<compile_context>
chip_gen: v7x
topology: tpu7x:2x2x1
jax: 0.10.0
libtpu: 0.0.40
codegen_flags: <defaults>
</compile_context>

<pallas_src>
import jax
import jax.numpy as jnp
from jax.experimental import pallas as pl
from jax.experimental.pallas import tpu as pltpu

BN_EPS = 1e-5
LEAKY_SLOPE = 0.2
TILE_M = 256                      # row tile; multiple of 128 -> fine on v5e/v6e/v7x
VMEM_LIMIT = 48 * 1024 * 1024     # under v7x's 64 MiB physical VMEM


def _round_up(x, m):
    return (x + m - 1) // m * m


def _pad2d(x, rows, cols):
    r, c = x.shape
    if r == rows and c == cols:
        return x
    return jnp.pad(x, ((0, rows - r), (0, cols - c)))


# ----------------------------- Pallas kernels ------------------------------

def _matmul_stats_kernel(p_ref, w_ref, y_ref, stats_ref):
    """y = p @ w (bf16 operands, f32 accumulate) + per-column sum / sum-of-squares.

    Grid: (M // tile_m,), marked "arbitrary".  `stats_ref` is a resident (2, C)
    accumulator: row 0 = sum, row 1 = sum of squares (zero rows from M-padding
    contribute nothing, so statistics are exact)."""
    i = pl.program_id(0)
    y = jnp.dot(p_ref[...], w_ref[...], preferred_element_type=jnp.float32)
    y_ref[...] = y

    @pl.when(i == 0)
    def _init():
        stats_ref[...] = jnp.zeros_like(stats_ref)

    s = jnp.sum(y, axis=0, keepdims=True)
    sq = jnp.sum(y * y, axis=0, keepdims=True)
    stats_ref[...] += jnp.concatenate([s, sq], axis=0)


def _bn_lrelu_kernel(y_ref, scale_ref, shift_ref, o_ref):
    """Per-channel affine (folded BatchNorm) + LeakyReLU(0.2), tiled over rows."""
    z = y_ref[...] * scale_ref[...] + shift_ref[...]
    o_ref[...] = jnp.where(z > 0, z, LEAKY_SLOPE * z).astype(o_ref.dtype)


def _matvec_tanh_kernel(w_ref, pT_ref, o_ref):
    """tanh(w_row @ patches^T) for the C_out == 1 final layer (lane-dense store)."""
    y = jnp.dot(w_ref[...], pT_ref[...], preferred_element_type=jnp.float32)
    o_ref[...] = jnp.tanh(y)


# ----------------------------- kernel wrappers ------------------------------

def matmul_with_stats(patches, w_mat):
    """Tiled (M, K) @ (K, C) with fused per-channel sum / sumsq accumulation."""
    M, K = patches.shape
    Kw, C = w_mat.shape
    assert K == Kw
    k_pad = _round_up(K, 128)
    tile_m = min(TILE_M, _round_up(M, 16))
    m_pad = _round_up(M, tile_m)
    n_tiles = m_pad // tile_m

    p = _pad2d(patches.astype(jnp.bfloat16), m_pad, k_pad)
    w = _pad2d(w_mat.astype(jnp.bfloat16), k_pad, C)

    y, stats = pl.pallas_call(
        _matmul_stats_kernel,
        out_shape=(jax.ShapeDtypeStruct((m_pad, C), jnp.float32),
                   jax.ShapeDtypeStruct((2, C), jnp.float32)),
        grid_spec=pltpu.PrefetchScalarGridSpec(
            num_scalar_prefetch=0,
            grid=(n_tiles,),
            in_specs=[
                pl.BlockSpec((tile_m, k_pad), lambda i: (i, 0)),
                pl.BlockSpec((k_pad, C), lambda i: (0, 0)),      # resident weight
            ],
            out_specs=(
                pl.BlockSpec((tile_m, C), lambda i: (i, 0)),
                pl.BlockSpec((2, C), lambda i: (0, 0)),          # resident stats acc
            ),
        ),
        compiler_params=pltpu.CompilerParams(
            dimension_semantics=("arbitrary",),
            vmem_limit_bytes=VMEM_LIMIT),
    )(p, w)
    return y[:M], stats[0], stats[1]


def bn_lrelu_apply(y, scale, shift, out_dtype=jnp.bfloat16):
    """Apply folded-BN affine + LeakyReLU, tiled over rows ("parallel" grid)."""
    M, C = y.shape
    tile_m = min(TILE_M, _round_up(M, 16))
    m_pad = _round_up(M, tile_m)
    n_tiles = m_pad // tile_m
    y_p = _pad2d(y, m_pad, C)

    out = pl.pallas_call(
        _bn_lrelu_kernel,
        out_shape=jax.ShapeDtypeStruct((m_pad, C), out_dtype),
        grid_spec=pltpu.PrefetchScalarGridSpec(
            num_scalar_prefetch=0,
            grid=(n_tiles,),
            in_specs=[
                pl.BlockSpec((tile_m, C), lambda i: (i, 0)),
                pl.BlockSpec((1, C), lambda i: (0, 0)),
                pl.BlockSpec((1, C), lambda i: (0, 0)),
            ],
            out_specs=pl.BlockSpec((tile_m, C), lambda i: (i, 0)),
        ),
        compiler_params=pltpu.CompilerParams(
            dimension_semantics=("parallel",),
            vmem_limit_bytes=VMEM_LIMIT),
    )(y_p, scale.reshape(1, C).astype(jnp.float32),
      shift.reshape(1, C).astype(jnp.float32))
    return out[:M]


def conv_matvec_tanh(patches, w_vec):
    """Final layer (C_out == 1): tanh(patches @ w) with a lane-dense output.

    Patches are fed transposed (K, M) so the kernel's natural output layout is
    (rows, TILE_M): full-width unmasked stores instead of a masked (M, 1) column."""
    M, K = patches.shape
    k_pad = _round_up(K, 128)
    tile_m = min(TILE_M, _round_up(M, 128))
    m_pad = _round_up(M, tile_m)
    n_tiles = m_pad // tile_m

    p_t = _pad2d(patches.astype(jnp.bfloat16), m_pad, k_pad).T      # (K, M)
    w_rows = jnp.zeros((16, k_pad), jnp.bfloat16).at[0, :K].set(
        w_vec.astype(jnp.bfloat16))

    out = pl.pallas_call(
        _matvec_tanh_kernel,
        out_shape=jax.ShapeDtypeStruct((16, m_pad), jnp.float32),
        grid_spec=pltpu.PrefetchScalarGridSpec(
            num_scalar_prefetch=0,
            grid=(n_tiles,),
            in_specs=[
                pl.BlockSpec((16, k_pad), lambda i: (0, 0)),        # resident weight row
                pl.BlockSpec((k_pad, tile_m), lambda i: (0, i)),
            ],
            out_specs=pl.BlockSpec((16, tile_m), lambda i: (0, i)),
        ),
        compiler_params=pltpu.CompilerParams(
            dimension_semantics=("parallel",),
            vmem_limit_bytes=VMEM_LIMIT),
    )(w_rows, p_t)
    return out[0, :M]


# ------------------------------ plain-JAX glue ------------------------------

def _bn_scale_shift(col_sum, col_sumsq, count, gamma, beta):
    """Fold training-mode (biased) batch statistics into per-channel scale/shift."""
    mean = col_sum / count
    var = jnp.maximum(col_sumsq / count - mean * mean, 0.0)   # clamp f32 cancellation
    inv = jax.lax.rsqrt(var + BN_EPS)
    scale = gamma * inv
    shift = beta - mean * scale
    return scale, shift


def conv_transpose_im2col(x_nhwc, weight, stride, padding):
    """ConvTranspose2d(x, weight, stride, padding, bias=False) lowered to
    (patch matrix, weight matrix).  `weight` is PyTorch layout (C_in, C_out, kh, kw).
    # TODO(synk): decompose the stride-2 ConvT into 4 stride-phase sub-convolutions
    # so the zero-dilated rows (75% structural zeros) are never materialized in HBM.
    """
    N, H, W, Cin = x_nhwc.shape
    wCin, Cout, kh, kw = weight.shape
    assert wCin == Cin
    Hd = (H - 1) * stride + 1
    Wd = (W - 1) * stride + 1
    xd = jnp.zeros((N, Hd, Wd, Cin), x_nhwc.dtype)
    xd = xd.at[:, ::stride, ::stride, :].set(x_nhwc)
    ph, pw = kh - 1 - padding, kw - 1 - padding
    xp = jnp.pad(xd, ((0, 0), (ph, ph), (pw, pw), (0, 0)))
    Hout = (H - 1) * stride - 2 * padding + kh
    Wout = (W - 1) * stride - 2 * padding + kw
    cols = []
    for i in range(kh):
        for j in range(kw):
            cols.append(xp[:, i:i + Hout, j:j + Wout, :])       # (N,Hout,Wout,Cin)
    patches = jnp.stack(cols, axis=3)                           # (N,Hout,Wout,kh*kw,Cin)
    patches = patches.reshape(N * Hout * Wout, kh * kw * Cin)
    w_flip = weight[:, :, ::-1, ::-1]                           # (Cin,Cout,kh,kw)
    w_mat = jnp.transpose(w_flip, (2, 3, 0, 1)).reshape(kh * kw * Cin, Cout)
    return patches, w_mat, (N, Hout, Wout, Cout)


# -------------------------------- Generator ---------------------------------

def init_params(key, outp_c=1, inp_c=100, ngf=32):
    k1, k2, k3, k4 = jax.random.split(key, 4)
    std = 0.02
    return {
        # ConvTranspose2d weights: (C_in, C_out, kh, kw), bias=False
        "w1": std * jax.random.normal(k1, (inp_c, ngf * 4, 4, 4), jnp.float32),
        "w2": std * jax.random.normal(k2, (ngf * 4, ngf * 2, 3, 3), jnp.float32),
        "w3": std * jax.random.normal(k3, (ngf * 2, ngf, 4, 4), jnp.float32),
        "w4": std * jax.random.normal(k4, (ngf, outp_c, 4, 4), jnp.float32),
        # BatchNorm2d default init: gamma=1, beta=0 (training-mode batch stats)
        "g1": jnp.ones((ngf * 4,), jnp.float32), "b1": jnp.zeros((ngf * 4,), jnp.float32),
        "g2": jnp.ones((ngf * 2,), jnp.float32), "b2": jnp.zeros((ngf * 2,), jnp.float32),
        "g3": jnp.ones((ngf,), jnp.float32), "b3": jnp.zeros((ngf,), jnp.float32),
    }


def generator_forward(x_nchw, params):
    N = x_nchw.shape[0]

    # ---- layer 1: ConvT(inp_c, 4ngf, k=4, s=1, p=0) on a 1x1 input is exactly
    #      a dense matmul x(N, Cin) @ W(Cin, kh*kw*Cout) -- no im2col, no zeros.
    w1 = params["w1"]                                   # (Cin, Cout, 4, 4)
    Cin, C1, kh, kw = w1.shape
    x2 = x_nchw.reshape(N, Cin).astype(jnp.float32)
    w1m = jnp.transpose(w1, (0, 2, 3, 1)).reshape(Cin, kh * kw * C1)
    y, s, sq = matmul_with_stats(x2, w1m)               # y: (N, kh*kw*C1) f32
    # fold the 4x4 spatial taps into the batch-stat (row) dimension
    y = y.reshape(N * kh * kw, C1)
    s = s.reshape(kh * kw, C1).sum(axis=0)
    sq = sq.reshape(kh * kw, C1).sum(axis=0)
    scale, shift = _bn_scale_shift(s, sq, N * kh * kw, params["g1"], params["b1"])
    a = bn_lrelu_apply(y, scale, shift).reshape(N, kh, kw, C1)   # NHWC, bf16

    # ---- layer 2: ConvT(4ngf, 2ngf, k=3, s=2, p=1) + BN + LeakyReLU
    p, wm, (N_, H, W, C) = conv_transpose_im2col(a, params["w2"], stride=2, padding=1)
    y, s, sq = matmul_with_stats(p, wm)
    scale, shift = _bn_scale_shift(s, sq, y.shape[0], params["g2"], params["b2"])
    a = bn_lrelu_apply(y, scale, shift).reshape(N_, H, W, C)

    # ---- layer 3: ConvT(2ngf, ngf, k=4, s=2, p=1) + BN + LeakyReLU
    p, wm, (N_, H, W, C) = conv_transpose_im2col(a, params["w3"], stride=2, padding=1)
    y, s, sq = matmul_with_stats(p, wm)
    scale, shift = _bn_scale_shift(s, sq, y.shape[0], params["g3"], params["b3"])
    a = bn_lrelu_apply(y, scale, shift).reshape(N_, H, W, C)

    # ---- layer 4: ConvT(ngf, outp_c=1, k=4, s=2, p=1) + Tanh (lane-dense store)
    p, wm, (N_, H, W, C) = conv_transpose_im2col(a, params["w4"], stride=2, padding=1)
    assert C == 1, "final layer kernel is specialized for C_out == 1"
    out = conv_matvec_tanh(p, wm[:, 0]).reshape(N_, H, W, 1)

    # NHWC -> NCHW to match the PyTorch output convention
    return jnp.transpose(out, (0, 3, 1, 2))


if __name__ == "__main__":
    key = jax.random.PRNGKey(0)
    kx, kp = jax.random.split(key)

    N, inp_c, ngf, outp_c = 2, 100, 32, 1
    x = jax.random.normal(kx, (N, inp_c, 1, 1), jnp.float32)   # latent noise, NCHW
    params = init_params(kp, outp_c=outp_c, inp_c=inp_c, ngf=ngf)

    out = jax.jit(generator_forward)(x, params)
    out = jax.block_until_ready(out)

    assert out.shape == (N, outp_c, 28, 28), out.shape
    assert bool(jnp.all(jnp.isfinite(out)))
    assert bool(jnp.all(jnp.abs(out) <= 1.0 + 1e-6))           # tanh range
    print("KERNEL_OK")
</pallas_src>

<mosaic_0001>
module attributes {stable_mosaic.version = 11 : i64} {
  func.func @_matmul_stats_kernel(%arg0: i32, %arg1: memref<16x128xbf16, #tpu.memory_space<vmem>>, %arg2: memref<128x2048xbf16, #tpu.memory_space<vmem>>, %arg3: memref<16x2048xf32, #tpu.memory_space<vmem>>, %arg4: memref<2x2048xf32, #tpu.memory_space<vmem>>) attributes {dimension_semantics = [#tpu.dimension_semantics<arbitrary>], iteration_bounds = array<i64: 1>, scalar_prefetch = 0 : i64, scratch_operands = 0 : i64, tpu.core_type = #tpu.core_type<tc>, window_params = [{transform_indices = @transform_0, window_bounds = array<i64: 16, 128>}, {pipeline_mode = #tpu.pipeline_mode<synchronous>, transform_indices = @transform_1, window_bounds = array<i64: 128, 2048>}, {transform_indices = @transform_2, window_bounds = array<i64: 16, 2048>}, {pipeline_mode = #tpu.pipeline_mode<synchronous>, transform_indices = @transform_3, window_bounds = array<i64: 2, 2048>}]} {
    %c0 = arith.constant 0 : index
    %c0_0 = arith.constant 0 : index
    %0 = vector.load %arg1[%c0, %c0_0] : memref<16x128xbf16, #tpu.memory_space<vmem>>, vector<16x128xbf16>
    %c0_1 = arith.constant 0 : index
    %c0_2 = arith.constant 0 : index
    %1 = vector.load %arg2[%c0_1, %c0_2] : memref<128x2048xbf16, #tpu.memory_space<vmem>>, vector<128x2048xbf16>
    %cst = arith.constant dense<0.000000e+00> : vector<16x2048xf32>
    %2 = tpu.matmul %0, %1, %cst {dimension_numbers = #tpu.dot_dimension_numbers<[1], [0], [0], [1], [0, 0, 1, 1], [], []>} : vector<16x128xbf16>, vector<128x2048xbf16>, vector<16x2048xf32> -> vector<16x2048xf32>
    %c0_3 = arith.constant 0 : index
    %c0_4 = arith.constant 0 : index
    %3 = vector.load %arg3[%c0_3, %c0_4] : memref<16x2048xf32, #tpu.memory_space<vmem>>, vector<16x2048xf32>
    tpu.vector_store %arg3[%c0_3, %c0_4], %2 {strides = array<i32>} : memref<16x2048xf32, #tpu.memory_space<vmem>>, vector<16x2048xf32>,
    %c0_i32 = arith.constant 0 : i32
    %4 = arith.cmpi eq, %arg0, %c0_i32 : i32
    %5 = arith.extui %4 : i1 to i32
    %c0_i32_5 = arith.constant 0 : i32
    %6 = arith.cmpi ne, %5, %c0_i32_5 : i32
    scf.if %6 {
      %cst_12 = arith.constant 0.000000e+00 : f32
      %16 = vector.broadcast %cst_12 : f32 to vector<2x2048xf32>
      %c0_13 = arith.constant 0 : index
      %c0_14 = arith.constant 0 : index
      %17 = vector.load %arg4[%c0_13, %c0_14] : memref<2x2048xf32, #tpu.memory_space<vmem>>, vector<2x2048xf32>
      tpu.vector_store %arg4[%c0_13, %c0_14], %16 {strides = array<i32>} : memref<2x2048xf32, #tpu.memory_space<vmem>>, vector<2x2048xf32>,
    } else {
    }
    %cst_6 = arith.constant dense<0.000000e+00> : vector<2048xf32>
    %7 = vector.multi_reduction <add>, %2, %cst_6 [0] : vector<16x2048xf32> to vector<2048xf32>
    %8 = vector.shape_cast %7 : vector<2048xf32> to vector<1x2048xf32>
    %9 = arith.mulf %2, %2 : vector<16x2048xf32>
    %cst_7 = arith.constant dense<0.000000e+00> : vector<2048xf32>
    %10 = vector.multi_reduction <add>, %9, %cst_7 [0] : vector<16x2048xf32> to vector<2048xf32>
    %11 = vector.shape_cast %10 : vector<2048xf32> to vector<1x2048xf32>
    %c0_8 = arith.constant 0 : index
    %c0_9 = arith.constant 0 : index
    %12 = vector.load %arg4[%c0_8, %c0_9] : memref<2x2048xf32, #tpu.memory_space<vmem>>, vector<2x2048xf32>
    %13 = tpu.concatenate %8, %11 in 0 : vector<1x2048xf32>, vector<1x2048xf32> -> vector<2x2048xf32>
    %14 = arith.addf %12, %13 : vector<2x2048xf32>
    %c0_10 = arith.constant 0 : index
    %c0_11 = arith.constant 0 : index
    %15 = vector.load %arg4[%c0_10, %c0_11] : memref<2x2048xf32, #tpu.memory_space<vmem>>, vector<2x2048xf32>
    tpu.vector_store %arg4[%c0_10, %c0_11], %14 {strides = array<i32>} : memref<2x2048xf32, #tpu.memory_space<vmem>>, vector<2x2048xf32>,
    return
  }
  func.func @transform_0(%arg0: i32) -> (i32, i32) {
    %c0_i32 = arith.constant 0 : i32
    %c0_i32_0 = arith.constant 0 : i32
    return %arg0, %c0_i32 : i32, i32
  }
  func.func @transform_1(%arg0: i32) -> (i32, i32) {
    %c0_i32 = arith.constant 0 : i32
    %c0_i32_0 = arith.constant 0 : i32
    %c0_i32_1 = arith.constant 0 : i32
    return %c0_i32, %c0_i32_0 : i32, i32
  }
  func.func @transform_2(%arg0: i32) -> (i32, i32) {
    %c0_i32 = arith.constant 0 : i32
    %c0_i32_0 = arith.constant 0 : i32
    return %arg0, %c0_i32 : i32, i32
  }
  func.func @transform_3(%arg0: i32) -> (i32, i32) {
    %c0_i32 = arith.constant 0 : i32
    %c0_i32_0 = arith.constant 0 : i32
    %c0_i32_1 = arith.constant 0 : i32
    return %c0_i32, %c0_i32_0 : i32, i32
  }
}

module attributes {stable_mosaic.version = 11 : i64} {
  func.func @_bn_lrelu_kernel(%arg0: i32, %arg1: memref<32x128xf32, #tpu.memory_space<vmem>>, %arg2: memref<1x128xf32, #tpu.memory_space<vmem>>, %arg3: memref<1x128xf32, #tpu.memory_space<vmem>>, %arg4: memref<32x128xbf16, #tpu.memory_space<vmem>>) attributes {dimension_semantics = [#tpu.dimension_semantics<parallel>], iteration_bounds = array<i64: 1>, scalar_prefetch = 0 : i64, scratch_operands = 0 : i64, tpu.core_type = #tpu.core_type<tc>, window_params = [{transform_indices = @transform_0, window_bounds = array<i64: 32, 128>}, {pipeline_mode = #tpu.pipeline_mode<synchronous>, transform_indices = @transform_1, window_bounds = array<i64: 1, 128>}, {pipeline_mode = #tpu.pipeline_mode<synchronous>, transform_indices = @transform_2, window_bounds = array<i64: 1, 128>}, {transform_indices = @transform_3, window_bounds = array<i64: 32, 128>}]} {
    %c0 = arith.constant 0 : index
    %c0_0 = arith.constant 0 : index
    %0 = vector.load %arg1[%c0, %c0_0] : memref<32x128xf32, #tpu.memory_space<vmem>>, vector<32x128xf32>
    %c0_1 = arith.constant 0 : index
    %c0_2 = arith.constant 0 : index
    %1 = vector.load %arg2[%c0_1, %c0_2] : memref<1x128xf32, #tpu.memory_space<vmem>>, vector<1x128xf32>
    %2 = vector.broadcast %1 : vector<1x128xf32> to vector<32x128xf32>
    %3 = arith.mulf %0, %2 : vector<32x128xf32>
    %c0_3 = arith.constant 0 : index
    %c0_4 = arith.constant 0 : index
    %4 = vector.load %arg3[%c0_3, %c0_4] : memref<1x128xf32, #tpu.memory_space<vmem>>, vector<1x128xf32>
    %5 = vector.broadcast %4 : vector<1x128xf32> to vector<32x128xf32>
    %6 = arith.addf %3, %5 : vector<32x128xf32>
    %cst = arith.constant 0.000000e+00 : f32
    %7 = vector.broadcast %cst : f32 to vector<32x128xf32>
    %8 = arith.cmpf ogt, %6, %7 : vector<32x128xf32>
    %cst_5 = arith.constant 2.000000e-01 : f32
    %9 = vector.broadcast %cst_5 : f32 to vector<32x128xf32>
    %10 = arith.mulf %9, %6 : vector<32x128xf32>
    %11 = arith.select %8, %6, %10 : vector<32x128xi1>, vector<32x128xf32>
    %12 = arith.truncf %11 : vector<32x128xf32> to vector<32x128xbf16>
    %c0_6 = arith.constant 0 : index
    %c0_7 = arith.constant 0 : index
    %13 = vector.load %arg4[%c0_6, %c0_7] : memref<32x128xbf16, #tpu.memory_space<vmem>>, vector<32x128xbf16>
    tpu.vector_store %arg4[%c0_6, %c0_7], %12 {strides = array<i32>} : memref<32x128xbf16, #tpu.memory_space<vmem>>, vector<32x128xbf16>,
    return
  }
  func.func @transform_0(%arg0: i32) -> (i32, i32) {
    %c0_i32 = arith.constant 0 : i32
    %c0_i32_0 = arith.constant 0 : i32
    return %arg0, %c0_i32 : i32, i32
  }
  func.func @transform_1(%arg0: i32) -> (i32, i32) {
    %c0_i32 = arith.constant 0 : i32
    %c0_i32_0 = arith.constant 0 : i32
    %c0_i32_1 = arith.constant 0 : i32
    return %c0_i32, %c0_i32_0 : i32, i32
  }
  func.func @transform_2(%arg0: i32) -> (i32, i32) {
    %c0_i32 = arith.constant 0 : i32
    %c0_i32_0 = arith.constant 0 : i32
    %c0_i32_1 = arith.constant 0 : i32
    return %c0_i32, %c0_i32_0 : i32, i32
  }
  func.func @transform_3(%arg0: i32) -> (i32, i32) {
    %c0_i32 = arith.constant 0 : i32
    %c0_i32_0 = arith.constant 0 : i32
    return %arg0, %c0_i32 : i32, i32
  }
}

module attributes {stable_mosaic.version = 11 : i64} {
  func.func @_matmul_stats_kernel(%arg0: i32, %arg1: memref<112x1152xbf16, #tpu.memory_space<vmem>>, %arg2: memref<1152x64xbf16, #tpu.memory_space<vmem>>, %arg3: memref<112x64xf32, #tpu.memory_space<vmem>>, %arg4: memref<2x64xf32, #tpu.memory_space<vmem>>) attributes {dimension_semantics = [#tpu.dimension_semantics<arbitrary>], iteration_bounds = array<i64: 1>, scalar_prefetch = 0 : i64, scratch_operands = 0 : i64, tpu.core_type = #tpu.core_type<tc>, window_params = [{transform_indices = @transform_0, window_bounds = array<i64: 112, 1152>}, {pipeline_mode = #tpu.pipeline_mode<synchronous>, transform_indices = @transform_1, window_bounds = array<i64: 1152, 64>}, {transform_indices = @transform_2, window_bounds = array<i64: 112, 64>}, {pipeline_mode = #tpu.pipeline_mode<synchronous>, transform_indices = @transform_3, window_bounds = array<i64: 2, 64>}]} {
    %c0 = arith.constant 0 : index
    %c0_0 = arith.constant 0 : index
    %0 = vector.load %arg1[%c0, %c0_0] : memref<112x1152xbf16, #tpu.memory_space<vmem>>, vector<112x1152xbf16>
    %c0_1 = arith.constant 0 : index
    %c0_2 = arith.constant 0 : index
    %1 = vector.load %arg2[%c0_1, %c0_2] : memref<1152x64xbf16, #tpu.memory_space<vmem>>, vector<1152x64xbf16>
    %cst = arith.constant dense<0.000000e+00> : vector<112x64xf32>
    %2 = tpu.matmul %0, %1, %cst {dimension_numbers = #tpu.dot_dimension_numbers<[1], [0], [0], [1], [0, 0, 1, 1], [], []>} : vector<112x1152xbf16>, vector<1152x64xbf16>, vector<112x64xf32> -> vector<112x64xf32>
    %c0_3 = arith.constant 0 : index
    %c0_4 = arith.constant 0 : index
    %3 = vector.load %arg3[%c0_3, %c0_4] : memref<112x64xf32, #tpu.memory_space<vmem>>, vector<112x64xf32>
    tpu.vector_store %arg3[%c0_3, %c0_4], %2 {strides = array<i32>} : memref<112x64xf32, #tpu.memory_space<vmem>>, vector<112x64xf32>,
    %c0_i32 = arith.constant 0 : i32
    %4 = arith.cmpi eq, %arg0, %c0_i32 : i32
    %5 = arith.extui %4 : i1 to i32
    %c0_i32_5 = arith.constant 0 : i32
    %6 = arith.cmpi ne, %5, %c0_i32_5 : i32
    scf.if %6 {
      %cst_12 = arith.constant 0.000000e+00 : f32
      %16 = vector.broadcast %cst_12 : f32 to vector<2x64xf32>
      %c0_13 = arith.constant 0 : index
      %c0_14 = arith.constant 0 : index
      %17 = vector.load %arg4[%c0_13, %c0_14] : memref<2x64xf32, #tpu.memory_space<vmem>>, vector<2x64xf32>
      tpu.vector_store %arg4[%c0_13, %c0_14], %16 {strides = array<i32>} : memref<2x64xf32, #tpu.memory_space<vmem>>, vector<2x64xf32>,
    } else {
    }
    %cst_6 = arith.constant dense<0.000000e+00> : vector<64xf32>
    %7 = vector.multi_reduction <add>, %2, %cst_6 [0] : vector<112x64xf32> to vector<64xf32>
    %8 = vector.shape_cast %7 : vector<64xf32> to vector<1x64xf32>
    %9 = arith.mulf %2, %2 : vector<112x64xf32>
    %cst_7 = arith.constant dense<0.000000e+00> : vector<64xf32>
    %10 = vector.multi_reduction <add>, %9, %cst_7 [0] : vector<112x64xf32> to vector<64xf32>
    %11 = vector.shape_cast %10 : vector<64xf32> to vector<1x64xf32>
    %c0_8 = arith.constant 0 : index
    %c0_9 = arith.constant 0 : index
    %12 = vector.load %arg4[%c0_8, %c0_9] : memref<2x64xf32, #tpu.memory_space<vmem>>, vector<2x64xf32>
    %13 = tpu.concatenate %8, %11 in 0 : vector<1x64xf32>, vector<1x64xf32> -> vector<2x64xf32>
    %14 = arith.addf %12, %13 : vector<2x64xf32>
    %c0_10 = arith.constant 0 : index
    %c0_11 = arith.constant 0 : index
    %15 = vector.load %arg4[%c0_10, %c0_11] : memref<2x64xf32, #tpu.memory_space<vmem>>, vector<2x64xf32>
    tpu.vector_store %arg4[%c0_10, %c0_11], %14 {strides = array<i32>} : memref<2x64xf32, #tpu.memory_space<vmem>>, vector<2x64xf32>,
    return
  }
  func.func @transform_0(%arg0: i32) -> (i32, i32) {
    %c0_i32 = arith.constant 0 : i32
    %c0_i32_0 = arith.constant 0 : i32
    return %arg0, %c0_i32 : i32, i32
  }
  func.func @transform_1(%arg0: i32) -> (i32, i32) {
    %c0_i32 = arith.constant 0 : i32
    %c0_i32_0 = arith.constant 0 : i32
    %c0_i32_1 = arith.constant 0 : i32
    return %c0_i32, %c0_i32_0 : i32, i32
  }
  func.func @transform_2(%arg0: i32) -> (i32, i32) {
    %c0_i32 = arith.constant 0 : i32
    %c0_i32_0 = arith.constant 0 : i32
    return %arg0, %c0_i32 : i32, i32
  }
  func.func @transform_3(%arg0: i32) -> (i32, i32) {
    %c0_i32 = arith.constant 0 : i32
    %c0_i32_0 = arith.constant 0 : i32
    %c0_i32_1 = arith.constant 0 : i32
    return %c0_i32, %c0_i32_0 : i32, i32
  }
}

module attributes {stable_mosaic.version = 11 : i64} {
  func.func @_bn_lrelu_kernel(%arg0: i32, %arg1: memref<112x64xf32, #tpu.memory_space<vmem>>, %arg2: memref<1x64xf32, #tpu.memory_space<vmem>>, %arg3: memref<1x64xf32, #tpu.memory_space<vmem>>, %arg4: memref<112x64xbf16, #tpu.memory_space<vmem>>) attributes {dimension_semantics = [#tpu.dimension_semantics<parallel>], iteration_bounds = array<i64: 1>, scalar_prefetch = 0 : i64, scratch_operands = 0 : i64, tpu.core_type = #tpu.core_type<tc>, window_params = [{transform_indices = @transform_0, window_bounds = array<i64: 112, 64>}, {pipeline_mode = #tpu.pipeline_mode<synchronous>, transform_indices = @transform_1, window_bounds = array<i64: 1, 64>}, {pipeline_mode = #tpu.pipeline_mode<synchronous>, transform_indices = @transform_2, window_bounds = array<i64: 1, 64>}, {transform_indices = @transform_3, window_bounds = array<i64: 112, 64>}]} {
    %c0 = arith.constant 0 : index
    %c0_0 = arith.constant 0 : index
    %0 = vector.load %arg1[%c0, %c0_0] : memref<112x64xf32, #tpu.memory_space<vmem>>, vector<112x64xf32>
    %c0_1 = arith.constant 0 : index
    %c0_2 = arith.constant 0 : index
    %1 = vector.load %arg2[%c0_1, %c0_2] : memref<1x64xf32, #tpu.memory_space<vmem>>, vector<1x64xf32>
    %2 = vector.broadcast %1 : vector<1x64xf32> to vector<112x64xf32>
    %3 = arith.mulf %0, %2 : vector<112x64xf32>
    %c0_3 = arith.constant 0 : index
    %c0_4 = arith.constant 0 : index
    %4 = vector.load %arg3[%c0_3, %c0_4] : memref<1x64xf32, #tpu.memory_space<vmem>>, vector<1x64xf32>
    %5 = vector.broadcast %4 : vector<1x64xf32> to vector<112x64xf32>
    %6 = arith.addf %3, %5 : vector<112x64xf32>
    %cst = arith.constant 0.000000e+00 : f32
    %7 = vector.broadcast %cst : f32 to vector<112x64xf32>
    %8 = arith.cmpf ogt, %6, %7 : vector<112x64xf32>
    %cst_5 = arith.constant 2.000000e-01 : f32
    %9 = vector.broadcast %cst_5 : f32 to vector<112x64xf32>
    %10 = arith.mulf %9, %6 : vector<112x64xf32>
    %11 = arith.select %8, %6, %10 : vector<112x64xi1>, vector<112x64xf32>
    %12 = arith.truncf %11 : vector<112x64xf32> to vector<112x64xbf16>
    %c0_6 = arith.constant 0 : index
    %c0_7 = arith.constant 0 : index
    %13 = vector.load %arg4[%c0_6, %c0_7] : memref<112x64xbf16, #tpu.memory_space<vmem>>, vector<112x64xbf16>
    tpu.vector_store %arg4[%c0_6, %c0_7], %12 {strides = array<i32>} : memref<112x64xbf16, #tpu.memory_space<vmem>>, vector<112x64xbf16>,
    return
  }
  func.func @transform_0(%arg0: i32) -> (i32, i32) {
    %c0_i32 = arith.constant 0 : i32
    %c0_i32_0 = arith.constant 0 : i32
    return %arg0, %c0_i32 : i32, i32
  }
  func.func @transform_1(%arg0: i32) -> (i32, i32) {
    %c0_i32 = arith.constant 0 : i32
    %c0_i32_0 = arith.constant 0 : i32
    %c0_i32_1 = arith.constant 0 : i32
    return %c0_i32, %c0_i32_0 : i32, i32
  }
  func.func @transform_2(%arg0: i32) -> (i32, i32) {
    %c0_i32 = arith.constant 0 : i32
    %c0_i32_0 = arith.constant 0 : i32
    %c0_i32_1 = arith.constant 0 : i32
    return %c0_i32, %c0_i32_0 : i32, i32
  }
  func.func @transform_3(%arg0: i32) -> (i32, i32) {
    %c0_i32 = arith.constant 0 : i32
    %c0_i32_0 = arith.constant 0 : i32
    return %arg0, %c0_i32 : i32, i32
  }
}

module attributes {stable_mosaic.version = 11 : i64} {
  func.func @_matmul_stats_kernel(%arg0: i32, %arg1: memref<256x1024xbf16, #tpu.memory_space<vmem>>, %arg2: memref<1024x32xbf16, #tpu.memory_space<vmem>>, %arg3: memref<256x32xf32, #tpu.memory_space<vmem>>, %arg4: memref<2x32xf32, #tpu.memory_space<vmem>>) attributes {dimension_semantics = [#tpu.dimension_semantics<arbitrary>], iteration_bounds = array<i64: 2>, scalar_prefetch = 0 : i64, scratch_operands = 0 : i64, tpu.core_type = #tpu.core_type<tc>, window_params = [{transform_indices = @transform_0, window_bounds = array<i64: 256, 1024>}, {pipeline_mode = #tpu.pipeline_mode<synchronous>, transform_indices = @transform_1, window_bounds = array<i64: 1024, 32>}, {transform_indices = @transform_2, window_bounds = array<i64: 256, 32>}, {pipeline_mode = #tpu.pipeline_mode<synchronous>, transform_indices = @transform_3, window_bounds = array<i64: 2, 32>}]} {
    %c0 = arith.constant 0 : index
    %c0_0 = arith.constant 0 : index
    %0 = vector.load %arg1[%c0, %c0_0] : memref<256x1024xbf16, #tpu.memory_space<vmem>>, vector<256x1024xbf16>
    %c0_1 = arith.constant 0 : index
    %c0_2 = arith.constant 0 : index
    %1 = vector.load %arg2[%c0_1, %c0_2] : memref<1024x32xbf16, #tpu.memory_space<vmem>>, vector<1024x32xbf16>
    %cst = arith.constant dense<0.000000e+00> : vector<256x32xf32>
    %2 = tpu.matmul %0, %1, %cst {dimension_numbers = #tpu.dot_dimension_numbers<[1], [0], [0], [1], [0, 0, 1, 1], [], []>} : vector<256x1024xbf16>, vector<1024x32xbf16>, vector<256x32xf32> -> vector<256x32xf32>
    %c0_3 = arith.constant 0 : index
    %c0_4 = arith.constant 0 : index
    %3 = vector.load %arg3[%c0_3, %c0_4] : memref<256x32xf32, #tpu.memory_space<vmem>>, vector<256x32xf32>
    tpu.vector_store %arg3[%c0_3, %c0_4], %2 {strides = array<i32>} : memref<256x32xf32, #tpu.memory_space<vmem>>, vector<256x32xf32>,
    %c0_i32 = arith.constant 0 : i32
    %4 = arith.cmpi eq, %arg0, %c0_i32 : i32
    %5 = arith.extui %4 : i1 to i32
    %c0_i32_5 = arith.constant 0 : i32
    %6 = arith.cmpi ne, %5, %c0_i32_5 : i32
    scf.if %6 {
      %cst_12 = arith.constant 0.000000e+00 : f32
      %16 = vector.broadcast %cst_12 : f32 to vector<2x32xf32>
      %c0_13 = arith.constant 0 : index
      %c0_14 = arith.constant 0 : index
      %17 = vector.load %arg4[%c0_13, %c0_14] : memref<2x32xf32, #tpu.memory_space<vmem>>, vector<2x32xf32>
      tpu.vector_store %arg4[%c0_13, %c0_14], %16 {strides = array<i32>} : memref<2x32xf32, #tpu.memory_space<vmem>>, vector<2x32xf32>,
    } else {
    }
    %cst_6 = arith.constant dense<0.000000e+00> : vector<32xf32>
    %7 = vector.multi_reduction <add>, %2, %cst_6 [0] : vector<256x32xf32> to vector<32xf32>
    %8 = vector.shape_cast %7 : vector<32xf32> to vector<1x32xf32>
    %9 = arith.mulf %2, %2 : vector<256x32xf32>
    %cst_7 = arith.constant dense<0.000000e+00> : vector<32xf32>
    %10 = vector.multi_reduction <add>, %9, %cst_7 [0] : vector<256x32xf32> to vector<32xf32>
    %11 = vector.shape_cast %10 : vector<32xf32> to vector<1x32xf32>
    %c0_8 = arith.constant 0 : index
    %c0_9 = arith.constant 0 : index
    %12 = vector.load %arg4[%c0_8, %c0_9] : memref<2x32xf32, #tpu.memory_space<vmem>>, vector<2x32xf32>
    %13 = tpu.concatenate %8, %11 in 0 : vector<1x32xf32>, vector<1x32xf32> -> vector<2x32xf32>
    %14 = arith.addf %12, %13 : vector<2x32xf32>
    %c0_10 = arith.constant 0 : index
    %c0_11 = arith.constant 0 : index
    %15 = vector.load %arg4[%c0_10, %c0_11] : memref<2x32xf32, #tpu.memory_space<vmem>>, vector<2x32xf32>
    tpu.vector_store %arg4[%c0_10, %c0_11], %14 {strides = array<i32>} : memref<2x32xf32, #tpu.memory_space<vmem>>, vector<2x32xf32>,
    return
  }
  func.func @transform_0(%arg0: i32) -> (i32, i32) {
    %c0_i32 = arith.constant 0 : i32
    %c0_i32_0 = arith.constant 0 : i32
    return %arg0, %c0_i32 : i32, i32
  }
  func.func @transform_1(%arg0: i32) -> (i32, i32) {
    %c0_i32 = arith.constant 0 : i32
    %c0_i32_0 = arith.constant 0 : i32
    %c0_i32_1 = arith.constant 0 : i32
    return %c0_i32, %c0_i32_0 : i32, i32
  }
  func.func @transform_2(%arg0: i32) -> (i32, i32) {
    %c0_i32 = arith.constant 0 : i32
    %c0_i32_0 = arith.constant 0 : i32
    return %arg0, %c0_i32 : i32, i32
  }
  func.func @transform_3(%arg0: i32) -> (i32, i32) {
    %c0_i32 = arith.constant 0 : i32
    %c0_i32_0 = arith.constant 0 : i32
    %c0_i32_1 = arith.constant 0 : i32
    return %c0_i32, %c0_i32_0 : i32, i32
  }
}

module attributes {stable_mosaic.version = 11 : i64} {
  func.func @_bn_lrelu_kernel(%arg0: i32, %arg1: memref<256x32xf32, #tpu.memory_space<vmem>>, %arg2: memref<1x32xf32, #tpu.memory_space<vmem>>, %arg3: memref<1x32xf32, #tpu.memory_space<vmem>>, %arg4: memref<256x32xbf16, #tpu.memory_space<vmem>>) attributes {dimension_semantics = [#tpu.dimension_semantics<parallel>], iteration_bounds = array<i64: 2>, scalar_prefetch = 0 : i64, scratch_operands = 0 : i64, tpu.core_type = #tpu.core_type<tc>, window_params = [{transform_indices = @transform_0, window_bounds = array<i64: 256, 32>}, {pipeline_mode = #tpu.pipeline_mode<synchronous>, transform_indices = @transform_1, window_bounds = array<i64: 1, 32>}, {pipeline_mode = #tpu.pipeline_mode<synchronous>, transform_indices = @transform_2, window_bounds = array<i64: 1, 32>}, {transform_indices = @transform_3, window_bounds = array<i64: 256, 32>}]} {
    %c0 = arith.constant 0 : index
    %c0_0 = arith.constant 0 : index
    %0 = vector.load %arg1[%c0, %c0_0] : memref<256x32xf32, #tpu.memory_space<vmem>>, vector<256x32xf32>
    %c0_1 = arith.constant 0 : index
    %c0_2 = arith.constant 0 : index
    %1 = vector.load %arg2[%c0_1, %c0_2] : memref<1x32xf32, #tpu.memory_space<vmem>>, vector<1x32xf32>
    %2 = vector.broadcast %1 : vector<1x32xf32> to vector<256x32xf32>
    %3 = arith.mulf %0, %2 : vector<256x32xf32>
    %c0_3 = arith.constant 0 : index
    %c0_4 = arith.constant 0 : index
    %4 = vector.load %arg3[%c0_3, %c0_4] : memref<1x32xf32, #tpu.memory_space<vmem>>, vector<1x32xf32>
    %5 = vector.broadcast %4 : vector<1x32xf32> to vector<256x32xf32>
    %6 = arith.addf %3, %5 : vector<256x32xf32>
    %cst = arith.constant 0.000000e+00 : f32
    %7 = vector.broadcast %cst : f32 to vector<256x32xf32>
    %8 = arith.cmpf ogt, %6, %7 : vector<256x32xf32>
    %cst_5 = arith.constant 2.000000e-01 : f32
    %9 = vector.broadcast %cst_5 : f32 to vector<256x32xf32>
    %10 = arith.mulf %9, %6 : vector<256x32xf32>
    %11 = arith.select %8, %6, %10 : vector<256x32xi1>, vector<256x32xf32>
    %12 = arith.truncf %11 : vector<256x32xf32> to vector<256x32xbf16>
    %c0_6 = arith.constant 0 : index
    %c0_7 = arith.constant 0 : index
    %13 = vector.load %arg4[%c0_6, %c0_7] : memref<256x32xbf16, #tpu.memory_space<vmem>>, vector<256x32xbf16>
    tpu.vector_store %arg4[%c0_6, %c0_7], %12 {strides = array<i32>} : memref<256x32xbf16, #tpu.memory_space<vmem>>, vector<256x32xbf16>,
    return
  }
  func.func @transform_0(%arg0: i32) -> (i32, i32) {
    %c0_i32 = arith.constant 0 : i32
    %c0_i32_0 = arith.constant 0 : i32
    return %arg0, %c0_i32 : i32, i32
  }
  func.func @transform_1(%arg0: i32) -> (i32, i32) {
    %c0_i32 = arith.constant 0 : i32
    %c0_i32_0 = arith.constant 0 : i32
    %c0_i32_1 = arith.constant 0 : i32
    return %c0_i32, %c0_i32_0 : i32, i32
  }
  func.func @transform_2(%arg0: i32) -> (i32, i32) {
    %c0_i32 = arith.constant 0 : i32
    %c0_i32_0 = arith.constant 0 : i32
    %c0_i32_1 = arith.constant 0 : i32
    return %c0_i32, %c0_i32_0 : i32, i32
  }
  func.func @transform_3(%arg0: i32) -> (i32, i32) {
    %c0_i32 = arith.constant 0 : i32
    %c0_i32_0 = arith.constant 0 : i32
    return %arg0, %c0_i32 : i32, i32
  }
}

module attributes {stable_mosaic.version = 11 : i64} {
  func.func @_matvec_tanh_kernel(%arg0: i32, %arg1: memref<16x512xbf16, #tpu.memory_space<vmem>>, %arg2: memref<512x256xbf16, #tpu.memory_space<vmem>>, %arg3: memref<16x256xf32, #tpu.memory_space<vmem>>) attributes {dimension_semantics = [#tpu.dimension_semantics<parallel>], iteration_bounds = array<i64: 7>, scalar_prefetch = 0 : i64, scratch_operands = 0 : i64, tpu.core_type = #tpu.core_type<tc>, window_params = [{pipeline_mode = #tpu.pipeline_mode<synchronous>, transform_indices = @transform_0, window_bounds = array<i64: 16, 512>}, {transform_indices = @transform_1, window_bounds = array<i64: 512, 256>}, {transform_indices = @transform_2, window_bounds = array<i64: 16, 256>}]} {
    %c0 = arith.constant 0 : index
    %c0_0 = arith.constant 0 : index
    %0 = vector.load %arg1[%c0, %c0_0] : memref<16x512xbf16, #tpu.memory_space<vmem>>, vector<16x512xbf16>
    %c0_1 = arith.constant 0 : index
    %c0_2 = arith.constant 0 : index
    %1 = vector.load %arg2[%c0_1, %c0_2] : memref<512x256xbf16, #tpu.memory_space<vmem>>, vector<512x256xbf16>
    %cst = arith.constant dense<0.000000e+00> : vector<16x256xf32>
    %2 = tpu.matmul %0, %1, %cst {dimension_numbers = #tpu.dot_dimension_numbers<[1], [0], [0], [1], [0, 0, 1, 1], [], []>} : vector<16x512xbf16>, vector<512x256xbf16>, vector<16x256xf32> -> vector<16x256xf32>
    %3 = math.tanh %2 : vector<16x256xf32>
    %c0_3 = arith.constant 0 : index
    %c0_4 = arith.constant 0 : index
    %4 = vector.load %arg3[%c0_3, %c0_4] : memref<16x256xf32, #tpu.memory_space<vmem>>, vector<16x256xf32>
    tpu.vector_store %arg3[%c0_3, %c0_4], %3 {strides = array<i32>} : memref<16x256xf32, #tpu.memory_space<vmem>>, vector<16x256xf32>,
    return
  }
  func.func @transform_0(%arg0: i32) -> (i32, i32) {
    %c0_i32 = arith.constant 0 : i32
    %c0_i32_0 = arith.constant 0 : i32
    %c0_i32_1 = arith.constant 0 : i32
    return %c0_i32, %c0_i32_0 : i32, i32
  }
  func.func @transform_1(%arg0: i32) -> (i32, i32) {
    %c0_i32 = arith.constant 0 : i32
    %c0_i32_0 = arith.constant 0 : i32
    return %c0_i32, %arg0 : i32, i32
  }
  func.func @transform_2(%arg0: i32) -> (i32, i32) {
    %c0_i32 = arith.constant 0 : i32
    %c0_i32_0 = arith.constant 0 : i32
    return %c0_i32, %arg0 : i32, i32
  }
}

</mosaic_0001>

<bundles_post_ra>
// kernel: generator_forward.8
= control target key start
LH: loop header
LB: loop body
LE: loop exit
PB: predicated region body
PF: predicated region fallthrough
CT: control target
= control target key end

     0   :  { %s141_s0 = inlined_call_operand.vmem [shape: f32[32,128], index: 0, kind: input, shape index: {}]   ;;  %s142_s1 = inlined_call_operand.vmem [shape: f32[1,128], index: 1, kind: input, shape index: {}]   ;;  %s143_s2 = inlined_call_operand.vmem [shape: f32[1,128], index: 2, kind: input, shape index: {}]   ;;  %s144_s3 = inlined_call_operand.vmem [shape: bf16[32,128], index: 3, kind: output, shape index: {}]  }
   0x1   :  { %v14_v0 = vld [vmem:[%s141_s0] sm:$0xff]  ;;  %v15_v1 = vld [vmem:[%s141_s0 + $0x8] sm:$0xff]  ;;  %v16_v6 = vld [vmem:[%s141_s0 + $0x10] sm:$0xff] }
   0x2   :  { %v76_v2 = vld [vmem:[%s142_s1] ss:$0 sm:$0xff]  ;;  %v17_v7 = vld [vmem:[%s141_s0 + $0x18] sm:$0xff] }
   0x3   :  { %v25_v3 = vmul.f32 %v76_v2, %v14_v0  ;;  %v26_v4 = vmul.f32 %v76_v2, %v15_v1  ;;  %v77_v5 = vld [vmem:[%s143_s2] ss:$0 sm:$0xff]  ;;  %v27_v8 = vmul.f32 %v76_v2, %v16_v6  ;;  %v28_v9 = vmul.f32 %v76_v2, %v17_v7 }
   0x5   :  { %v36_v10 = vadd.f32 %v77_v5, %v25_v3  ;;  %v37_v11 = vadd.f32 %v77_v5, %v26_v4  ;;  %v38_v12 = vadd.f32 %v77_v5, %v27_v8  ;;  %v39_v13 = vadd.f32 %v77_v5, %v28_v9 }
   0x7   :  { %vm40_vm0 = vcmp.gt.f32.partialorder %v36_v10, 0.0  ;;  %vm41_vm1 = vcmp.gt.f32.partialorder %v37_v11, 0.0  ;;  %v44_v14 = vmul.f32 0.2, %v36_v10  ;;  %v45_v15 = vmul.f32 0.2, %v37_v11 }
   0x8   :  { %vm42_vm2 = vcmp.gt.f32.partialorder %v38_v12, 0.0  ;;  %vm43_vm3 = vcmp.gt.f32.partialorder %v39_v13, 0.0  ;;  %v46_v16 = vmul.f32 0.2, %v38_v12  ;;  %v47_v17 = vmul.f32 0.2, %v39_v13 }
   0x9   :  { %v48_v18 = vsel %vm40_vm0, %v36_v10, %v44_v14  ;;  %v49_v19 = vsel %vm41_vm1, %v37_v11, %v45_v15 }
   0xa   :  { %v89_v20 = vpack.c.bf16 %v49_v19, %v48_v18  ;;  %v50_v21 = vsel %vm42_vm2, %v38_v12, %v46_v16  ;;  %v51_v22 = vsel %vm43_vm3, %v39_v13, %v47_v17 }
   0xb   :  { %v94_v23 = vpack.c.bf16 %v51_v22, %v50_v21 }
   0xc   :  { %90 = vst [vmem:[%s144_s3] sm:$0xff] %v89_v20  }
   0xd   :  { %96 = vst [vmem:[%s144_s3 + $0x8] sm:$0xff] %v94_v23  }

// kernel: generator_forward.7
= control target key start
LH: loop header
LB: loop body
LE: loop exit
PB: predicated region body
PF: predicated region fallthrough
CT: control target
= control target key end

     0   :  { %v1688_v3 = vmov 0   ;;  %vm1434_vm0 = vcmask 1040384   ;;  %s2254_s1 = inlined_call_operand.vmem [shape: bf16[128,2048], index: 1, kind: input, shape index: {}]   ;;  %s2255_s0 = inlined_call_operand.vmem [shape: bf16[16,128], index: 0, kind: input, shape index: {}]   ;;  %s2256_s2 = inlined_call_operand.vmem [shape: f32[16,2048], index: 2, kind: output, shape index: {0}]   ;;  %s2257_s3 = inlined_call_operand.vmem [shape: f32[2,2048], index: 3, kind: output, shape index: {1}]  }
   0x1   :  { %v16_v0 = vld [vmem:[%s2254_s1] sm:$0xff]  ;;  %v17_v2 = vld [vmem:[%s2254_s1 + $0x8] sm:$0xff]  ;;  %822 = vmatprep.mubr.bf16.mxu0 %v1688_v3  ;;  %865 = vmatprep.mubr.bf16.mxu1 %v1688_v3  ;;  %v18_v63 = vld [vmem:[%s2254_s1 + $0x10] sm:$0xff] }
   0x2   :  { %v24_v1 = vld [vmem:[%s2254_s1 + $0x40] sm:$0xff]  ;;  %v25_v5 = vld [vmem:[%s2254_s1 + $0x48] sm:$0xff] }
   0x3   :  { %v1557_v4 = vcombine.high %v16_v0, %v24_v1  ;;  %v1556_v6 = vcombine.low %v16_v0, %v24_v1  ;;  %v32_v7 = vld [vmem:[%s2254_s1 + $0x80] sm:$0xff]  ;;  %v1559_v9 = vcombine.high %v17_v2, %v25_v5  ;;  %v1558_v10 = vcombine.low %v17_v2, %v25_v5  ;;  %v33_v12 = vld [vmem:[%s2254_s1 + $0x88] sm:$0xff]  ;;  %v26_v0 = vld [vmem:[%s2254_s1 + $0x50] sm:$0xff] }
   0x4   :  { %v40_v8 = vld [vmem:[%s2254_s1 + $0xc0] sm:$0xff]  ;;  %v41_v13 = vld [vmem:[%s2254_s1 + $0xc8] sm:$0xff]  ;;  %v19_v1 = vld [vmem:[%s2254_s1 + $0x18] sm:$0xff] }
   0x5   :  { %v1573_v11 = vcombine.high %v32_v7, %v40_v8  ;;  %v48_v14 = vld [vmem:[%s2254_s1 + $0x100] sm:$0xff]  ;;  %790 = vmatprep.subr.bf16.mxu0 %v1557_v4  ;;  %v1575_v15 = vcombine.high %v33_v12, %v41_v13  ;;  %v49_v17 = vld [vmem:[%s2254_s1 + $0x108] sm:$0xff]  ;;  %833 = vmatprep.subr.bf16.mxu1 %v1559_v9  ;;  %v1572_v19 = vcombine.low %v32_v7, %v40_v8  ;;  %v27_v2 = vld [vmem:[%s2254_s1 + $0x58] sm:$0xff] }
   0x6   :  { %v56_v16 = vld [vmem:[%s2254_s1 + $0x140] sm:$0xff]  ;;  %v57_v18 = vld [vmem:[%s2254_s1 + $0x148] sm:$0xff]  ;;  %791 = vmatpush1.bf16.msra.mxu0 %v1556_v6  ;;  %834 = vmatpush1.bf16.msra.mxu1 %v1558_v10  ;;  %v1574_v20 = vcombine.low %v33_v12, %v41_v13  ;;  %v1561_v6 = vcombine.high %v18_v63, %v26_v0  ;;  %v1563_v7 = vcombine.high %v19_v1, %v27_v2  ;;  %v34_v8 = vld [vmem:[%s2254_s1 + $0x90] sm:$0xff] }
   0x7   :  { %792 = vmatprep.subr.bf16.mxu0 %v1573_v11  ;;  %v1589_v21 = vcombine.high %v48_v14, %v56_v16  ;;  %835 = vmatprep.subr.bf16.mxu1 %v1575_v15  ;;  %v1591_v22 = vcombine.high %v49_v17, %v57_v18  ;;  %v64_v23 = vld [vmem:[%s2254_s1 + $0x180] sm:$0xff]  ;;  %v65_v25 = vld [vmem:[%s2254_s1 + $0x188] sm:$0xff]  ;;  %v1588_v27 = vcombine.low %v48_v14, %v56_v16  ;;  %v42_v9 = vld [vmem:[%s2254_s1 + $0xd0] sm:$0xff] }
   0x8   :  { %v72_v24 = vld [vmem:[%s2254_s1 + $0x1c0] sm:$0xff]  ;;  %v73_v26 = vld [vmem:[%s2254_s1 + $0x1c8] sm:$0xff]  ;;  %v1590_v28 = vcombine.low %v49_v17, %v57_v18  ;;  %v35_v11 = vld [vmem:[%s2254_s1 + $0x98] sm:$0xff]  ;;  %v1560_v13 = vcombine.low %v18_v63, %v26_v0  ;;  %v1562_v14 = vcombine.low %v19_v1, %v27_v2  ;;  %v1577_v15 = vcombine.high %v34_v8, %v42_v9 }
   0x9   :  { %v1605_v29 = vcombine.high %v64_v23, %v72_v24  ;;  %v1607_v30 = vcombine.high %v65_v25, %v73_v26  ;;  %v80_v31 = vld [vmem:[%s2254_s1 + $0x200] sm:$0xff]  ;;  %v81_v33 = vld [vmem:[%s2254_s1 + $0x208] sm:$0xff]  ;;  %v1604_v35 = vcombine.low %v64_v23, %v72_v24  ;;  %v1606_v36 = vcombine.low %v65_v25, %v73_v26  ;;  %v43_v12 = vld [vmem:[%s2254_s1 + $0xd8] sm:$0xff] }
   0xa   :  { %793 = vmatpush1.bf16.msra.mxu0 %v1572_v19  ;;  %836 = vmatpush1.bf16.msra.mxu1 %v1574_v20  ;;  %v88_v32 = vld [vmem:[%s2254_s1 + $0x240] sm:$0xff]  ;;  %v89_v34 = vld [vmem:[%s2254_s1 + $0x248] sm:$0xff]  ;;  %v1579_v16 = vcombine.high %v35_v11, %v43_v12  ;;  %v50_v17 = vld [vmem:[%s2254_s1 + $0x110] sm:$0xff] }
   0xb   :  { %794 = vmatprep.subr.bf16.mxu0 %v1589_v21  ;;  %837 = vmatprep.subr.bf16.mxu1 %v1591_v22  ;;  %v1621_v37 = vcombine.high %v80_v31, %v88_v32  ;;  %v1623_v38 = vcombine.high %v81_v33, %v89_v34  ;;  %v96_v39 = vld [vmem:[%s2254_s1 + $0x280] sm:$0xff]  ;;  %v97_v41 = vld [vmem:[%s2254_s1 + $0x288] sm:$0xff]  ;;  %v1620_v43 = vcombine.low %v80_v31, %v88_v32  ;;  %v58_v18 = vld [vmem:[%s2254_s1 + $0x150] sm:$0xff] }
   0xc   :  { %v104_v40 = vld [vmem:[%s2254_s1 + $0x2c0] sm:$0xff]  ;;  %v105_v42 = vld [vmem:[%s2254_s1 + $0x2c8] sm:$0xff]  ;;  %v1622_v44 = vcombine.low %v81_v33, %v89_v34  ;;  %v51_v19 = vld [vmem:[%s2254_s1 + $0x118] sm:$0xff]  ;;  %v1576_v21 = vcombine.low %v34_v8, %v42_v9  ;;  %v1578_v22 = vcombine.low %v35_v11, %v43_v12  ;;  %v1593_v23 = vcombine.high %v50_v17, %v58_v18 }
   0xd   :  { %v1637_v45 = vcombine.high %v96_v39, %v104_v40  ;;  %v1639_v46 = vcombine.high %v97_v41, %v105_v42  ;;  %v112_v47 = vld [vmem:[%s2254_s1 + $0x300] sm:$0xff]  ;;  %v113_v49 = vld [vmem:[%s2254_s1 + $0x308] sm:$0xff]  ;;  %v1636_v51 = vcombine.low %v96_v39, %v104_v40  ;;  %v1638_v52 = vcombine.low %v97_v41, %v105_v42  ;;  %v59_v20 = vld [vmem:[%s2254_s1 + $0x158] sm:$0xff] }
   0xe   :  { %795 = vmatpush1.bf16.msra.mxu0 %v1588_v27  ;;  %838 = vmatpush1.bf16.msra.mxu1 %v1590_v28  ;;  %v120_v48 = vld [vmem:[%s2254_s1 + $0x340] sm:$0xff]  ;;  %v121_v50 = vld [vmem:[%s2254_s1 + $0x348] sm:$0xff]  ;;  %v1595_v24 = vcombine.high %v51_v19, %v59_v20  ;;  %v66_v25 = vld [vmem:[%s2254_s1 + $0x190] sm:$0xff] }
   0xf   :  { %796 = vmatprep.subr.bf16.mxu0 %v1605_v29  ;;  %839 = vmatprep.subr.bf16.mxu1 %v1607_v30  ;;  %v1653_v53 = vcombine.high %v112_v47, %v120_v48  ;;  %v1655_v54 = vcombine.high %v113_v49, %v121_v50  ;;  %v128_v55 = vld [vmem:[%s2254_s1 + $0x380] sm:$0xff]  ;;  %v129_v57 = vld [vmem:[%s2254_s1 + $0x388] sm:$0xff]  ;;  %v1652_v59 = vcombine.low %v112_v47, %v120_v48  ;;  %v74_v26 = vld [vmem:[%s2254_s1 + $0x1d0] sm:$0xff] }
  0x10   :  { %v136_v56 = vld [vmem:[%s2254_s1 + $0x3c0] sm:$0xff]  ;;  %v137_v58 = vld [vmem:[%s2254_s1 + $0x3c8] sm:$0xff]  ;;  %v1654_v60 = vcombine.low %v113_v49, %v121_v50  ;;  %v67_v27 = vld [vmem:[%s2254_s1 + $0x198] sm:$0xff]  ;;  %v1592_v29 = vcombine.low %v50_v17, %v58_v18  ;;  %v1594_v30 = vcombine.low %v51_v19, %v59_v20  ;;  %v1609_v31 = vcombine.high %v66_v25, %v74_v26 }
  0x11   :  { %v1669_v61 = vcombine.high %v128_v55, %v136_v56  ;;  %v1671_v62 = vcombine.high %v129_v57, %v137_v58  ;;  %v1668_v4 = vcombine.low %v128_v55, %v136_v56  ;;  %v1670_v5 = vcombine.low %v129_v57, %v137_v58  ;;  %v1829_v10 = vld [vmem:[%s2255_s0] sm:$0xff]   ;;  %v75_v28 = vld [vmem:[%s2254_s1 + $0x1d8] sm:$0xff]  ;;  %v82_v33 = vld [vmem:[%s2254_s1 + $0x210] sm:$0xff] }
  0x12   :  { %797 = vmatpush1.bf16.msra.mxu0 %v1604_v35  ;;  %840 = vmatpush1.bf16.msra.mxu1 %v1606_v36  ;;  %v1611_v32 = vcombine.high %v67_v27, %v75_v28  ;;  %v90_v34 = vld [vmem:[%s2254_s1 + $0x250] sm:$0xff]  ;;  %v83_v35 = vld [vmem:[%s2254_s1 + $0x218] sm:$0xff]  ;;  %v20_v1 = vld [vmem:[%s2254_s1 + $0x20] sm:$0xff] }
  0x13   :  { %798 = vmatprep.subr.bf16.mxu0 %v1621_v37  ;;  %841 = vmatprep.subr.bf16.mxu1 %v1623_v38  ;;  %v91_v36 = vld [vmem:[%s2254_s1 + $0x258] sm:$0xff]  ;;  %v1608_v37 = vcombine.low %v66_v25, %v74_v26  ;;  %v1610_v38 = vcombine.low %v67_v27, %v75_v28  ;;  %v1625_v39 = vcombine.high %v82_v33, %v90_v34  ;;  %v98_v41 = vld [vmem:[%s2254_s1 + $0x290] sm:$0xff]  ;;  %v28_v2 = vld [vmem:[%s2254_s1 + $0x60] sm:$0xff] }
  0x14   :  { %v1627_v40 = vcombine.high %v83_v35, %v91_v36  ;;  %v106_v42 = vld [vmem:[%s2254_s1 + $0x2d0] sm:$0xff]  ;;  %v1565_v8 = vcombine.high %v20_v1, %v28_v2  ;;  %v36_v11 = vld [vmem:[%s2254_s1 + $0xa0] sm:$0xff] }
  0x15   :  { %v1641_v47 = vcombine.high %v98_v41, %v106_v42  ;;  %v114_v49 = vld [vmem:[%s2254_s1 + $0x310] sm:$0xff]  ;;  %v44_v12 = vld [vmem:[%s2254_s1 + $0xe0] sm:$0xff] }
  0x16   :  { %799 = vmatpush1.bf16.msra.mxu0 %v1620_v43  ;;  %842 = vmatpush1.bf16.msra.mxu1 %v1622_v44  ;;  %v99_v43 = vld [vmem:[%s2254_s1 + $0x298] sm:$0xff]  ;;  %v122_v50 = vld [vmem:[%s2254_s1 + $0x350] sm:$0xff]  ;;  %v1581_v17 = vcombine.high %v36_v11, %v44_v12  ;;  %v52_v19 = vld [vmem:[%s2254_s1 + $0x120] sm:$0xff] }
  0x17   :  { %800 = vmatprep.subr.bf16.mxu0 %v1637_v45  ;;  %843 = vmatprep.subr.bf16.mxu1 %v1639_v46  ;;  %v107_v44 = vld [vmem:[%s2254_s1 + $0x2d8] sm:$0xff]  ;;  %v1624_v45 = vcombine.low %v82_v33, %v90_v34  ;;  %v1626_v46 = vcombine.low %v83_v35, %v91_v36  ;;  %v1657_v55 = vcombine.high %v114_v49, %v122_v50  ;;  %v130_v57 = vld [vmem:[%s2254_s1 + $0x390] sm:$0xff]  ;;  %v60_v20 = vld [vmem:[%s2254_s1 + $0x160] sm:$0xff] }
  0x18   :  { %v1643_v48 = vcombine.high %v99_v43, %v107_v44  ;;  %v138_v58 = vld [vmem:[%s2254_s1 + $0x3d0] sm:$0xff]  ;;  %v1597_v25 = vcombine.high %v52_v19, %v60_v20  ;;  %v68_v27 = vld [vmem:[%s2254_s1 + $0x1a0] sm:$0xff] }
  0x19   :  { %v1673_v63 = vcombine.high %v130_v57, %v138_v58  ;;  %v76_v28 = vld [vmem:[%s2254_s1 + $0x1e0] sm:$0xff] }
  0x1a   :  { %801 = vmatpush1.bf16.msra.mxu0 %v1636_v51  ;;  %844 = vmatpush1.bf16.msra.mxu1 %v1638_v52  ;;  %v115_v51 = vld [vmem:[%s2254_s1 + $0x318] sm:$0xff]  ;;  %v1613_v33 = vcombine.high %v68_v27, %v76_v28  ;;  %v84_v35 = vld [vmem:[%s2254_s1 + $0x220] sm:$0xff] }
  0x1b   :  { %802 = vmatprep.subr.bf16.mxu0 %v1653_v53  ;;  %845 = vmatprep.subr.bf16.mxu1 %v1655_v54  ;;  %v123_v52 = vld [vmem:[%s2254_s1 + $0x358] sm:$0xff]  ;;  %v1640_v53 = vcombine.low %v98_v41, %v106_v42  ;;  %v1642_v54 = vcombine.low %v99_v43, %v107_v44  ;;  %v92_v36 = vld [vmem:[%s2254_s1 + $0x260] sm:$0xff] }
  0x1c   :  { %v1659_v56 = vcombine.high %v115_v51, %v123_v52  ;;  %v1629_v41 = vcombine.high %v84_v35, %v92_v36  ;;  %v100_v43 = vld [vmem:[%s2254_s1 + $0x2a0] sm:$0xff] }
  0x1d   :  { %v108_v44 = vld [vmem:[%s2254_s1 + $0x2e0] sm:$0xff] }
  0x1e   :  { %803 = vmatpush1.bf16.msra.mxu0 %v1652_v59  ;;  %846 = vmatpush1.bf16.msra.mxu1 %v1654_v60  ;;  %v131_v59 = vld [vmem:[%s2254_s1 + $0x398] sm:$0xff] }
  0x1f   :  { %804 = vmatprep.subr.bf16.mxu0 %v1669_v61  ;;  %847 = vmatprep.subr.bf16.mxu1 %v1671_v62  ;;  %v139_v60 = vld [vmem:[%s2254_s1 + $0x3d8] sm:$0xff]  ;;  %v1656_v61 = vcombine.low %v114_v49, %v122_v50  ;;  %v1658_v62 = vcombine.low %v115_v51, %v123_v52  ;;  %v1645_v49 = vcombine.high %v100_v43, %v108_v44  ;;  %v116_v51 = vld [vmem:[%s2254_s1 + $0x320] sm:$0xff] }
  0x20   :  { %v1675_v0 = vcombine.high %v131_v59, %v139_v60  ;;  %v124_v52 = vld [vmem:[%s2254_s1 + $0x360] sm:$0xff] }
  0x22   :  { %805 = vmatpush1.bf16.msra.mxu0 %v1668_v4  ;;  %848 = vmatpush1.bf16.msra.mxu1 %v1670_v5  ;;  %v21_v4 = vld [vmem:[%s2254_s1 + $0x28] sm:$0xff] }
  0x23   :  { %876 = vmatprep.subr.bf16.mxu0 %v1561_v6  ;;  %919 = vmatprep.subr.bf16.mxu1 %v1563_v7  ;;  %v29_v5 = vld [vmem:[%s2254_s1 + $0x68] sm:$0xff]  ;;  %v1672_v6 = vcombine.low %v130_v57, %v138_v58  ;;  %v1674_v7 = vcombine.low %v131_v59, %v139_v60  ;;  %v1661_v57 = vcombine.high %v116_v51, %v124_v52  ;;  %v132_v59 = vld [vmem:[%s2254_s1 + $0x3a0] sm:$0xff] }
  0x24   :  { %v1567_v9 = vcombine.high %v21_v4, %v29_v5  ;;  %v140_v60 = vld [vmem:[%s2254_s1 + $0x3e0] sm:$0xff] }
  0x25   :  { %823 = vmatmul.mubr.bf16.vlgmr.msra.gmra.mrb[0].mxu0 %v1829_v10  ;;  %866 = vmatmul.mubr.bf16.vlgmr.msra.gmra.mrb[0].mxu1 %v1829_v10 }
  0x26   :  { %877 = vmatpush1.bf16.msra.mxu0 %v1560_v13  ;;  %920 = vmatpush1.bf16.msra.mxu1 %v1562_v14  ;;  %v37_v13 = vld [vmem:[%s2254_s1 + $0xa8] sm:$0xff] }
  0x27   :  { %878 = vmatprep.subr.bf16.mxu0 %v1577_v15  ;;  %921 = vmatprep.subr.bf16.mxu1 %v1579_v16  ;;  %v45_v14 = vld [vmem:[%s2254_s1 + $0xe8] sm:$0xff]  ;;  %v1564_v15 = vcombine.low %v20_v1, %v28_v2  ;;  %v1566_v16 = vcombine.low %v21_v4, %v29_v5  ;;  %v1677_v1 = vcombine.high %v132_v59, %v140_v60  ;;  %v22_v4 = vld [vmem:[%s2254_s1 + $0x30] sm:$0xff] }
  0x28   :  { %908 = vmatprep.mubr.bf16.mxu0 %v1688_v3  ;;  %951 = vmatprep.mubr.bf16.mxu1 %v1688_v3  ;;  %v1583_v18 = vcombine.high %v37_v13, %v45_v14  ;;  %v30_v5 = vld [vmem:[%s2254_s1 + $0x70] sm:$0xff] }
  0x2a   :  { %879 = vmatpush1.bf16.msra.mxu0 %v1576_v21  ;;  %922 = vmatpush1.bf16.msra.mxu1 %v1578_v22  ;;  %v53_v21 = vld [vmem:[%s2254_s1 + $0x128] sm:$0xff] }
  0x2b   :  { %880 = vmatprep.subr.bf16.mxu0 %v1593_v23  ;;  %923 = vmatprep.subr.bf16.mxu1 %v1595_v24  ;;  %v61_v22 = vld [vmem:[%s2254_s1 + $0x168] sm:$0xff]  ;;  %v1580_v23 = vcombine.low %v36_v11, %v44_v12  ;;  %v1582_v24 = vcombine.low %v37_v13, %v45_v14  ;;  %v1569_v11 = vcombine.high %v22_v4, %v30_v5  ;;  %v38_v13 = vld [vmem:[%s2254_s1 + $0xb0] sm:$0xff] }
  0x2c   :  { %v1599_v26 = vcombine.high %v53_v21, %v61_v22  ;;  %v46_v14 = vld [vmem:[%s2254_s1 + $0xf0] sm:$0xff] }
  0x2e   :  { %881 = vmatpush1.bf16.msra.mxu0 %v1592_v29  ;;  %924 = vmatpush1.bf16.msra.mxu1 %v1594_v30  ;;  %v69_v29 = vld [vmem:[%s2254_s1 + $0x1a8] sm:$0xff] }
  0x2f   :  { %882 = vmatprep.subr.bf16.mxu0 %v1609_v31  ;;  %925 = vmatprep.subr.bf16.mxu1 %v1611_v32  ;;  %v77_v30 = vld [vmem:[%s2254_s1 + $0x1e8] sm:$0xff]  ;;  %v1596_v31 = vcombine.low %v52_v19, %v60_v20  ;;  %v1598_v32 = vcombine.low %v53_v21, %v61_v22  ;;  %v1585_v19 = vcombine.high %v38_v13, %v46_v14  ;;  %v54_v21 = vld [vmem:[%s2254_s1 + $0x130] sm:$0xff] }
  0x30   :  { %v1615_v34 = vcombine.high %v69_v29, %v77_v30  ;;  %v62_v22 = vld [vmem:[%s2254_s1 + $0x170] sm:$0xff] }
  0x32   :  { %883 = vmatpush1.bf16.msra.mxu0 %v1608_v37  ;;  %926 = vmatpush1.bf16.msra.mxu1 %v1610_v38  ;;  %v85_v37 = vld [vmem:[%s2254_s1 + $0x228] sm:$0xff] }
  0x33   :  { %884 = vmatprep.subr.bf16.mxu0 %v1625_v39  ;;  %927 = vmatprep.subr.bf16.mxu1 %v1627_v40  ;;  %v93_v38 = vld [vmem:[%s2254_s1 + $0x268] sm:$0xff]  ;;  %v1612_v39 = vcombine.low %v68_v27, %v76_v28  ;;  %v1614_v40 = vcombine.low %v69_v29, %v77_v30  ;;  %v1601_v27 = vcombine.high %v54_v21, %v62_v22  ;;  %v70_v29 = vld [vmem:[%s2254_s1 + $0x1b0] sm:$0xff] }
  0x34   :  { %v1631_v42 = vcombine.high %v85_v37, %v93_v38  ;;  %v78_v30 = vld [vmem:[%s2254_s1 + $0x1f0] sm:$0xff] }
  0x36   :  { %885 = vmatpush1.bf16.msra.mxu0 %v1624_v45  ;;  %928 = vmatpush1.bf16.msra.mxu1 %v1626_v46  ;;  %v101_v45 = vld [vmem:[%s2254_s1 + $0x2a8] sm:$0xff] }
  0x37   :  { %886 = vmatprep.subr.bf16.mxu0 %v1641_v47  ;;  %929 = vmatprep.subr.bf16.mxu1 %v1643_v48  ;;  %v109_v46 = vld [vmem:[%s2254_s1 + $0x2e8] sm:$0xff]  ;;  %v1628_v47 = vcombine.low %v84_v35, %v92_v36  ;;  %v1630_v48 = vcombine.low %v85_v37, %v93_v38  ;;  %v1617_v35 = vcombine.high %v70_v29, %v78_v30  ;;  %v86_v37 = vld [vmem:[%s2254_s1 + $0x230] sm:$0xff] }
  0x38   :  { %v1647_v50 = vcombine.high %v101_v45, %v109_v46  ;;  %v94_v38 = vld [vmem:[%s2254_s1 + $0x270] sm:$0xff] }
  0x3a   :  { %887 = vmatpush1.bf16.msra.mxu0 %v1640_v53  ;;  %930 = vmatpush1.bf16.msra.mxu1 %v1642_v54  ;;  %v117_v53 = vld [vmem:[%s2254_s1 + $0x328] sm:$0xff] }
  0x3b   :  { %888 = vmatprep.subr.bf16.mxu0 %v1657_v55  ;;  %931 = vmatprep.subr.bf16.mxu1 %v1659_v56  ;;  %v125_v54 = vld [vmem:[%s2254_s1 + $0x368] sm:$0xff]  ;;  %v1644_v55 = vcombine.low %v100_v43, %v108_v44  ;;  %v1646_v56 = vcombine.low %v101_v45, %v109_v46  ;;  %v102_v44 = vld [vmem:[%s2254_s1 + $0x2b0] sm:$0xff]  ;;  %v103_v46 = vld [vmem:[%s2254_s1 + $0x2b8] sm:$0xff] }
  0x3c   :  { %v1663_v58 = vcombine.high %v117_v53, %v125_v54  ;;  %v110_v45 = vld [vmem:[%s2254_s1 + $0x2f0] sm:$0xff] }
  0x3e   :  { %889 = vmatpush1.bf16.msra.mxu0 %v1656_v61  ;;  %932 = vmatpush1.bf16.msra.mxu1 %v1658_v62  ;;  %v133_v61 = vld [vmem:[%s2254_s1 + $0x3a8] sm:$0xff] }
  0x3f   :  { %890 = vmatprep.subr.bf16.mxu0 %v1673_v63  ;;  %933 = vmatprep.subr.bf16.mxu1 %v1675_v0  ;;  %v141_v62 = vld [vmem:[%s2254_s1 + $0x3e8] sm:$0xff]  ;;  %v1660_v63 = vcombine.low %v116_v51, %v124_v52  ;;  %v1662_v0 = vcombine.low %v117_v53, %v125_v54  ;;  %v118_v52 = vld [vmem:[%s2254_s1 + $0x330] sm:$0xff]  ;;  %v119_v54 = vld [vmem:[%s2254_s1 + $0x338] sm:$0xff] }
  0x40   :  { %v1679_v2 = vcombine.high %v133_v61, %v141_v62  ;;  %v126_v53 = vld [vmem:[%s2254_s1 + $0x370] sm:$0xff] }
  0x42   :  { %891 = vmatpush1.bf16.msra.mxu0 %v1672_v6  ;;  %934 = vmatpush1.bf16.msra.mxu1 %v1674_v7  ;;  %v23_v6 = vld [vmem:[%s2254_s1 + $0x38] sm:$0xff] }
  0x43   :  { %962 = vmatprep.subr.bf16.mxu0 %v1565_v8  ;;  %1005 = vmatprep.subr.bf16.mxu1 %v1567_v9  ;;  %v31_v7 = vld [vmem:[%s2254_s1 + $0x78] sm:$0xff]  ;;  %v1676_v8 = vcombine.low %v132_v59, %v140_v60  ;;  %v1678_v9 = vcombine.low %v133_v61, %v141_v62  ;;  %v134_v60 = vld [vmem:[%s2254_s1 + $0x3b0] sm:$0xff] }
  0x44   :  { %v1571_v12 = vcombine.high %v23_v6, %v31_v7  ;;  %v142_v61 = vld [vmem:[%s2254_s1 + $0x3f0] sm:$0xff]  ;;  %v135_v62 = vld [vmem:[%s2254_s1 + $0x3b8] sm:$0xff] }
  0x45   :  { %909 = vmatmul.mubr.bf16.vlgmr.msra.gmra.mrb[4].mxu0 %v1829_v10  ;;  %952 = vmatmul.mubr.bf16.vlgmr.msra.gmra.mrb[4].mxu1 %v1829_v10 }
  0x46   :  { %963 = vmatpush1.bf16.msra.mxu0 %v1564_v15  ;;  %1006 = vmatpush1.bf16.msra.mxu1 %v1566_v16  ;;  %v39_v15 = vld [vmem:[%s2254_s1 + $0xb8] sm:$0xff] }
  0x47   :  { %964 = vmatprep.subr.bf16.mxu0 %v1581_v17  ;;  %1007 = vmatprep.subr.bf16.mxu1 %v1583_v18  ;;  %v47_v16 = vld [vmem:[%s2254_s1 + $0xf8] sm:$0xff]  ;;  %v1568_v17 = vcombine.low %v22_v4, %v30_v5  ;;  %v1570_v18 = vcombine.low %v23_v6, %v31_v7  ;;  %v1680_v5 = vcombine.low %v134_v60, %v142_v61  ;;  %v1689_v7 = vmov 1983009808  }
  0x48   :  { %994 = vmatprep.mubr.bf16.mxu0 %v1688_v3  ;;  %1037 = vmatprep.mubr.bf16.mxu1 %v1688_v3  ;;  %v1587_v20 = vcombine.high %v39_v15, %v47_v16 }
  0x4a   :  { %965 = vmatpush1.bf16.msra.mxu0 %v1580_v23  ;;  %1008 = vmatpush1.bf16.msra.mxu1 %v1582_v24  ;;  %v55_v23 = vld [vmem:[%s2254_s1 + $0x138] sm:$0xff] }
  0x4b   :  { %966 = vmatprep.subr.bf16.mxu0 %v1597_v25  ;;  %1009 = vmatprep.subr.bf16.mxu1 %v1599_v26  ;;  %v63_v24 = vld [vmem:[%s2254_s1 + $0x178] sm:$0xff]  ;;  %v1584_v25 = vcombine.low %v38_v13, %v46_v14  ;;  %v1586_v26 = vcombine.low %v39_v15, %v47_v16 }
  0x4c   :  { %v1603_v28 = vcombine.high %v55_v23, %v63_v24 }
  0x4e   :  { %967 = vmatpush1.bf16.msra.mxu0 %v1596_v31  ;;  %1010 = vmatpush1.bf16.msra.mxu1 %v1598_v32  ;;  %v71_v31 = vld [vmem:[%s2254_s1 + $0x1b8] sm:$0xff] }
  0x4f   :  { %968 = vmatprep.subr.bf16.mxu0 %v1613_v33  ;;  %1011 = vmatprep.subr.bf16.mxu1 %v1615_v34  ;;  %v79_v32 = vld [vmem:[%s2254_s1 + $0x1f8] sm:$0xff]  ;;  %v1600_v33 = vcombine.low %v54_v21, %v62_v22  ;;  %v1602_v34 = vcombine.low %v55_v23, %v63_v24 }
  0x50   :  { %v1619_v36 = vcombine.high %v71_v31, %v79_v32 }
  0x52   :  { %969 = vmatpush1.bf16.msra.mxu0 %v1612_v39  ;;  %1012 = vmatpush1.bf16.msra.mxu1 %v1614_v40  ;;  %v95_v39 = vld [vmem:[%s2254_s1 + $0x278] sm:$0xff]  ;;  %v1616_v40 = vcombine.low %v70_v29, %v78_v30 }
  0x53   :  { %970 = vmatprep.subr.bf16.mxu0 %v1629_v41  ;;  %1013 = vmatprep.subr.bf16.mxu1 %v1631_v42  ;;  %v1618_v41 = vcombine.low %v71_v31, %v79_v32  ;;  %v1633_v42 = vcombine.high %v86_v37, %v94_v38 }
  0x56   :  { %971 = vmatpush1.bf16.msra.mxu0 %v1628_v47  ;;  %1014 = vmatpush1.bf16.msra.mxu1 %v1630_v48  ;;  %v111_v47 = vld [vmem:[%s2254_s1 + $0x2f8] sm:$0xff]  ;;  %v1632_v48 = vcombine.low %v86_v37, %v94_v38 }
  0x57   :  { %972 = vmatprep.subr.bf16.mxu0 %v1645_v49  ;;  %1015 = vmatprep.subr.bf16.mxu1 %v1647_v50  ;;  %v1649_v50 = vcombine.high %v102_v44, %v110_v45  ;;  %v1651_v51 = vcombine.high %v103_v46, %v111_v47 }
  0x5a   :  { %973 = vmatpush1.bf16.msra.mxu0 %v1644_v55  ;;  %1016 = vmatpush1.bf16.msra.mxu1 %v1646_v56  ;;  %v127_v55 = vld [vmem:[%s2254_s1 + $0x378] sm:$0xff]  ;;  %v1648_v56 = vcombine.low %v102_v44, %v110_v45 }
  0x5b   :  { %974 = vmatprep.subr.bf16.mxu0 %v1661_v57  ;;  %1017 = vmatprep.subr.bf16.mxu1 %v1663_v58  ;;  %v1650_v57 = vcombine.low %v103_v46, %v111_v47  ;;  %v1665_v58 = vcombine.high %v118_v52, %v126_v53  ;;  %v1667_v59 = vcombine.high %v119_v54, %v127_v55 }
  0x5e   :  { %975 = vmatpush1.bf16.msra.mxu0 %v1660_v63  ;;  %1018 = vmatpush1.bf16.msra.mxu1 %v1662_v0  ;;  %v143_v63 = vld [vmem:[%s2254_s1 + $0x3f8] sm:$0xff]  ;;  %v1664_v0 = vcombine.low %v118_v52, %v126_v53 }
  0x5f   :  { %976 = vmatprep.subr.bf16.mxu0 %v1677_v1  ;;  %1019 = vmatprep.subr.bf16.mxu1 %v1679_v2  ;;  %v1666_v1 = vcombine.low %v119_v54, %v127_v55  ;;  %v1681_v2 = vcombine.high %v134_v60, %v142_v61  ;;  %v1683_v4 = vcombine.high %v135_v62, %v143_v63 }
  0x60   :  { %v1682_v6 = vcombine.low %v135_v62, %v143_v63 }
  0x62   :  { %977 = vmatpush1.bf16.msra.mxu0 %v1676_v8  ;;  %1020 = vmatpush1.bf16.msra.mxu1 %v1678_v9  ;;  %v2115_v8 = vunpack.c.l.s4 %v1689_v7 }
  0x63   :  { %1048 = vmatprep.subr.bf16.mxu0 %v1569_v11  ;;  %1091 = vmatprep.subr.bf16.mxu1 %v1571_v12 }
  0x64   :  { %v1471_v16 = vunpack.c.0.s8 %v2115_v8 }
  0x65   :  { %995 = vmatmul.mubr.bf16.vlgmr.msra.gmra.mrb[8].mxu0 %v1829_v10  ;;  %1038 = vmatmul.mubr.bf16.vlgmr.msra.gmra.mrb[8].mxu1 %v1829_v10 }
  0x66   :  { %1049 = vmatpush1.bf16.msra.mxu0 %v1568_v17  ;;  %1092 = vmatpush1.bf16.msra.mxu1 %v1570_v18  ;;  %v1472_v17 = vlaneseq }
  0x67   :  { %1050 = vmatprep.subr.bf16.mxu0 %v1585_v19  ;;  %1093 = vmatprep.subr.bf16.mxu1 %v1587_v20 }
  0x68   :  { %1080 = vmatprep.mubr.bf16.mxu0 %v1688_v3  ;;  %1123 = vmatprep.mubr.bf16.mxu1 %v1688_v3  ;;  %v87_v3 = vld [vmem:[%s2254_s1 + $0x238] sm:$0xff] }
  0x69   :  { %v1635_v43 = vcombine.high %v87_v3, %v95_v39  ;;  %v1634_v49 = vcombine.low %v87_v3, %v95_v39 }
  0x6a   :  { %1051 = vmatpush1.bf16.msra.mxu0 %v1584_v25  ;;  %1094 = vmatpush1.bf16.msra.mxu1 %v1586_v26 }
  0x6b   :  { %1052 = vmatprep.subr.bf16.mxu0 %v1601_v27  ;;  %1095 = vmatprep.subr.bf16.mxu1 %v1603_v28 }
  0x6e   :  { %1053 = vmatpush1.bf16.msra.mxu0 %v1600_v33  ;;  %1096 = vmatpush1.bf16.msra.mxu1 %v1602_v34 }
  0x6f   :  { %1054 = vmatprep.subr.bf16.mxu0 %v1617_v35  ;;  %1097 = vmatprep.subr.bf16.mxu1 %v1619_v36 }
  0x72   :  { %1055 = vmatpush1.bf16.msra.mxu0 %v1616_v40  ;;  %1098 = vmatpush1.bf16.msra.mxu1 %v1618_v41 }
  0x73   :  { %1056 = vmatprep.subr.bf16.mxu0 %v1633_v42  ;;  %1099 = vmatprep.subr.bf16.mxu1 %v1635_v43 }
  0x76   :  { %1057 = vmatpush1.bf16.msra.mxu0 %v1632_v48  ;;  %1100 = vmatpush1.bf16.msra.mxu1 %v1634_v49 }
  0x77   :  { %1058 = vmatprep.subr.bf16.mxu0 %v1649_v50  ;;  %1101 = vmatprep.subr.bf16.mxu1 %v1651_v51 }
  0x7a   :  { %1059 = vmatpush1.bf16.msra.mxu0 %v1648_v56  ;;  %1102 = vmatpush1.bf16.msra.mxu1 %v1650_v57 }
  0x7b   :  { %1060 = vmatprep.subr.bf16.mxu0 %v1665_v58  ;;  %1103 = vmatprep.subr.bf16.mxu1 %v1667_v59 }
  0x7e   :  { %1061 = vmatpush1.bf16.msra.mxu0 %v1664_v0  ;;  %1104 = vmatpush1.bf16.msra.mxu1 %v1666_v1 }
  0x7f   :  { %1062 = vmatprep.subr.bf16.mxu0 %v1681_v2  ;;  %1105 = vmatprep.subr.bf16.mxu1 %v1683_v4 }
  0x82   :  { %1063 = vmatpush1.bf16.msra.mxu0 %v1680_v5  ;;  %1106 = vmatpush1.bf16.msra.mxu1 %v1682_v6  ;;  %v1473_v6 = vshrl.u32 %v1472_v17, 7 }
  0x85   :  { %1081 = vmatmul.mubr.bf16.vlgmr.msra.gmra.mrb[12].mxu0 %v1829_v10  ;;  %1124 = vmatmul.mubr.bf16.vlgmr.msra.gmra.mrb[12].mxu1 %v1829_v10 }
  0xf8   :  { %v824_v9 = vpop.f32.mrb[0].mxu0  ;;  %v867_v12 = vpop.f32.mrb[0].mxu1 }
  0xf9   :  { %1134 = vst [vmem:[%s2256_s2] sm:$0xff] %v824_v9  ;;  %v1286_v11 = vmul.f32 %v824_v9, %v824_v9  ;;  %v826_v13 = vpop.f32.mrb[1].mxu0  ;;  %1136 = vst [vmem:[%s2256_s2 + $0x10] sm:$0xff] %v867_v12  ;;  %v1288_v14 = vmul.f32 %v867_v12, %v867_v12  ;;  %v869_v10 = vpop.f32.mrb[1].mxu1 }
  0xfa   :  { %1135 = vst [vmem:[%s2256_s2 + $0x8] sm:$0xff] %v826_v13  ;;  %v828_v15 = vpop.f32.mrb[2].mxu0  ;;  %v1287_v18 = vmul.f32 %v826_v13, %v826_v13  ;;  %1137 = vst [vmem:[%s2256_s2 + $0x18] sm:$0xff] %v869_v10  ;;  %v1289_v19 = vmul.f32 %v869_v10, %v869_v10  ;;  %v871_v22 = vpop.f32.mrb[2].mxu1 }
  0xfb   :  { %1150 = vst [vmem:[%s2256_s2 + $0x80] sm:$0xff] %v828_v15  ;;  %v1174_v20 = vadd.f32 %v828_v15, %v824_v9  ;;  %v1302_v21 = vmul.f32 %v828_v15, %v828_v15  ;;  %v830_v23 = vpop.f32.mrb[3].mxu0  ;;  %1152 = vst [vmem:[%s2256_s2 + $0x90] sm:$0xff] %v871_v22  ;;  %v1188_v24 = vadd.f32 %v871_v22, %v867_v12  ;;  %v873_v28 = vpop.f32.mrb[3].mxu1 }
  0xfc   :  { %v1304_v25 = vmul.f32 %v871_v22, %v871_v22  ;;  %1151 = vst [vmem:[%s2256_s2 + $0x88] sm:$0xff] %v830_v23  ;;  %v1181_v26 = vadd.f32 %v830_v23, %v826_v13  ;;  %v1303_v27 = vmul.f32 %v830_v23, %v830_v23  ;;  %1153 = vst [vmem:[%s2256_s2 + $0x98] sm:$0xff] %v873_v28 }
  0xfd   :  { %v1175_v29 = vrot.slane %v1174_v20, 4  ;;  %v1318_v30 = vadd.f32 %v1302_v21, %v1286_v11  ;;  %v1195_v31 = vadd.f32 %v873_v28, %v869_v10  ;;  %v1305_v32 = vmul.f32 %v873_v28, %v873_v28 }
  0xfe   :  { %v1189_v33 = vrot.slane %v1188_v24, 4  ;;  %v1332_v34 = vadd.f32 %v1304_v25, %v1288_v14  ;;  %v1182_v35 = vrot.slane %v1181_v26, 4  ;;  %v1325_v36 = vadd.f32 %v1303_v27, %v1287_v18 }
  0xff   :  { %v1176_v37 = vadd.f32 %v1175_v29, %v1174_v20  ;;  %v1319_v38 = vrot.slane %v1318_v30, 4  ;;  %v1196_v3 = vrot.slane %v1195_v31, 4  ;;  %v1339_v39 = vadd.f32 %v1305_v32, %v1289_v19 }
 0x100   :  { %v1190_v40 = vadd.f32 %v1189_v33, %v1188_v24  ;;  %v1333_v41 = vrot.slane %v1332_v34, 4  ;;  %v1183_v42 = vadd.f32 %v1182_v35, %v1181_v26  ;;  %v1326_v43 = vrot.slane %v1325_v36, 4 }
 0x101   :  { %v1177_v44 = vrot.slane %v1176_v37, 2  ;;  %v1320_v45 = vadd.f32 %v1319_v38, %v1318_v30  ;;  %v1197_v46 = vadd.f32 %v1196_v3, %v1195_v31  ;;  %v1340_v47 = vrot.slane %v1339_v39, 4 }
 0x102   :  { %v1191_v48 = vrot.slane %v1190_v40, 2  ;;  %v1334_v49 = vadd.f32 %v1333_v41, %v1332_v34  ;;  %v1184_v50 = vrot.slane %v1183_v42, 2  ;;  %v1327_v51 = vadd.f32 %v1326_v43, %v1325_v36 }
 0x103   :  { %v1178_v52 = vadd.f32 %v1177_v44, %v1176_v37  ;;  %v1321_v53 = vrot.slane %v1320_v45, 2  ;;  %v1198_v54 = vrot.slane %v1197_v46, 2  ;;  %v1341_v55 = vadd.f32 %v1340_v47, %v1339_v39 }
 0x104   :  { %v1192_v56 = vadd.f32 %v1191_v48, %v1190_v40  ;;  %v1335_v57 = vrot.slane %v1334_v49, 2  ;;  %v1185_v58 = vadd.f32 %v1184_v50, %v1183_v42  ;;  %v1328_v59 = vrot.slane %v1327_v51, 2 }
 0x105   :  { %v1179_v60 = vrot.slane %v1178_v52, 1  ;;  %v1322_v61 = vadd.f32 %v1321_v53, %v1320_v45  ;;  %v1199_v62 = vadd.f32 %v1198_v54, %v1197_v46  ;;  %v1342_v63 = vrot.slane %v1341_v55, 2 }
 0x106   :  { %v1193_v0 = vrot.slane %v1192_v56, 1  ;;  %v1336_v1 = vadd.f32 %v1335_v57, %v1334_v49  ;;  %v1186_v2 = vrot.slane %v1185_v58, 1  ;;  %v1329_v4 = vadd.f32 %v1328_v59, %v1327_v51 }
 0x107   :  { %v1323_v5 = vrot.slane %v1322_v61, 1  ;;  %v1200_v7 = vrot.slane %v1199_v62, 1  ;;  %v1343_v9 = vadd.f32 %v1342_v63, %v1341_v55  ;;  %v1180_v13 = vadd.f32 %v1179_v60, %v1178_v52 }
 0x108   :  { %v1337_v11 = vrot.slane %v1336_v1, 1  ;;  %v1330_v12 = vrot.slane %v1329_v4, 1  ;;  %v1194_v15 = vadd.f32 %v1193_v0, %v1192_v56  ;;  %v1187_v19 = vadd.f32 %v1186_v2, %v1185_v58 }
 0x109   :  { %v1324_v14 = vadd.f32 %v1323_v5, %v1322_v61  ;;  %v1344_v10 = vrot.slane %v1343_v9, 1  ;;  %v2145_v22 = vsub.s32 %v1471_v16, %v1473_v6  ;;  %v1201_v23 = vadd.f32 %v1200_v7, %v1199_v62 }
 0x10a   :  { %v1338_v18 = vadd.f32 %v1337_v11, %v1336_v1  ;;  %v1331_v20 = vadd.f32 %v1330_v12, %v1329_v4 }
 0x10b   :  { %v1435_v21 = vsel %vm1434_vm0, %v1180_v13, %v1324_v14  ;;  %v1345_v17 = vadd.f32 %v1344_v10, %v1343_v9 }
 0x10c   :  { %v1437_v24 = vsel %vm1434_vm0, %v1194_v15, %v1338_v18  ;;  %v1436_v25 = vsel %vm1434_vm0, %v1187_v19, %v1331_v20 }
 0x10d   :  { %v1467_v26 = vcombine.low %v1435_v21, %v1436_v25  ;;  %v1438_v27 = vsel %vm1434_vm0, %v1201_v23, %v1345_v17 }
 0x10e   :  { %v1468_v28 = vcombine.low %v1437_v24, %v1438_v27 }
 0x10f   :  { %v1475_v29 = vrot.slane %v1467_v26, %v2145_v22 }
 0x110   :  { %v1482_v30 = vrot.slane %v1468_v28, %v2145_v22 }
 0x112   :  { %v1483_v31 = vcombine.low %v1475_v29, %v1482_v30 }
 0x114   :  { %1543 = vst [vmem:[%s2257_s3] sm:$0xff] %v1483_v31 }
 0x118   :  { %v910_v8 = vpop.f32.mrb[4].mxu0  ;;  %v953_v32 = vpop.f32.mrb[4].mxu1 }
 0x119   :  { %1138 = vst [vmem:[%s2256_s2 + $0x20] sm:$0xff] %v910_v8  ;;  %v1290_v16 = vmul.f32 %v910_v8, %v910_v8  ;;  %v912_v33 = vpop.f32.mrb[5].mxu0  ;;  %1140 = vst [vmem:[%s2256_s2 + $0x30] sm:$0xff] %v953_v32  ;;  %v1292_v34 = vmul.f32 %v953_v32, %v953_v32  ;;  %v955_v35 = vpop.f32.mrb[5].mxu1 }
 0x11a   :  { %1139 = vst [vmem:[%s2256_s2 + $0x28] sm:$0xff] %v912_v33  ;;  %v914_v36 = vpop.f32.mrb[6].mxu0  ;;  %v1291_v37 = vmul.f32 %v912_v33, %v912_v33  ;;  %1141 = vst [vmem:[%s2256_s2 + $0x38] sm:$0xff] %v955_v35  ;;  %v1293_v38 = vmul.f32 %v955_v35, %v955_v35  ;;  %v957_v40 = vpop.f32.mrb[6].mxu1 }
 0x11b   :  { %1154 = vst [vmem:[%s2256_s2 + $0xa0] sm:$0xff] %v914_v36  ;;  %v1202_v3 = vadd.f32 %v914_v36, %v910_v8  ;;  %v1306_v39 = vmul.f32 %v914_v36, %v914_v36  ;;  %v916_v41 = vpop.f32.mrb[7].mxu0  ;;  %1156 = vst [vmem:[%s2256_s2 + $0xb0] sm:$0xff] %v957_v40  ;;  %v1216_v42 = vadd.f32 %v957_v40, %v953_v32  ;;  %v959_v46 = vpop.f32.mrb[7].mxu1 }
 0x11c   :  { %v1308_v43 = vmul.f32 %v957_v40, %v957_v40  ;;  %1155 = vst [vmem:[%s2256_s2 + $0xa8] sm:$0xff] %v916_v41  ;;  %v1209_v44 = vadd.f32 %v916_v41, %v912_v33  ;;  %v1307_v45 = vmul.f32 %v916_v41, %v916_v41  ;;  %1157 = vst [vmem:[%s2256_s2 + $0xb8] sm:$0xff] %v959_v46 }
 0x11d   :  { %v1203_v47 = vrot.slane %v1202_v3, 4  ;;  %v1346_v48 = vadd.f32 %v1306_v39, %v1290_v16  ;;  %v1223_v49 = vadd.f32 %v959_v46, %v955_v35  ;;  %v1309_v50 = vmul.f32 %v959_v46, %v959_v46 }
 0x11e   :  { %v1217_v51 = vrot.slane %v1216_v42, 4  ;;  %v1360_v52 = vadd.f32 %v1308_v43, %v1292_v34  ;;  %v1210_v53 = vrot.slane %v1209_v44, 4  ;;  %v1353_v54 = vadd.f32 %v1307_v45, %v1291_v37 }
 0x11f   :  { %v1204_v55 = vadd.f32 %v1203_v47, %v1202_v3  ;;  %v1347_v56 = vrot.slane %v1346_v48, 4  ;;  %v1224_v57 = vrot.slane %v1223_v49, 4  ;;  %v1367_v58 = vadd.f32 %v1309_v50, %v1293_v38 }
 0x120   :  { %v1218_v59 = vadd.f32 %v1217_v51, %v1216_v42  ;;  %v1361_v60 = vrot.slane %v1360_v52, 4  ;;  %v1211_v61 = vadd.f32 %v1210_v53, %v1209_v44  ;;  %v1354_v62 = vrot.slane %v1353_v54, 4 }
 0x121   :  { %v1205_v63 = vrot.slane %v1204_v55, 2  ;;  %v1348_v0 = vadd.f32 %v1347_v56, %v1346_v48  ;;  %v1225_v1 = vadd.f32 %v1224_v57, %v1223_v49  ;;  %v1368_v2 = vrot.slane %v1367_v58, 4 }
 0x122   :  { %v1219_v4 = vrot.slane %v1218_v59, 2  ;;  %v1362_v5 = vadd.f32 %v1361_v60, %v1360_v52  ;;  %v1212_v6 = vrot.slane %v1211_v61, 2  ;;  %v1355_v7 = vadd.f32 %v1354_v62, %v1353_v54 }
 0x123   :  { %v1206_v9 = vadd.f32 %v1205_v63, %v1204_v55  ;;  %v1349_v11 = vrot.slane %v1348_v0, 2  ;;  %v1226_v12 = vrot.slane %v1225_v1, 2  ;;  %v1369_v13 = vadd.f32 %v1368_v2, %v1367_v58 }
 0x124   :  { %v1220_v14 = vadd.f32 %v1219_v4, %v1218_v59  ;;  %v1363_v10 = vrot.slane %v1362_v5, 2  ;;  %v1213_v15 = vadd.f32 %v1212_v6, %v1211_v61  ;;  %v1356_v18 = vrot.slane %v1355_v7, 2 }
 0x125   :  { %v1207_v19 = vrot.slane %v1206_v9, 1  ;;  %v1350_v20 = vadd.f32 %v1349_v11, %v1348_v0  ;;  %v1227_v21 = vadd.f32 %v1226_v12, %v1225_v1  ;;  %v1370_v23 = vrot.slane %v1369_v13, 2 }
 0x126   :  { %v1221_v17 = vrot.slane %v1220_v14, 1  ;;  %v1364_v24 = vadd.f32 %v1363_v10, %v1362_v5  ;;  %v1214_v25 = vrot.slane %v1213_v15, 1  ;;  %v1357_v26 = vadd.f32 %v1356_v18, %v1355_v7 }
 0x127   :  { %v1351_v27 = vrot.slane %v1350_v20, 1  ;;  %v1228_v28 = vrot.slane %v1227_v21, 1  ;;  %v1371_v29 = vadd.f32 %v1370_v23, %v1369_v13  ;;  %v1208_v8 = vadd.f32 %v1207_v19, %v1206_v9 }
 0x128   :  { %v1365_v30 = vrot.slane %v1364_v24, 1  ;;  %v1358_v31 = vrot.slane %v1357_v26, 1  ;;  %v1222_v33 = vadd.f32 %v1221_v17, %v1220_v14  ;;  %v1215_v35 = vadd.f32 %v1214_v25, %v1213_v15 }
 0x129   :  { %v1352_v16 = vadd.f32 %v1351_v27, %v1350_v20  ;;  %v1372_v32 = vrot.slane %v1371_v29, 1  ;;  %v1229_v38 = vadd.f32 %v1228_v28, %v1227_v21 }
 0x12a   :  { %v1366_v34 = vadd.f32 %v1365_v30, %v1364_v24  ;;  %v1359_v36 = vadd.f32 %v1358_v31, %v1357_v26 }
 0x12b   :  { %v1439_v37 = vsel %vm1434_vm0, %v1208_v8, %v1352_v16  ;;  %v1373_v3 = vadd.f32 %v1372_v32, %v1371_v29 }
 0x12c   :  { %v1441_v39 = vsel %vm1434_vm0, %v1222_v33, %v1366_v34  ;;  %v1440_v40 = vsel %vm1434_vm0, %v1215_v35, %v1359_v36 }
 0x12d   :  { %v1484_v41 = vcombine.low %v1439_v37, %v1440_v40  ;;  %v1442_v42 = vsel %vm1434_vm0, %v1229_v38, %v1373_v3 }
 0x12e   :  { %v1485_v43 = vcombine.low %v1441_v39, %v1442_v42 }
 0x12f   :  { %v1492_v44 = vrot.slane %v1484_v41, %v2145_v22 }
 0x130   :  { %v1499_v45 = vrot.slane %v1485_v43, %v2145_v22 }
 0x132   :  { %v1500_v46 = vcombine.low %v1492_v44, %v1499_v45 }
 0x134   :  { %1544 = vst [vmem:[%s2257_s3 + $0x8] sm:$0xff] %v1500_v46 }
 0x138   :  { %v996_v47 = vpop.f32.mrb[8].mxu0  ;;  %v1039_v49 = vpop.f32.mrb[8].mxu1 }
 0x139   :  { %1142 = vst [vmem:[%s2256_s2 + $0x40] sm:$0xff] %v996_v47  ;;  %v1294_v48 = vmul.f32 %v996_v47, %v996_v47  ;;  %v998_v50 = vpop.f32.mrb[9].mxu0  ;;  %1144 = vst [vmem:[%s2256_s2 + $0x50] sm:$0xff] %v1039_v49  ;;  %v1296_v51 = vmul.f32 %v1039_v49, %v1039_v49  ;;  %v1041_v52 = vpop.f32.mrb[9].mxu1 }
 0x13a   :  { %1143 = vst [vmem:[%s2256_s2 + $0x48] sm:$0xff] %v998_v50  ;;  %v1000_v53 = vpop.f32.mrb[10].mxu0  ;;  %v1295_v54 = vmul.f32 %v998_v50, %v998_v50  ;;  %1145 = vst [vmem:[%s2256_s2 + $0x58] sm:$0xff] %v1041_v52  ;;  %v1297_v55 = vmul.f32 %v1041_v52, %v1041_v52  ;;  %v1043_v58 = vpop.f32.mrb[10].mxu1 }
 0x13b   :  { %1158 = vst [vmem:[%s2256_s2 + $0xc0] sm:$0xff] %v1000_v53  ;;  %v1230_v56 = vadd.f32 %v1000_v53, %v996_v47  ;;  %v1310_v57 = vmul.f32 %v1000_v53, %v1000_v53  ;;  %v1002_v59 = vpop.f32.mrb[11].mxu0  ;;  %1160 = vst [vmem:[%s2256_s2 + $0xd0] sm:$0xff] %v1043_v58  ;;  %v1244_v60 = vadd.f32 %v1043_v58, %v1039_v49  ;;  %v1045_v0 = vpop.f32.mrb[11].mxu1 }
 0x13c   :  { %v1312_v61 = vmul.f32 %v1043_v58, %v1043_v58  ;;  %1159 = vst [vmem:[%s2256_s2 + $0xc8] sm:$0xff] %v1002_v59  ;;  %v1237_v62 = vadd.f32 %v1002_v59, %v998_v50  ;;  %v1311_v63 = vmul.f32 %v1002_v59, %v1002_v59  ;;  %1161 = vst [vmem:[%s2256_s2 + $0xd8] sm:$0xff] %v1045_v0 }
 0x13d   :  { %v1231_v1 = vrot.slane %v1230_v56, 4  ;;  %v1374_v2 = vadd.f32 %v1310_v57, %v1294_v48  ;;  %v1251_v4 = vadd.f32 %v1045_v0, %v1041_v52  ;;  %v1313_v5 = vmul.f32 %v1045_v0, %v1045_v0 }
 0x13e   :  { %v1245_v6 = vrot.slane %v1244_v60, 4  ;;  %v1388_v7 = vadd.f32 %v1312_v61, %v1296_v51  ;;  %v1238_v9 = vrot.slane %v1237_v62, 4  ;;  %v1381_v11 = vadd.f32 %v1311_v63, %v1295_v54 }
 0x13f   :  { %v1232_v12 = vadd.f32 %v1231_v1, %v1230_v56  ;;  %v1375_v13 = vrot.slane %v1374_v2, 4  ;;  %v1252_v14 = vrot.slane %v1251_v4, 4  ;;  %v1395_v10 = vadd.f32 %v1313_v5, %v1297_v55 }
 0x140   :  { %v1246_v15 = vadd.f32 %v1245_v6, %v1244_v60  ;;  %v1389_v18 = vrot.slane %v1388_v7, 4  ;;  %v1239_v19 = vadd.f32 %v1238_v9, %v1237_v62  ;;  %v1382_v20 = vrot.slane %v1381_v11, 4 }
 0x141   :  { %v1233_v21 = vrot.slane %v1232_v12, 2  ;;  %v1376_v23 = vadd.f32 %v1375_v13, %v1374_v2  ;;  %v1253_v17 = vadd.f32 %v1252_v14, %v1251_v4  ;;  %v1396_v24 = vrot.slane %v1395_v10, 4 }
 0x142   :  { %v1247_v25 = vrot.slane %v1246_v15, 2  ;;  %v1390_v26 = vadd.f32 %v1389_v18, %v1388_v7  ;;  %v1240_v27 = vrot.slane %v1239_v19, 2  ;;  %v1383_v28 = vadd.f32 %v1382_v20, %v1381_v11 }
 0x143   :  { %v1234_v29 = vadd.f32 %v1233_v21, %v1232_v12  ;;  %v1377_v30 = vrot.slane %v1376_v23, 2  ;;  %v1254_v31 = vrot.slane %v1253_v17, 2  ;;  %v1397_v8 = vadd.f32 %v1396_v24, %v1395_v10 }
 0x144   :  { %v1248_v16 = vadd.f32 %v1247_v25, %v1246_v15  ;;  %v1391_v32 = vrot.slane %v1390_v26, 2  ;;  %v1241_v33 = vadd.f32 %v1240_v27, %v1239_v19  ;;  %v1384_v34 = vrot.slane %v1383_v28, 2 }
 0x145   :  { %v1235_v35 = vrot.slane %v1234_v29, 1  ;;  %v1378_v36 = vadd.f32 %v1377_v30, %v1376_v23  ;;  %v1255_v37 = vadd.f32 %v1254_v31, %v1253_v17  ;;  %v1398_v38 = vrot.slane %v1397_v8, 2 }
 0x146   :  { %v1249_v3 = vrot.slane %v1248_v16, 1  ;;  %v1392_v39 = vadd.f32 %v1391_v32, %v1390_v26  ;;  %v1242_v40 = vrot.slane %v1241_v33, 1  ;;  %v1385_v41 = vadd.f32 %v1384_v34, %v1383_v28 }
 0x147   :  { %v1379_v42 = vrot.slane %v1378_v36, 1  ;;  %v1256_v43 = vrot.slane %v1255_v37, 1  ;;  %v1399_v44 = vadd.f32 %v1398_v38, %v1397_v8  ;;  %v1236_v47 = vadd.f32 %v1235_v35, %v1234_v29 }
 0x148   :  { %v1393_v45 = vrot.slane %v1392_v39, 1  ;;  %v1386_v46 = vrot.slane %v1385_v41, 1  ;;  %v1250_v50 = vadd.f32 %v1249_v3, %v1248_v16  ;;  %v1243_v52 = vadd.f32 %v1242_v40, %v1241_v33 }
 0x149   :  { %v1380_v48 = vadd.f32 %v1379_v42, %v1378_v36  ;;  %v1400_v49 = vrot.slane %v1399_v44, 1  ;;  %v1257_v55 = vadd.f32 %v1256_v43, %v1255_v37 }
 0x14a   :  { %v1394_v51 = vadd.f32 %v1393_v45, %v1392_v39  ;;  %v1387_v53 = vadd.f32 %v1386_v46, %v1385_v41 }
 0x14b   :  { %v1443_v54 = vsel %vm1434_vm0, %v1236_v47, %v1380_v48  ;;  %v1401_v56 = vadd.f32 %v1400_v49, %v1399_v44 }
 0x14c   :  { %v1445_v57 = vsel %vm1434_vm0, %v1250_v50, %v1394_v51  ;;  %v1444_v58 = vsel %vm1434_vm0, %v1243_v52, %v1387_v53 }
 0x14d   :  { %v1501_v59 = vcombine.low %v1443_v54, %v1444_v58  ;;  %v1446_v60 = vsel %vm1434_vm0, %v1257_v55, %v1401_v56 }
 0x14e   :  { %v1502_v61 = vcombine.low %v1445_v57, %v1446_v60 }
 0x14f   :  { %v1509_v62 = vrot.slane %v1501_v59, %v2145_v22 }
 0x150   :  { %v1516_v63 = vrot.slane %v1502_v61, %v2145_v22 }
 0x152   :  { %v1517_v0 = vcombine.low %v1509_v62, %v1516_v63 }
 0x154   :  { %1545 = vst [vmem:[%s2257_s3 + $0x10] sm:$0xff] %v1517_v0 }
 0x158   :  { %v1082_v1 = vpop.f32.mrb[12].mxu0  ;;  %v1125_v2 = vpop.f32.mrb[12].mxu1 }
 0x159   :  { %1146 = vst [vmem:[%s2256_s2 + $0x60] sm:$0xff] %v1082_v1  ;;  %v1084_v4 = vpop.f32.mrb[13].mxu0  ;;  %v1298_v5 = vmul.f32 %v1082_v1, %v1082_v1  ;;  %1148 = vst [vmem:[%s2256_s2 + $0x70] sm:$0xff] %v1125_v2  ;;  %v1300_v6 = vmul.f32 %v1125_v2, %v1125_v2  ;;  %v1127_v7 = vpop.f32.mrb[13].mxu1 }
 0x15a   :  { %1147 = vst [vmem:[%s2256_s2 + $0x68] sm:$0xff] %v1084_v4  ;;  %v1086_v9 = vpop.f32.mrb[14].mxu0  ;;  %v1299_v11 = vmul.f32 %v1084_v4, %v1084_v4  ;;  %1149 = vst [vmem:[%s2256_s2 + $0x78] sm:$0xff] %v1127_v7  ;;  %v1301_v12 = vmul.f32 %v1127_v7, %v1127_v7  ;;  %v1129_v10 = vpop.f32.mrb[14].mxu1 }
 0x15b   :  { %1162 = vst [vmem:[%s2256_s2 + $0xe0] sm:$0xff] %v1086_v9  ;;  %v1258_v13 = vadd.f32 %v1086_v9, %v1082_v1  ;;  %v1314_v14 = vmul.f32 %v1086_v9, %v1086_v9  ;;  %v1088_v15 = vpop.f32.mrb[15].mxu0  ;;  %1164 = vst [vmem:[%s2256_s2 + $0xf0] sm:$0xff] %v1129_v10  ;;  %v1272_v18 = vadd.f32 %v1129_v10, %v1125_v2  ;;  %v1131_v23 = vpop.f32.mrb[15].mxu1 }
 0x15c   :  { %v1316_v19 = vmul.f32 %v1129_v10, %v1129_v10  ;;  %1163 = vst [vmem:[%s2256_s2 + $0xe8] sm:$0xff] %v1088_v15  ;;  %v1265_v20 = vadd.f32 %v1088_v15, %v1084_v4  ;;  %v1315_v21 = vmul.f32 %v1088_v15, %v1088_v15  ;;  %1165 = vst [vmem:[%s2256_s2 + $0xf8] sm:$0xff] %v1131_v23 }
 0x15d   :  { %v1259_v17 = vrot.slane %v1258_v13, 4  ;;  %v1402_v24 = vadd.f32 %v1314_v14, %v1298_v5  ;;  %v1279_v25 = vadd.f32 %v1131_v23, %v1127_v7  ;;  %v1317_v26 = vmul.f32 %v1131_v23, %v1131_v23 }
 0x15e   :  { %v1273_v27 = vrot.slane %v1272_v18, 4  ;;  %v1416_v28 = vadd.f32 %v1316_v19, %v1300_v6  ;;  %v1266_v29 = vrot.slane %v1265_v20, 4  ;;  %v1409_v30 = vadd.f32 %v1315_v21, %v1299_v11 }
 0x15f   :  { %v1260_v31 = vadd.f32 %v1259_v17, %v1258_v13  ;;  %v1403_v8 = vrot.slane %v1402_v24, 4  ;;  %v1280_v16 = vrot.slane %v1279_v25, 4  ;;  %v1423_v32 = vadd.f32 %v1317_v26, %v1301_v12 }
 0x160   :  { %v1274_v33 = vadd.f32 %v1273_v27, %v1272_v18  ;;  %v1417_v34 = vrot.slane %v1416_v28, 4  ;;  %v1267_v35 = vadd.f32 %v1266_v29, %v1265_v20  ;;  %v1410_v36 = vrot.slane %v1409_v30, 4 }
 0x161   :  { %v1261_v37 = vrot.slane %v1260_v31, 2  ;;  %v1404_v38 = vadd.f32 %v1403_v8, %v1402_v24  ;;  %v1281_v3 = vadd.f32 %v1280_v16, %v1279_v25  ;;  %v1424_v39 = vrot.slane %v1423_v32, 4 }
 0x162   :  { %v1275_v40 = vrot.slane %v1274_v33, 2  ;;  %v1418_v41 = vadd.f32 %v1417_v34, %v1416_v28  ;;  %v1268_v42 = vrot.slane %v1267_v35, 2  ;;  %v1411_v43 = vadd.f32 %v1410_v36, %v1409_v30 }
 0x163   :  { %v1262_v44 = vadd.f32 %v1261_v37, %v1260_v31  ;;  %v1405_v45 = vrot.slane %v1404_v38, 2  ;;  %v1282_v46 = vrot.slane %v1281_v3, 2  ;;  %v1425_v47 = vadd.f32 %v1424_v39, %v1423_v32 }
 0x164   :  { %v1276_v48 = vadd.f32 %v1275_v40, %v1274_v33  ;;  %v1419_v49 = vrot.slane %v1418_v41, 2  ;;  %v1269_v50 = vadd.f32 %v1268_v42, %v1267_v35  ;;  %v1412_v51 = vrot.slane %v1411_v43, 2 }
 0x165   :  { %v1263_v52 = vrot.slane %v1262_v44, 1  ;;  %v1406_v53 = vadd.f32 %v1405_v45, %v1404_v38  ;;  %v1283_v54 = vadd.f32 %v1282_v46, %v1281_v3  ;;  %v1426_v55 = vrot.slane %v1425_v47, 2 }
 0x166   :  { %v1277_v56 = vrot.slane %v1276_v48, 1  ;;  %v1420_v57 = vadd.f32 %v1419_v49, %v1418_v41  ;;  %v1270_v58 = vrot.slane %v1269_v50, 1  ;;  %v1413_v59 = vadd.f32 %v1412_v51, %v1411_v43 }
 0x167   :  { %v1407_v60 = vrot.slane %v1406_v53, 1  ;;  %v1284_v61 = vrot.slane %v1283_v54, 1  ;;  %v1427_v62 = vadd.f32 %v1426_v55, %v1425_v47  ;;  %v1264_v1 = vadd.f32 %v1263_v52, %v1262_v44 }
 0x168   :  { %v1421_v63 = vrot.slane %v1420_v57, 1  ;;  %v1414_v0 = vrot.slane %v1413_v59, 1  ;;  %v1278_v5 = vadd.f32 %v1277_v56, %v1276_v48  ;;  %v1271_v7 = vadd.f32 %v1270_v58, %v1269_v50 }
 0x169   :  { %v1408_v2 = vadd.f32 %v1407_v60, %v1406_v53  ;;  %v1428_v4 = vrot.slane %v1427_v62, 1  ;;  %v1285_v12 = vadd.f32 %v1284_v61, %v1283_v54 }
 0x16a   :  { %v1422_v6 = vadd.f32 %v1421_v63, %v1420_v57  ;;  %v1415_v9 = vadd.f32 %v1414_v0, %v1413_v59 }
 0x16b   :  { %v1447_v11 = vsel %vm1434_vm0, %v1264_v1, %v1408_v2  ;;  %v1429_v13 = vadd.f32 %v1428_v4, %v1427_v62 }
 0x16c   :  { %v1449_v14 = vsel %vm1434_vm0, %v1278_v5, %v1422_v6  ;;  %v1448_v10 = vsel %vm1434_vm0, %v1271_v7, %v1415_v9 }
 0x16d   :  { %v1518_v15 = vcombine.low %v1447_v11, %v1448_v10  ;;  %v1450_v18 = vsel %vm1434_vm0, %v1285_v12, %v1429_v13 }
 0x16e   :  { %v1519_v19 = vcombine.low %v1449_v14, %v1450_v18 }
 0x16f   :  { %v1526_v20 = vrot.slane %v1518_v15, %v2145_v22 }
 0x170   :  { %v1533_v21 = vrot.slane %v1519_v19, %v2145_v22 }
 0x172   :  { %v1534_v23 = vcombine.low %v1526_v20, %v1533_v21 }
 0x174   :  { %1546 = vst [vmem:[%s2257_s3 + $0x18] sm:$0xff] %v1534_v23 }

// kernel: generator_forward.10
= control target key start
LH: loop header
LB: loop body
LE: loop exit
PB: predicated region body
PF: predicated region fallthrough
CT: control target
= control target key end

     0   :  { %vm168_vm0 = vcmask 519168   ;;  %s373_s0 = inlined_call_operand.vmem [shape: f32[112,64], index: 0, kind: input, shape index: {}]   ;;  %s374_s1 = inlined_call_operand.vmem [shape: f32[1,64], index: 1, kind: input, shape index: {}]   ;;  %s375_s2 = inlined_call_operand.vmem [shape: f32[1,64], index: 2, kind: input, shape index: {}]   ;;  %s376_s3 = inlined_call_operand.vmem [shape: bf16[112,64], index: 3, kind: output, shape index: {}]  }
   0x1   :  { %v14_v0 = vld [vmem:[%s373_s0] sm:$0xff]  ;;  %v15_v4 = vld [vmem:[%s373_s0 + $0x8] sm:$0xff]  ;;  %v16_v5 = vld [vmem:[%s373_s0 + $0x10] sm:$0xff] }
   0x2   :  { %v243_v1 = vld [vmem:[%s374_s1] ss:$0 sm:$0xff]  ;;  %v17_v6 = vld [vmem:[%s373_s0 + $0x18] sm:$0xff]  ;;  %v19_v11 = vld [vmem:[%s373_s0 + $0x28] sm:$0xff] }
   0x3   :  { %v248_v2 = vld [vmem:[%s375_s2] ss:$0 sm:$0xff]  ;;  %v35_v3 = vmul.f32 %v243_v1, %v14_v0  ;;  %v36_v7 = vmul.f32 %v243_v1, %v15_v4  ;;  %v37_v8 = vmul.f32 %v243_v1, %v16_v5  ;;  %v38_v9 = vmul.f32 %v243_v1, %v17_v6  ;;  %v20_v12 = vld [vmem:[%s373_s0 + $0x30] sm:$0xff]  ;;  %v21_v17 = vld [vmem:[%s373_s0 + $0x38] sm:$0xff] }
   0x4   :  { %v18_v10 = vld [vmem:[%s373_s0 + $0x20] sm:$0xff]  ;;  %v40_v15 = vmul.f32 %v243_v1, %v19_v11  ;;  %v41_v16 = vmul.f32 %v243_v1, %v20_v12  ;;  %v42_v21 = vmul.f32 %v243_v1, %v21_v17  ;;  %v23_v34 = vld [vmem:[%s373_s0 + $0x48] sm:$0xff]  ;;  %v24_v38 = vld [vmem:[%s373_s0 + $0x50] sm:$0xff] }
   0x5   :  { %v56_v13 = vadd.f32 %v248_v2, %v35_v3  ;;  %v39_v14 = vmul.f32 %v243_v1, %v18_v10  ;;  %v57_v18 = vadd.f32 %v248_v2, %v36_v7  ;;  %v58_v19 = vadd.f32 %v248_v2, %v37_v8  ;;  %v22_v33 = vld [vmem:[%s373_s0 + $0x40] sm:$0xff]  ;;  %v25_v47 = vld [vmem:[%s373_s0 + $0x58] sm:$0xff]  ;;  %v27_v62 = vld [vmem:[%s373_s0 + $0x68] sm:$0xff] }
   0x6   :  { %v59_v20 = vadd.f32 %v248_v2, %v38_v9  ;;  %v61_v24 = vadd.f32 %v248_v2, %v40_v15  ;;  %v62_v42 = vadd.f32 %v248_v2, %v41_v16  ;;  %v63_v44 = vadd.f32 %v248_v2, %v42_v21  ;;  %v26_v58 = vld [vmem:[%s373_s0 + $0x60] sm:$0xff] }
   0x7   :  { %vm70_vm1 = vcmp.gt.f32.partialorder %v56_v13, 0.0  ;;  %v84_v22 = vmul.f32 0.2, %v56_v13  ;;  %v60_v23 = vadd.f32 %v248_v2, %v39_v14  ;;  %vm71_vm2 = vcmp.gt.f32.partialorder %v57_v18, 0.0 }
   0x8   :  { %v85_v25 = vmul.f32 0.2, %v57_v18  ;;  %vm72_vm3 = vcmp.gt.f32.partialorder %v58_v19, 0.0  ;;  %v86_v26 = vmul.f32 0.2, %v58_v19  ;;  %vm73_vm4 = vcmp.gt.f32.partialorder %v59_v20, 0.0 }
   0x9   :  { %v98_v27 = vsel %vm70_vm1, %v56_v13, %v84_v22  ;;  %v87_v28 = vmul.f32 0.2, %v59_v20  ;;  %vm74_vm5 = vcmp.gt.f32.partialorder %v60_v23, 0.0  ;;  %v88_v32 = vmul.f32 0.2, %v60_v23 }
   0xa   :  { %v203_v29 = vpack.c.bf16 %v98_v27, %v98_v27  ;;  %v99_v30 = vsel %vm71_vm2, %v57_v18, %v85_v25  ;;  %v100_v31 = vsel %vm72_vm3, %v58_v19, %v86_v26  ;;  %vm75_vm6 = vcmp.gt.f32.partialorder %v61_v24, 0.0 }
   0xb   :  { %v204_v35 = vpack.c.bf16 %v99_v30, %v99_v30  ;;  %v205_v36 = vpack.c.bf16 %v100_v31, %v100_v31  ;;  %v101_v37 = vsel %vm73_vm4, %v59_v20, %v87_v28  ;;  %v102_v40 = vsel %vm74_vm5, %v60_v23, %v88_v32 }
   0xc   :  { %169 = vst.msk [vmem:[%s376_s3] sm:$0xf] %vm168_vm0, %v203_v29  ;;  %v206_v39 = vpack.c.bf16 %v101_v37, %v101_v37  ;;  %v89_v41 = vmul.f32 0.2, %v61_v24  ;;  %v207_v43 = vpack.c.bf16 %v102_v40, %v102_v40  ;;  %v43_v45 = vmul.f32 %v243_v1, %v22_v33 }
   0xd   :  { %170 = vst.msk [vmem:[%s376_s3 + $0x4] sm:$0xf] %vm168_vm0, %v204_v35  ;;  %171 = vst.msk [vmem:[%s376_s3 + $0x8] sm:$0xf] %vm168_vm0, %v205_v36  ;;  %v44_v46 = vmul.f32 %v243_v1, %v23_v34  ;;  %vm76_vm7 = vcmp.gt.f32.partialorder %v62_v42, 0.0  ;;  %v45_v50 = vmul.f32 %v243_v1, %v24_v38  ;;  %vm77_vm8 = vcmp.gt.f32.partialorder %v63_v44, 0.0 }
   0xe   :  { %172 = vst.msk [vmem:[%s376_s3 + $0xc] sm:$0xf] %vm168_vm0, %v206_v39  ;;  %v103_v48 = vsel %vm75_vm6, %v61_v24, %v89_v41  ;;  %v90_v49 = vmul.f32 0.2, %v62_v42  ;;  %173 = vst.msk [vmem:[%s376_s3 + $0x10] sm:$0xf] %vm168_vm0, %v207_v43  ;;  %v64_v53 = vadd.f32 %v248_v2, %v43_v45  ;;  %v46_v57 = vmul.f32 %v243_v1, %v25_v47 }
   0xf   :  { %v208_v51 = vpack.c.bf16 %v103_v48, %v103_v48  ;;  %v91_v52 = vmul.f32 0.2, %v63_v44  ;;  %v65_v55 = vadd.f32 %v248_v2, %v44_v46  ;;  %v66_v56 = vadd.f32 %v248_v2, %v45_v50 }
  0x10   :  { %v104_v54 = vsel %vm76_vm7, %v62_v42, %v90_v49  ;;  %vm78_vm9 = vcmp.gt.f32.partialorder %v64_v53, 0.0  ;;  %v92_v61 = vmul.f32 0.2, %v64_v53  ;;  %v67_v5 = vadd.f32 %v248_v2, %v46_v57 }
  0x11   :  { %174 = vst.msk [vmem:[%s376_s3 + $0x14] sm:$0xf] %vm168_vm0, %v208_v51  ;;  %v209_v59 = vpack.c.bf16 %v104_v54, %v104_v54  ;;  %v105_v60 = vsel %vm77_vm8, %v63_v44, %v91_v52  ;;  %vm79_vm10 = vcmp.gt.f32.partialorder %v65_v55, 0.0  ;;  %v93_v0 = vmul.f32 0.2, %v65_v55 }
  0x12   :  { %v210_v63 = vpack.c.bf16 %v105_v60, %v105_v60  ;;  %vm80_vm11 = vcmp.gt.f32.partialorder %v66_v56, 0.0  ;;  %v106_v3 = vsel %vm78_vm9, %v64_v53, %v92_v61  ;;  %v94_v4 = vmul.f32 0.2, %v66_v56 }
  0x13   :  { %175 = vst.msk [vmem:[%s376_s3 + $0x18] sm:$0xf] %vm168_vm0, %v209_v59  ;;  %v47_v6 = vmul.f32 %v243_v1, %v26_v58  ;;  %v211_v7 = vpack.c.bf16 %v106_v3, %v106_v3  ;;  %v107_v8 = vsel %vm79_vm10, %v65_v55, %v93_v0  ;;  %v48_v9 = vmul.f32 %v243_v1, %v27_v62 }
  0x14   :  { %176 = vst.msk [vmem:[%s376_s3 + $0x1c] sm:$0xf] %vm168_vm0, %v210_v63  ;;  %v212_v10 = vpack.c.bf16 %v107_v8, %v107_v8  ;;  %v108_v11 = vsel %vm80_vm11, %v66_v56, %v94_v4  ;;  %vm81_vm12 = vcmp.gt.f32.partialorder %v67_v5, 0.0  ;;  %v95_v12 = vmul.f32 0.2, %v67_v5 }
  0x15   :  { %177 = vst.msk [vmem:[%s376_s3 + $0x20] sm:$0xf] %vm168_vm0, %v211_v7  ;;  %v213_v13 = vpack.c.bf16 %v108_v11, %v108_v11  ;;  %v68_v14 = vadd.f32 %v248_v2, %v47_v6  ;;  %v69_v15 = vadd.f32 %v248_v2, %v48_v9 }
  0x16   :  { %178 = vst.msk [vmem:[%s376_s3 + $0x24] sm:$0xf] %vm168_vm0, %v212_v10  ;;  %v109_v1 = vsel %vm81_vm12, %v67_v5, %v95_v12 }
  0x17   :  { %179 = vst.msk [vmem:[%s376_s3 + $0x28] sm:$0xf] %vm168_vm0, %v213_v13  ;;  %v214_v16 = vpack.c.bf16 %v109_v1, %v109_v1  ;;  %vm82_vm13 = vcmp.gt.f32.partialorder %v68_v14, 0.0  ;;  %v96_v17 = vmul.f32 0.2, %v68_v14  ;;  %vm83_vm14 = vcmp.gt.f32.partialorder %v69_v15, 0.0 }
  0x18   :  { %v97_v18 = vmul.f32 0.2, %v69_v15 }
  0x19   :  { %180 = vst.msk [vmem:[%s376_s3 + $0x2c] sm:$0xf] %vm168_vm0, %v214_v16  ;;  %v110_v2 = vsel %vm82_vm13, %v68_v14, %v96_v17 }
  0x1a   :  { %v215_v19 = vpack.c.bf16 %v110_v2, %v110_v2  ;;  %v111_v20 = vsel %vm83_vm14, %v69_v15, %v97_v18 }
  0x1b   :  { %v216_v21 = vpack.c.bf16 %v111_v20, %v111_v20 }
  0x1c   :  { %181 = vst.msk [vmem:[%s376_s3 + $0x30] sm:$0xf] %vm168_vm0, %v215_v19 }
  0x1d   :  { %182 = vst.msk [vmem:[%s376_s3 + $0x34] sm:$0xf] %vm168_vm0, %v216_v21 }

// kernel: generator_forward.9
= control target key start
LH: loop header
LB: loop body
LE: loop exit
PB: predicated region body
PF: predicated region fallthrough
CT: control target
= control target key end

     0   :  { %vm2150_vm0 = vmmov 0   ;;  %vm1446_vm1 = vcmask 517120   ;;  %vm1427_vm2 = vcmask 523264   ;;  %vm1529_vm3 = vcmask 1040384   ;;  %s2754_s1 = inlined_call_operand.vmem [shape: bf16[1152,64], index: 1, kind: input, shape index: {}]   ;;  %s2755_s0 = inlined_call_operand.vmem [shape: bf16[112,1152], index: 0, kind: input, shape index: {}]   ;;  %s2756_s3 = inlined_call_operand.vmem [shape: f32[2,64], index: 3, kind: output, shape index: {1}]   ;;  %s2757_s2 = inlined_call_operand.vmem [shape: f32[112,64], index: 2, kind: output, shape index: {0}]  }
   0x1   :  { %v1986_v0 = vld [vmem:[%s2754_s1 + $0x40] sm:$0xff]   ;;  %v1988_v2 = vld [vmem:[%s2754_s1 + $0x48] sm:$0xff]   ;;  %v1990_v4 = vld [vmem:[%s2754_s1 + $0x50] sm:$0xff]  }
   0x2   :  { %v1987_v1 = vld [vmem:[%s2754_s1] sm:$0xff]   ;;  %1968 = vmatprep.subr.bf16.mxu1 %v1986_v0  ;;  %1677 = vmatprep.subr.bf16.mxu0 %v1986_v0  ;;  %v1989_v3 = vld [vmem:[%s2754_s1 + $0x8] sm:$0xff]   ;;  %v1991_v5 = vld [vmem:[%s2754_s1 + $0x10] sm:$0xff]  }
   0x3   :  { %1976 = vmatpush3.bf16.msra.mxu1 %v1987_v1  ;;  %1678 = vmatpush3.bf16.msra.mxu0 %v1987_v1  ;;  %v1992_v6 = vld [vmem:[%s2754_s1 + $0x58] sm:$0xff]   ;;  %v1994_v8 = vld [vmem:[%s2754_s1 + $0x60] sm:$0xff]   ;;  %v1996_v10 = vld [vmem:[%s2754_s1 + $0x68] sm:$0xff]  }
   0x4   :  { %1969 = vmatprep.subr.bf16.mxu1 %v1988_v2  ;;  %1679 = vmatprep.subr.bf16.mxu0 %v1988_v2  ;;  %v1993_v7 = vld [vmem:[%s2754_s1 + $0x18] sm:$0xff]   ;;  %v1995_v9 = vld [vmem:[%s2754_s1 + $0x20] sm:$0xff]   ;;  %v1997_v12 = vld [vmem:[%s2754_s1 + $0x28] sm:$0xff]  }
   0x5   :  { %v2004_v11 = vld [vmem:[%s2755_s0 + $0x124] ss:$36 sps:$4 sm:$0xff]   ;;  %v1998_v14 = vld [vmem:[%s2754_s1 + $0x70] sm:$0xff]   ;;  %v2000_v16 = vld [vmem:[%s2754_s1 + $0x78] sm:$0xff]  }
   0x6   :  { %v2008_v13 = vld [vmem:[%s2755_s0 + $0x4] ss:$36 sps:$4 sm:$0xff]   ;;  %1046 = vmatprep.mubr.bf16.mxu1 %v2004_v11  ;;  %v1999_v15 = vld [vmem:[%s2754_s1 + $0x30] sm:$0xff]   ;;  %v2001_v17 = vld [vmem:[%s2754_s1 + $0x38] sm:$0xff]  }
   0x7   :  { %1977 = vmatpush3.bf16.msra.mxu1 %v1989_v3  ;;  %1680 = vmatpush3.bf16.msra.mxu0 %v1989_v3  ;;  %v2005_v18 = vld [vmem:[%s2754_s1 + $0xc0] sm:$0xff]   ;;  %v2012_v24 = vld [vmem:[%s2754_s1 + $0xc8] sm:$0xff]   ;;  %v2016_v30 = vld [vmem:[%s2754_s1 + $0xd0] sm:$0xff]  }
   0x8   :  { %1970 = vmatprep.subr.bf16.mxu1 %v1990_v4  ;;  %1681 = vmatprep.subr.bf16.mxu0 %v1990_v4  ;;  %v2002_v19 = vld [vmem:[%s2755_s0 + $0x120] ss:$36 sps:$4 sm:$0xff]   ;;  %v2014_v25 = vld [vmem:[%s2754_s1 + $0x148] sm:$0xff]   ;;  %v2021_v31 = vld [vmem:[%s2754_s1 + $0x150] sm:$0xff]  }
   0x9   :  { %1014 = vmatprep.mubr.bf16.mxu0 %v2008_v13  ;;  %v2006_v20 = vld [vmem:[%s2755_s0] ss:$36 sps:$4 sm:$0xff]   ;;  %v2017_v26 = vld [vmem:[%s2755_s0 + $0x4c] ss:$36 sps:$4 sm:$0xff]   ;;  %v2023_v36 = vld [vmem:[%s2754_s1 + $0xd8] sm:$0xff]  }
   0xa   :  { %v2010_v21 = vld [vmem:[%s2754_s1 + $0x140] sm:$0xff]   ;;  %v2013_v27 = vld [vmem:[%s2754_s1 + $0x88] sm:$0xff]   ;;  %v2019_v32 = vld [vmem:[%s2754_s1 + $0x90] sm:$0xff]  }
   0xb   :  { %1978 = vmatpush3.bf16.msra.mxu1 %v1991_v5  ;;  %1682 = vmatpush3.bf16.msra.mxu0 %v1991_v5  ;;  %v2009_v22 = vld [vmem:[%s2754_s1 + $0x80] sm:$0xff]   ;;  %v2024_v28 = vld [vmem:[%s2755_s0 + $0x16c] ss:$36 sps:$4 sm:$0xff]   ;;  %v2028_v37 = vld [vmem:[%s2754_s1 + $0x158] sm:$0xff]  }
   0xc   :  { %1971 = vmatprep.subr.bf16.mxu1 %v1992_v6  ;;  %1683 = vmatprep.subr.bf16.mxu0 %v1992_v6  ;;  %v2011_v23 = vld [vmem:[%s2754_s1 + $0x100] sm:$0xff]   ;;  %v2015_v29 = vld [vmem:[%s2754_s1 + $0x108] sm:$0xff]   ;;  %v2022_v35 = vld [vmem:[%s2754_s1 + $0x110] sm:$0xff]   ;;  %v2149_v6 = vmov 0.0  }
   0xd   :  { %v2020_v33 = vld [vmem:[%s2755_s0 + $0x48] ss:$36 sps:$4 sm:$0xff]   ;;  %v2026_v38 = vld [vmem:[%s2754_s1 + $0x98] sm:$0xff]   ;;  %v2030_v41 = vld [vmem:[%s2754_s1 + $0xe0] sm:$0xff]   ;;  %1447 = vst.msk [vmem:[%s2756_s3] sm:$0x3] %vm1446_vm1, %v2149_v6 }
   0xe   :  { %v2027_v34 = vld [vmem:[%s2755_s0 + $0x168] ss:$36 sps:$4 sm:$0xff]   ;;  %v2029_v39 = vld [vmem:[%s2754_s1 + $0x118] sm:$0xff]   ;;  %v2035_v42 = vld [vmem:[%s2754_s1 + $0x160] sm:$0xff]  }
   0xf   :  { %1979 = vmatpush3.bf16.msra.mxu1 %v1993_v7  ;;  %1684 = vmatpush3.bf16.msra.mxu0 %v1993_v7  ;;  %v2031_v40 = vld [vmem:[%s2755_s0 + $0x94] ss:$36 sps:$4 sm:$0xff]   ;;  %v2033_v44 = vld [vmem:[%s2754_s1 + $0xa0] sm:$0xff]   ;;  %v2037_v48 = vld [vmem:[%s2754_s1 + $0xe8] sm:$0xff]  }
  0x10   :  { %1972 = vmatprep.subr.bf16.mxu1 %v1994_v8  ;;  %1685 = vmatprep.subr.bf16.mxu0 %v1994_v8  ;;  %v2038_v43 = vld [vmem:[%s2755_s0 + $0x1b4] ss:$36 sps:$4 sm:$0xff]   ;;  %v2036_v46 = vld [vmem:[%s2754_s1 + $0x120] sm:$0xff]   ;;  %v2042_v49 = vld [vmem:[%s2754_s1 + $0x168] sm:$0xff]  }
  0x11   :  { %v2034_v45 = vld [vmem:[%s2755_s0 + $0x90] ss:$36 sps:$4 sm:$0xff]   ;;  %v2040_v50 = vld [vmem:[%s2754_s1 + $0xa8] sm:$0xff]   ;;  %v2045_v51 = vld [vmem:[%s2755_s0 + $0xdc] ss:$36 sps:$4 sm:$0xff]  }
  0x12   :  { %v2041_v47 = vld [vmem:[%s2755_s0 + $0x1b0] ss:$36 sps:$4 sm:$0xff]   ;;  %v2043_v52 = vld [vmem:[%s2754_s1 + $0x128] sm:$0xff]   ;;  %v2048_v56 = vld [vmem:[%s2755_s0 + $0xd8] ss:$36 sps:$4 sm:$0xff]  }
  0x13   :  { %1980 = vmatpush3.bf16.msra.mxu1 %v1995_v9  ;;  %1686 = vmatpush3.bf16.msra.mxu0 %v1995_v9  ;;  %v2044_v53 = vld [vmem:[%s2754_s1 + $0xf0] sm:$0xff]   ;;  %v2051_v58 = vld [vmem:[%s2754_s1 + $0xf8] sm:$0xff]   ;;  %v2058_v63 = vld [vmem:[%s2754_s1 + $0x1c0] sm:$0xff]  }
  0x14   :  { %1973 = vmatprep.subr.bf16.mxu1 %v1996_v10  ;;  %1687 = vmatprep.subr.bf16.mxu0 %v1996_v10  ;;  %v2049_v54 = vld [vmem:[%s2754_s1 + $0x170] sm:$0xff]   ;;  %v2053_v59 = vld [vmem:[%s2754_s1 + $0x178] sm:$0xff]   ;;  %v2054_v0 = vld [vmem:[%s2755_s0 + $0x8] ss:$36 sps:$4 sm:$0xff]  }
  0x15   :  { %v2047_v55 = vld [vmem:[%s2754_s1 + $0xb0] sm:$0xff]   ;;  %v2052_v60 = vld [vmem:[%s2754_s1 + $0xb8] sm:$0xff]   ;;  %v2062_v3 = vld [vmem:[%s2754_s1 + $0x180] sm:$0xff]  }
  0x16   :  { %v2050_v57 = vld [vmem:[%s2754_s1 + $0x130] sm:$0xff]   ;;  %v2057_v62 = vld [vmem:[%s2754_s1 + $0x138] sm:$0xff]   ;;  %v2063_v4 = vld [vmem:[%s2754_s1 + $0x200] sm:$0xff]  }
  0x17   :  { %1981 = vmatpush3.bf16.msra.mxu1 %v1997_v12  ;;  %1688 = vmatpush3.bf16.msra.mxu0 %v1997_v12  ;;  %v2056_v61 = vld [vmem:[%s2755_s0 + $0xc] ss:$36 sps:$4 sm:$0xff]   ;;  %v2061_v2 = vld [vmem:[%s2755_s0 + $0x14] ss:$36 sps:$4 sm:$0xff]   ;;  %v2069_v9 = vld [vmem:[%s2755_s0 + $0x5c] ss:$36 sps:$4 sm:$0xff]  }
  0x18   :  { %1974 = vmatprep.subr.bf16.mxu1 %v1998_v14  ;;  %1689 = vmatprep.subr.bf16.mxu0 %v1998_v14  ;;  %v2059_v1 = vld [vmem:[%s2755_s0 + $0x10] ss:$36 sps:$4 sm:$0xff]   ;;  %v2066_v7 = vld [vmem:[%s2754_s1 + $0x1c8] sm:$0xff]   ;;  %v2071_v13 = vld [vmem:[%s2755_s0 + $0x58] ss:$36 sps:$4 sm:$0xff]  }
  0x19   :  { %v2064_v5 = vld [vmem:[%s2755_s0 + $0x54] ss:$36 sps:$4 sm:$0xff]   ;;  %v2068_v8 = vld [vmem:[%s2754_s1 + $0x188] sm:$0xff]   ;;  %v2074_v14 = vld [vmem:[%s2755_s0 + $0x9c] ss:$36 sps:$4 sm:$0xff]  }
  0x1a   :  { %v2067_v10 = vld [vmem:[%s2755_s0 + $0x50] ss:$36 sps:$4 sm:$0xff]   ;;  %v2072_v11 = vld [vmem:[%s2754_s1 + $0x208] sm:$0xff]  }
  0x1b   :  { %1982 = vmatpush3.bf16.msra.mxu1 %v1999_v15  ;;  %1690 = vmatpush3.bf16.msra.mxu0 %v1999_v15  ;;  %v2073_v12 = vld [vmem:[%s2754_s1 + $0x1d0] sm:$0xff]  }
  0x1c   :  { %1975 = vmatprep.subr.bf16.mxu1 %v2000_v16  ;;  %1691 = vmatprep.subr.bf16.mxu0 %v2000_v16  ;;  %v2076_v15 = vld [vmem:[%s2754_s1 + $0x190] sm:$0xff]   ;;  %v2078_v16 = vld [vmem:[%s2755_s0 + $0xa4] ss:$36 sps:$4 sm:$0xff]  }
  0x1f   :  { %1983 = vmatpush3.bf16.msra.mxu1 %v2001_v17  ;;  %1692 = vmatpush3.bf16.msra.mxu0 %v2001_v17  ;;  %v2081_v17 = vld [vmem:[%s2754_s1 + $0x210] sm:$0xff]  }
  0x20   :  { %1735 = vmatprep.subr.bf16.mxu1 %v2005_v18  ;;  %1793 = vmatprep.subr.bf16.mxu0 %v2010_v21  ;;  %v2082_v18 = vld [vmem:[%s2754_s1 + $0x1d8] sm:$0xff]   ;;  %v2080_v21 = vld [vmem:[%s2755_s0 + $0xa0] ss:$36 sps:$4 sm:$0xff]  }
  0x22   :  { %1047 = vmatmul.mubr.bf16.vlgmr.msra.gmra.mrb[0].mxu1 %v2002_v19  ;;  %1015 = vmatmul.mubr.bf16.vlgmr.msra.gmra.mrb[0].mxu0 %v2006_v20  ;;  %v2083_v19 = vld [vmem:[%s2754_s1 + $0x198] sm:$0xff]  }
  0x23   :  { %1736 = vmatpush3.bf16.msra.mxu1 %v2009_v22  ;;  %1794 = vmatpush3.bf16.msra.mxu0 %v2011_v23  ;;  %v2077_v20 = vld [vmem:[%s2755_s0 + $0x98] ss:$36 sps:$4 sm:$0xff]   ;;  %v2084_v22 = vld [vmem:[%s2755_s0 + $0xe4] ss:$36 sps:$4 sm:$0xff]   ;;  %v2087_v23 = vld [vmem:[%s2755_s0 + $0xec] ss:$36 sps:$4 sm:$0xff]  }
  0x24   :  { %1737 = vmatprep.subr.bf16.mxu1 %v2012_v24  ;;  %1795 = vmatprep.subr.bf16.mxu0 %v2014_v25  ;;  %v2090_v24 = vld [vmem:[%s2754_s1 + $0x218] sm:$0xff]   ;;  %v2091_v25 = vld [vmem:[%s2754_s1 + $0x1e0] sm:$0xff]  }
  0x25   :  { %1022 = vmatprep.mubr.bf16.mxu0 %v2017_v26  ;;  %1054 = vmatprep.mubr.bf16.mxu1 %v2024_v28  ;;  %v2092_v26 = vld [vmem:[%s2754_s1 + $0x1a0] sm:$0xff]   ;;  %v2089_v28 = vld [vmem:[%s2755_s0 + $0xe8] ss:$36 sps:$4 sm:$0xff]  }
  0x27   :  { %1738 = vmatpush3.bf16.msra.mxu1 %v2013_v27  ;;  %1796 = vmatpush3.bf16.msra.mxu0 %v2015_v29  ;;  %v2086_v27 = vld [vmem:[%s2755_s0 + $0xe0] ss:$36 sps:$4 sm:$0xff]   ;;  %v2093_v29 = vld [vmem:[%s2755_s0 + $0x12c] ss:$36 sps:$4 sm:$0xff]  }
  0x28   :  { %1739 = vmatprep.subr.bf16.mxu1 %v2016_v30  ;;  %1797 = vmatprep.subr.bf16.mxu0 %v2021_v31  ;;  %v2096_v30 = vld [vmem:[%s2755_s0 + $0x134] ss:$36 sps:$4 sm:$0xff]   ;;  %v2099_v31 = vld [vmem:[%s2754_s1 + $0x220] sm:$0xff]  }
  0x2a   :  { %1023 = vmatmul.mubr.bf16.gmra.mrb[4].mxu0 %v2020_v33  ;;  %1055 = vmatmul.mubr.bf16.gmra.mrb[4].mxu1 %v2027_v34  ;;  %v2101_v33 = vld [vmem:[%s2754_s1 + $0x1a8] sm:$0xff]  }
  0x2b   :  { %1740 = vmatpush3.bf16.msra.mxu1 %v2019_v32  ;;  %1798 = vmatpush3.bf16.msra.mxu0 %v2022_v35  ;;  %v2100_v32 = vld [vmem:[%s2754_s1 + $0x1e8] sm:$0xff]  }
  0x2c   :  { %1741 = vmatprep.subr.bf16.mxu1 %v2023_v36  ;;  %1799 = vmatprep.subr.bf16.mxu0 %v2028_v37  ;;  %v2107_v34 = vld [vmem:[%s2754_s1 + $0x228] sm:$0xff]   ;;  %v2098_v36 = vld [vmem:[%s2755_s0 + $0x130] ss:$36 sps:$4 sm:$0xff]  }
  0x2d   :  { %1030 = vmatprep.mubr.bf16.mxu0 %v2031_v40  ;;  %1062 = vmatprep.mubr.bf16.mxu1 %v2038_v43  ;;  %v2095_v35 = vld [vmem:[%s2755_s0 + $0x128] ss:$36 sps:$4 sm:$0xff]   ;;  %v2109_v37 = vld [vmem:[%s2754_s1 + $0x1f0] sm:$0xff]   ;;  %v2105_v40 = vld [vmem:[%s2755_s0 + $0x17c] ss:$36 sps:$4 sm:$0xff]  }
  0x2e   :  { %v2119_v43 = vld [vmem:[%s2754_s1 + $0x1b8] sm:$0xff]  }
  0x2f   :  { %1742 = vmatpush3.bf16.msra.mxu1 %v2026_v38  ;;  %1800 = vmatpush3.bf16.msra.mxu0 %v2029_v39  ;;  %v2110_v38 = vld [vmem:[%s2754_s1 + $0x1b0] sm:$0xff]  }
  0x30   :  { %1743 = vmatprep.subr.bf16.mxu1 %v2030_v41  ;;  %1801 = vmatprep.subr.bf16.mxu0 %v2035_v42  ;;  %v2102_v39 = vld [vmem:[%s2755_s0 + $0x174] ss:$36 sps:$4 sm:$0xff]  }
  0x31   :  { %v2114_v41 = vld [vmem:[%s2754_s1 + $0x230] sm:$0xff]   ;;  %v2117_v42 = vld [vmem:[%s2754_s1 + $0x1f8] sm:$0xff]  }
  0x32   :  { %1031 = vmatmul.mubr.bf16.gmra.mrb[8].mxu0 %v2034_v45  ;;  %1063 = vmatmul.mubr.bf16.gmra.mrb[8].mxu1 %v2041_v47  ;;  %v2123_v45 = vld [vmem:[%s2754_s1 + $0x238] sm:$0xff]  }
  0x33   :  { %1744 = vmatpush3.bf16.msra.mxu1 %v2033_v44  ;;  %1802 = vmatpush3.bf16.msra.mxu0 %v2036_v46  ;;  %v2104_v44 = vld [vmem:[%s2755_s0 + $0x170] ss:$36 sps:$4 sm:$0xff]   ;;  %v2108_v46 = vld [vmem:[%s2755_s0 + $0x178] ss:$36 sps:$4 sm:$0xff]  }
  0x34   :  { %1745 = vmatprep.subr.bf16.mxu1 %v2037_v48  ;;  %1803 = vmatprep.subr.bf16.mxu0 %v2042_v49  ;;  %v2111_v47 = vld [vmem:[%s2755_s0 + $0x1bc] ss:$36 sps:$4 sm:$0xff]   ;;  %v2115_v48 = vld [vmem:[%s2755_s0 + $0x1c4] ss:$36 sps:$4 sm:$0xff]  }
  0x35   :  { %1038 = vmatprep.mubr.bf16.mxu0 %v2045_v51  ;;  %1103 = vmatprep.mubr.bf16.mxu1 %v2056_v61  ;;  %v2113_v49 = vld [vmem:[%s2755_s0 + $0x1b8] ss:$36 sps:$4 sm:$0xff]   ;;  %v2135_v61 = vld [vmem:[%s2755_s0 + $0xf0] ss:$36 sps:$4 sm:$0xff]  }
  0x36   :  { %v2122_v51 = vld [vmem:[%s2755_s0 + $0x1c] ss:$36 sps:$4 sm:$0xff]  }
  0x37   :  { %1746 = vmatpush3.bf16.msra.mxu1 %v2040_v50  ;;  %1804 = vmatpush3.bf16.msra.mxu0 %v2043_v52  ;;  %v2118_v50 = vld [vmem:[%s2755_s0 + $0x1c0] ss:$36 sps:$4 sm:$0xff]   ;;  %v2120_v52 = vld [vmem:[%s2755_s0 + $0x18] ss:$36 sps:$4 sm:$0xff]  }
  0x38   :  { %1747 = vmatprep.subr.bf16.mxu1 %v2044_v53  ;;  %1805 = vmatprep.subr.bf16.mxu0 %v2049_v54  ;;  %v2124_v53 = vld [vmem:[%s2755_s0 + $0x20] ss:$36 sps:$4 sm:$0xff]  }
  0x39   :  { %v2125_v54 = vld [vmem:[%s2755_s0 + $0x64] ss:$36 sps:$4 sm:$0xff]  }
  0x3a   :  { %1039 = vmatmul.mubr.bf16.gmra.mrb[12].mxu0 %v2048_v56  ;;  %v2128_v56 = vld [vmem:[%s2755_s0 + $0x68] ss:$36 sps:$4 sm:$0xff]  }
  0x3b   :  { %1748 = vmatpush3.bf16.msra.mxu1 %v2047_v55  ;;  %1806 = vmatpush3.bf16.msra.mxu0 %v2050_v57  ;;  %v2127_v55 = vld [vmem:[%s2755_s0 + $0x60] ss:$36 sps:$4 sm:$0xff]   ;;  %v2129_v57 = vld [vmem:[%s2755_s0 + $0xac] ss:$36 sps:$4 sm:$0xff]  }
  0x3c   :  { %1749 = vmatprep.subr.bf16.mxu1 %v2051_v58  ;;  %1807 = vmatprep.subr.bf16.mxu0 %v2053_v59  ;;  %v2131_v58 = vld [vmem:[%s2755_s0 + $0xa8] ss:$36 sps:$4 sm:$0xff]   ;;  %v2132_v59 = vld [vmem:[%s2755_s0 + $0xb0] ss:$36 sps:$4 sm:$0xff]  }
  0x3d   :  { %1192 = vmatprep.mubr.bf16.mxu0 %v2061_v2  ;;  %v2141_v2 = vld [vmem:[%s2755_s0 + $0x184] ss:$36 sps:$4 sm:$0xff]  }
  0x3f   :  { %1750 = vmatpush3.bf16.msra.mxu1 %v2052_v60  ;;  %1808 = vmatpush3.bf16.msra.mxu0 %v2057_v62  ;;  %v2133_v60 = vld [vmem:[%s2755_s0 + $0xf4] ss:$36 sps:$4 sm:$0xff]  }
  0x40   :  { %1851 = vmatprep.subr.bf16.mxu1 %v2058_v63  ;;  %1924 = vmatprep.subr.bf16.mxu0 %v2149_v6  ;;  %v2136_v62 = vld [vmem:[%s2755_s0 + $0xf8] ss:$36 sps:$4 sm:$0xff]  }
  0x41   :  { %v2137_v63 = vld [vmem:[%s2755_s0 + $0x13c] ss:$36 sps:$4 sm:$0xff]  }
  0x42   :  { %1104 = vmatmul.mubr.bf16.vlgmr.msra.gmra.mrb[12].mxu1 %v2054_v0  ;;  %1193 = vmatmul.mubr.bf16.vlgmr.msra.gmra.mrb[16].mxu0 %v2059_v1  ;;  %v2139_v0 = vld [vmem:[%s2755_s0 + $0x138] ss:$36 sps:$4 sm:$0xff]   ;;  %v2140_v1 = vld [vmem:[%s2755_s0 + $0x140] ss:$36 sps:$4 sm:$0xff]  }
  0x43   :  { %1852 = vmatpush3.bf16.msra.mxu1 %v2062_v3  ;;  %1925 = vmatpush3.bf16.msra.mxu0 %v2063_v4  ;;  %v2143_v3 = vld [vmem:[%s2755_s0 + $0x180] ss:$36 sps:$4 sm:$0xff]   ;;  %v2144_v4 = vld [vmem:[%s2755_s0 + $0x188] ss:$36 sps:$4 sm:$0xff]  }
  0x44   :  { %1111 = vmatprep.mubr.bf16.mxu1 %v2064_v5  ;;  %1853 = vmatprep.subr.bf16.mxu1 %v2066_v7  ;;  %v2145_v5 = vld [vmem:[%s2755_s0 + $0x1cc] ss:$36 sps:$4 sm:$0xff]  }
  0x45   :  { %1200 = vmatprep.mubr.bf16.mxu0 %v2069_v9  ;;  %1926 = vmatprep.subr.bf16.mxu0 %v2149_v6  ;;  %v2147_v7 = vld [vmem:[%s2755_s0 + $0x1c8] ss:$36 sps:$4 sm:$0xff]  }
  0x47   :  { %1854 = vmatpush3.bf16.msra.mxu1 %v2068_v8  ;;  %1927 = vmatpush3.bf16.msra.mxu0 %v2072_v11  ;;  %v2148_v8 = vld [vmem:[%s2755_s0 + $0x1d0] ss:$36 sps:$4 sm:$0xff]  }
  0x48   :  { %1855 = vmatprep.subr.bf16.mxu1 %v2073_v12  ;;  %1928 = vmatprep.subr.bf16.mxu0 %v2149_v6 }
  0x4a   :  { %1112 = vmatmul.mubr.bf16.gmra.mrb[16].mxu1 %v2067_v10  ;;  %1201 = vmatmul.mubr.bf16.gmra.mrb[20].mxu0 %v2071_v13 }
  0x4b   :  { %1119 = vmatprep.mubr.bf16.mxu1 %v2074_v14  ;;  %1856 = vmatpush3.bf16.msra.mxu1 %v2076_v15 }
  0x4c   :  { %1208 = vmatprep.mubr.bf16.mxu0 %v2078_v16  ;;  %1929 = vmatpush3.bf16.msra.mxu0 %v2081_v17 }
  0x4d   :  { %1857 = vmatprep.subr.bf16.mxu1 %v2082_v18  ;;  %1930 = vmatprep.subr.bf16.mxu0 %v2149_v6 }
  0x4f   :  { %1858 = vmatpush3.bf16.msra.mxu1 %v2083_v19 }
  0x50   :  { %1931 = vmatpush3.bf16.msra.mxu0 %v2090_v24  ;;  %1859 = vmatprep.subr.bf16.mxu1 %v2091_v25 }
  0x51   :  { %1932 = vmatprep.subr.bf16.mxu0 %v2149_v6 }
  0x52   :  { %1120 = vmatmul.mubr.bf16.gmra.mrb[20].mxu1 %v2077_v20  ;;  %1209 = vmatmul.mubr.bf16.gmra.mrb[24].mxu0 %v2080_v21 }
  0x53   :  { %1127 = vmatprep.mubr.bf16.mxu1 %v2084_v22  ;;  %1216 = vmatprep.mubr.bf16.mxu0 %v2087_v23 }
  0x54   :  { %1860 = vmatpush3.bf16.msra.mxu1 %v2092_v26  ;;  %1933 = vmatpush3.bf16.msra.mxu0 %v2099_v31 }
  0x55   :  { %1861 = vmatprep.subr.bf16.mxu1 %v2100_v32  ;;  %1934 = vmatprep.subr.bf16.mxu0 %v2149_v6 }
  0x58   :  { %1862 = vmatpush3.bf16.msra.mxu1 %v2101_v33  ;;  %1935 = vmatpush3.bf16.msra.mxu0 %v2107_v34 }
  0x59   :  { %1936 = vmatprep.subr.bf16.mxu0 %v2149_v6  ;;  %1863 = vmatprep.subr.bf16.mxu1 %v2109_v37 }
  0x5a   :  { %1128 = vmatmul.mubr.bf16.gmra.mrb[24].mxu1 %v2086_v27  ;;  %1217 = vmatmul.mubr.bf16.gmra.mrb[28].mxu0 %v2089_v28 }
  0x5b   :  { %1135 = vmatprep.mubr.bf16.mxu1 %v2093_v29  ;;  %1224 = vmatprep.mubr.bf16.mxu0 %v2096_v30 }
  0x5c   :  { %1864 = vmatpush3.bf16.msra.mxu1 %v2110_v38  ;;  %1937 = vmatpush3.bf16.msra.mxu0 %v2114_v41 }
  0x5d   :  { %1865 = vmatprep.subr.bf16.mxu1 %v2117_v42  ;;  %1938 = vmatprep.subr.bf16.mxu0 %v2149_v6 }
  0x60   :  { %1866 = vmatpush3.bf16.msra.mxu1 %v2119_v43  ;;  %1939 = vmatpush3.bf16.msra.mxu0 %v2123_v45 }
  0x62   :  { %1136 = vmatmul.mubr.bf16.gmra.mrb[28].mxu1 %v2095_v35  ;;  %1225 = vmatmul.mubr.bf16.gmra.mrb[32].mxu0 %v2098_v36 }
  0x63   :  { %1143 = vmatprep.mubr.bf16.mxu1 %v2102_v39  ;;  %1232 = vmatprep.mubr.bf16.mxu0 %v2105_v40 }
  0x6a   :  { %1144 = vmatmul.mubr.bf16.gmra.mrb[32].mxu1 %v2104_v44  ;;  %1233 = vmatmul.mubr.bf16.gmra.mrb[36].mxu0 %v2108_v46 }
  0x6b   :  { %1151 = vmatprep.mubr.bf16.mxu1 %v2111_v47  ;;  %1240 = vmatprep.mubr.bf16.mxu0 %v2115_v48 }
  0x72   :  { %1152 = vmatmul.mubr.bf16.gmra.mrb[36].mxu1 %v2113_v49  ;;  %1241 = vmatmul.mubr.bf16.gmra.mrb[40].mxu0 %v2118_v50 }
  0x73   :  { %1281 = vmatprep.mubr.bf16.mxu1 %v2122_v51  ;;  %1940 = vmatprep.mubr.msk.bf16.mxu0 %vm2150_vm0, %v2149_v6 }
  0x7a   :  { %1282 = vmatmul.mubr.bf16.vlgmr.msra.gmra.mrb[40].mxu1 %v2120_v52  ;;  %1941 = vmatmul.mubr.bf16.vlgmr.msra.gmra.mrb[44].mxu0 %v2124_v53 }
  0x7b   :  { %1289 = vmatprep.mubr.bf16.mxu1 %v2125_v54  ;;  %1944 = vmatprep.mubr.msk.bf16.mxu0 %vm2150_vm0, %v2149_v6 }
  0x82   :  { %1290 = vmatmul.mubr.bf16.gmra.mrb[44].mxu1 %v2127_v55  ;;  %1945 = vmatmul.mubr.bf16.gmra.mrb[48].mxu0 %v2128_v56 }
  0x83   :  { %1297 = vmatprep.mubr.bf16.mxu1 %v2129_v57  ;;  %1948 = vmatprep.mubr.msk.bf16.mxu0 %vm2150_vm0, %v2149_v6 }
  0x8a   :  { %1298 = vmatmul.mubr.bf16.gmra.mrb[48].mxu1 %v2131_v58  ;;  %1949 = vmatmul.mubr.bf16.gmra.mrb[52].mxu0 %v2132_v59 }
  0x8b   :  { %1305 = vmatprep.mubr.bf16.mxu1 %v2133_v60  ;;  %1952 = vmatprep.mubr.msk.bf16.mxu0 %vm2150_vm0, %v2149_v6 }
  0x92   :  { %1306 = vmatmul.mubr.bf16.gmra.mrb[52].mxu1 %v2135_v61  ;;  %1953 = vmatmul.mubr.bf16.gmra.mrb[56].mxu0 %v2136_v62 }
  0x93   :  { %1313 = vmatprep.mubr.bf16.mxu1 %v2137_v63  ;;  %1956 = vmatprep.mubr.msk.bf16.mxu0 %vm2150_vm0, %v2149_v6 }
  0x9a   :  { %1314 = vmatmul.mubr.bf16.gmra.mrb[56].mxu1 %v2139_v0  ;;  %1957 = vmatmul.mubr.bf16.gmra.mrb[60].mxu0 %v2140_v1 }
  0x9b   :  { %1321 = vmatprep.mubr.bf16.mxu1 %v2141_v2  ;;  %1960 = vmatprep.mubr.msk.bf16.mxu0 %vm2150_vm0, %v2149_v6 }
  0xa2   :  { %1322 = vmatmul.mubr.bf16.gmra.mrb[60].mxu1 %v2143_v3  ;;  %1961 = vmatmul.mubr.bf16.gmra.mrb[64].mxu0 %v2144_v4 }
  0xa3   :  { %1329 = vmatprep.mubr.bf16.mxu1 %v2145_v5  ;;  %1964 = vmatprep.mubr.msk.bf16.mxu0 %vm2150_vm0, %v2149_v6 }
  0xaa   :  { %1330 = vmatmul.mubr.bf16.gmra.mrb[64].mxu1 %v2147_v7  ;;  %1965 = vmatmul.mubr.bf16.gmra.mrb[68].mxu0 %v2148_v8 }
  0xf5   :  { %v1717_v9 = vpop.f32.mrb[0].mxu1  ;;  %v1693_v10 = vpop.f32.mrb[0].mxu0 }
  0xf6   :  { %v1718_v11 = vpop.f32.mrb[1].mxu1  ;;  %v1694_v12 = vpop.f32.mrb[1].mxu0 }
  0xf7   :  { %v2598_v13 = vadd.f32 %v1718_v11, %v1717_v9  ;;  %v1720_v14 = vpop.f32.mrb[2].mxu1  ;;  %v1695_v15 = vadd.f32 %v1694_v12, %v1693_v10  ;;  %v1696_v16 = vpop.f32.mrb[2].mxu0 }
  0xf8   :  { %v1721_v17 = vpop.f32.mrb[3].mxu1  ;;  %v1697_v18 = vpop.f32.mrb[3].mxu0 }
  0xf9   :  { %v2600_v19 = vadd.f32 %v1721_v17, %v1720_v14  ;;  %v1698_v20 = vadd.f32 %v1697_v18, %v1696_v16 }
  0xfd   :  { %v1699_v21 = vpop.f32.mrb[4].mxu0  ;;  %v1723_v22 = vpop.f32.mrb[4].mxu1 }
  0xfe   :  { %v1700_v23 = vpop.f32.mrb[5].mxu0  ;;  %v1724_v24 = vpop.f32.mrb[5].mxu1 }
  0xff   :  { %v1701_v25 = vadd.f32 %v1700_v23, %v1699_v21  ;;  %v1702_v26 = vpop.f32.mrb[6].mxu0  ;;  %v2602_v27 = vadd.f32 %v1724_v24, %v1723_v22  ;;  %v1726_v28 = vpop.f32.mrb[6].mxu1 }
 0x100   :  { %v1703_v29 = vpop.f32.mrb[7].mxu0  ;;  %v1727_v30 = vpop.f32.mrb[7].mxu1 }
 0x101   :  { %v1704_v31 = vadd.f32 %v1703_v29, %v1702_v26  ;;  %v2604_v32 = vadd.f32 %v1727_v30, %v1726_v28 }
 0x105   :  { %v1705_v33 = vpop.f32.mrb[8].mxu0  ;;  %v1729_v34 = vpop.f32.mrb[8].mxu1 }
 0x106   :  { %v1706_v35 = vpop.f32.mrb[9].mxu0  ;;  %v1730_v36 = vpop.f32.mrb[9].mxu1 }
 0x107   :  { %v1707_v37 = vadd.f32 %v1706_v35, %v1705_v33  ;;  %v1708_v38 = vpop.f32.mrb[10].mxu0  ;;  %v2606_v39 = vadd.f32 %v1730_v36, %v1729_v34  ;;  %v1732_v40 = vpop.f32.mrb[10].mxu1 }
 0x108   :  { %v1709_v41 = vpop.f32.mrb[11].mxu0  ;;  %v1733_v42 = vpop.f32.mrb[11].mxu1 }
 0x109   :  { %v1710_v43 = vadd.f32 %v1709_v41, %v1708_v38  ;;  %v2608_v44 = vadd.f32 %v1733_v42, %v1732_v40 }
 0x10d   :  { %v1711_v45 = vpop.f32.mrb[12].mxu0 }
 0x10e   :  { %v1712_v46 = vpop.f32.mrb[13].mxu0 }
 0x10f   :  { %v1713_v47 = vadd.f32 %v1712_v46, %v1711_v45  ;;  %v1714_v48 = vpop.f32.mrb[14].mxu0 }
 0x110   :  { %v1715_v49 = vpop.f32.mrb[15].mxu0 }
 0x111   :  { %v1716_v50 = vadd.f32 %v1715_v49, %v1714_v48 }
 0x115   :  { %v1751_v51 = vpop.f32.mrb[12].mxu1  ;;  %v1809_v52 = vpop.f32.mrb[16].mxu0 }
 0x116   :  { %v1752_v53 = vpop.f32.mrb[13].mxu1  ;;  %v1810_v54 = vpop.f32.mrb[17].mxu0 }
 0x117   :  { %v1753_v55 = vadd.f32 %v1752_v53, %v1751_v51  ;;  %v1754_v56 = vpop.f32.mrb[14].mxu1  ;;  %v1811_v57 = vadd.f32 %v1810_v54, %v1809_v52  ;;  %v1812_v58 = vpop.f32.mrb[18].mxu0 }
 0x118   :  { %v1755_v59 = vpop.f32.mrb[15].mxu1  ;;  %v1813_v60 = vpop.f32.mrb[19].mxu0 }
 0x119   :  { %v1106_v61 = vadd.f32 %v1753_v55, %v1695_v15  ;;  %v1756_v62 = vadd.f32 %v1755_v59, %v1754_v56  ;;  %v1814_v63 = vadd.f32 %v1813_v60, %v1812_v58 }
 0x11b   :  { %v1109_v6 = vadd.f32 %v1756_v62, %v1698_v20  ;;  %v2615_v0 = vadd.f32 %v1811_v57, %v1106_v61 }
 0x11d   :  { %v2617_v1 = vadd.f32 %v1814_v63, %v1109_v6  ;;  %v1757_v2 = vpop.f32.mrb[16].mxu1  ;;  %v1815_v3 = vpop.f32.mrb[20].mxu0 }
 0x11e   :  { %v1758_v4 = vpop.f32.mrb[17].mxu1  ;;  %v1816_v5 = vpop.f32.mrb[21].mxu0 }
 0x11f   :  { %v1759_v7 = vadd.f32 %v1758_v4, %v1757_v2  ;;  %v1760_v8 = vpop.f32.mrb[18].mxu1  ;;  %v1817_v9 = vadd.f32 %v1816_v5, %v1815_v3  ;;  %v1818_v10 = vpop.f32.mrb[22].mxu0 }
 0x120   :  { %v1761_v11 = vpop.f32.mrb[19].mxu1  ;;  %v1819_v12 = vpop.f32.mrb[23].mxu0 }
 0x121   :  { %v1114_v14 = vadd.f32 %v1759_v7, %v1701_v25  ;;  %v1762_v16 = vadd.f32 %v1761_v11, %v1760_v8  ;;  %v1820_v15 = vadd.f32 %v1819_v12, %v1818_v10 }
 0x123   :  { %v1117_v17 = vadd.f32 %v1762_v16, %v1704_v31  ;;  %v2619_v18 = vadd.f32 %v1817_v9, %v1114_v14 }
 0x125   :  { %v2621_v20 = vadd.f32 %v1820_v15, %v1117_v17  ;;  %v1763_v21 = vpop.f32.mrb[20].mxu1  ;;  %v1821_v22 = vpop.f32.mrb[24].mxu0 }
 0x126   :  { %v1764_v23 = vpop.f32.mrb[21].mxu1  ;;  %v1822_v24 = vpop.f32.mrb[25].mxu0 }
 0x127   :  { %v1765_v26 = vadd.f32 %v1764_v23, %v1763_v21  ;;  %v1766_v28 = vpop.f32.mrb[22].mxu1  ;;  %v1823_v29 = vadd.f32 %v1822_v24, %v1821_v22  ;;  %v1824_v30 = vpop.f32.mrb[26].mxu0 }
 0x128   :  { %v1767_v33 = vpop.f32.mrb[23].mxu1  ;;  %v1825_v34 = vpop.f32.mrb[27].mxu0 }
 0x129   :  { %v1122_v35 = vadd.f32 %v1765_v26, %v1707_v37  ;;  %v1768_v36 = vadd.f32 %v1767_v33, %v1766_v28  ;;  %v1826_v25 = vadd.f32 %v1825_v34, %v1824_v30 }
 0x12b   :  { %v1125_v38 = vadd.f32 %v1768_v36, %v1710_v43  ;;  %v2623_v40 = vadd.f32 %v1823_v29, %v1122_v35 }
 0x12d   :  { %v2625_v31 = vadd.f32 %v1826_v25, %v1125_v38  ;;  %v1769_v41 = vpop.f32.mrb[24].mxu1  ;;  %v1827_v42 = vpop.f32.mrb[28].mxu0 }
 0x12e   :  { %v1770_v45 = vpop.f32.mrb[25].mxu1  ;;  %v1828_v46 = vpop.f32.mrb[29].mxu0 }
 0x12f   :  { %v1771_v48 = vadd.f32 %v1770_v45, %v1769_v41  ;;  %v1772_v49 = vpop.f32.mrb[26].mxu1  ;;  %v1829_v51 = vadd.f32 %v1828_v46, %v1827_v42  ;;  %v1830_v52 = vpop.f32.mrb[30].mxu0 }
 0x130   :  { %v1773_v53 = vpop.f32.mrb[27].mxu1  ;;  %v1831_v54 = vpop.f32.mrb[31].mxu0 }
 0x131   :  { %v1130_v55 = vadd.f32 %v1771_v48, %v1713_v47  ;;  %v1774_v56 = vadd.f32 %v1773_v53, %v1772_v49  ;;  %v1832_v37 = vadd.f32 %v1831_v54, %v1830_v52 }
 0x133   :  { %v1133_v57 = vadd.f32 %v1774_v56, %v1716_v50  ;;  %v2627_v58 = vadd.f32 %v1829_v51, %v1130_v55 }
 0x135   :  { %v2629_v43 = vadd.f32 %v1832_v37, %v1133_v57  ;;  %v1775_v59 = vpop.f32.mrb[28].mxu1  ;;  %v1833_v60 = vpop.f32.mrb[32].mxu0 }
 0x136   :  { %v1776_v61 = vpop.f32.mrb[29].mxu1  ;;  %v1834_v62 = vpop.f32.mrb[33].mxu0 }
 0x137   :  { %v1777_v63 = vadd.f32 %v1776_v61, %v1775_v59  ;;  %v1778_v6 = vpop.f32.mrb[30].mxu1  ;;  %v1835_v2 = vadd.f32 %v1834_v62, %v1833_v60  ;;  %v1836_v3 = vpop.f32.mrb[34].mxu0 }
 0x138   :  { %v1779_v4 = vpop.f32.mrb[31].mxu1  ;;  %v1837_v5 = vpop.f32.mrb[35].mxu0 }
 0x139   :  { %v1138_v7 = vadd.f32 %v1777_v63, %v2598_v13  ;;  %v1780_v47 = vadd.f32 %v1779_v4, %v1778_v6  ;;  %v1838_v8 = vadd.f32 %v1837_v5, %v1836_v3 }
 0x13b   :  { %v1141_v50 = vadd.f32 %v1780_v47, %v2600_v19  ;;  %v2633_v9 = vadd.f32 %v1835_v2, %v1138_v7 }
 0x13d   :  { %v2635_v10 = vadd.f32 %v1838_v8, %v1141_v50  ;;  %v1781_v11 = vpop.f32.mrb[32].mxu1  ;;  %v1839_v12 = vpop.f32.mrb[36].mxu0 }
 0x13e   :  { %v1782_v14 = vpop.f32.mrb[33].mxu1  ;;  %v1840_v16 = vpop.f32.mrb[37].mxu0 }
 0x13f   :  { %v1783_v15 = vadd.f32 %v1782_v14, %v1781_v11  ;;  %v1784_v17 = vpop.f32.mrb[34].mxu1  ;;  %v1841_v21 = vadd.f32 %v1840_v16, %v1839_v12  ;;  %v1842_v22 = vpop.f32.mrb[38].mxu0 }
 0x140   :  { %v1785_v23 = vpop.f32.mrb[35].mxu1  ;;  %v1843_v24 = vpop.f32.mrb[39].mxu0 }
 0x141   :  { %v1146_v13 = vadd.f32 %v1783_v15, %v2602_v27  ;;  %v1786_v26 = vadd.f32 %v1785_v23, %v1784_v17  ;;  %v1844_v28 = vadd.f32 %v1843_v24, %v1842_v22 }
 0x143   :  { %v1149_v19 = vadd.f32 %v1786_v26, %v2604_v32  ;;  %v2639_v29 = vadd.f32 %v1841_v21, %v1146_v13 }
 0x145   :  { %v2641_v30 = vadd.f32 %v1844_v28, %v1149_v19  ;;  %v1787_v33 = vpop.f32.mrb[36].mxu1  ;;  %v1845_v34 = vpop.f32.mrb[40].mxu0 }
 0x146   :  { %v1788_v35 = vpop.f32.mrb[37].mxu1  ;;  %v1846_v36 = vpop.f32.mrb[41].mxu0 }
 0x147   :  { %v1789_v25 = vadd.f32 %v1788_v35, %v1787_v33  ;;  %v1790_v38 = vpop.f32.mrb[38].mxu1  ;;  %v1847_v41 = vadd.f32 %v1846_v36, %v1845_v34  ;;  %v1848_v42 = vpop.f32.mrb[42].mxu0 }
 0x148   :  { %v1791_v45 = vpop.f32.mrb[39].mxu1  ;;  %v1849_v46 = vpop.f32.mrb[43].mxu0 }
 0x149   :  { %v1154_v27 = vadd.f32 %v1789_v25, %v2606_v39  ;;  %v1792_v48 = vadd.f32 %v1791_v45, %v1790_v38  ;;  %v1850_v49 = vadd.f32 %v1849_v46, %v1848_v42 }
 0x14b   :  { %v1157_v32 = vadd.f32 %v1792_v48, %v2608_v44  ;;  %v2645_v51 = vadd.f32 %v1847_v41, %v1154_v27 }
 0x14d   :  { %v2647_v52 = vadd.f32 %v1850_v49, %v1157_v32  ;;  %v1867_v53 = vpop.f32.mrb[40].mxu1  ;;  %v1372_v54 = vpop.f32.mrb[44].mxu0 }
 0x14e   :  { %v1868_v55 = vpop.f32.mrb[41].mxu1  ;;  %v1942_v56 = vpop.f32.mrb[45].mxu0 }
 0x14f   :  { %v1869_v37 = vadd.f32 %v1868_v55, %v1867_v53  ;;  %v1870_v57 = vpop.f32.mrb[42].mxu1  ;;  %v1375_v59 = vpop.f32.mrb[46].mxu0 }
 0x150   :  { %v1871_v60 = vpop.f32.mrb[43].mxu1  ;;  %v1943_v61 = vpop.f32.mrb[47].mxu0 }
 0x151   :  { %v1872_v62 = vadd.f32 %v1871_v60, %v1870_v57  ;;  %v1284_v39 = vadd.f32 %v1869_v37, %v2615_v0 }
 0x153   :  { %v1373_v63 = vadd.f32 %v1372_v54, %v1284_v39  ;;  %v1287_v44 = vadd.f32 %v1872_v62, %v2617_v1 }
 0x155   :  { %1428 = vst.msk [vmem:[%s2757_s2] sm:$0xff] %vm1427_vm2, %v1373_v63  ;;  %v1481_v6 = vmul.f32 %v1373_v63, %v1373_v63  ;;  %v1376_v2 = vadd.f32 %v1375_v59, %v1287_v44  ;;  %v1873_v3 = vpop.f32.mrb[44].mxu1  ;;  %v1380_v4 = vpop.f32.mrb[48].mxu0  ;;  %v1448_v47 = vsel %vm1427_vm2, %v1373_v63, 0.0 }
 0x156   :  { %v1874_v5 = vpop.f32.mrb[45].mxu1  ;;  %v1946_v7 = vpop.f32.mrb[49].mxu0 }
 0x157   :  { %1429 = vst.msk [vmem:[%s2757_s2 + $0x8] sm:$0xff] %vm1427_vm2, %v1376_v2  ;;  %v1449_v0 = vsel %vm1427_vm2, %v1376_v2, 0.0  ;;  %v1482_v1 = vmul.f32 %v1376_v2, %v1376_v2  ;;  %v1875_v8 = vadd.f32 %v1874_v5, %v1873_v3  ;;  %v1876_v50 = vpop.f32.mrb[46].mxu1  ;;  %v1383_v11 = vpop.f32.mrb[50].mxu0  ;;  %v1495_v15 = vsel %vm1427_vm2, %v1481_v6, 0.0 }
 0x158   :  { %v1450_v12 = vadd.f32 %v1449_v0, %v1448_v47  ;;  %v1877_v14 = vpop.f32.mrb[47].mxu1  ;;  %v1947_v16 = vpop.f32.mrb[51].mxu0 }
 0x159   :  { %v1496_v17 = vsel %vm1427_vm2, %v1482_v1, 0.0  ;;  %v1878_v21 = vadd.f32 %v1877_v14, %v1876_v50  ;;  %v1292_v22 = vadd.f32 %v1875_v8, %v2619_v18 }
 0x15a   :  { %v1497_v23 = vadd.f32 %v1496_v17, %v1495_v15 }
 0x15b   :  { %v1381_v24 = vadd.f32 %v1380_v4, %v1292_v22  ;;  %v1295_v13 = vadd.f32 %v1878_v21, %v2621_v20 }
 0x15d   :  { %1430 = vst.msk [vmem:[%s2757_s2 + $0x10] sm:$0xff] %vm1427_vm2, %v1381_v24  ;;  %v1451_v26 = vsel %vm1427_vm2, %v1381_v24, 0.0  ;;  %v1483_v28 = vmul.f32 %v1381_v24, %v1381_v24  ;;  %v1384_v19 = vadd.f32 %v1383_v11, %v1295_v13  ;;  %v1879_v33 = vpop.f32.mrb[48].mxu1  ;;  %v1388_v34 = vpop.f32.mrb[52].mxu0 }
 0x15e   :  { %v1452_v35 = vadd.f32 %v1451_v26, %v1450_v12  ;;  %v1880_v36 = vpop.f32.mrb[49].mxu1  ;;  %v1950_v25 = vpop.f32.mrb[53].mxu0 }
 0x15f   :  { %v1498_v18 = vsel %vm1427_vm2, %v1483_v28, 0.0  ;;  %1431 = vst.msk [vmem:[%s2757_s2 + $0x18] sm:$0xff] %vm1427_vm2, %v1384_v19  ;;  %v1453_v20 = vsel %vm1427_vm2, %v1384_v19, 0.0  ;;  %v1484_v38 = vmul.f32 %v1384_v19, %v1384_v19  ;;  %v1881_v41 = vadd.f32 %v1880_v36, %v1879_v33  ;;  %v1882_v42 = vpop.f32.mrb[50].mxu1  ;;  %v1391_v45 = vpop.f32.mrb[54].mxu0 }
 0x160   :  { %v1499_v46 = vadd.f32 %v1498_v18, %v1497_v23  ;;  %v1454_v27 = vadd.f32 %v1453_v20, %v1452_v35  ;;  %v1883_v48 = vpop.f32.mrb[51].mxu1  ;;  %v1951_v49 = vpop.f32.mrb[55].mxu0 }
 0x161   :  { %v1500_v32 = vsel %vm1427_vm2, %v1484_v38, 0.0  ;;  %v1884_v53 = vadd.f32 %v1883_v48, %v1882_v42  ;;  %v1300_v54 = vadd.f32 %v1881_v41, %v2623_v40 }
 0x162   :  { %v1501_v55 = vadd.f32 %v1500_v32, %v1499_v46 }
 0x163   :  { %v1389_v56 = vadd.f32 %v1388_v34, %v1300_v54  ;;  %v1303_v37 = vadd.f32 %v1884_v53, %v2625_v31 }
 0x165   :  { %1432 = vst.msk [vmem:[%s2757_s2 + $0x20] sm:$0xff] %vm1427_vm2, %v1389_v56  ;;  %v1455_v57 = vsel %vm1427_vm2, %v1389_v56, 0.0  ;;  %v1485_v59 = vmul.f32 %v1389_v56, %v1389_v56  ;;  %v1392_v60 = vadd.f32 %v1391_v45, %v1303_v37  ;;  %v1885_v61 = vpop.f32.mrb[52].mxu1  ;;  %v1396_v62 = vpop.f32.mrb[56].mxu0 }
 0x166   :  { %v1456_v39 = vadd.f32 %v1455_v57, %v1454_v27  ;;  %v1886_v63 = vpop.f32.mrb[53].mxu1  ;;  %v1954_v44 = vpop.f32.mrb[57].mxu0 }
 0x167   :  { %v1502_v40 = vsel %vm1427_vm2, %v1485_v59, 0.0  ;;  %1433 = vst.msk [vmem:[%s2757_s2 + $0x28] sm:$0xff] %vm1427_vm2, %v1392_v60  ;;  %v1457_v31 = vsel %vm1427_vm2, %v1392_v60, 0.0  ;;  %v1486_v6 = vmul.f32 %v1392_v60, %v1392_v60  ;;  %v1887_v2 = vadd.f32 %v1886_v63, %v1885_v61  ;;  %v1888_v3 = vpop.f32.mrb[54].mxu1  ;;  %v1399_v4 = vpop.f32.mrb[58].mxu0 }
 0x168   :  { %v1503_v5 = vadd.f32 %v1502_v40, %v1501_v55  ;;  %v1458_v7 = vadd.f32 %v1457_v31, %v1456_v39  ;;  %v1889_v47 = vpop.f32.mrb[55].mxu1  ;;  %v1955_v0 = vpop.f32.mrb[59].mxu0 }
 0x169   :  { %v1504_v1 = vsel %vm1427_vm2, %v1486_v6, 0.0  ;;  %v1890_v8 = vadd.f32 %v1889_v47, %v1888_v3  ;;  %v1308_v50 = vadd.f32 %v1887_v2, %v2627_v58 }
 0x16a   :  { %v1505_v11 = vadd.f32 %v1504_v1, %v1503_v5 }
 0x16b   :  { %v1397_v12 = vadd.f32 %v1396_v62, %v1308_v50  ;;  %v1311_v14 = vadd.f32 %v1890_v8, %v2629_v43 }
 0x16d   :  { %1434 = vst.msk [vmem:[%s2757_s2 + $0x30] sm:$0xff] %vm1427_vm2, %v1397_v12  ;;  %v1459_v16 = vsel %vm1427_vm2, %v1397_v12, 0.0  ;;  %v1487_v15 = vmul.f32 %v1397_v12, %v1397_v12  ;;  %v1400_v17 = vadd.f32 %v1399_v4, %v1311_v14  ;;  %v1891_v21 = vpop.f32.mrb[56].mxu1  ;;  %v1404_v22 = vpop.f32.mrb[60].mxu0 }
 0x16e   :  { %v1460_v23 = vadd.f32 %v1459_v16, %v1458_v7  ;;  %v1892_v24 = vpop.f32.mrb[57].mxu1  ;;  %v1958_v13 = vpop.f32.mrb[61].mxu0 }
 0x16f   :  { %v1506_v58 = vsel %vm1427_vm2, %v1487_v15, 0.0  ;;  %1435 = vst.msk [vmem:[%s2757_s2 + $0x38] sm:$0xff] %vm1427_vm2, %v1400_v17  ;;  %v1461_v43 = vsel %vm1427_vm2, %v1400_v17, 0.0  ;;  %v1488_v26 = vmul.f32 %v1400_v17, %v1400_v17  ;;  %v1893_v28 = vadd.f32 %v1892_v24, %v1891_v21  ;;  %v1894_v19 = vpop.f32.mrb[58].mxu1  ;;  %v1407_v33 = vpop.f32.mrb[62].mxu0 }
 0x170   :  { %v1507_v34 = vadd.f32 %v1506_v58, %v1505_v11  ;;  %v1462_v35 = vadd.f32 %v1461_v43, %v1460_v23  ;;  %v1895_v36 = vpop.f32.mrb[59].mxu1  ;;  %v1959_v25 = vpop.f32.mrb[63].mxu0 }
 0x171   :  { %v1508_v18 = vsel %vm1427_vm2, %v1488_v26, 0.0  ;;  %v1896_v20 = vadd.f32 %v1895_v36, %v1894_v19  ;;  %v1316_v38 = vadd.f32 %v1893_v28, %v2633_v9 }
 0x172   :  { %v1509_v41 = vadd.f32 %v1508_v18, %v1507_v34 }
 0x173   :  { %v1405_v42 = vadd.f32 %v1404_v22, %v1316_v38  ;;  %v1319_v45 = vadd.f32 %v1896_v20, %v2635_v10 }
 0x175   :  { %1436 = vst.msk [vmem:[%s2757_s2 + $0x40] sm:$0xff] %vm1427_vm2, %v1405_v42  ;;  %v1463_v46 = vsel %vm1427_vm2, %v1405_v42, 0.0  ;;  %v1489_v27 = vmul.f32 %v1405_v42, %v1405_v42  ;;  %v1408_v48 = vadd.f32 %v1407_v33, %v1319_v45  ;;  %v1897_v49 = vpop.f32.mrb[60].mxu1  ;;  %v1412_v32 = vpop.f32.mrb[64].mxu0 }
 0x176   :  { %v1464_v53 = vadd.f32 %v1463_v46, %v1462_v35  ;;  %v1898_v54 = vpop.f32.mrb[61].mxu1  ;;  %v1962_v55 = vpop.f32.mrb[65].mxu0 }
 0x177   :  { %v1510_v9 = vsel %vm1427_vm2, %v1489_v27, 0.0  ;;  %1437 = vst.msk [vmem:[%s2757_s2 + $0x48] sm:$0xff] %vm1427_vm2, %v1408_v48  ;;  %v1465_v10 = vsel %vm1427_vm2, %v1408_v48, 0.0  ;;  %v1490_v56 = vmul.f32 %v1408_v48, %v1408_v48  ;;  %v1899_v37 = vadd.f32 %v1898_v54, %v1897_v49  ;;  %v1900_v57 = vpop.f32.mrb[62].mxu1  ;;  %v1415_v59 = vpop.f32.mrb[66].mxu0 }
 0x178   :  { %v1511_v60 = vadd.f32 %v1510_v9, %v1509_v41  ;;  %v1466_v61 = vadd.f32 %v1465_v10, %v1464_v53  ;;  %v1901_v62 = vpop.f32.mrb[63].mxu1  ;;  %v1963_v39 = vpop.f32.mrb[67].mxu0  ;;  %v1528_v55 = vld [vmem:[%s2756_s3] sm:$0x3] }
 0x179   :  { %v1512_v63 = vsel %vm1427_vm2, %v1490_v56, 0.0  ;;  %v1902_v44 = vadd.f32 %v1901_v62, %v1900_v57  ;;  %v1324_v40 = vadd.f32 %v1899_v37, %v2639_v29 }
 0x17a   :  { %v1513_v31 = vadd.f32 %v1512_v63, %v1511_v60 }
 0x17b   :  { %v1413_v6 = vadd.f32 %v1412_v32, %v1324_v40  ;;  %v1327_v2 = vadd.f32 %v1902_v44, %v2641_v30 }
 0x17d   :  { %1438 = vst.msk [vmem:[%s2757_s2 + $0x50] sm:$0xff] %vm1427_vm2, %v1413_v6  ;;  %v1467_v3 = vsel %vm1427_vm2, %v1413_v6, 0.0  ;;  %v1491_v4 = vmul.f32 %v1413_v6, %v1413_v6  ;;  %v1416_v5 = vadd.f32 %v1415_v59, %v1327_v2  ;;  %v1903_v7 = vpop.f32.mrb[64].mxu1  ;;  %v1420_v47 = vpop.f32.mrb[68].mxu0 }
 0x17e   :  { %v1468_v0 = vadd.f32 %v1467_v3, %v1466_v61  ;;  %v1904_v1 = vpop.f32.mrb[65].mxu1  ;;  %v1966_v8 = vpop.f32.mrb[69].mxu0 }
 0x17f   :  { %v1514_v29 = vsel %vm1427_vm2, %v1491_v4, 0.0  ;;  %1439 = vst.msk [vmem:[%s2757_s2 + $0x58] sm:$0xff] %vm1427_vm2, %v1416_v5  ;;  %v1469_v30 = vsel %vm1427_vm2, %v1416_v5, 0.0  ;;  %v1492_v50 = vmul.f32 %v1416_v5, %v1416_v5  ;;  %v1905_v11 = vadd.f32 %v1904_v1, %v1903_v7  ;;  %v1906_v12 = vpop.f32.mrb[66].mxu1  ;;  %v1423_v14 = vpop.f32.mrb[70].mxu0 }
 0x180   :  { %v1515_v16 = vadd.f32 %v1514_v29, %v1513_v31  ;;  %v1470_v15 = vadd.f32 %v1469_v30, %v1468_v0  ;;  %v1907_v17 = vpop.f32.mrb[67].mxu1  ;;  %v1967_v21 = vpop.f32.mrb[71].mxu0 }
 0x181   :  { %v1516_v22 = vsel %vm1427_vm2, %v1492_v50, 0.0  ;;  %v1908_v23 = vadd.f32 %v1907_v17, %v1906_v12  ;;  %v1332_v24 = vadd.f32 %v1905_v11, %v2645_v51 }
 0x182   :  { %v1517_v13 = vadd.f32 %v1516_v22, %v1515_v16 }
 0x183   :  { %v1421_v58 = vadd.f32 %v1420_v47, %v1332_v24  ;;  %v1335_v43 = vadd.f32 %v1908_v23, %v2647_v52 }
 0x185   :  { %1440 = vst.msk [vmem:[%s2757_s2 + $0x60] sm:$0xff] %vm1427_vm2, %v1421_v58  ;;  %v1471_v26 = vsel %vm1427_vm2, %v1421_v58, 0.0  ;;  %v1493_v28 = vmul.f32 %v1421_v58, %v1421_v58  ;;  %v1424_v19 = vadd.f32 %v1423_v14, %v1335_v43 }
 0x186   :  { %v1472_v33 = vadd.f32 %v1471_v26, %v1470_v15 }
 0x187   :  { %v1518_v34 = vsel %vm1427_vm2, %v1493_v28, 0.0  ;;  %1441 = vst.msk [vmem:[%s2757_s2 + $0x68] sm:$0xff] %vm1427_vm2, %v1424_v19  ;;  %v1473_v51 = vsel %vm1427_vm2, %v1424_v19, 0.0  ;;  %v1494_v52 = vmul.f32 %v1424_v19, %v1424_v19 }
 0x188   :  { %v1519_v35 = vadd.f32 %v1518_v34, %v1517_v13  ;;  %v1474_v36 = vadd.f32 %v1473_v51, %v1472_v33 }
 0x189   :  { %v1520_v25 = vsel %vm1427_vm2, %v1494_v52, 0.0 }
 0x18a   :  { %v1475_v18 = vrot.slane %v1474_v36, 4  ;;  %v1521_v20 = vadd.f32 %v1520_v25, %v1519_v35 }
 0x18c   :  { %v1476_v38 = vadd.f32 %v1475_v18, %v1474_v36  ;;  %v1522_v41 = vrot.slane %v1521_v20, 4 }
 0x18e   :  { %v1477_v42 = vrot.slane %v1476_v38, 2  ;;  %v1523_v45 = vadd.f32 %v1522_v41, %v1521_v20 }
 0x190   :  { %v1478_v46 = vadd.f32 %v1477_v42, %v1476_v38  ;;  %v1524_v27 = vrot.slane %v1523_v45, 2 }
 0x192   :  { %v1479_v48 = vrot.slane %v1478_v46, 1  ;;  %v1525_v49 = vadd.f32 %v1524_v27, %v1523_v45 }
 0x194   :  { %v1526_v32 = vrot.slane %v1525_v49, 1  ;;  %v1480_v53 = vadd.f32 %v1479_v48, %v1478_v46 }
 0x196   :  { %v1527_v54 = vadd.f32 %v1526_v32, %v1525_v49 }
 0x198   :  { %v1530_v9 = vsel %vm1529_vm3, %v1480_v53, %v1527_v54 }
 0x199   :  { %v1531_v10 = vadd.f32 %v1530_v9, %v1528_v55 }
 0x19b   :  { %1533 = vst.msk [vmem:[%s2756_s3] sm:$0x3] %vm1446_vm1, %v1531_v10 }

// kernel: generator_forward.12
= control target key start
LH: loop header
LB: loop body
LE: loop exit
PB: predicated region body
PF: predicated region fallthrough
CT: control target
= control target key end

     0   :  { %s710_s12 = smov 0   ;;  %s905_s0 = inlined_call_operand.vmem [shape: f32[512,32], index: 0, kind: input, shape index: {}]   ;;  %s906_s1 = inlined_call_operand.vmem [shape: f32[1,32], index: 1, kind: input, shape index: {}]   ;;  %s907_s2 = inlined_call_operand.vmem [shape: f32[1,32], index: 2, kind: input, shape index: {}]   ;;  %s908_s3 = inlined_call_operand.vmem [shape: bf16[512,32], index: 3, kind: output, shape index: {}]  }
   0x1 LB: > { %s597_s13 = sadd.s32 4294967295, %s688_s12   ;;  %p601_p0 = scmp.ge.s32.totalorder %s688_s12, 1  ;;  %s688_s12 = sphi %s710_s12, %s13_s12  }
   0x2   : > { %p138_p1 = scmp.lt.s32.totalorder %s688_s12, 3 }
   0x4   : > { %p139_p2 = pnand %p601_p0, %p138_p1 }
   0x5   : > { %s602_s14 = sshll.u32 (!%p139_p2), %s597_s13, 5  ;;  %v724_v0 = vld [vmem:[%s906_s1] ss:$0 sm:$0xff] (!%p139_p2)  ;;  %vm508_vm0 = vcmask (!%p139_p2), 257024  }
   0x6   : > { %142 = sbr.rel (%p139_p2) target bundleno = 72 (0x48), region = 32  ;;  %p163_p3 = scmp.lt.s32.totalorder (!%p139_p2), %s602_s14, 63  ;;  %v734_v1 = vld [vmem:[%s907_s2] ss:$0 sm:$0xff] (!%p139_p2) }
   0xd   : > { %s910_s14 = smov (!%p163_p3, %s602_s14), 63 }
   0xe   : > { %s603_s15 = sshll.u32 %s910_s14, 3  ;;  %s605_s23 = sshll.u32 %s910_s14, 2 }
   0xf   : > { %s729_s20 = scalar_lea.vmem %s905_s0, %s603_s15  ;;  %s762_s26 = scalar_lea.vmem %s908_s3, %s605_s23 }
  0x10   : > { %v174_v2 = vld [vmem:[%s729_s20] sm:$0xff]  ;;  %v175_v3 = vld [vmem:[%s729_s20 + $0x8] sm:$0xff]  ;;  %v176_v4 = vld [vmem:[%s729_s20 + $0x10] sm:$0xff] }
  0x11   : > { %v213_v5 = vmul.f32 %v724_v0, %v174_v2  ;;  %v214_v6 = vmul.f32 %v724_v0, %v175_v3  ;;  %v215_v7 = vmul.f32 %v724_v0, %v176_v4  ;;  %v177_v8 = vld [vmem:[%s729_s20 + $0x18] sm:$0xff]  ;;  %v178_v9 = vld [vmem:[%s729_s20 + $0x20] sm:$0xff]  ;;  %v179_v10 = vld [vmem:[%s729_s20 + $0x28] sm:$0xff] }
  0x12   : > { %v216_v11 = vmul.f32 %v724_v0, %v177_v8  ;;  %v217_v12 = vmul.f32 %v724_v0, %v178_v9  ;;  %v218_v13 = vmul.f32 %v724_v0, %v179_v10  ;;  %v180_v14 = vld [vmem:[%s729_s20 + $0x30] sm:$0xff]  ;;  %v181_v15 = vld [vmem:[%s729_s20 + $0x38] sm:$0xff]  ;;  %v182_v31 = vld [vmem:[%s729_s20 + $0x40] sm:$0xff] }
  0x13   : > { %v252_v16 = vadd.f32 %v734_v1, %v213_v5  ;;  %v253_v17 = vadd.f32 %v734_v1, %v214_v6  ;;  %v254_v18 = vadd.f32 %v734_v1, %v215_v7  ;;  %v219_v19 = vmul.f32 %v724_v0, %v180_v14  ;;  %v183_v36 = vld [vmem:[%s729_s20 + $0x48] sm:$0xff]  ;;  %v184_v37 = vld [vmem:[%s729_s20 + $0x50] sm:$0xff]  ;;  %v185_v38 = vld [vmem:[%s729_s20 + $0x58] sm:$0xff] }
  0x14   : > { %v255_v20 = vadd.f32 %v734_v1, %v216_v11  ;;  %v256_v21 = vadd.f32 %v734_v1, %v217_v12  ;;  %v257_v22 = vadd.f32 %v734_v1, %v218_v13  ;;  %v220_v23 = vmul.f32 %v724_v0, %v181_v15  ;;  %v186_v50 = vld [vmem:[%s729_s20 + $0x60] sm:$0xff]  ;;  %v187_v2 = vld [vmem:[%s729_s20 + $0x68] sm:$0xff]  ;;  %v188_v5 = vld [vmem:[%s729_s20 + $0x70] sm:$0xff] }
  0x15   : > { %vm284_vm1 = vcmp.gt.f32.partialorder %v252_v16, 0.0  ;;  %v316_v24 = vmul.f32 0.2, %v252_v16  ;;  %vm285_vm2 = vcmp.gt.f32.partialorder %v253_v17, 0.0  ;;  %v317_v25 = vmul.f32 0.2, %v253_v17 }
  0x16   : > { %vm286_vm3 = vcmp.gt.f32.partialorder %v254_v18, 0.0  ;;  %v318_v26 = vmul.f32 0.2, %v254_v18  ;;  %vm287_vm4 = vcmp.gt.f32.partialorder %v255_v20, 0.0  ;;  %v319_v27 = vmul.f32 0.2, %v255_v20 }
  0x17   : > { %v348_v28 = vsel %vm284_vm1, %v252_v16, %v316_v24  ;;  %v349_v29 = vsel %vm285_vm2, %v253_v17, %v317_v25  ;;  %vm288_vm5 = vcmp.gt.f32.partialorder %v256_v21, 0.0  ;;  %v320_v30 = vmul.f32 0.2, %v256_v21  ;;  %v189_v13 = vld [vmem:[%s729_s20 + $0x78] sm:$0xff]  ;;  %v190_v14 = vld [vmem:[%s729_s20 + $0x80] sm:$0xff] }
  0x18   : > { %v642_v32 = vpack.c.bf16 %v348_v28, %v348_v28  ;;  %v643_v33 = vpack.c.bf16 %v349_v29, %v349_v29  ;;  %v350_v34 = vsel %vm286_vm3, %v254_v18, %v318_v26  ;;  %v351_v35 = vsel %vm287_vm4, %v255_v20, %v319_v27  ;;  %v192_v20 = vld [vmem:[%s729_s20 + $0x90] sm:$0xff] }
  0x19   : > { %v644_v39 = vpack.c.bf16 %v350_v34, %v350_v34  ;;  %v645_v40 = vpack.c.bf16 %v351_v35, %v351_v35  ;;  %v352_v41 = vsel %vm288_vm5, %v256_v21, %v320_v30  ;;  %vm289_vm6 = vcmp.gt.f32.partialorder %v257_v22, 0.0  ;;  %v193_v21 = vld [vmem:[%s729_s20 + $0x98] sm:$0xff] }
  0x1a   : > { %509 = vst.msk [vmem:[%s762_s26] sm:$0xf] %vm508_vm0, %v642_v32  ;;  %510 = vst.msk [vmem:[%s762_s26 + $0x4] sm:$0xf] %vm508_vm0, %v643_v33  ;;  %v646_v42 = vpack.c.bf16 %v352_v41, %v352_v41  ;;  %v321_v43 = vmul.f32 0.2, %v257_v22  ;;  %v258_v44 = vadd.f32 %v734_v1, %v219_v19  ;;  %v259_v45 = vadd.f32 %v734_v1, %v220_v23 }
  0x1b   : > { %511 = vst.msk [vmem:[%s762_s26 + $0x8] sm:$0xf] %vm508_vm0, %v644_v39  ;;  %512 = vst.msk [vmem:[%s762_s26 + $0xc] sm:$0xf] %vm508_vm0, %v645_v40  ;;  %v221_v46 = vmul.f32 %v724_v0, %v182_v31  ;;  %v222_v47 = vmul.f32 %v724_v0, %v183_v36  ;;  %v223_v48 = vmul.f32 %v724_v0, %v184_v37  ;;  %v191_v19 = vld [vmem:[%s729_s20 + $0x88] sm:$0xff]  ;;  %v194_v33 = vld [vmem:[%s729_s20 + $0xa0] sm:$0xff] }
  0x1c   : > { %v224_v49 = vmul.f32 %v724_v0, %v185_v38  ;;  %513 = vst.msk [vmem:[%s762_s26 + $0x10] sm:$0xf] %vm508_vm0, %v646_v42  ;;  %v353_v51 = vsel %vm289_vm6, %v257_v22, %v321_v43  ;;  %vm290_vm7 = vcmp.gt.f32.partialorder %v258_v44, 0.0  ;;  %v322_v52 = vmul.f32 0.2, %v258_v44 }
  0x1d   : > { %vm291_vm8 = vcmp.gt.f32.partialorder %v259_v45, 0.0  ;;  %v647_v53 = vpack.c.bf16 %v353_v51, %v353_v51  ;;  %v323_v54 = vmul.f32 0.2, %v259_v45  ;;  %v260_v55 = vadd.f32 %v734_v1, %v221_v46 }
  0x1e   : > { %v261_v56 = vadd.f32 %v734_v1, %v222_v47  ;;  %v354_v57 = vsel %vm290_vm7, %v258_v44, %v322_v52  ;;  %v262_v58 = vadd.f32 %v734_v1, %v223_v48  ;;  %v263_v59 = vadd.f32 %v734_v1, %v224_v49  ;;  %v195_v52 = vld [vmem:[%s729_s20 + $0xa8] sm:$0xff] }
  0x1f   : > { %v225_v60 = vmul.f32 %v724_v0, %v186_v50  ;;  %514 = vst.msk [vmem:[%s762_s26 + $0x14] sm:$0xf] %vm508_vm0, %v647_v53  ;;  %v648_v61 = vpack.c.bf16 %v354_v57, %v354_v57  ;;  %v355_v62 = vsel %vm291_vm8, %v259_v45, %v323_v54  ;;  %vm292_vm9 = vcmp.gt.f32.partialorder %v260_v55, 0.0 }
  0x20   : > { %v324_v63 = vmul.f32 0.2, %v260_v55  ;;  %v649_v3 = vpack.c.bf16 %v355_v62, %v355_v62  ;;  %vm293_vm10 = vcmp.gt.f32.partialorder %v261_v56, 0.0  ;;  %v325_v4 = vmul.f32 0.2, %v261_v56  ;;  %v198_v62 = vld [vmem:[%s729_s20 + $0xc0] sm:$0xff] }
  0x21   : > { %vm294_vm11 = vcmp.gt.f32.partialorder %v262_v58, 0.0  ;;  %515 = vst.msk [vmem:[%s762_s26 + $0x18] sm:$0xf] %vm508_vm0, %v648_v61  ;;  %v326_v7 = vmul.f32 0.2, %v262_v58  ;;  %vm295_vm12 = vcmp.gt.f32.partialorder %v263_v59, 0.0  ;;  %v264_v11 = vadd.f32 %v734_v1, %v225_v60 }
  0x22   : > { %v356_v6 = vsel %vm292_vm9, %v260_v55, %v324_v63  ;;  %v327_v8 = vmul.f32 0.2, %v263_v59  ;;  %516 = vst.msk [vmem:[%s762_s26 + $0x1c] sm:$0xf] %vm508_vm0, %v649_v3  ;;  %v357_v10 = vsel %vm293_vm10, %v261_v56, %v325_v4  ;;  %v226_v12 = vmul.f32 %v724_v0, %v187_v2  ;;  %v196_v56 = vld [vmem:[%s729_s20 + $0xb0] sm:$0xff]  ;;  %v197_v61 = vld [vmem:[%s729_s20 + $0xb8] sm:$0xff] }
  0x23   : > { %v650_v9 = vpack.c.bf16 %v356_v6, %v356_v6  ;;  %v651_v15 = vpack.c.bf16 %v357_v10, %v357_v10  ;;  %v358_v16 = vsel %vm294_vm11, %v262_v58, %v326_v7  ;;  %v227_v18 = vmul.f32 %v724_v0, %v188_v5  ;;  %v199_v63 = vld [vmem:[%s729_s20 + $0xc8] sm:$0xff]  ;;  %v200_v6 = vld [vmem:[%s729_s20 + $0xd0] sm:$0xff]  ;;  %v201_v7 = vld [vmem:[%s729_s20 + $0xd8] sm:$0xff] }
  0x24   : > { %v359_v17 = vsel %vm295_vm12, %v263_v59, %v327_v8  ;;  %v652_v22 = vpack.c.bf16 %v358_v16, %v358_v16  ;;  %vm296_vm13 = vcmp.gt.f32.partialorder %v264_v11, 0.0  ;;  %v328_v24 = vmul.f32 0.2, %v264_v11 }
  0x25   : > { %517 = vst.msk [vmem:[%s762_s26 + $0x20] sm:$0xf] %vm508_vm0, %v650_v9  ;;  %v653_v23 = vpack.c.bf16 %v359_v17, %v359_v17  ;;  %518 = vst.msk [vmem:[%s762_s26 + $0x24] sm:$0xf] %vm508_vm0, %v651_v15  ;;  %v265_v25 = vadd.f32 %v734_v1, %v226_v12  ;;  %v266_v26 = vadd.f32 %v734_v1, %v227_v18 }
  0x26   : > { %v228_v27 = vmul.f32 %v724_v0, %v189_v13  ;;  %v229_v28 = vmul.f32 %v724_v0, %v190_v14  ;;  %519 = vst.msk [vmem:[%s762_s26 + $0x28] sm:$0xf] %vm508_vm0, %v652_v22  ;;  %v360_v29 = vsel %vm296_vm13, %v264_v11, %v328_v24  ;;  %v230_v30 = vmul.f32 %v724_v0, %v191_v19 }
  0x27   : > { %520 = vst.msk [vmem:[%s762_s26 + $0x2c] sm:$0xf] %vm508_vm0, %v653_v23  ;;  %v231_v31 = vmul.f32 %v724_v0, %v192_v20  ;;  %v232_v32 = vmul.f32 %v724_v0, %v193_v21  ;;  %v654_v34 = vpack.c.bf16 %v360_v29, %v360_v29  ;;  %vm297_vm14 = vcmp.gt.f32.partialorder %v265_v25, 0.0 }
  0x28   : > { %v329_v35 = vmul.f32 0.2, %v265_v25  ;;  %vm298_vm15 = vcmp.gt.f32.partialorder %v266_v26, 0.0  ;;  %v330_v36 = vmul.f32 0.2, %v266_v26  ;;  %v267_v37 = vadd.f32 %v734_v1, %v228_v27 }
  0x29   : > { %v268_v38 = vadd.f32 %v734_v1, %v229_v28  ;;  %v269_v39 = vadd.f32 %v734_v1, %v230_v30  ;;  %521 = vst.msk [vmem:[%s762_s26 + $0x30] sm:$0xf] %vm508_vm0, %v654_v34  ;;  %v270_v41 = vadd.f32 %v734_v1, %v231_v31  ;;  %v271_v42 = vadd.f32 %v734_v1, %v232_v32  ;;  %v202_v31 = vld [vmem:[%s729_s20 + $0xe0] sm:$0xff] }
  0x2a   : > { %v361_v40 = vsel %vm297_vm14, %v265_v25, %v329_v35  ;;  %v233_v43 = vmul.f32 %v724_v0, %v194_v33  ;;  %v362_v45 = vsel %vm298_vm15, %v266_v26, %v330_v36  ;;  %vm299_vm1 = vcmp.gt.f32.partialorder %v267_v37, 0.0  ;;  %v203_v35 = vld [vmem:[%s729_s20 + $0xe8] sm:$0xff]  ;;  %v204_v36 = vld [vmem:[%s729_s20 + $0xf0] sm:$0xff] }
  0x2b   : > { %v655_v44 = vpack.c.bf16 %v361_v40, %v361_v40  ;;  %v331_v46 = vmul.f32 0.2, %v267_v37  ;;  %v656_v47 = vpack.c.bf16 %v362_v45, %v362_v45  ;;  %vm300_vm2 = vcmp.gt.f32.partialorder %v268_v38, 0.0 }
  0x2c   : > { %v332_v48 = vmul.f32 0.2, %v268_v38  ;;  %vm301_vm3 = vcmp.gt.f32.partialorder %v269_v39, 0.0  ;;  %v333_v50 = vmul.f32 0.2, %v269_v39  ;;  %vm302_vm4 = vcmp.gt.f32.partialorder %v270_v41, 0.0 }
  0x2d   : > { %522 = vst.msk [vmem:[%s762_s26 + $0x34] sm:$0xf] %vm508_vm0, %v655_v44  ;;  %v363_v49 = vsel %vm299_vm1, %v267_v37, %v331_v46  ;;  %v334_v51 = vmul.f32 0.2, %v270_v41  ;;  %523 = vst.msk [vmem:[%s762_s26 + $0x38] sm:$0xf] %vm508_vm0, %v656_v47  ;;  %v272_v60 = vadd.f32 %v734_v1, %v233_v43  ;;  %v234_v5 = vmul.f32 %v724_v0, %v195_v52 }
  0x2e   : > { %v657_v53 = vpack.c.bf16 %v363_v49, %v363_v49  ;;  %v364_v54 = vsel %vm300_vm2, %v268_v38, %v332_v48  ;;  %vm303_vm5 = vcmp.gt.f32.partialorder %v271_v42, 0.0  ;;  %v335_v55 = vmul.f32 0.2, %v271_v42  ;;  %v205_v44 = vld [vmem:[%s729_s20 + $0xf8] sm:$0xff] }
  0x2f   : > { %v658_v57 = vpack.c.bf16 %v364_v54, %v364_v54  ;;  %v365_v58 = vsel %vm301_vm3, %v269_v39, %v333_v50  ;;  %v366_v59 = vsel %vm302_vm4, %v270_v41, %v334_v51  ;;  %vm304_vm6 = vcmp.gt.f32.partialorder %v272_v60, 0.0 }
  0x30   : > { %524 = vst.msk [vmem:[%s762_s26 + $0x3c] sm:$0xf] %vm508_vm0, %v657_v53  ;;  %v659_v2 = vpack.c.bf16 %v365_v58, %v365_v58  ;;  %v660_v3 = vpack.c.bf16 %v366_v59, %v366_v59  ;;  %v367_v4 = vsel %vm303_vm5, %v271_v42, %v335_v55  ;;  %v336_v9 = vmul.f32 0.2, %v272_v60 }
  0x31   : > { %525 = vst.msk [vmem:[%s762_s26 + $0x40] sm:$0xf] %vm508_vm0, %v658_v57  ;;  %v661_v8 = vpack.c.bf16 %v367_v4, %v367_v4  ;;  %v235_v10 = vmul.f32 %v724_v0, %v196_v56  ;;  %v273_v11 = vadd.f32 %v734_v1, %v234_v5  ;;  %v236_v12 = vmul.f32 %v724_v0, %v197_v61 }
  0x32   : > { %526 = vst.msk [vmem:[%s762_s26 + $0x44] sm:$0xf] %vm508_vm0, %v659_v2  ;;  %527 = vst.msk [vmem:[%s762_s26 + $0x48] sm:$0xf] %vm508_vm0, %v660_v3  ;;  %v237_v13 = vmul.f32 %v724_v0, %v198_v62  ;;  %v238_v14 = vmul.f32 %v724_v0, %v199_v63  ;;  %v368_v15 = vsel %vm304_vm6, %v272_v60, %v336_v9 }
  0x33   : > { %528 = vst.msk [vmem:[%s762_s26 + $0x4c] sm:$0xf] %vm508_vm0, %v661_v8  ;;  %v274_v16 = vadd.f32 %v734_v1, %v235_v10  ;;  %v239_v17 = vmul.f32 %v724_v0, %v200_v6  ;;  %v240_v18 = vmul.f32 %v724_v0, %v201_v7  ;;  %v662_v19 = vpack.c.bf16 %v368_v15, %v368_v15 }
  0x34   : > { %vm305_vm7 = vcmp.gt.f32.partialorder %v273_v11, 0.0  ;;  %v337_v20 = vmul.f32 0.2, %v273_v11  ;;  %v275_v21 = vadd.f32 %v734_v1, %v236_v12  ;;  %v276_v23 = vadd.f32 %v734_v1, %v237_v13 }
  0x35   : > { %vm306_vm8 = vcmp.gt.f32.partialorder %v274_v16, 0.0  ;;  %v338_v22 = vmul.f32 0.2, %v274_v16  ;;  %v277_v24 = vadd.f32 %v734_v1, %v238_v14  ;;  %529 = vst.msk [vmem:[%s762_s26 + $0x50] sm:$0xf] %vm508_vm0, %v662_v19  ;;  %v278_v27 = vadd.f32 %v734_v1, %v239_v17 }
  0x36   : > { %v369_v25 = vsel %vm305_vm7, %v273_v11, %v337_v20  ;;  %vm307_vm9 = vcmp.gt.f32.partialorder %v275_v21, 0.0  ;;  %v339_v26 = vmul.f32 0.2, %v275_v21  ;;  %vm308_vm10 = vcmp.gt.f32.partialorder %v276_v23, 0.0 }
  0x37   : > { %v663_v28 = vpack.c.bf16 %v369_v25, %v369_v25  ;;  %v370_v29 = vsel %vm306_vm8, %v274_v16, %v338_v22  ;;  %v340_v30 = vmul.f32 0.2, %v276_v23  ;;  %vm309_vm11 = vcmp.gt.f32.partialorder %v277_v24, 0.0 }
  0x38   : > { %v664_v32 = vpack.c.bf16 %v370_v29, %v370_v29  ;;  %v371_v33 = vsel %vm307_vm9, %v275_v21, %v339_v26  ;;  %v341_v34 = vmul.f32 0.2, %v277_v24  ;;  %vm310_vm12 = vcmp.gt.f32.partialorder %v278_v27, 0.0 }
  0x39   : > { %530 = vst.msk [vmem:[%s762_s26 + $0x54] sm:$0xf] %vm508_vm0, %v663_v28  ;;  %v665_v37 = vpack.c.bf16 %v371_v33, %v371_v33  ;;  %v372_v38 = vsel %vm308_vm10, %v276_v23, %v340_v30  ;;  %v342_v39 = vmul.f32 0.2, %v278_v27  ;;  %v279_v42 = vadd.f32 %v734_v1, %v240_v18 }
  0x3a   : > { %531 = vst.msk [vmem:[%s762_s26 + $0x58] sm:$0xf] %vm508_vm0, %v664_v32  ;;  %v666_v40 = vpack.c.bf16 %v372_v38, %v372_v38  ;;  %v373_v41 = vsel %vm309_vm11, %v277_v24, %v341_v34  ;;  %v241_v43 = vmul.f32 %v724_v0, %v202_v31  ;;  %v242_v47 = vmul.f32 %v724_v0, %v203_v35 }
  0x3b   : > { %532 = vst.msk [vmem:[%s762_s26 + $0x5c] sm:$0xf] %vm508_vm0, %v665_v37  ;;  %v667_v45 = vpack.c.bf16 %v373_v41, %v373_v41  ;;  %v374_v46 = vsel %vm310_vm12, %v278_v27, %v342_v39  ;;  %v243_v48 = vmul.f32 %v724_v0, %v204_v36  ;;  %vm311_vm13 = vcmp.gt.f32.partialorder %v279_v42, 0.0 }
  0x3c   : > { %533 = vst.msk [vmem:[%s762_s26 + $0x60] sm:$0xf] %vm508_vm0, %v666_v40  ;;  %v668_v49 = vpack.c.bf16 %v374_v46, %v374_v46  ;;  %v343_v50 = vmul.f32 0.2, %v279_v42  ;;  %v280_v51 = vadd.f32 %v734_v1, %v241_v43  ;;  %v281_v52 = vadd.f32 %v734_v1, %v242_v47 }
  0x3d   : > { %534 = vst.msk [vmem:[%s762_s26 + $0x64] sm:$0xf] %vm508_vm0, %v667_v45  ;;  %v282_v53 = vadd.f32 %v734_v1, %v243_v48  ;;  %v244_v54 = vmul.f32 %v724_v0, %v205_v44 }
  0x3e   : > { %535 = vst.msk [vmem:[%s762_s26 + $0x68] sm:$0xf] %vm508_vm0, %v668_v49  ;;  %v375_v55 = vsel %vm311_vm13, %v279_v42, %v343_v50  ;;  %vm312_vm14 = vcmp.gt.f32.partialorder %v280_v51, 0.0  ;;  %v344_v56 = vmul.f32 0.2, %v280_v51  ;;  %vm313_vm15 = vcmp.gt.f32.partialorder %v281_v52, 0.0 }
  0x3f   : > { %v669_v57 = vpack.c.bf16 %v375_v55, %v375_v55  ;;  %v345_v58 = vmul.f32 0.2, %v281_v52  ;;  %vm314_vm1 = vcmp.gt.f32.partialorder %v282_v53, 0.0  ;;  %v346_v60 = vmul.f32 0.2, %v282_v53 }
  0x40   : > { %v376_v59 = vsel %vm312_vm14, %v280_v51, %v344_v56  ;;  %v283_v61 = vadd.f32 %v734_v1, %v244_v54 }
  0x41   : > { %536 = vst.msk [vmem:[%s762_s26 + $0x6c] sm:$0xf] %vm508_vm0, %v669_v57  ;;  %v670_v0 = vpack.c.bf16 %v376_v59, %v376_v59  ;;  %v377_v62 = vsel %vm313_vm15, %v281_v52, %v345_v58  ;;  %v378_v2 = vsel %vm314_vm1, %v282_v53, %v346_v60 }
  0x42   : > { %v671_v63 = vpack.c.bf16 %v377_v62, %v377_v62  ;;  %vm315_vm2 = vcmp.gt.f32.partialorder %v283_v61, 0.0  ;;  %v347_v3 = vmul.f32 0.2, %v283_v61  ;;  %v672_v4 = vpack.c.bf16 %v378_v2, %v378_v2 }
  0x43   : > { %537 = vst.msk [vmem:[%s762_s26 + $0x70] sm:$0xf] %vm508_vm0, %v670_v0 }
  0x44   : > { %538 = vst.msk [vmem:[%s762_s26 + $0x74] sm:$0xf] %vm508_vm0, %v671_v63  ;;  %v379_v5 = vsel %vm315_vm2, %v283_v61, %v347_v3  ;;  %539 = vst.msk [vmem:[%s762_s26 + $0x78] sm:$0xf] %vm508_vm0, %v672_v4 }
  0x45   : > { %v673_v6 = vpack.c.bf16 %v379_v5, %v379_v5 }
  0x47   : > { %540 = vst.msk [vmem:[%s762_s26 + $0x7c] sm:$0xf] %vm508_vm0, %v673_v6 }
  0x48 PF: > { %s13_s12 = sadd.s32 1, %s688_s12  }
  0x49   : > { %p10_p4 = scmp.ge.s32.totalorder %s13_s12, 4  }
  0x4b   :  { %12 = sbr.rel (!%p10_p4) target bundleno = 1 (0x1), region = 62 }

// kernel: generator_forward.11
= control target key start
LH: loop header
LB: loop body
LE: loop exit
PB: predicated region body
PF: predicated region fallthrough
CT: control target
= control target key end

     0   :  { %s3133_s12 = smov 0   ;;  %s3907_s0 = inlined_call_operand.vmem [shape: bf16[512,1024], index: 0, kind: input, shape index: {}]   ;;  %s3908_s1 = inlined_call_operand.vmem [shape: bf16[1024,32], index: 1, kind: input, shape index: {}]   ;;  %s3909_s2 = inlined_call_operand.vmem [shape: f32[512,32], index: 2, kind: output, shape index: {0}]   ;;  %s3910_s3 = inlined_call_operand.vmem [shape: f32[2,32], index: 3, kind: output, shape index: {1}]  }
   0x1 LB: > { %s2377_s13 = sadd.s32 4294967295, %s3110_s12   ;;  %p2381_p0 = scmp.ge.s32.totalorder %s3110_s12, 1  ;;  %s3110_s12 = sphi %s3133_s12, %s14_s12  }
   0x2   : > { %p137_p1 = scmp.lt.s32.totalorder %s3110_s12, 3 }
   0x4   : > { %p138_p2 = pnand %p2381_p0, %p137_p1 }
   0x5   : > { %v3040_v0 = vld [vmem:[%s3908_s1 + $0x40] sm:$0xff] (!%p138_p2)   ;;  %v3044_v4 = vld [vmem:[%s3908_s1 + $0x48] sm:$0xff] (!%p138_p2)   ;;  %v3048_v8 = vld [vmem:[%s3908_s1 + $0x50] sm:$0xff] (!%p138_p2)   ;;  %s2382_s21 = sshll.u32 (!%p138_p2), %s2377_s13, 5  ;;  %vm2100_vm0 = vcmask (!%p138_p2), 261120   ;;  %p2579_p4 = scmp.ne.s32.totalorder (!%p138_p2), %s2377_s13, 0 }
   0x6   : > { %141 = sbr.rel (%p138_p2) target bundleno = 593 (0x251), region = 28  ;;  %v3041_v1 = vld [vmem:[%s3908_s1 + $0xc0] sm:$0xff] (!%p138_p2)   ;;  %2583 = vmatprep.subr.bf16.mxu0 (!%p138_p2), %v3040_v0  ;;  %v3045_v5 = vld [vmem:[%s3908_s1 + $0xc8] sm:$0xff] (!%p138_p2)   ;;  %v3049_v9 = vld [vmem:[%s3908_s1 + $0xd0] sm:$0xff] (!%p138_p2)   ;;  %p163_p3 = scmp.lt.s32.totalorder (!%p138_p2), %s2382_s21, 63 }
   0x7   : > { %v3042_v2 = vld [vmem:[%s3908_s1] sm:$0xff] (!%p138_p2)   ;;  %2695 = vmatprep.subr.bf16.mxu1 (!%p138_p2), %v3041_v1  ;;  %v3046_v6 = vld [vmem:[%s3908_s1 + $0x8] sm:$0xff] (!%p138_p2)   ;;  %v3050_v10 = vld [vmem:[%s3908_s1 + $0x10] sm:$0xff] (!%p138_p2)  }
   0x8   : > { %v3043_v3 = vld [vmem:[%s3908_s1 + $0x80] sm:$0xff] (!%p138_p2)   ;;  %2584 = vmatpush3.bf16.msra.mxu0 (!%p138_p2), %v3042_v2  ;;  %v3047_v7 = vld [vmem:[%s3908_s1 + $0x88] sm:$0xff] (!%p138_p2)   ;;  %v3051_v11 = vld [vmem:[%s3908_s1 + $0x90] sm:$0xff] (!%p138_p2)  }
   0x9   : > { %2696 = vmatpush3.bf16.msra.mxu1 (!%p138_p2), %v3043_v3  ;;  %2585 = vmatprep.subr.bf16.mxu0 (!%p138_p2), %v3044_v4  ;;  %v3052_v12 = vld [vmem:[%s3908_s1 + $0x58] sm:$0xff] (!%p138_p2)   ;;  %v3056_v16 = vld [vmem:[%s3908_s1 + $0x60] sm:$0xff] (!%p138_p2)   ;;  %v3060_v20 = vld [vmem:[%s3908_s1 + $0x68] sm:$0xff] (!%p138_p2)  }
   0xa   : > { %2697 = vmatprep.subr.bf16.mxu1 (!%p138_p2), %v3045_v5  ;;  %v3053_v13 = vld [vmem:[%s3908_s1 + $0xd8] sm:$0xff] (!%p138_p2)   ;;  %v3057_v17 = vld [vmem:[%s3908_s1 + $0xe0] sm:$0xff] (!%p138_p2)   ;;  %v3061_v21 = vld [vmem:[%s3908_s1 + $0xe8] sm:$0xff] (!%p138_p2)  }
   0xb   : > { %v3054_v14 = vld [vmem:[%s3908_s1 + $0x18] sm:$0xff] (!%p138_p2)   ;;  %v3058_v18 = vld [vmem:[%s3908_s1 + $0x20] sm:$0xff] (!%p138_p2)   ;;  %v3062_v22 = vld [vmem:[%s3908_s1 + $0x28] sm:$0xff] (!%p138_p2)  }
   0xc   : > { %2586 = vmatpush3.bf16.msra.mxu0 (!%p138_p2), %v3046_v6  ;;  %v3055_v15 = vld [vmem:[%s3908_s1 + $0x98] sm:$0xff] (!%p138_p2)   ;;  %v3059_v19 = vld [vmem:[%s3908_s1 + $0xa0] sm:$0xff] (!%p138_p2)   ;;  %v3063_v23 = vld [vmem:[%s3908_s1 + $0xa8] sm:$0xff] (!%p138_p2)  }
   0xd   : > { %2698 = vmatpush3.bf16.msra.mxu1 %v3047_v7  ;;  %2587 = vmatprep.subr.bf16.mxu0 %v3048_v8  ;;  %s3912_s21 = smov (!%p163_p3, %s2382_s21), 63  ;;  %v3064_v24 = vld [vmem:[%s3908_s1 + $0x70] sm:$0xff]   ;;  %v3068_v28 = vld [vmem:[%s3908_s1 + $0x78] sm:$0xff]   ;;  %v3072_v40 = vld [vmem:[%s3908_s1 + $0x140] sm:$0xff]   ;;  %vm2137_vm1 = vcmask (!%p2579_p4), 254976  }
   0xe   : > { %2699 = vmatprep.subr.bf16.mxu1 %v3049_v9  ;;  %v3065_v25 = vld [vmem:[%s3908_s1 + $0xf0] sm:$0xff]   ;;  %s2582_s19 = sshll.u32 %s3912_s21, 5  ;;  %v3069_v29 = vld [vmem:[%s3908_s1 + $0xf8] sm:$0xff]   ;;  %v3073_v41 = vld [vmem:[%s3908_s1 + $0x100] sm:$0xff]  }
   0xf   : > { %v3066_v26 = vld [vmem:[%s3908_s1 + $0x30] sm:$0xff]   ;;  %s3239_s29 = scalar_lea.vmem %s3907_s0, %s2582_s19  ;;  %v3070_v30 = vld [vmem:[%s3908_s1 + $0x38] sm:$0xff]   ;;  %v3074_v42 = vld [vmem:[%s3908_s1 + $0x1c0] sm:$0xff]  }
  0x10   : > { %2588 = vmatpush3.bf16.msra.mxu0 %v3050_v10  ;;  %v3067_v27 = vld [vmem:[%s3908_s1 + $0xb0] sm:$0xff]   ;;  %v3071_v31 = vld [vmem:[%s3908_s1 + $0xb8] sm:$0xff]   ;;  %v176_v32 = vld [vmem:[%s3239_s29] sm:$0xff] }
  0x11   : > { %2700 = vmatpush3.bf16.msra.mxu1 %v3051_v11  ;;  %2589 = vmatprep.subr.bf16.mxu0 %v3052_v12  ;;  %v180_v33 = vld [vmem:[%s3239_s29 + $0x20] sm:$0xff]  ;;  %v177_v34 = vld [vmem:[%s3239_s29 + $0x8] sm:$0xff]  ;;  %v3080_v2 = vld [vmem:[%s3908_s1 + $0x150] sm:$0xff]  }
  0x12   : > { %2701 = vmatprep.subr.bf16.mxu1 %v3053_v13  ;;  %v2387_v35 = vcombine.low %v176_v32, %v180_v33  ;;  %v2388_v36 = vcombine.high %v176_v32, %v180_v33  ;;  %v181_v37 = vld [vmem:[%s3239_s29 + $0x28] sm:$0xff]  ;;  %v3075_v43 = vld [vmem:[%s3908_s1 + $0x180] sm:$0xff]   ;;  %v3081_v4 = vld [vmem:[%s3908_s1 + $0x110] sm:$0xff]  }
  0x13   : > { %v2389_v38 = vcombine.low %v177_v34, %v181_v37  ;;  %v2390_v39 = vcombine.high %v177_v34, %v181_v37  ;;  %v184_v44 = vld [vmem:[%s3239_s29 + $0x40] sm:$0xff]  ;;  %v185_v47 = vld [vmem:[%s3239_s29 + $0x48] sm:$0xff]  ;;  %v3082_v7 = vld [vmem:[%s3908_s1 + $0x1d0] sm:$0xff]  }
  0x14   : > { %2590 = vmatpush3.bf16.msra.mxu0 %v3054_v14  ;;  %1488 = vmatprep.mubr.bf16.mxu0 %v2388_v36  ;;  %v188_v45 = vld [vmem:[%s3239_s29 + $0x60] sm:$0xff]  ;;  %v189_v48 = vld [vmem:[%s3239_s29 + $0x68] sm:$0xff]  ;;  %v3083_v9 = vld [vmem:[%s3908_s1 + $0x190] sm:$0xff]  }
  0x15   : > { %2702 = vmatpush3.bf16.msra.mxu1 %v3055_v15  ;;  %2591 = vmatprep.subr.bf16.mxu0 %v3056_v16  ;;  %v2396_v46 = vcombine.high %v184_v44, %v188_v45  ;;  %v192_v49 = vld [vmem:[%s3239_s29 + $0x80] sm:$0xff]  ;;  %v2398_v50 = vcombine.high %v185_v47, %v189_v48  ;;  %v193_v52 = vld [vmem:[%s3239_s29 + $0x88] sm:$0xff]  ;;  %v2395_v54 = vcombine.low %v184_v44, %v188_v45  ;;  %v3084_v14 = vld [vmem:[%s3908_s1 + $0x158] sm:$0xff]  }
  0x16   : > { %2703 = vmatprep.subr.bf16.mxu1 %v3057_v17  ;;  %1649 = vmatprep.mubr.bf16.mxu1 %v2390_v39  ;;  %v196_v51 = vld [vmem:[%s3239_s29 + $0xa0] sm:$0xff]  ;;  %v197_v53 = vld [vmem:[%s3239_s29 + $0xa8] sm:$0xff]  ;;  %v2397_v56 = vcombine.low %v185_v47, %v189_v48  ;;  %v3085_v15 = vld [vmem:[%s3908_s1 + $0x118] sm:$0xff]  }
  0x17   : > { %v3076_v55 = vld [vmem:[%s3908_s1 + $0x148] sm:$0xff]   ;;  %v2404_v57 = vcombine.high %v192_v49, %v196_v51  ;;  %v2406_v59 = vcombine.high %v193_v52, %v197_v53  ;;  %v200_v62 = vld [vmem:[%s3239_s29 + $0xc0] sm:$0xff]  ;;  %v2403_v3 = vcombine.low %v192_v49, %v196_v51  ;;  %v2405_v5 = vcombine.low %v193_v52, %v197_v53  ;;  %v3086_v17 = vld [vmem:[%s3908_s1 + $0x1d8] sm:$0xff]  }
  0x18   : > { %2592 = vmatpush3.bf16.msra.mxu0 %v3058_v18  ;;  %v3077_v58 = vld [vmem:[%s3908_s1 + $0x108] sm:$0xff]   ;;  %v204_v63 = vld [vmem:[%s3239_s29 + $0xe0] sm:$0xff]  ;;  %v3097_v47 = vld [vmem:[%s3908_s1 + $0x130] sm:$0xff]  }
  0x19   : > { %2704 = vmatpush3.bf16.msra.mxu1 %v3059_v19  ;;  %2593 = vmatprep.subr.bf16.mxu0 %v3060_v20  ;;  %v3078_v60 = vld [vmem:[%s3908_s1 + $0x1c8] sm:$0xff]   ;;  %v2412_v6 = vcombine.high %v200_v62, %v204_v63  ;;  %v208_v10 = vld [vmem:[%s3239_s29 + $0x100] sm:$0xff]  ;;  %v2411_v16 = vcombine.low %v200_v62, %v204_v63  ;;  %v3087_v20 = vld [vmem:[%s3908_s1 + $0x198] sm:$0xff]  }
  0x1a   : > { %2705 = vmatprep.subr.bf16.mxu1 %v3061_v21  ;;  %v3079_v61 = vld [vmem:[%s3908_s1 + $0x188] sm:$0xff]   ;;  %v212_v11 = vld [vmem:[%s3239_s29 + $0x120] sm:$0xff]  ;;  %v3098_v48 = vld [vmem:[%s3908_s1 + $0x1f0] sm:$0xff]  }
  0x1b   : > { %v201_v0 = vld [vmem:[%s3239_s29 + $0xc8] sm:$0xff]  ;;  %v2420_v19 = vcombine.high %v208_v10, %v212_v11  ;;  %v3099_v49 = vld [vmem:[%s3908_s1 + $0x1b0] sm:$0xff]   ;;  %v236_v51 = vld [vmem:[%s3239_s29 + $0x1e0] sm:$0xff] }
  0x1c   : > { %2594 = vmatpush3.bf16.msra.mxu0 %v3062_v22  ;;  %v205_v1 = vld [vmem:[%s3239_s29 + $0xe8] sm:$0xff]  ;;  %v216_v22 = vld [vmem:[%s3239_s29 + $0x140] sm:$0xff] }
  0x1d   : > { %2706 = vmatpush3.bf16.msra.mxu1 %v3063_v23  ;;  %2595 = vmatprep.subr.bf16.mxu0 %v3064_v24  ;;  %v2414_v8 = vcombine.high %v201_v0, %v205_v1  ;;  %v209_v12 = vld [vmem:[%s3239_s29 + $0x108] sm:$0xff]  ;;  %v2413_v18 = vcombine.low %v201_v0, %v205_v1  ;;  %v220_v23 = vld [vmem:[%s3239_s29 + $0x160] sm:$0xff] }
  0x1e   : > { %2707 = vmatprep.subr.bf16.mxu1 %v3065_v25  ;;  %v213_v13 = vld [vmem:[%s3239_s29 + $0x128] sm:$0xff]  ;;  %v3088_v24 = vld [vmem:[%s3908_s1 + $0x160] sm:$0xff]   ;;  %v2428_v32 = vcombine.high %v216_v22, %v220_v23 }
  0x1f   : > { %v2422_v21 = vcombine.high %v209_v12, %v213_v13  ;;  %v217_v25 = vld [vmem:[%s3239_s29 + $0x148] sm:$0xff]  ;;  %v240_v62 = vld [vmem:[%s3239_s29 + $0x200] sm:$0xff] }
  0x20   : > { %2596 = vmatpush3.bf16.msra.mxu0 %v3066_v26  ;;  %v221_v26 = vld [vmem:[%s3239_s29 + $0x168] sm:$0xff]  ;;  %v244_v63 = vld [vmem:[%s3239_s29 + $0x220] sm:$0xff] }
  0x21   : > { %2708 = vmatpush3.bf16.msra.mxu1 %v3067_v27  ;;  %2597 = vmatprep.subr.bf16.mxu0 %v3068_v28  ;;  %v3089_v27 = vld [vmem:[%s3908_s1 + $0x120] sm:$0xff]   ;;  %v2430_v33 = vcombine.high %v217_v25, %v221_v26  ;;  %v3092_v34 = vld [vmem:[%s3908_s1 + $0x168] sm:$0xff]  }
  0x22   : > { %2709 = vmatprep.subr.bf16.mxu1 %v3069_v29  ;;  %v3090_v28 = vld [vmem:[%s3908_s1 + $0x1e0] sm:$0xff]   ;;  %v3093_v36 = vld [vmem:[%s3908_s1 + $0x128] sm:$0xff]  }
  0x23   : > { %v3091_v29 = vld [vmem:[%s3908_s1 + $0x1a0] sm:$0xff]   ;;  %v3094_v37 = vld [vmem:[%s3908_s1 + $0x1e8] sm:$0xff]  }
  0x24   : > { %2598 = vmatpush3.bf16.msra.mxu0 %v3070_v30  ;;  %v2419_v30 = vcombine.low %v208_v10, %v212_v11  ;;  %v3095_v39 = vld [vmem:[%s3908_s1 + $0x1a8] sm:$0xff]   ;;  %v2451_v10 = vcombine.low %v240_v62, %v244_v63 }
  0x25   : > { %2710 = vmatpush3.bf16.msra.mxu1 %v3071_v31  ;;  %2807 = vmatprep.subr.bf16.mxu0 %v3072_v40  ;;  %v2421_v31 = vcombine.low %v209_v12, %v213_v13  ;;  %v225_v40 = vld [vmem:[%s3239_s29 + $0x188] sm:$0xff] }
  0x26   : > { %2919 = vmatprep.subr.bf16.mxu1 %v3074_v42  ;;  %v2427_v42 = vcombine.low %v216_v22, %v220_v23  ;;  %v233_v52 = vld [vmem:[%s3239_s29 + $0x1c8] sm:$0xff]  ;;  %v264_v22 = vld [vmem:[%s3239_s29 + $0x2c0] sm:$0xff] }
  0x27   : > { %1489 = vmatmul.mubr.bf16.vlgmr.msra.gmra.mrb[0].mxu0 %v2387_v35  ;;  %v224_v35 = vld [vmem:[%s3239_s29 + $0x180] sm:$0xff]  ;;  %v237_v53 = vld [vmem:[%s3239_s29 + $0x1e8] sm:$0xff] }
  0x28   : > { %1650 = vmatmul.mubr.bf16.vlgmr.msra.gmra.mrb[0].mxu1 %v2389_v38  ;;  %2808 = vmatpush3.bf16.msra.mxu0 %v3073_v41  ;;  %v228_v38 = vld [vmem:[%s3239_s29 + $0x1a0] sm:$0xff]  ;;  %v229_v41 = vld [vmem:[%s3239_s29 + $0x1a8] sm:$0xff] }
  0x29   : > { %2920 = vmatpush3.bf16.msra.mxu1 %v3075_v43  ;;  %1496 = vmatprep.mubr.bf16.mxu0 %v2396_v46  ;;  %v2429_v43 = vcombine.low %v217_v25, %v221_v26  ;;  %v2436_v44 = vcombine.high %v224_v35, %v228_v38  ;;  %v2438_v45 = vcombine.high %v225_v40, %v229_v41  ;;  %v3096_v46 = vld [vmem:[%s3908_s1 + $0x170] sm:$0xff]   ;;  %v241_v0 = vld [vmem:[%s3239_s29 + $0x208] sm:$0xff]  ;;  %v268_v23 = vld [vmem:[%s3239_s29 + $0x2e0] sm:$0xff] }
  0x2a   : > { %1657 = vmatprep.mubr.bf16.mxu1 %v2398_v50  ;;  %2809 = vmatprep.subr.bf16.mxu0 %v3076_v55  ;;  %v232_v50 = vld [vmem:[%s3239_s29 + $0x1c0] sm:$0xff]  ;;  %v3100_v55 = vld [vmem:[%s3908_s1 + $0x178] sm:$0xff]   ;;  %v245_v1 = vld [vmem:[%s3239_s29 + $0x228] sm:$0xff] }
  0x2b   : > { %2921 = vmatprep.subr.bf16.mxu1 %v3078_v60  ;;  %v3102_v60 = vld [vmem:[%s3908_s1 + $0x1f8] sm:$0xff]   ;;  %v2453_v11 = vcombine.low %v241_v0, %v245_v1  ;;  %v269_v25 = vld [vmem:[%s3239_s29 + $0x2e8] sm:$0xff] }
  0x2c   : > { %2810 = vmatpush3.bf16.msra.mxu0 %v3077_v58  ;;  %v3101_v58 = vld [vmem:[%s3908_s1 + $0x138] sm:$0xff]  }
  0x2d   : > { %2922 = vmatpush3.bf16.msra.mxu1 %v3079_v61  ;;  %2811 = vmatprep.subr.bf16.mxu0 %v3080_v2  ;;  %v3103_v61 = vld [vmem:[%s3908_s1 + $0x1b8] sm:$0xff]   ;;  %v2443_v2 = vcombine.low %v232_v50, %v236_v51 }
  0x2e   : > { %2923 = vmatprep.subr.bf16.mxu1 %v3082_v7  ;;  %v252_v7 = vld [vmem:[%s3239_s29 + $0x260] sm:$0xff] }
  0x2f   : > { %1497 = vmatmul.mubr.bf16.gmra.mrb[4].mxu0 %v2395_v54  ;;  %v2435_v54 = vcombine.low %v224_v35, %v228_v38  ;;  %v280_v38 = vld [vmem:[%s3239_s29 + $0x340] sm:$0xff] }
  0x30   : > { %1658 = vmatmul.mubr.bf16.gmra.mrb[4].mxu1 %v2397_v56  ;;  %1504 = vmatprep.mubr.bf16.mxu0 %v2404_v57  ;;  %v2437_v56 = vcombine.low %v225_v40, %v229_v41  ;;  %v2444_v57 = vcombine.high %v232_v50, %v236_v51  ;;  %v281_v40 = vld [vmem:[%s3239_s29 + $0x348] sm:$0xff] }
  0x31   : > { %1665 = vmatprep.mubr.bf16.mxu1 %v2406_v59  ;;  %2812 = vmatpush3.bf16.msra.mxu0 %v3081_v4  ;;  %v2446_v59 = vcombine.high %v233_v52, %v237_v53  ;;  %v2452_v4 = vcombine.high %v240_v62, %v244_v63  ;;  %v285_v41 = vld [vmem:[%s3239_s29 + $0x368] sm:$0xff]  ;;  %v178_v62 = vld [vmem:[%s3239_s29 + $0x10] sm:$0xff] }
  0x32   : > { %2924 = vmatpush3.bf16.msra.mxu1 %v3083_v9  ;;  %2813 = vmatprep.subr.bf16.mxu0 %v3084_v14  ;;  %v253_v9 = vld [vmem:[%s3239_s29 + $0x268] sm:$0xff]  ;;  %v256_v14 = vld [vmem:[%s3239_s29 + $0x280] sm:$0xff]  ;;  %v2493_v51 = vcombine.low %v281_v40, %v285_v41  ;;  %v182_v63 = vld [vmem:[%s3239_s29 + $0x30] sm:$0xff] }
  0x33   : > { %2925 = vmatprep.subr.bf16.mxu1 %v3086_v17  ;;  %v261_v17 = vld [vmem:[%s3239_s29 + $0x2a8] sm:$0xff] }
  0x35   : > { %2814 = vmatpush3.bf16.msra.mxu0 %v3085_v15  ;;  %v260_v15 = vld [vmem:[%s3239_s29 + $0x2a0] sm:$0xff] }
  0x36   : > { %2926 = vmatpush3.bf16.msra.mxu1 %v3087_v20  ;;  %2815 = vmatprep.subr.bf16.mxu0 %v3088_v24  ;;  %v2468_v20 = vcombine.high %v256_v14, %v260_v15  ;;  %v265_v24 = vld [vmem:[%s3239_s29 + $0x2c8] sm:$0xff]  ;;  %v2467_v26 = vcombine.low %v256_v14, %v260_v15  ;;  %v194_v14 = vld [vmem:[%s3239_s29 + $0x90] sm:$0xff] }
  0x37   : > { %1505 = vmatmul.mubr.bf16.gmra.mrb[8].mxu0 %v2403_v3  ;;  %2927 = vmatprep.subr.bf16.mxu1 %v3090_v28  ;;  %v2445_v3 = vcombine.low %v233_v52, %v237_v53  ;;  %v2476_v28 = vcombine.high %v264_v22, %v268_v23  ;;  %v2477_v35 = vcombine.low %v265_v24, %v269_v25  ;;  %v198_v15 = vld [vmem:[%s3239_s29 + $0xb0] sm:$0xff] }
  0x38   : > { %1666 = vmatmul.mubr.bf16.gmra.mrb[8].mxu1 %v2405_v5  ;;  %1512 = vmatprep.mubr.bf16.mxu0 %v2412_v6  ;;  %v2454_v5 = vcombine.high %v241_v0, %v245_v1  ;;  %v248_v6 = vld [vmem:[%s3239_s29 + $0x240] sm:$0xff]  ;;  %v179_v0 = vld [vmem:[%s3239_s29 + $0x18] sm:$0xff] }
  0x39   : > { %1673 = vmatprep.mubr.bf16.mxu1 %v2414_v8  ;;  %2816 = vmatpush3.bf16.msra.mxu0 %v3089_v27  ;;  %v249_v8 = vld [vmem:[%s3239_s29 + $0x248] sm:$0xff]  ;;  %v2460_v12 = vcombine.high %v248_v6, %v252_v7  ;;  %v183_v1 = vld [vmem:[%s3239_s29 + $0x38] sm:$0xff] }
  0x3a   : > { %2928 = vmatpush3.bf16.msra.mxu1 %v3091_v29  ;;  %2817 = vmatprep.subr.bf16.mxu0 %v3092_v34  ;;  %v2462_v13 = vcombine.high %v249_v8, %v253_v9  ;;  %v2478_v29 = vcombine.high %v265_v24, %v269_v25  ;;  %v2475_v34 = vcombine.low %v264_v22, %v268_v23  ;;  %v202_v22 = vld [vmem:[%s3239_s29 + $0xd0] sm:$0xff]  ;;  %v203_v24 = vld [vmem:[%s3239_s29 + $0xd8] sm:$0xff] }
  0x3b   : > { %2929 = vmatprep.subr.bf16.mxu1 %v3094_v37  ;;  %v206_v23 = vld [vmem:[%s3239_s29 + $0xf0] sm:$0xff]  ;;  %v207_v25 = vld [vmem:[%s3239_s29 + $0xf8] sm:$0xff] }
  0x3d   : > { %2818 = vmatpush3.bf16.msra.mxu0 %v3093_v36 }
  0x3e   : > { %2930 = vmatpush3.bf16.msra.mxu1 %v3095_v39  ;;  %2819 = vmatprep.subr.bf16.mxu0 %v3096_v46  ;;  %v284_v39 = vld [vmem:[%s3239_s29 + $0x360] sm:$0xff] }
  0x3f   : > { %1513 = vmatmul.mubr.bf16.gmra.mrb[12].mxu0 %v2411_v16  ;;  %2931 = vmatprep.subr.bf16.mxu1 %v3098_v48  ;;  %v257_v16 = vld [vmem:[%s3239_s29 + $0x288] sm:$0xff]  ;;  %v288_v46 = vld [vmem:[%s3239_s29 + $0x380] sm:$0xff]  ;;  %v2491_v50 = vcombine.low %v280_v38, %v284_v39 }
  0x40   : > { %1674 = vmatmul.mubr.bf16.gmra.mrb[12].mxu1 %v2413_v18  ;;  %1520 = vmatprep.mubr.bf16.mxu0 %v2420_v19  ;;  %v2459_v18 = vcombine.low %v248_v6, %v252_v7  ;;  %v2461_v19 = vcombine.low %v249_v8, %v253_v9  ;;  %v2469_v27 = vcombine.low %v257_v16, %v261_v17  ;;  %v289_v48 = vld [vmem:[%s3239_s29 + $0x388] sm:$0xff]  ;;  %v186_v6 = vld [vmem:[%s3239_s29 + $0x50] sm:$0xff]  ;;  %v187_v8 = vld [vmem:[%s3239_s29 + $0x58] sm:$0xff] }
  0x41   : > { %1681 = vmatprep.mubr.bf16.mxu1 %v2422_v21  ;;  %2820 = vmatpush3.bf16.msra.mxu0 %v3097_v47  ;;  %v2470_v21 = vcombine.high %v257_v16, %v261_v17  ;;  %v292_v47 = vld [vmem:[%s3239_s29 + $0x3a0] sm:$0xff]  ;;  %v190_v7 = vld [vmem:[%s3239_s29 + $0x70] sm:$0xff]  ;;  %v191_v9 = vld [vmem:[%s3239_s29 + $0x78] sm:$0xff] }
  0x42   : > { %2932 = vmatpush3.bf16.msra.mxu1 %v3099_v49  ;;  %2821 = vmatprep.subr.bf16.mxu0 %v3100_v55  ;;  %v293_v49 = vld [vmem:[%s3239_s29 + $0x3a8] sm:$0xff]  ;;  %v2500_v52 = vcombine.high %v288_v46, %v292_v47  ;;  %v300_v55 = vld [vmem:[%s3239_s29 + $0x3e0] sm:$0xff]  ;;  %v195_v16 = vld [vmem:[%s3239_s29 + $0x98] sm:$0xff] }
  0x43   : > { %2933 = vmatprep.subr.bf16.mxu1 %v3102_v60  ;;  %v2502_v53 = vcombine.high %v289_v48, %v293_v49  ;;  %v199_v17 = vld [vmem:[%s3239_s29 + $0xb8] sm:$0xff] }
  0x45   : > { %2822 = vmatpush3.bf16.msra.mxu0 %v3101_v58  ;;  %v2499_v58 = vcombine.low %v288_v46, %v292_v47  ;;  %v226_v46 = vld [vmem:[%s3239_s29 + $0x190] sm:$0xff] }
  0x46   : > { %2934 = vmatpush3.bf16.msra.mxu1 %v3103_v61  ;;  %v230_v47 = vld [vmem:[%s3239_s29 + $0x1b0] sm:$0xff] }
  0x47   : > { %1521 = vmatmul.mubr.bf16.gmra.mrb[16].mxu0 %v2419_v30  ;;  %v272_v30 = vld [vmem:[%s3239_s29 + $0x300] sm:$0xff] }
  0x48   : > { %1682 = vmatmul.mubr.bf16.gmra.mrb[16].mxu1 %v2421_v31  ;;  %1528 = vmatprep.mubr.bf16.mxu0 %v2428_v32  ;;  %v276_v31 = vld [vmem:[%s3239_s29 + $0x320] sm:$0xff]  ;;  %v273_v32 = vld [vmem:[%s3239_s29 + $0x308] sm:$0xff] }
  0x49   : > { %1689 = vmatprep.mubr.bf16.mxu1 %v2430_v33  ;;  %v277_v33 = vld [vmem:[%s3239_s29 + $0x328] sm:$0xff]  ;;  %v2484_v36 = vcombine.high %v272_v30, %v276_v31 }
  0x4a   : > { %v2486_v37 = vcombine.high %v273_v32, %v277_v33 }
  0x4f   : > { %1529 = vmatmul.mubr.bf16.gmra.mrb[20].mxu0 %v2427_v42  ;;  %v2483_v42 = vcombine.low %v272_v30, %v276_v31  ;;  %v210_v30 = vld [vmem:[%s3239_s29 + $0x110] sm:$0xff] }
  0x50   : > { %1690 = vmatmul.mubr.bf16.gmra.mrb[20].mxu1 %v2429_v43  ;;  %1536 = vmatprep.mubr.bf16.mxu0 %v2436_v44  ;;  %v2485_v43 = vcombine.low %v273_v32, %v277_v33  ;;  %v2492_v44 = vcombine.high %v280_v38, %v284_v39  ;;  %v214_v31 = vld [vmem:[%s3239_s29 + $0x130] sm:$0xff]  ;;  %v211_v32 = vld [vmem:[%s3239_s29 + $0x118] sm:$0xff] }
  0x51   : > { %1697 = vmatprep.mubr.bf16.mxu1 %v2438_v45  ;;  %v2494_v45 = vcombine.high %v281_v40, %v285_v41  ;;  %v215_v33 = vld [vmem:[%s3239_s29 + $0x138] sm:$0xff]  ;;  %v218_v38 = vld [vmem:[%s3239_s29 + $0x150] sm:$0xff] }
  0x52   : > { %v222_v39 = vld [vmem:[%s3239_s29 + $0x170] sm:$0xff]  ;;  %v219_v40 = vld [vmem:[%s3239_s29 + $0x158] sm:$0xff] }
  0x53   : > { %v223_v41 = vld [vmem:[%s3239_s29 + $0x178] sm:$0xff] }
  0x57   : > { %1537 = vmatmul.mubr.bf16.gmra.mrb[24].mxu0 %v2435_v54  ;;  %v296_v54 = vld [vmem:[%s3239_s29 + $0x3c0] sm:$0xff] }
  0x58   : > { %1698 = vmatmul.mubr.bf16.gmra.mrb[24].mxu1 %v2437_v56  ;;  %1544 = vmatprep.mubr.bf16.mxu0 %v2444_v57  ;;  %v297_v56 = vld [vmem:[%s3239_s29 + $0x3c8] sm:$0xff]  ;;  %v2508_v60 = vcombine.high %v296_v54, %v300_v55 }
  0x59   : > { %1705 = vmatprep.mubr.bf16.mxu1 %v2446_v59  ;;  %v301_v57 = vld [vmem:[%s3239_s29 + $0x3e8] sm:$0xff]  ;;  %v2501_v59 = vcombine.low %v289_v48, %v293_v49  ;;  %v227_v48 = vld [vmem:[%s3239_s29 + $0x198] sm:$0xff] }
  0x5a   : > { %v2510_v61 = vcombine.high %v297_v56, %v301_v57  ;;  %v231_v49 = vld [vmem:[%s3239_s29 + $0x1b8] sm:$0xff] }
  0x5f   : > { %1545 = vmatmul.mubr.bf16.gmra.mrb[28].mxu0 %v2443_v2  ;;  %v2507_v2 = vcombine.low %v296_v54, %v300_v55  ;;  %v234_v54 = vld [vmem:[%s3239_s29 + $0x1d0] sm:$0xff] }
  0x60   : > { %1706 = vmatmul.mubr.bf16.gmra.mrb[28].mxu1 %v2445_v3  ;;  %1552 = vmatprep.mubr.bf16.mxu0 %v2452_v4  ;;  %v2509_v3 = vcombine.low %v297_v56, %v301_v57  ;;  %v2392_v4 = vcombine.high %v178_v62, %v182_v63  ;;  %v238_v55 = vld [vmem:[%s3239_s29 + $0x1f0] sm:$0xff]  ;;  %v235_v56 = vld [vmem:[%s3239_s29 + $0x1d8] sm:$0xff] }
  0x61   : > { %1713 = vmatprep.mubr.bf16.mxu1 %v2454_v5  ;;  %v2394_v5 = vcombine.high %v179_v0, %v183_v1  ;;  %v239_v57 = vld [vmem:[%s3239_s29 + $0x1f8] sm:$0xff] }
  0x67   : > { %1553 = vmatmul.mubr.bf16.gmra.mrb[32].mxu0 %v2451_v10  ;;  %v2391_v10 = vcombine.low %v178_v62, %v182_v63  ;;  %v242_v62 = vld [vmem:[%s3239_s29 + $0x210] sm:$0xff] }
  0x68   : > { %1714 = vmatmul.mubr.bf16.gmra.mrb[32].mxu1 %v2453_v11  ;;  %1560 = vmatprep.mubr.bf16.mxu0 %v2460_v12  ;;  %v2393_v11 = vcombine.low %v179_v0, %v183_v1  ;;  %v2400_v12 = vcombine.high %v186_v6, %v190_v7  ;;  %v246_v63 = vld [vmem:[%s3239_s29 + $0x230] sm:$0xff]  ;;  %v243_v0 = vld [vmem:[%s3239_s29 + $0x218] sm:$0xff] }
  0x69   : > { %1721 = vmatprep.mubr.bf16.mxu1 %v2462_v13  ;;  %v2402_v13 = vcombine.high %v187_v8, %v191_v9  ;;  %v247_v1 = vld [vmem:[%s3239_s29 + $0x238] sm:$0xff] }
  0x6f   : > { %1561 = vmatmul.mubr.bf16.gmra.mrb[36].mxu0 %v2459_v18  ;;  %v2399_v18 = vcombine.low %v186_v6, %v190_v7  ;;  %v250_v6 = vld [vmem:[%s3239_s29 + $0x250] sm:$0xff] }
  0x70   : > { %1722 = vmatmul.mubr.bf16.gmra.mrb[36].mxu1 %v2461_v19  ;;  %1568 = vmatprep.mubr.bf16.mxu0 %v2468_v20  ;;  %v2401_v19 = vcombine.low %v187_v8, %v191_v9  ;;  %v2408_v20 = vcombine.high %v194_v14, %v198_v15  ;;  %v254_v7 = vld [vmem:[%s3239_s29 + $0x270] sm:$0xff]  ;;  %v251_v8 = vld [vmem:[%s3239_s29 + $0x258] sm:$0xff] }
  0x71   : > { %1729 = vmatprep.mubr.bf16.mxu1 %v2470_v21  ;;  %v2410_v21 = vcombine.high %v195_v16, %v199_v17  ;;  %v255_v9 = vld [vmem:[%s3239_s29 + $0x278] sm:$0xff] }
  0x77   : > { %1569 = vmatmul.mubr.bf16.gmra.mrb[40].mxu0 %v2467_v26  ;;  %v2407_v26 = vcombine.low %v194_v14, %v198_v15  ;;  %v258_v14 = vld [vmem:[%s3239_s29 + $0x290] sm:$0xff] }
  0x78   : > { %1730 = vmatmul.mubr.bf16.gmra.mrb[40].mxu1 %v2469_v27  ;;  %1576 = vmatprep.mubr.bf16.mxu0 %v2476_v28  ;;  %v2409_v27 = vcombine.low %v195_v16, %v199_v17  ;;  %v2416_v28 = vcombine.high %v202_v22, %v206_v23  ;;  %v262_v15 = vld [vmem:[%s3239_s29 + $0x2b0] sm:$0xff]  ;;  %v259_v16 = vld [vmem:[%s3239_s29 + $0x298] sm:$0xff] }
  0x79   : > { %1737 = vmatprep.mubr.bf16.mxu1 %v2478_v29  ;;  %v2418_v29 = vcombine.high %v203_v24, %v207_v25  ;;  %v263_v17 = vld [vmem:[%s3239_s29 + $0x2b8] sm:$0xff] }
  0x7f   : > { %1577 = vmatmul.mubr.bf16.gmra.mrb[44].mxu0 %v2475_v34  ;;  %v2415_v34 = vcombine.low %v202_v22, %v206_v23  ;;  %v266_v22 = vld [vmem:[%s3239_s29 + $0x2d0] sm:$0xff] }
  0x80   : > { %1738 = vmatmul.mubr.bf16.gmra.mrb[44].mxu1 %v2477_v35  ;;  %1584 = vmatprep.mubr.bf16.mxu0 %v2484_v36  ;;  %v2417_v35 = vcombine.low %v203_v24, %v207_v25  ;;  %v2424_v36 = vcombine.high %v210_v30, %v214_v31  ;;  %v270_v23 = vld [vmem:[%s3239_s29 + $0x2f0] sm:$0xff]  ;;  %v267_v24 = vld [vmem:[%s3239_s29 + $0x2d8] sm:$0xff] }
  0x81   : > { %1745 = vmatprep.mubr.bf16.mxu1 %v2486_v37  ;;  %v2426_v37 = vcombine.high %v211_v32, %v215_v33  ;;  %v271_v25 = vld [vmem:[%s3239_s29 + $0x2f8] sm:$0xff] }
  0x87   : > { %1585 = vmatmul.mubr.bf16.gmra.mrb[48].mxu0 %v2483_v42  ;;  %v2423_v42 = vcombine.low %v210_v30, %v214_v31  ;;  %v274_v30 = vld [vmem:[%s3239_s29 + $0x310] sm:$0xff] }
  0x88   : > { %1746 = vmatmul.mubr.bf16.gmra.mrb[48].mxu1 %v2485_v43  ;;  %1592 = vmatprep.mubr.bf16.mxu0 %v2492_v44  ;;  %v2425_v43 = vcombine.low %v211_v32, %v215_v33  ;;  %v2432_v44 = vcombine.high %v218_v38, %v222_v39  ;;  %v278_v31 = vld [vmem:[%s3239_s29 + $0x330] sm:$0xff]  ;;  %v275_v33 = vld [vmem:[%s3239_s29 + $0x318] sm:$0xff] }
  0x89   : > { %1753 = vmatprep.mubr.bf16.mxu1 %v2494_v45  ;;  %v2434_v45 = vcombine.high %v219_v40, %v223_v41 }
  0x8f   : > { %1593 = vmatmul.mubr.bf16.gmra.mrb[52].mxu0 %v2491_v50  ;;  %v2431_v50 = vcombine.low %v218_v38, %v222_v39 }
  0x90   : > { %1754 = vmatmul.mubr.bf16.gmra.mrb[52].mxu1 %v2493_v51  ;;  %1600 = vmatprep.mubr.bf16.mxu0 %v2500_v52  ;;  %v2433_v51 = vcombine.low %v219_v40, %v223_v41  ;;  %v2440_v52 = vcombine.high %v226_v46, %v230_v47  ;;  %v2481_v41 = vcombine.low %v267_v24, %v271_v25 }
  0x91   : > { %1761 = vmatprep.mubr.bf16.mxu1 %v2502_v53  ;;  %v2442_v53 = vcombine.high %v227_v48, %v231_v49 }
  0x97   : > { %1601 = vmatmul.mubr.bf16.gmra.mrb[56].mxu0 %v2499_v58  ;;  %v2439_v58 = vcombine.low %v226_v46, %v230_v47 }
  0x98   : > { %1762 = vmatmul.mubr.bf16.gmra.mrb[56].mxu1 %v2501_v59  ;;  %1608 = vmatprep.mubr.bf16.mxu0 %v2508_v60  ;;  %v2441_v59 = vcombine.low %v227_v48, %v231_v49  ;;  %v2448_v60 = vcombine.high %v234_v54, %v238_v55 }
  0x99   : > { %1769 = vmatprep.mubr.bf16.mxu1 %v2510_v61  ;;  %v2450_v61 = vcombine.high %v235_v56, %v239_v57 }
  0x9f   : > { %1609 = vmatmul.mubr.bf16.gmra.mrb[60].mxu0 %v2507_v2  ;;  %v2447_v2 = vcombine.low %v234_v54, %v238_v55  ;;  %v283_v55 = vld [vmem:[%s3239_s29 + $0x358] sm:$0xff] }
  0xa0   : > { %1770 = vmatmul.mubr.bf16.gmra.mrb[60].mxu1 %v2509_v3  ;;  %1810 = vmatprep.mubr.bf16.mxu0 %v2392_v4  ;;  %v2449_v3 = vcombine.low %v235_v56, %v239_v57  ;;  %v2456_v4 = vcombine.high %v242_v62, %v246_v63  ;;  %v287_v56 = vld [vmem:[%s3239_s29 + $0x378] sm:$0xff] }
  0xa1   : > { %1971 = vmatprep.mubr.bf16.mxu1 %v2394_v5  ;;  %v2458_v5 = vcombine.high %v243_v0, %v247_v1 }
  0xa7   : > { %1811 = vmatmul.mubr.bf16.vlgmr.msra.gmra.mrb[64].mxu0 %v2391_v10  ;;  %v2455_v10 = vcombine.low %v242_v62, %v246_v63 }
  0xa8   : > { %1972 = vmatmul.mubr.bf16.vlgmr.msra.gmra.mrb[64].mxu1 %v2393_v11  ;;  %1818 = vmatprep.mubr.bf16.mxu0 %v2400_v12  ;;  %v2457_v11 = vcombine.low %v243_v0, %v247_v1  ;;  %v2464_v12 = vcombine.high %v250_v6, %v254_v7 }
  0xa9   : > { %1979 = vmatprep.mubr.bf16.mxu1 %v2402_v13  ;;  %v2466_v13 = vcombine.high %v251_v8, %v255_v9 }
  0xaf   : > { %1819 = vmatmul.mubr.bf16.gmra.mrb[68].mxu0 %v2399_v18  ;;  %v2463_v18 = vcombine.low %v250_v6, %v254_v7 }
  0xb0   : > { %1980 = vmatmul.mubr.bf16.gmra.mrb[68].mxu1 %v2401_v19  ;;  %1826 = vmatprep.mubr.bf16.mxu0 %v2408_v20  ;;  %v2465_v19 = vcombine.low %v251_v8, %v255_v9  ;;  %v2472_v20 = vcombine.high %v258_v14, %v262_v15 }
  0xb1   : > { %1987 = vmatprep.mubr.bf16.mxu1 %v2410_v21  ;;  %v2474_v21 = vcombine.high %v259_v16, %v263_v17 }
  0xb7   : > { %1827 = vmatmul.mubr.bf16.gmra.mrb[72].mxu0 %v2407_v26  ;;  %v2471_v26 = vcombine.low %v258_v14, %v262_v15  ;;  %v295_v14 = vld [vmem:[%s3239_s29 + $0x3b8] sm:$0xff] }
  0xb8   : > { %1988 = vmatmul.mubr.bf16.gmra.mrb[72].mxu1 %v2409_v27  ;;  %1834 = vmatprep.mubr.bf16.mxu0 %v2416_v28  ;;  %v2473_v27 = vcombine.low %v259_v16, %v263_v17  ;;  %v2480_v28 = vcombine.high %v266_v22, %v270_v23 }
  0xb9   : > { %1995 = vmatprep.mubr.bf16.mxu1 %v2418_v29  ;;  %v2482_v29 = vcombine.high %v267_v24, %v271_v25 }
  0xbf   : > { %1835 = vmatmul.mubr.bf16.gmra.mrb[76].mxu0 %v2415_v34  ;;  %v279_v34 = vld [vmem:[%s3239_s29 + $0x338] sm:$0xff] }
  0xc0   : > { %1996 = vmatmul.mubr.bf16.gmra.mrb[76].mxu1 %v2417_v35  ;;  %1842 = vmatprep.mubr.bf16.mxu0 %v2424_v36  ;;  %v2490_v46 = vcombine.high %v275_v33, %v279_v34  ;;  %v2489_v63 = vcombine.low %v275_v33, %v279_v34  ;;  %v302_v33 = vld [vmem:[%s3239_s29 + $0x3f0] sm:$0xff] }
  0xc1   : > { %2003 = vmatprep.mubr.bf16.mxu1 %v2426_v37  ;;  %v2479_v37 = vcombine.low %v266_v22, %v270_v23 }
  0xc7   : > { %1843 = vmatmul.mubr.bf16.gmra.mrb[80].mxu0 %v2423_v42  ;;  %v2488_v42 = vcombine.high %v274_v30, %v278_v31 }
  0xc8   : > { %2004 = vmatmul.mubr.bf16.gmra.mrb[80].mxu1 %v2425_v43  ;;  %1850 = vmatprep.mubr.bf16.mxu0 %v2432_v44 }
  0xc9   : > { %2011 = vmatprep.mubr.bf16.mxu1 %v2434_v45 }
  0xcf   : > { %1851 = vmatmul.mubr.bf16.gmra.mrb[84].mxu0 %v2431_v50 }
  0xd0   : > { %2012 = vmatmul.mubr.bf16.gmra.mrb[84].mxu1 %v2433_v51  ;;  %1858 = vmatprep.mubr.bf16.mxu0 %v2440_v52  ;;  %v282_v52 = vld [vmem:[%s3239_s29 + $0x350] sm:$0xff] }
  0xd1   : > { %2019 = vmatprep.mubr.bf16.mxu1 %v2442_v53  ;;  %v286_v53 = vld [vmem:[%s3239_s29 + $0x370] sm:$0xff] }
  0xd2   : > { %v2496_v0 = vcombine.high %v282_v52, %v286_v53  ;;  %v2495_v17 = vcombine.low %v282_v52, %v286_v53 }
  0xd7   : > { %1859 = vmatmul.mubr.bf16.gmra.mrb[88].mxu0 %v2439_v58 }
  0xd8   : > { %2020 = vmatmul.mubr.bf16.gmra.mrb[88].mxu1 %v2441_v59  ;;  %1866 = vmatprep.mubr.bf16.mxu0 %v2448_v60  ;;  %v2487_v59 = vcombine.low %v274_v30, %v278_v31 }
  0xd9   : > { %2027 = vmatprep.mubr.bf16.mxu1 %v2450_v61 }
  0xdf   : > { %1867 = vmatmul.mubr.bf16.gmra.mrb[92].mxu0 %v2447_v2 }
  0xe0   : > { %2028 = vmatmul.mubr.bf16.gmra.mrb[92].mxu1 %v2449_v3  ;;  %1874 = vmatprep.mubr.bf16.mxu0 %v2456_v4  ;;  %v2498_v4 = vcombine.high %v283_v55, %v287_v56 }
  0xe1   : > { %2035 = vmatprep.mubr.bf16.mxu1 %v2458_v5 }
  0xe7   : > { %1875 = vmatmul.mubr.bf16.gmra.mrb[96].mxu0 %v2455_v10  ;;  %v290_v10 = vld [vmem:[%s3239_s29 + $0x390] sm:$0xff] }
  0xe8   : > { %2036 = vmatmul.mubr.bf16.gmra.mrb[96].mxu1 %v2457_v11  ;;  %1882 = vmatprep.mubr.bf16.mxu0 %v2464_v12  ;;  %v294_v11 = vld [vmem:[%s3239_s29 + $0x3b0] sm:$0xff] }
  0xe9   : > { %2043 = vmatprep.mubr.bf16.mxu1 %v2466_v13  ;;  %v291_v13 = vld [vmem:[%s3239_s29 + $0x398] sm:$0xff]  ;;  %v2504_v22 = vcombine.high %v290_v10, %v294_v11 }
  0xef   : > { %1883 = vmatmul.mubr.bf16.gmra.mrb[100].mxu0 %v2463_v18 }
  0xf0   : > { %2044 = vmatmul.mubr.bf16.gmra.mrb[100].mxu1 %v2465_v19  ;;  %1890 = vmatprep.mubr.bf16.mxu0 %v2472_v20 }
  0xf1   : > { %2051 = vmatprep.mubr.bf16.mxu1 %v2474_v21  ;;  %v2497_v21 = vcombine.low %v283_v55, %v287_v56 }
  0xf7   : > { %1891 = vmatmul.mubr.bf16.gmra.mrb[104].mxu0 %v2471_v26  ;;  %v2506_v26 = vcombine.high %v291_v13, %v295_v14 }
  0xf8   : > { %2052 = vmatmul.mubr.bf16.gmra.mrb[104].mxu1 %v2473_v27  ;;  %1898 = vmatprep.mubr.bf16.mxu0 %v2480_v28 }
  0xf9   : > { %2059 = vmatprep.mubr.bf16.mxu1 %v2482_v29 }
  0xfa   : > { %v2599_v32 = vpop.f32.mrb[0].mxu0 }
  0xfb   : > { %v2711_v35 = vpop.f32.mrb[0].mxu1  ;;  %v2600_v36 = vpop.f32.mrb[1].mxu0 }
  0xfc   : > { %v2601_v38 = vadd.f32 %v2600_v36, %v2599_v32  ;;  %v2712_v39 = vpop.f32.mrb[1].mxu1  ;;  %v2602_v40 = vpop.f32.mrb[2].mxu0  ;;  %v298_v32 = vld [vmem:[%s3239_s29 + $0x3d0] sm:$0xff]  ;;  %v303_v36 = vld [vmem:[%s3239_s29 + $0x3f8] sm:$0xff] }
  0xfd   : > { %v2713_v43 = vadd.f32 %v2712_v39, %v2711_v35  ;;  %v2714_v44 = vpop.f32.mrb[2].mxu1  ;;  %v2603_v45 = vpop.f32.mrb[3].mxu0  ;;  %v299_v35 = vld [vmem:[%s3239_s29 + $0x3d8] sm:$0xff]  ;;  %v2503_v39 = vcombine.low %v290_v10, %v294_v11  ;;  %s2386_s29 = sshll.u32 %s3912_s21, 3 }
  0xfe   : > { %v2604_v47 = vadd.f32 %v2603_v45, %v2602_v40  ;;  %v2715_v48 = vpop.f32.mrb[3].mxu1  ;;  %s3540_s4 = scalar_lea.vmem %s3909_s2, %s2386_s29 }
  0xff   : > { %v3459_v49 = vadd.f32 %v2713_v43, %v2601_v38  ;;  %v2716_v50 = vadd.f32 %v2715_v48, %v2714_v44  ;;  %1899 = vmatmul.mubr.bf16.gmra.mrb[108].mxu0 %v2479_v37  ;;  %v2505_v43 = vcombine.low %v291_v13, %v295_v14  ;;  %v2512_v44 = vcombine.high %v298_v32, %v302_v33 }
 0x100   : > { %2060 = vmatmul.mubr.bf16.gmra.mrb[108].mxu1 %v2481_v41  ;;  %1906 = vmatprep.mubr.bf16.mxu0 %v2488_v42  ;;  %v2514_v48 = vcombine.high %v299_v35, %v303_v36 }
 0x101   : > { %v3461_v51 = vadd.f32 %v2716_v50, %v2604_v47  ;;  %2067 = vmatprep.mubr.bf16.mxu1 %v2490_v46 }
 0x102   : > { %v2605_v54 = vpop.f32.mrb[4].mxu0 }
 0x103   : > { %v2717_v57 = vpop.f32.mrb[4].mxu1  ;;  %v2606_v58 = vpop.f32.mrb[5].mxu0 }
 0x104   : > { %v2607_v60 = vadd.f32 %v2606_v58, %v2605_v54  ;;  %v2718_v61 = vpop.f32.mrb[5].mxu1  ;;  %v2608_v62 = vpop.f32.mrb[6].mxu0 }
 0x105   : > { %v2719_v1 = vadd.f32 %v2718_v61, %v2717_v57  ;;  %v2720_v2 = vpop.f32.mrb[6].mxu1  ;;  %v2609_v3 = vpop.f32.mrb[7].mxu0 }
 0x106   : > { %v2610_v5 = vadd.f32 %v2609_v3, %v2608_v62  ;;  %v2721_v6 = vpop.f32.mrb[7].mxu1 }
 0x107   : > { %v3467_v7 = vadd.f32 %v2719_v1, %v2607_v60  ;;  %v2722_v8 = vadd.f32 %v2721_v6, %v2720_v2  ;;  %1907 = vmatmul.mubr.bf16.gmra.mrb[112].mxu0 %v2487_v59  ;;  %v2511_v59 = vcombine.low %v298_v32, %v302_v33 }
 0x108   : > { %2068 = vmatmul.mubr.bf16.gmra.mrb[112].mxu1 %v2489_v63  ;;  %1914 = vmatprep.mubr.bf16.mxu0 %v2496_v0  ;;  %v2513_v63 = vcombine.low %v299_v35, %v303_v36 }
 0x109   : > { %v3469_v9 = vadd.f32 %v2722_v8, %v2610_v5  ;;  %2075 = vmatprep.mubr.bf16.mxu1 %v2498_v4 }
 0x10a   : > { %v2611_v12 = vpop.f32.mrb[8].mxu0 }
 0x10b   : > { %v2723_v15 = vpop.f32.mrb[8].mxu1  ;;  %v2612_v16 = vpop.f32.mrb[9].mxu0 }
 0x10c   : > { %v2613_v18 = vadd.f32 %v2612_v16, %v2611_v12  ;;  %v2724_v19 = vpop.f32.mrb[9].mxu1  ;;  %v2614_v20 = vpop.f32.mrb[10].mxu0 }
 0x10d   : > { %v2725_v23 = vadd.f32 %v2724_v19, %v2723_v15  ;;  %v2726_v24 = vpop.f32.mrb[10].mxu1  ;;  %v2615_v25 = vpop.f32.mrb[11].mxu0 }
 0x10e   : > { %v2616_v27 = vadd.f32 %v2615_v25, %v2614_v20  ;;  %v2727_v28 = vpop.f32.mrb[11].mxu1 }
 0x10f   : > { %v3475_v29 = vadd.f32 %v2725_v23, %v2613_v18  ;;  %v2728_v30 = vadd.f32 %v2727_v28, %v2726_v24  ;;  %1915 = vmatmul.mubr.bf16.gmra.mrb[116].mxu0 %v2495_v17 }
 0x110   : > { %2076 = vmatmul.mubr.bf16.gmra.mrb[116].mxu1 %v2497_v21  ;;  %1922 = vmatprep.mubr.bf16.mxu0 %v2504_v22 }
 0x111   : > { %v3477_v31 = vadd.f32 %v2728_v30, %v2616_v27  ;;  %2083 = vmatprep.mubr.bf16.mxu1 %v2506_v26 }
 0x112   : > { %v2617_v34 = vpop.f32.mrb[12].mxu0 }
 0x113   : > { %v2729_v37 = vpop.f32.mrb[12].mxu1  ;;  %v2618_v38 = vpop.f32.mrb[13].mxu0 }
 0x114   : > { %v2619_v40 = vadd.f32 %v2618_v38, %v2617_v34  ;;  %v2730_v41 = vpop.f32.mrb[13].mxu1  ;;  %v2620_v42 = vpop.f32.mrb[14].mxu0 }
 0x115   : > { %v2731_v45 = vadd.f32 %v2730_v41, %v2729_v37  ;;  %v2732_v46 = vpop.f32.mrb[14].mxu1  ;;  %v2621_v47 = vpop.f32.mrb[15].mxu0 }
 0x116   : > { %v2622_v50 = vadd.f32 %v2621_v47, %v2620_v42  ;;  %v2733_v52 = vpop.f32.mrb[15].mxu1 }
 0x117   : > { %v3483_v53 = vadd.f32 %v2731_v45, %v2619_v40  ;;  %v2734_v54 = vadd.f32 %v2733_v52, %v2732_v46  ;;  %1923 = vmatmul.mubr.bf16.gmra.mrb[120].mxu0 %v2503_v39 }
 0x118   : > { %2084 = vmatmul.mubr.bf16.gmra.mrb[120].mxu1 %v2505_v43  ;;  %1930 = vmatprep.mubr.bf16.mxu0 %v2512_v44 }
 0x119   : > { %v3485_v55 = vadd.f32 %v2734_v54, %v2622_v50  ;;  %2091 = vmatprep.mubr.bf16.mxu1 %v2514_v48 }
 0x11a   : > { %v2623_v56 = vpop.f32.mrb[16].mxu0 }
 0x11b   : > { %v2735_v57 = vpop.f32.mrb[16].mxu1  ;;  %v2624_v58 = vpop.f32.mrb[17].mxu0 }
 0x11c   : > { %v2625_v60 = vadd.f32 %v2624_v58, %v2623_v56  ;;  %v2736_v61 = vpop.f32.mrb[17].mxu1  ;;  %v2626_v62 = vpop.f32.mrb[18].mxu0 }
 0x11d   : > { %v2737_v0 = vadd.f32 %v2736_v61, %v2735_v57  ;;  %v2738_v1 = vpop.f32.mrb[18].mxu1  ;;  %v2627_v2 = vpop.f32.mrb[19].mxu0 }
 0x11e   : > { %v2628_v3 = vadd.f32 %v2627_v2, %v2626_v62  ;;  %v2739_v4 = vpop.f32.mrb[19].mxu1 }
 0x11f   : > { %v3487_v5 = vadd.f32 %v2737_v0, %v2625_v60  ;;  %v2740_v6 = vadd.f32 %v2739_v4, %v2738_v1  ;;  %1931 = vmatmul.mubr.bf16.gmra.mrb[124].mxu0 %v2511_v59 }
 0x120   : > { %2092 = vmatmul.mubr.bf16.gmra.mrb[124].mxu1 %v2513_v63 }
 0x121   : > { %v3489_v8 = vadd.f32 %v2740_v6, %v2628_v3 }
 0x122   : > { %v2629_v10 = vpop.f32.mrb[20].mxu0 }
 0x123   : > { %v2741_v11 = vpop.f32.mrb[20].mxu1  ;;  %v2630_v12 = vpop.f32.mrb[21].mxu0 }
 0x124   : > { %v2631_v13 = vadd.f32 %v2630_v12, %v2629_v10  ;;  %v2742_v14 = vpop.f32.mrb[21].mxu1  ;;  %v2632_v15 = vpop.f32.mrb[22].mxu0 }
 0x125   : > { %v2743_v16 = vadd.f32 %v2742_v14, %v2741_v11  ;;  %v2744_v17 = vpop.f32.mrb[22].mxu1  ;;  %v2633_v18 = vpop.f32.mrb[23].mxu0 }
 0x126   : > { %v2634_v19 = vadd.f32 %v2633_v18, %v2632_v15  ;;  %v2745_v20 = vpop.f32.mrb[23].mxu1 }
 0x127   : > { %v3491_v21 = vadd.f32 %v2743_v16, %v2631_v13  ;;  %v2746_v22 = vadd.f32 %v2745_v20, %v2744_v17 }
 0x129   : > { %v3493_v23 = vadd.f32 %v2746_v22, %v2634_v19 }
 0x12a   : > { %v2635_v24 = vpop.f32.mrb[24].mxu0 }
 0x12b   : > { %v2747_v25 = vpop.f32.mrb[24].mxu1  ;;  %v2636_v26 = vpop.f32.mrb[25].mxu0 }
 0x12c   : > { %v2637_v27 = vadd.f32 %v2636_v26, %v2635_v24  ;;  %v2748_v28 = vpop.f32.mrb[25].mxu1  ;;  %v2638_v30 = vpop.f32.mrb[26].mxu0 }
 0x12d   : > { %v2749_v32 = vadd.f32 %v2748_v28, %v2747_v25  ;;  %v2750_v33 = vpop.f32.mrb[26].mxu1  ;;  %v2639_v34 = vpop.f32.mrb[27].mxu0 }
 0x12e   : > { %v2640_v35 = vadd.f32 %v2639_v34, %v2638_v30  ;;  %v2751_v36 = vpop.f32.mrb[27].mxu1 }
 0x12f   : > { %v3495_v37 = vadd.f32 %v2749_v32, %v2637_v27  ;;  %v2752_v38 = vadd.f32 %v2751_v36, %v2750_v33 }
 0x131   : > { %v3497_v39 = vadd.f32 %v2752_v38, %v2640_v35 }
 0x132   : > { %v2641_v40 = vpop.f32.mrb[28].mxu0 }
 0x133   : > { %v2753_v41 = vpop.f32.mrb[28].mxu1  ;;  %v2642_v42 = vpop.f32.mrb[29].mxu0 }
 0x134   : > { %v2643_v43 = vadd.f32 %v2642_v42, %v2641_v40  ;;  %v2754_v44 = vpop.f32.mrb[29].mxu1  ;;  %v2644_v45 = vpop.f32.mrb[30].mxu0 }
 0x135   : > { %v2755_v46 = vadd.f32 %v2754_v44, %v2753_v41  ;;  %v2756_v47 = vpop.f32.mrb[30].mxu1  ;;  %v2645_v48 = vpop.f32.mrb[31].mxu0 }
 0x136   : > { %v2646_v50 = vadd.f32 %v2645_v48, %v2644_v45  ;;  %v2757_v52 = vpop.f32.mrb[31].mxu1 }
 0x137   : > { %v3499_v54 = vadd.f32 %v2755_v46, %v2643_v43  ;;  %v2758_v56 = vadd.f32 %v2757_v52, %v2756_v47 }
 0x139   : > { %v3501_v57 = vadd.f32 %v2758_v56, %v2646_v50 }
 0x13a   : > { %v2647_v58 = vpop.f32.mrb[32].mxu0 }
 0x13b   : > { %v2759_v59 = vpop.f32.mrb[32].mxu1  ;;  %v2648_v60 = vpop.f32.mrb[33].mxu0 }
 0x13c   : > { %v2649_v61 = vadd.f32 %v2648_v60, %v2647_v58  ;;  %v2760_v62 = vpop.f32.mrb[33].mxu1  ;;  %v2650_v63 = vpop.f32.mrb[34].mxu0 }
 0x13d   : > { %v2761_v0 = vadd.f32 %v2760_v62, %v2759_v59  ;;  %v2762_v1 = vpop.f32.mrb[34].mxu1  ;;  %v2651_v2 = vpop.f32.mrb[35].mxu0 }
 0x13e   : > { %v2652_v3 = vadd.f32 %v2651_v2, %v2650_v63  ;;  %v2763_v4 = vpop.f32.mrb[35].mxu1 }
 0x13f   : > { %v3503_v6 = vadd.f32 %v2761_v0, %v2649_v61  ;;  %v2764_v10 = vadd.f32 %v2763_v4, %v2762_v1 }
 0x141   : > { %v3505_v11 = vadd.f32 %v2764_v10, %v2652_v3 }
 0x142   : > { %v2653_v12 = vpop.f32.mrb[36].mxu0 }
 0x143   : > { %v2765_v13 = vpop.f32.mrb[36].mxu1  ;;  %v2654_v14 = vpop.f32.mrb[37].mxu0 }
 0x144   : > { %v2655_v15 = vadd.f32 %v2654_v14, %v2653_v12  ;;  %v2766_v16 = vpop.f32.mrb[37].mxu1  ;;  %v2656_v17 = vpop.f32.mrb[38].mxu0 }
 0x145   : > { %v2767_v18 = vadd.f32 %v2766_v16, %v2765_v13  ;;  %v2768_v19 = vpop.f32.mrb[38].mxu1  ;;  %v2657_v20 = vpop.f32.mrb[39].mxu0 }
 0x146   : > { %v2658_v22 = vadd.f32 %v2657_v20, %v2656_v17  ;;  %v2769_v24 = vpop.f32.mrb[39].mxu1 }
 0x147   : > { %v3507_v25 = vadd.f32 %v2767_v18, %v2655_v15  ;;  %v2770_v26 = vadd.f32 %v2769_v24, %v2768_v19 }
 0x149   : > { %v3509_v27 = vadd.f32 %v2770_v26, %v2658_v22 }
 0x14a   : > { %v2659_v28 = vpop.f32.mrb[40].mxu0 }
 0x14b   : > { %v2771_v30 = vpop.f32.mrb[40].mxu1  ;;  %v2660_v32 = vpop.f32.mrb[41].mxu0 }
 0x14c   : > { %v2661_v33 = vadd.f32 %v2660_v32, %v2659_v28  ;;  %v2772_v34 = vpop.f32.mrb[41].mxu1  ;;  %v2662_v35 = vpop.f32.mrb[42].mxu0 }
 0x14d   : > { %v2773_v36 = vadd.f32 %v2772_v34, %v2771_v30  ;;  %v2774_v38 = vpop.f32.mrb[42].mxu1  ;;  %v2663_v40 = vpop.f32.mrb[43].mxu0 }
 0x14e   : > { %v2664_v41 = vadd.f32 %v2663_v40, %v2662_v35  ;;  %v2775_v42 = vpop.f32.mrb[43].mxu1 }
 0x14f   : > { %v3511_v43 = vadd.f32 %v2773_v36, %v2661_v33  ;;  %v2776_v44 = vadd.f32 %v2775_v42, %v2774_v38 }
 0x151   : > { %v3513_v45 = vadd.f32 %v2776_v44, %v2664_v41 }
 0x152   : > { %v2665_v46 = vpop.f32.mrb[44].mxu0 }
 0x153   : > { %v2777_v47 = vpop.f32.mrb[44].mxu1  ;;  %v2666_v48 = vpop.f32.mrb[45].mxu0 }
 0x154   : > { %v2667_v50 = vadd.f32 %v2666_v48, %v2665_v46  ;;  %v2778_v52 = vpop.f32.mrb[45].mxu1  ;;  %v2668_v56 = vpop.f32.mrb[46].mxu0 }
 0x155   : > { %v2779_v58 = vadd.f32 %v2778_v52, %v2777_v47  ;;  %v2780_v59 = vpop.f32.mrb[46].mxu1  ;;  %v2669_v60 = vpop.f32.mrb[47].mxu0 }
 0x156   : > { %v2670_v61 = vadd.f32 %v2669_v60, %v2668_v56  ;;  %v2781_v62 = vpop.f32.mrb[47].mxu1 }
 0x157   : > { %v3515_v63 = vadd.f32 %v2779_v58, %v2667_v50  ;;  %v2782_v0 = vadd.f32 %v2781_v62, %v2780_v59 }
 0x159   : > { %v3517_v1 = vadd.f32 %v2782_v0, %v2670_v61 }
 0x15a   : > { %v2671_v2 = vpop.f32.mrb[48].mxu0 }
 0x15b   : > { %v2783_v3 = vpop.f32.mrb[48].mxu1  ;;  %v2672_v4 = vpop.f32.mrb[49].mxu0 }
 0x15c   : > { %v2673_v10 = vadd.f32 %v2672_v4, %v2671_v2  ;;  %v2784_v12 = vpop.f32.mrb[49].mxu1  ;;  %v2674_v13 = vpop.f32.mrb[50].mxu0 }
 0x15d   : > { %v2785_v14 = vadd.f32 %v2784_v12, %v2783_v3  ;;  %v2786_v15 = vpop.f32.mrb[50].mxu1  ;;  %v2675_v16 = vpop.f32.mrb[51].mxu0 }
 0x15e   : > { %v2676_v17 = vadd.f32 %v2675_v16, %v2674_v13  ;;  %v2787_v18 = vpop.f32.mrb[51].mxu1 }
 0x15f   : > { %v3519_v19 = vadd.f32 %v2785_v14, %v2673_v10  ;;  %v2788_v20 = vadd.f32 %v2787_v18, %v2786_v15 }
 0x161   : > { %v3521_v22 = vadd.f32 %v2788_v20, %v2676_v17 }
 0x162   : > { %v2677_v24 = vpop.f32.mrb[52].mxu0 }
 0x163   : > { %v2789_v26 = vpop.f32.mrb[52].mxu1  ;;  %v2678_v28 = vpop.f32.mrb[53].mxu0 }
 0x164   : > { %v2679_v30 = vadd.f32 %v2678_v28, %v2677_v24  ;;  %v2790_v32 = vpop.f32.mrb[53].mxu1  ;;  %v2680_v33 = vpop.f32.mrb[54].mxu0 }
 0x165   : > { %v2791_v34 = vadd.f32 %v2790_v32, %v2789_v26  ;;  %v2792_v35 = vpop.f32.mrb[54].mxu1  ;;  %v2681_v36 = vpop.f32.mrb[55].mxu0 }
 0x166   : > { %v2682_v38 = vadd.f32 %v2681_v36, %v2680_v33  ;;  %v2793_v40 = vpop.f32.mrb[55].mxu1 }
 0x167   : > { %v3523_v41 = vadd.f32 %v2791_v34, %v2679_v30  ;;  %v2794_v42 = vadd.f32 %v2793_v40, %v2792_v35 }
 0x169   : > { %v3525_v44 = vadd.f32 %v2794_v42, %v2682_v38 }
 0x16a   : > { %v2683_v46 = vpop.f32.mrb[56].mxu0 }
 0x16b   : > { %v2795_v47 = vpop.f32.mrb[56].mxu1  ;;  %v2684_v48 = vpop.f32.mrb[57].mxu0 }
 0x16c   : > { %v2685_v50 = vadd.f32 %v2684_v48, %v2683_v46  ;;  %v2796_v52 = vpop.f32.mrb[57].mxu1  ;;  %v2686_v56 = vpop.f32.mrb[58].mxu0 }
 0x16d   : > { %v2797_v58 = vadd.f32 %v2796_v52, %v2795_v47  ;;  %v2798_v59 = vpop.f32.mrb[58].mxu1  ;;  %v2687_v60 = vpop.f32.mrb[59].mxu0 }
 0x16e   : > { %v2688_v61 = vadd.f32 %v2687_v60, %v2686_v56  ;;  %v2799_v62 = vpop.f32.mrb[59].mxu1 }
 0x16f   : > { %v3527_v0 = vadd.f32 %v2797_v58, %v2685_v50  ;;  %v2800_v2 = vadd.f32 %v2799_v62, %v2798_v59 }
 0x171   : > { %v3529_v3 = vadd.f32 %v2800_v2, %v2688_v61 }
 0x172   : > { %v2689_v4 = vpop.f32.mrb[60].mxu0 }
 0x173   : > { %v2801_v10 = vpop.f32.mrb[60].mxu1  ;;  %v2690_v12 = vpop.f32.mrb[61].mxu0 }
 0x174   : > { %v2691_v13 = vadd.f32 %v2690_v12, %v2689_v4  ;;  %v2802_v14 = vpop.f32.mrb[61].mxu1  ;;  %v2692_v15 = vpop.f32.mrb[62].mxu0 }
 0x175   : > { %v2803_v16 = vadd.f32 %v2802_v14, %v2801_v10  ;;  %v2804_v17 = vpop.f32.mrb[62].mxu1  ;;  %v2693_v18 = vpop.f32.mrb[63].mxu0 }
 0x176   : > { %v2694_v20 = vadd.f32 %v2693_v18, %v2692_v15  ;;  %v2805_v24 = vpop.f32.mrb[63].mxu1 }
 0x177   : > { %v3531_v26 = vadd.f32 %v2803_v16, %v2691_v13  ;;  %v2806_v28 = vadd.f32 %v2805_v24, %v2804_v17 }
 0x179   : > { %v3533_v30 = vadd.f32 %v2806_v28, %v2694_v20 }
 0x17a   : > { %v2823_v32 = vpop.f32.mrb[64].mxu0 }
 0x17b   : > { %v2935_v33 = vpop.f32.mrb[64].mxu1  ;;  %v2824_v34 = vpop.f32.mrb[65].mxu0 }
 0x17c   : > { %v2825_v35 = vadd.f32 %v2824_v34, %v2823_v32  ;;  %v2936_v36 = vpop.f32.mrb[65].mxu1  ;;  %v2826_v38 = vpop.f32.mrb[66].mxu0 }
 0x17d   : > { %v2937_v40 = vadd.f32 %v2936_v36, %v2935_v33  ;;  %v2938_v42 = vpop.f32.mrb[66].mxu1  ;;  %v2827_v46 = vpop.f32.mrb[67].mxu0 }
 0x17e   : > { %v1813_v47 = vadd.f32 %v2825_v35, %v3459_v49  ;;  %v2828_v48 = vadd.f32 %v2827_v46, %v2826_v38  ;;  %v2939_v50 = vpop.f32.mrb[67].mxu1 }
 0x17f   : > { %v2940_v52 = vadd.f32 %v2939_v50, %v2938_v42 }
 0x180   : > { %v3542_v56 = vadd.f32 %v2937_v40, %v1813_v47  ;;  %v1816_v58 = vadd.f32 %v2828_v48, %v3461_v51 }
 0x182   : > { %2101 = vst.msk [vmem:[%s3540_s4] sm:$0xff] %vm2100_vm0, %v3542_v56  ;;  %v3548_v59 = vadd.f32 %v2940_v52, %v1816_v58  ;;  %v2829_v49 = vpop.f32.mrb[68].mxu0 }
 0x183   : > { %v2941_v60 = vpop.f32.mrb[68].mxu1  ;;  %v2830_v61 = vpop.f32.mrb[69].mxu0 }
 0x184   : > { %2102 = vst.msk [vmem:[%s3540_s4 + $0x8] sm:$0xff] %vm2100_vm0, %v3548_v59  ;;  %v2831_v62 = vadd.f32 %v2830_v61, %v2829_v49  ;;  %v2942_v2 = vpop.f32.mrb[69].mxu1  ;;  %v2832_v4 = vpop.f32.mrb[70].mxu0 }
 0x185   : > { %v2943_v10 = vadd.f32 %v2942_v2, %v2941_v60  ;;  %v2944_v12 = vpop.f32.mrb[70].mxu1  ;;  %v2833_v13 = vpop.f32.mrb[71].mxu0 }
 0x186   : > { %v1821_v51 = vadd.f32 %v2831_v62, %v3467_v7  ;;  %v2834_v14 = vadd.f32 %v2833_v13, %v2832_v4  ;;  %v2945_v15 = vpop.f32.mrb[71].mxu1 }
 0x187   : > { %v2946_v16 = vadd.f32 %v2945_v15, %v2944_v12 }
 0x188   : > { %v3554_v17 = vadd.f32 %v2943_v10, %v1821_v51  ;;  %v1824_v18 = vadd.f32 %v2834_v14, %v3469_v9 }
 0x18a   : > { %2103 = vst.msk [vmem:[%s3540_s4 + $0x10] sm:$0xff] %vm2100_vm0, %v3554_v17  ;;  %v3560_v20 = vadd.f32 %v2946_v16, %v1824_v18  ;;  %v2835_v24 = vpop.f32.mrb[72].mxu0 }
 0x18b   : > { %v2947_v28 = vpop.f32.mrb[72].mxu1  ;;  %v2836_v32 = vpop.f32.mrb[73].mxu0 }
 0x18c   : > { %2104 = vst.msk [vmem:[%s3540_s4 + $0x18] sm:$0xff] %vm2100_vm0, %v3560_v20  ;;  %v2837_v7 = vadd.f32 %v2836_v32, %v2835_v24  ;;  %v2948_v33 = vpop.f32.mrb[73].mxu1  ;;  %v2838_v34 = vpop.f32.mrb[74].mxu0 }
 0x18d   : > { %v2949_v35 = vadd.f32 %v2948_v33, %v2947_v28  ;;  %v2950_v36 = vpop.f32.mrb[74].mxu1  ;;  %v2839_v38 = vpop.f32.mrb[75].mxu0 }
 0x18e   : > { %v1829_v9 = vadd.f32 %v2837_v7, %v3475_v29  ;;  %v2840_v40 = vadd.f32 %v2839_v38, %v2838_v34  ;;  %v2951_v42 = vpop.f32.mrb[75].mxu1 }
 0x18f   : > { %v2952_v46 = vadd.f32 %v2951_v42, %v2950_v36 }
 0x190   : > { %v3566_v47 = vadd.f32 %v2949_v35, %v1829_v9  ;;  %v1832_v48 = vadd.f32 %v2840_v40, %v3477_v31 }
 0x192   : > { %2105 = vst.msk [vmem:[%s3540_s4 + $0x20] sm:$0xff] %vm2100_vm0, %v3566_v47  ;;  %v3572_v50 = vadd.f32 %v2952_v46, %v1832_v48  ;;  %v2841_v52 = vpop.f32.mrb[76].mxu0 }
 0x193   : > { %v2953_v58 = vpop.f32.mrb[76].mxu1  ;;  %v2842_v49 = vpop.f32.mrb[77].mxu0 }
 0x194   : > { %2106 = vst.msk [vmem:[%s3540_s4 + $0x28] sm:$0xff] %vm2100_vm0, %v3572_v50  ;;  %v2843_v29 = vadd.f32 %v2842_v49, %v2841_v52  ;;  %v2954_v60 = vpop.f32.mrb[77].mxu1  ;;  %v2844_v61 = vpop.f32.mrb[78].mxu0 }
 0x195   : > { %v2955_v62 = vadd.f32 %v2954_v60, %v2953_v58  ;;  %v2956_v2 = vpop.f32.mrb[78].mxu1  ;;  %v2845_v4 = vpop.f32.mrb[79].mxu0 }
 0x196   : > { %v1837_v31 = vadd.f32 %v2843_v29, %v3483_v53  ;;  %v2846_v10 = vadd.f32 %v2845_v4, %v2844_v61  ;;  %v2957_v12 = vpop.f32.mrb[79].mxu1 }
 0x197   : > { %v2958_v13 = vadd.f32 %v2957_v12, %v2956_v2 }
 0x198   : > { %v3578_v51 = vadd.f32 %v2955_v62, %v1837_v31  ;;  %v1840_v14 = vadd.f32 %v2846_v10, %v3485_v55 }
 0x19a   : > { %2107 = vst.msk [vmem:[%s3540_s4 + $0x30] sm:$0xff] %vm2100_vm0, %v3578_v51  ;;  %v3584_v15 = vadd.f32 %v2958_v13, %v1840_v14  ;;  %v2847_v16 = vpop.f32.mrb[80].mxu0 }
 0x19b   : > { %v2959_v18 = vpop.f32.mrb[80].mxu1  ;;  %v2848_v24 = vpop.f32.mrb[81].mxu0 }
 0x19c   : > { %2108 = vst.msk [vmem:[%s3540_s4 + $0x38] sm:$0xff] %vm2100_vm0, %v3584_v15  ;;  %v2849_v53 = vadd.f32 %v2848_v24, %v2847_v16  ;;  %v2960_v28 = vpop.f32.mrb[81].mxu1  ;;  %v2850_v32 = vpop.f32.mrb[82].mxu0 }
 0x19d   : > { %v2961_v7 = vadd.f32 %v2960_v28, %v2959_v18  ;;  %v2962_v33 = vpop.f32.mrb[82].mxu1  ;;  %v2851_v34 = vpop.f32.mrb[83].mxu0 }
 0x19e   : > { %v1845_v55 = vadd.f32 %v2849_v53, %v3487_v5  ;;  %v2852_v35 = vadd.f32 %v2851_v34, %v2850_v32  ;;  %v2963_v36 = vpop.f32.mrb[83].mxu1 }
 0x19f   : > { %v2964_v38 = vadd.f32 %v2963_v36, %v2962_v33 }
 0x1a0   : > { %v3590_v9 = vadd.f32 %v2961_v7, %v1845_v55  ;;  %v1848_v40 = vadd.f32 %v2852_v35, %v3489_v8 }
 0x1a2   : > { %2109 = vst.msk [vmem:[%s3540_s4 + $0x40] sm:$0xff] %vm2100_vm0, %v3590_v9  ;;  %v3596_v42 = vadd.f32 %v2964_v38, %v1848_v40  ;;  %v2853_v46 = vpop.f32.mrb[84].mxu0 }
 0x1a3   : > { %v2965_v48 = vpop.f32.mrb[84].mxu1  ;;  %v2854_v52 = vpop.f32.mrb[85].mxu0 }
 0x1a4   : > { %2110 = vst.msk [vmem:[%s3540_s4 + $0x48] sm:$0xff] %vm2100_vm0, %v3596_v42  ;;  %v2855_v5 = vadd.f32 %v2854_v52, %v2853_v46  ;;  %v2966_v58 = vpop.f32.mrb[85].mxu1  ;;  %v2856_v49 = vpop.f32.mrb[86].mxu0 }
 0x1a5   : > { %v2967_v29 = vadd.f32 %v2966_v58, %v2965_v48  ;;  %v2968_v60 = vpop.f32.mrb[86].mxu1  ;;  %v2857_v61 = vpop.f32.mrb[87].mxu0 }
 0x1a6   : > { %v1853_v8 = vadd.f32 %v2855_v5, %v3491_v21  ;;  %v2858_v62 = vadd.f32 %v2857_v61, %v2856_v49  ;;  %v2969_v2 = vpop.f32.mrb[87].mxu1 }
 0x1a7   : > { %v2970_v4 = vadd.f32 %v2969_v2, %v2968_v60 }
 0x1a8   : > { %v3602_v31 = vadd.f32 %v2967_v29, %v1853_v8  ;;  %v1856_v10 = vadd.f32 %v2858_v62, %v3493_v23 }
 0x1aa   : > { %2111 = vst.msk [vmem:[%s3540_s4 + $0x50] sm:$0xff] %vm2100_vm0, %v3602_v31  ;;  %v3608_v12 = vadd.f32 %v2970_v4, %v1856_v10  ;;  %v2859_v13 = vpop.f32.mrb[88].mxu0 }
 0x1ab   : > { %v2971_v14 = vpop.f32.mrb[88].mxu1  ;;  %v2860_v16 = vpop.f32.mrb[89].mxu0 }
 0x1ac   : > { %2112 = vst.msk [vmem:[%s3540_s4 + $0x58] sm:$0xff] %vm2100_vm0, %v3608_v12  ;;  %v2861_v21 = vadd.f32 %v2860_v16, %v2859_v13  ;;  %v2972_v18 = vpop.f32.mrb[89].mxu1  ;;  %v2862_v24 = vpop.f32.mrb[90].mxu0 }
 0x1ad   : > { %v2973_v53 = vadd.f32 %v2972_v18, %v2971_v14  ;;  %v2974_v28 = vpop.f32.mrb[90].mxu1  ;;  %v2863_v32 = vpop.f32.mrb[91].mxu0 }
 0x1ae   : > { %v1861_v23 = vadd.f32 %v2861_v21, %v3495_v37  ;;  %v2864_v7 = vadd.f32 %v2863_v32, %v2862_v24  ;;  %v2975_v33 = vpop.f32.mrb[91].mxu1 }
 0x1af   : > { %v2976_v34 = vadd.f32 %v2975_v33, %v2974_v28 }
 0x1b0   : > { %v3614_v55 = vadd.f32 %v2973_v53, %v1861_v23  ;;  %v1864_v35 = vadd.f32 %v2864_v7, %v3497_v39 }
 0x1b2   : > { %2113 = vst.msk [vmem:[%s3540_s4 + $0x60] sm:$0xff] %vm2100_vm0, %v3614_v55  ;;  %v3620_v36 = vadd.f32 %v2976_v34, %v1864_v35  ;;  %v2865_v38 = vpop.f32.mrb[92].mxu0 }
 0x1b3   : > { %v2977_v40 = vpop.f32.mrb[92].mxu1  ;;  %v2866_v46 = vpop.f32.mrb[93].mxu0 }
 0x1b4   : > { %2114 = vst.msk [vmem:[%s3540_s4 + $0x68] sm:$0xff] %vm2100_vm0, %v3620_v36  ;;  %v2867_v37 = vadd.f32 %v2866_v46, %v2865_v38  ;;  %v2978_v48 = vpop.f32.mrb[93].mxu1  ;;  %v2868_v52 = vpop.f32.mrb[94].mxu0 }
 0x1b5   : > { %v2979_v5 = vadd.f32 %v2978_v48, %v2977_v40  ;;  %v2980_v58 = vpop.f32.mrb[94].mxu1  ;;  %v2869_v49 = vpop.f32.mrb[95].mxu0 }
 0x1b6   : > { %v1869_v39 = vadd.f32 %v2867_v37, %v3499_v54  ;;  %v2870_v29 = vadd.f32 %v2869_v49, %v2868_v52  ;;  %v2981_v60 = vpop.f32.mrb[95].mxu1 }
 0x1b7   : > { %v2982_v61 = vadd.f32 %v2981_v60, %v2980_v58 }
 0x1b8   : > { %v3626_v8 = vadd.f32 %v2979_v5, %v1869_v39  ;;  %v1872_v62 = vadd.f32 %v2870_v29, %v3501_v57 }
 0x1ba   : > { %2115 = vst.msk [vmem:[%s3540_s4 + $0x70] sm:$0xff] %vm2100_vm0, %v3626_v8  ;;  %v3632_v2 = vadd.f32 %v2982_v61, %v1872_v62  ;;  %v2871_v4 = vpop.f32.mrb[96].mxu0 }
 0x1bb   : > { %v2983_v10 = vpop.f32.mrb[96].mxu1  ;;  %v2872_v13 = vpop.f32.mrb[97].mxu0 }
 0x1bc   : > { %2116 = vst.msk [vmem:[%s3540_s4 + $0x78] sm:$0xff] %vm2100_vm0, %v3632_v2  ;;  %v2873_v54 = vadd.f32 %v2872_v13, %v2871_v4  ;;  %v2984_v14 = vpop.f32.mrb[97].mxu1  ;;  %v2874_v16 = vpop.f32.mrb[98].mxu0 }
 0x1bd   : > { %v2985_v21 = vadd.f32 %v2984_v14, %v2983_v10  ;;  %v2986_v18 = vpop.f32.mrb[98].mxu1  ;;  %v2875_v24 = vpop.f32.mrb[99].mxu0 }
 0x1be   : > { %v1877_v57 = vadd.f32 %v2873_v54, %v3503_v6  ;;  %v2876_v53 = vadd.f32 %v2875_v24, %v2874_v16  ;;  %v2987_v28 = vpop.f32.mrb[99].mxu1 }
 0x1bf   : > { %v2988_v32 = vadd.f32 %v2987_v28, %v2986_v18 }
 0x1c0   : > { %v3638_v23 = vadd.f32 %v2985_v21, %v1877_v57  ;;  %v1880_v7 = vadd.f32 %v2876_v53, %v3505_v11 }
 0x1c2   : > { %2117 = vst.msk [vmem:[%s3540_s4 + $0x80] sm:$0xff] %vm2100_vm0, %v3638_v23  ;;  %v3644_v33 = vadd.f32 %v2988_v32, %v1880_v7  ;;  %v2877_v34 = vpop.f32.mrb[100].mxu0 }
 0x1c3   : > { %v2989_v35 = vpop.f32.mrb[100].mxu1  ;;  %v2878_v38 = vpop.f32.mrb[101].mxu0 }
 0x1c4   : > { %2118 = vst.msk [vmem:[%s3540_s4 + $0x88] sm:$0xff] %vm2100_vm0, %v3644_v33  ;;  %v2879_v6 = vadd.f32 %v2878_v38, %v2877_v34  ;;  %v2990_v40 = vpop.f32.mrb[101].mxu1  ;;  %v2880_v46 = vpop.f32.mrb[102].mxu0 }
 0x1c5   : > { %v2991_v37 = vadd.f32 %v2990_v40, %v2989_v35  ;;  %v2992_v48 = vpop.f32.mrb[102].mxu1  ;;  %v2881_v52 = vpop.f32.mrb[103].mxu0 }
 0x1c6   : > { %v1885_v11 = vadd.f32 %v2879_v6, %v3507_v25  ;;  %v2882_v5 = vadd.f32 %v2881_v52, %v2880_v46  ;;  %v2993_v58 = vpop.f32.mrb[103].mxu1 }
 0x1c7   : > { %v2994_v49 = vadd.f32 %v2993_v58, %v2992_v48 }
 0x1c8   : > { %v3650_v39 = vadd.f32 %v2991_v37, %v1885_v11  ;;  %v1888_v29 = vadd.f32 %v2882_v5, %v3509_v27 }
 0x1ca   : > { %2119 = vst.msk [vmem:[%s3540_s4 + $0x90] sm:$0xff] %vm2100_vm0, %v3650_v39  ;;  %v3656_v60 = vadd.f32 %v2994_v49, %v1888_v29  ;;  %v2883_v61 = vpop.f32.mrb[104].mxu0 }
 0x1cb   : > { %v2995_v62 = vpop.f32.mrb[104].mxu1  ;;  %v2884_v4 = vpop.f32.mrb[105].mxu0 }
 0x1cc   : > { %2120 = vst.msk [vmem:[%s3540_s4 + $0x98] sm:$0xff] %vm2100_vm0, %v3656_v60  ;;  %v2885_v25 = vadd.f32 %v2884_v4, %v2883_v61  ;;  %v2996_v10 = vpop.f32.mrb[105].mxu1  ;;  %v2886_v13 = vpop.f32.mrb[106].mxu0 }
 0x1cd   : > { %v2997_v54 = vadd.f32 %v2996_v10, %v2995_v62  ;;  %v2998_v14 = vpop.f32.mrb[106].mxu1  ;;  %v2887_v16 = vpop.f32.mrb[107].mxu0 }
 0x1ce   : > { %v1893_v27 = vadd.f32 %v2885_v25, %v3511_v43  ;;  %v2888_v21 = vadd.f32 %v2887_v16, %v2886_v13  ;;  %v2999_v18 = vpop.f32.mrb[107].mxu1 }
 0x1cf   : > { %v3000_v24 = vadd.f32 %v2999_v18, %v2998_v14 }
 0x1d0   : > { %v3662_v57 = vadd.f32 %v2997_v54, %v1893_v27  ;;  %v1896_v53 = vadd.f32 %v2888_v21, %v3513_v45 }
 0x1d2   : > { %2121 = vst.msk [vmem:[%s3540_s4 + $0xa0] sm:$0xff] %vm2100_vm0, %v3662_v57  ;;  %v3668_v28 = vadd.f32 %v3000_v24, %v1896_v53  ;;  %v2889_v32 = vpop.f32.mrb[108].mxu0 }
 0x1d3   : > { %v3001_v7 = vpop.f32.mrb[108].mxu1  ;;  %v2890_v34 = vpop.f32.mrb[109].mxu0 }
 0x1d4   : > { %2122 = vst.msk [vmem:[%s3540_s4 + $0xa8] sm:$0xff] %vm2100_vm0, %v3668_v28  ;;  %v2891_v43 = vadd.f32 %v2890_v34, %v2889_v32  ;;  %v3002_v35 = vpop.f32.mrb[109].mxu1  ;;  %v2892_v38 = vpop.f32.mrb[110].mxu0 }
 0x1d5   : > { %v3003_v6 = vadd.f32 %v3002_v35, %v3001_v7  ;;  %v3004_v40 = vpop.f32.mrb[110].mxu1  ;;  %v2893_v46 = vpop.f32.mrb[111].mxu0 }
 0x1d6   : > { %v1901_v45 = vadd.f32 %v2891_v43, %v3515_v63  ;;  %v2894_v37 = vadd.f32 %v2893_v46, %v2892_v38  ;;  %v3005_v48 = vpop.f32.mrb[111].mxu1 }
 0x1d7   : > { %v3006_v52 = vadd.f32 %v3005_v48, %v3004_v40 }
 0x1d8   : > { %v3674_v11 = vadd.f32 %v3003_v6, %v1901_v45  ;;  %v1904_v5 = vadd.f32 %v2894_v37, %v3517_v1 }
 0x1da   : > { %2123 = vst.msk [vmem:[%s3540_s4 + $0xb0] sm:$0xff] %vm2100_vm0, %v3674_v11  ;;  %v3680_v58 = vadd.f32 %v3006_v52, %v1904_v5  ;;  %v2895_v49 = vpop.f32.mrb[112].mxu0 }
 0x1db   : > { %v3007_v29 = vpop.f32.mrb[112].mxu1  ;;  %v2896_v61 = vpop.f32.mrb[113].mxu0 }
 0x1dc   : > { %2124 = vst.msk [vmem:[%s3540_s4 + $0xb8] sm:$0xff] %vm2100_vm0, %v3680_v58  ;;  %v2897_v63 = vadd.f32 %v2896_v61, %v2895_v49  ;;  %v3008_v62 = vpop.f32.mrb[113].mxu1  ;;  %v2898_v4 = vpop.f32.mrb[114].mxu0 }
 0x1dd   : > { %v3009_v25 = vadd.f32 %v3008_v62, %v3007_v29  ;;  %v3010_v10 = vpop.f32.mrb[114].mxu1  ;;  %v2899_v13 = vpop.f32.mrb[115].mxu0 }
 0x1de   : > { %v1909_v1 = vadd.f32 %v2897_v63, %v3519_v19  ;;  %v2900_v54 = vadd.f32 %v2899_v13, %v2898_v4  ;;  %v3011_v14 = vpop.f32.mrb[115].mxu1 }
 0x1df   : > { %v3012_v16 = vadd.f32 %v3011_v14, %v3010_v10 }
 0x1e0   : > { %v3686_v27 = vadd.f32 %v3009_v25, %v1909_v1  ;;  %v1912_v21 = vadd.f32 %v2900_v54, %v3521_v22 }
 0x1e2   : > { %2125 = vst.msk [vmem:[%s3540_s4 + $0xc0] sm:$0xff] %vm2100_vm0, %v3686_v27  ;;  %v3692_v18 = vadd.f32 %v3012_v16, %v1912_v21  ;;  %v2901_v24 = vpop.f32.mrb[116].mxu0 }
 0x1e3   : > { %v3013_v53 = vpop.f32.mrb[116].mxu1  ;;  %v2902_v32 = vpop.f32.mrb[117].mxu0 }
 0x1e4   : > { %2126 = vst.msk [vmem:[%s3540_s4 + $0xc8] sm:$0xff] %vm2100_vm0, %v3692_v18  ;;  %v2903_v19 = vadd.f32 %v2902_v32, %v2901_v24  ;;  %v3014_v7 = vpop.f32.mrb[117].mxu1  ;;  %v2904_v34 = vpop.f32.mrb[118].mxu0 }
 0x1e5   : > { %v3015_v43 = vadd.f32 %v3014_v7, %v3013_v53  ;;  %v3016_v35 = vpop.f32.mrb[118].mxu1  ;;  %v2905_v38 = vpop.f32.mrb[119].mxu0 }
 0x1e6   : > { %v1917_v22 = vadd.f32 %v2903_v19, %v3523_v41  ;;  %v2906_v6 = vadd.f32 %v2905_v38, %v2904_v34  ;;  %v3017_v40 = vpop.f32.mrb[119].mxu1 }
 0x1e7   : > { %v3018_v46 = vadd.f32 %v3017_v40, %v3016_v35 }
 0x1e8   : > { %v3698_v45 = vadd.f32 %v3015_v43, %v1917_v22  ;;  %v1920_v37 = vadd.f32 %v2906_v6, %v3525_v44 }
 0x1ea   : > { %2127 = vst.msk [vmem:[%s3540_s4 + $0xd0] sm:$0xff] %vm2100_vm0, %v3698_v45  ;;  %v3704_v48 = vadd.f32 %v3018_v46, %v1920_v37  ;;  %v2907_v52 = vpop.f32.mrb[120].mxu0 }
 0x1eb   : > { %v3019_v5 = vpop.f32.mrb[120].mxu1  ;;  %v2908_v49 = vpop.f32.mrb[121].mxu0 }
 0x1ec   : > { %2128 = vst.msk [vmem:[%s3540_s4 + $0xd8] sm:$0xff] %vm2100_vm0, %v3704_v48  ;;  %v2909_v41 = vadd.f32 %v2908_v49, %v2907_v52  ;;  %v3020_v29 = vpop.f32.mrb[121].mxu1  ;;  %v2910_v61 = vpop.f32.mrb[122].mxu0 }
 0x1ed   : > { %v3021_v63 = vadd.f32 %v3020_v29, %v3019_v5  ;;  %v3022_v62 = vpop.f32.mrb[122].mxu1  ;;  %v2911_v4 = vpop.f32.mrb[123].mxu0 }
 0x1ee   : > { %v1925_v44 = vadd.f32 %v2909_v41, %v3527_v0  ;;  %v2912_v25 = vadd.f32 %v2911_v4, %v2910_v61  ;;  %v3023_v10 = vpop.f32.mrb[123].mxu1 }
 0x1ef   : > { %v3024_v13 = vadd.f32 %v3023_v10, %v3022_v62 }
 0x1f0   : > { %v3710_v1 = vadd.f32 %v3021_v63, %v1925_v44  ;;  %v1928_v54 = vadd.f32 %v2912_v25, %v3529_v3 }
 0x1f2   : > { %2129 = vst.msk [vmem:[%s3540_s4 + $0xe0] sm:$0xff] %vm2100_vm0, %v3710_v1  ;;  %v3716_v14 = vadd.f32 %v3024_v13, %v1928_v54  ;;  %v2913_v16 = vpop.f32.mrb[124].mxu0 }
 0x1f3   : > { %v3025_v21 = vpop.f32.mrb[124].mxu1  ;;  %v2914_v24 = vpop.f32.mrb[125].mxu0 }
 0x1f4   : > { %2130 = vst.msk [vmem:[%s3540_s4 + $0xe8] sm:$0xff] %vm2100_vm0, %v3716_v14  ;;  %v2915_v0 = vadd.f32 %v2914_v24, %v2913_v16  ;;  %v3026_v53 = vpop.f32.mrb[125].mxu1  ;;  %v2916_v32 = vpop.f32.mrb[126].mxu0 }
 0x1f5   : > { %v3027_v19 = vadd.f32 %v3026_v53, %v3025_v21  ;;  %v3028_v7 = vpop.f32.mrb[126].mxu1  ;;  %v2917_v34 = vpop.f32.mrb[127].mxu0 }
 0x1f6   : > { %v1933_v3 = vadd.f32 %v2915_v0, %v3531_v26  ;;  %v2918_v43 = vadd.f32 %v2917_v34, %v2916_v32  ;;  %v3029_v35 = vpop.f32.mrb[127].mxu1  ;;  %2136 = sbr.rel (%p2579_p4) target bundleno = 509 (0x1fd), region = 32  ;;  %v3112_v26 = vmov (!%p2579_p4), 0.0  }
 0x1f7   : > { %v3030_v38 = vadd.f32 %v3029_v35, %v3028_v7  ;;  %2138 = vst.msk [vmem:[%s3910_s3] sm:$0x3] (!%p2579_p4), %vm2137_vm1, %v3112_v26 }
 0x1f8   : > { %v3722_v22 = vadd.f32 %v3027_v19, %v1933_v3  ;;  %v1936_v6 = vadd.f32 %v2918_v43, %v3533_v30 }
 0x1fa   : > { %2131 = vst.msk [vmem:[%s3540_s4 + $0xf0] sm:$0xff] %vm2100_vm0, %v3722_v22  ;;  %v3728_v40 = vadd.f32 %v3030_v38, %v1936_v6 }
 0x1fc   : > { %2132 = vst.msk [vmem:[%s3540_s4 + $0xf8] sm:$0xff] %vm2100_vm0, %v3728_v40 }
 0x1fd PF: > { %v2139_v30 = vsel %vm2100_vm0, %v3542_v56, 0.0  ;;  %v2140_v46 = vsel %vm2100_vm0, %v3548_v59, 0.0  ;;  %v2142_v37 = vsel %vm2100_vm0, %v3554_v17, 0.0  ;;  %v2144_v5 = vsel %vm2100_vm0, %v3560_v20, 0.0 }
 0x1fe   : > { %v2141_v52 = vadd.f32 %v2140_v46, %v2139_v30  ;;  %v2146_v41 = vsel %vm2100_vm0, %v3566_v47, 0.0  ;;  %v2148_v61 = vsel %vm2100_vm0, %v3572_v50, 0.0  ;;  %v2150_v62 = vsel %vm2100_vm0, %v3578_v51, 0.0 }
 0x1ff   : > { %v2152_v44 = vsel %vm2100_vm0, %v3584_v15, 0.0  ;;  %v2154_v10 = vsel %vm2100_vm0, %v3590_v9, 0.0  ;;  %v2156_v54 = vsel %vm2100_vm0, %v3596_v42, 0.0  ;;  %v2208_v16 = vmul.f32 %v3542_v56, %v3542_v56 }
 0x200   : > { %v2143_v49 = vadd.f32 %v2142_v37, %v2141_v52  ;;  %v2209_v21 = vmul.f32 %v3548_v59, %v3548_v59  ;;  %v2210_v24 = vmul.f32 %v3554_v17, %v3554_v17  ;;  %v2158_v53 = vsel %vm2100_vm0, %v3602_v31, 0.0 }
 0x201   : > { %v2211_v32 = vmul.f32 %v3560_v20, %v3560_v20  ;;  %v2160_v7 = vsel %vm2100_vm0, %v3608_v12, 0.0  ;;  %v2212_v56 = vmul.f32 %v3566_v47, %v3566_v47  ;;  %v2240_v34 = vsel %vm2100_vm0, %v2208_v16, 0.0 }
 0x202   : > { %v2145_v29 = vadd.f32 %v2144_v5, %v2143_v49  ;;  %v2241_v59 = vsel %vm2100_vm0, %v2209_v21, 0.0  ;;  %v2243_v17 = vsel %vm2100_vm0, %v2210_v24, 0.0  ;;  %v2162_v35 = vsel %vm2100_vm0, %v3614_v55, 0.0 }
 0x203   : > { %v2242_v43 = vadd.f32 %v2241_v59, %v2240_v34  ;;  %v2213_v20 = vmul.f32 %v3572_v50, %v3572_v50  ;;  %v2245_v38 = vsel %vm2100_vm0, %v2211_v32, 0.0  ;;  %v2164_v47 = vsel %vm2100_vm0, %v3620_v36, 0.0 }
 0x204   : > { %v2147_v63 = vadd.f32 %v2146_v41, %v2145_v29  ;;  %v2214_v30 = vmul.f32 %v3578_v51, %v3578_v51  ;;  %v2247_v46 = vsel %vm2100_vm0, %v2212_v56, 0.0  ;;  %v2166_v5 = vsel %vm2100_vm0, %v3626_v8, 0.0 }
 0x205   : > { %v2244_v26 = vadd.f32 %v2243_v17, %v2242_v43  ;;  %v2215_v50 = vmul.f32 %v3584_v15, %v3584_v15  ;;  %v2249_v49 = vsel %vm2100_vm0, %v2213_v20, 0.0  ;;  %v2216_v51 = vmul.f32 %v3590_v9, %v3590_v9 }
 0x206   : > { %v2149_v4 = vadd.f32 %v2148_v61, %v2147_v63  ;;  %v2168_v61 = vsel %vm2100_vm0, %v3632_v2, 0.0  ;;  %v2251_v63 = vsel %vm2100_vm0, %v2214_v30, 0.0  ;;  %v2217_v15 = vmul.f32 %v3596_v42, %v3596_v42 }
 0x207   : > { %v2246_v52 = vadd.f32 %v2245_v38, %v2244_v26  ;;  %v2218_v9 = vmul.f32 %v3602_v31, %v3602_v31  ;;  %v2255_v16 = vsel %vm2100_vm0, %v2216_v51, 0.0  ;;  %v2219_v42 = vmul.f32 %v3608_v12, %v3608_v12 }
 0x208   : > { %v2151_v25 = vadd.f32 %v2150_v62, %v2149_v4  ;;  %v2220_v31 = vmul.f32 %v3614_v55, %v3614_v55  ;;  %v2178_v17 = vsel %vm2100_vm0, %v3662_v57, 0.0  ;;  %v2221_v12 = vmul.f32 %v3620_v36, %v3620_v36 }
 0x209   : > { %v2248_v29 = vadd.f32 %v2247_v46, %v2246_v52  ;;  %v2259_v56 = vsel %vm2100_vm0, %v2218_v9, 0.0  ;;  %v2180_v20 = vsel %vm2100_vm0, %v3668_v28, 0.0  ;;  %v2222_v55 = vmul.f32 %v3626_v8, %v3626_v8 }
 0x20a   : > { %v2153_v13 = vadd.f32 %v2152_v44, %v2151_v25  ;;  %v2170_v44 = vsel %vm2100_vm0, %v3638_v23, 0.0  ;;  %v2253_v25 = vsel %vm2100_vm0, %v2215_v50, 0.0  ;;  %v2263_v38 = vsel %vm2100_vm0, %v2220_v31, 0.0 }
 0x20b   : > { %v2250_v4 = vadd.f32 %v2249_v49, %v2248_v29  ;;  %v2223_v36 = vmul.f32 %v3632_v2, %v3632_v2  ;;  %v2265_v30 = vsel %vm2100_vm0, %v2221_v12, 0.0  ;;  %v2184_v52 = vsel %vm2100_vm0, %v3680_v58, 0.0 }
 0x20c   : > { %v2155_v0 = vadd.f32 %v2154_v10, %v2153_v13  ;;  %v2224_v8 = vmul.f32 %v3638_v23, %v3638_v23  ;;  %v2225_v2 = vmul.f32 %v3644_v33, %v3644_v33  ;;  %v2226_v23 = vmul.f32 %v3650_v39, %v3650_v39 }
 0x20d   : > { %v2252_v13 = vadd.f32 %v2251_v63, %v2250_v4  ;;  %v2269_v29 = vsel %vm2100_vm0, %v2223_v36, 0.0  ;;  %v2188_v63 = vsel %vm2100_vm0, %v3692_v18, 0.0  ;;  %v2232_v12 = vmul.f32 %v3686_v27, %v3686_v27 }
 0x20e   : > { %v2157_v19 = vadd.f32 %v2156_v54, %v2155_v0  ;;  %v2172_v54 = vsel %vm2100_vm0, %v3644_v33, 0.0  ;;  %v2174_v0 = vsel %vm2100_vm0, %v3650_v39, 0.0  ;;  %v2227_v33 = vmul.f32 %v3656_v60, %v3656_v60 }
 0x20f   : > { %v2254_v24 = vadd.f32 %v2253_v25, %v2252_v13  ;;  %v2273_v25 = vsel %vm2100_vm0, %v2225_v2, 0.0  ;;  %v2228_v39 = vmul.f32 %v3662_v57, %v3662_v57  ;;  %v2275_v9 = vsel %vm2100_vm0, %v2226_v23, 0.0 }
 0x210   : > { %v2159_v3 = vadd.f32 %v2158_v53, %v2157_v19  ;;  %v2257_v53 = vsel %vm2100_vm0, %v2217_v15, 0.0  ;;  %v2190_v15 = vsel %vm2100_vm0, %v3698_v45, 0.0  ;;  %v2230_v57 = vmul.f32 %v3674_v11, %v3674_v11 }
 0x211   : > { %v2256_v19 = vadd.f32 %v2255_v16, %v2254_v24  ;;  %v2194_v24 = vsel %vm2100_vm0, %v3710_v1, 0.0  ;;  %vm2310_vm2 = vcmask 1040384   ;;  %vm2313_vm3 = vcmask 254976  }
 0x212   : > { %v2161_v6 = vadd.f32 %v2160_v7, %v2159_v3  ;;  %v2176_v7 = vsel %vm2100_vm0, %v3656_v60, 0.0  ;;  %v2261_v3 = vsel %vm2100_vm0, %v2219_v42, 0.0  ;;  %v2229_v60 = vmul.f32 %v3668_v28, %v3668_v28 }
 0x213   : > { %v2258_v59 = vadd.f32 %v2257_v53, %v2256_v19  ;;  %v2279_v19 = vsel %vm2100_vm0, %v2228_v39, 0.0 }
 0x214   : > { %v2163_v37 = vadd.f32 %v2162_v35, %v2161_v6 }
 0x215   : > { %v2260_v35 = vadd.f32 %v2259_v56, %v2258_v59  ;;  %v2231_v56 = vmul.f32 %v3680_v58, %v3680_v58 }
 0x216   : > { %v2165_v41 = vadd.f32 %v2164_v47, %v2163_v37  ;;  %v2182_v47 = vsel %vm2100_vm0, %v3674_v11, 0.0 }
 0x217   : > { %v2262_v26 = vadd.f32 %v2261_v3, %v2260_v35  ;;  %v2283_v3 = vsel %vm2100_vm0, %v2230_v57, 0.0  ;;  %v2285_v35 = vsel %vm2100_vm0, %v2231_v56, 0.0 }
 0x218   : > { %v2167_v62 = vadd.f32 %v2166_v5, %v2165_v41  ;;  %v2267_v5 = vsel %vm2100_vm0, %v2222_v55, 0.0  ;;  %v2186_v41 = vsel %vm2100_vm0, %v3686_v27, 0.0  ;;  %v2200_v55 = vsel %vm2100_vm0, %v3728_v40, 0.0 }
 0x219   : > { %v2264_v37 = vadd.f32 %v2263_v38, %v2262_v26  ;;  %v2234_v38 = vmul.f32 %v3698_v45, %v3698_v45  ;;  %v2235_v27 = vmul.f32 %v3704_v48, %v3704_v48 }
 0x21a   : > { %v2169_v10 = vadd.f32 %v2168_v61, %v2167_v62  ;;  %v2271_v62 = vsel %vm2100_vm0, %v2224_v8, 0.0 }
 0x21b   : > { %v2266_v49 = vadd.f32 %v2265_v30, %v2264_v37  ;;  %v2236_v30 = vmul.f32 %v3710_v1, %v3710_v1  ;;  %v2293_v45 = vsel %vm2100_vm0, %v2235_v27, 0.0 }
 0x21c   : > { %v2171_v21 = vadd.f32 %v2170_v44, %v2169_v10 }
 0x21d   : > { %v2268_v51 = vadd.f32 %v2267_v5, %v2266_v49 }
 0x21e   : > { %v2173_v32 = vadd.f32 %v2172_v54, %v2171_v21  ;;  %v2192_v54 = vsel %vm2100_vm0, %v3704_v48, 0.0  ;;  %v2238_v48 = vmul.f32 %v3722_v22, %v3722_v22 }
 0x21f   : > { %v2270_v44 = vadd.f32 %v2269_v29, %v2268_v51 }
 0x220   : > { %v2175_v34 = vadd.f32 %v2174_v0, %v2173_v32  ;;  %v2277_v0 = vsel %vm2100_vm0, %v2227_v33, 0.0  ;;  %v2196_v32 = vsel %vm2100_vm0, %v3716_v14, 0.0 }
 0x221   : > { %v2272_v13 = vadd.f32 %v2271_v62, %v2270_v44 }
 0x222   : > { %v2177_v43 = vadd.f32 %v2176_v7, %v2175_v34  ;;  %v2281_v34 = vsel %vm2100_vm0, %v2229_v60, 0.0 }
 0x223   : > { %v2274_v21 = vadd.f32 %v2273_v25, %v2272_v13 }
 0x224   : > { %v2179_v6 = vadd.f32 %v2178_v17, %v2177_v43  ;;  %v2198_v17 = vsel %vm2100_vm0, %v3722_v22, 0.0  ;;  %v2233_v43 = vmul.f32 %v3692_v18, %v3692_v18 }
 0x225   : > { %v2276_v53 = vadd.f32 %v2275_v9, %v2274_v21 }
 0x226   : > { %v2181_v46 = vadd.f32 %v2180_v20, %v2179_v6  ;;  %v2287_v6 = vsel %vm2100_vm0, %v2232_v12, 0.0 }
 0x227   : > { %v2278_v31 = vadd.f32 %v2277_v0, %v2276_v53 }
 0x228   : > { %v2183_v50 = vadd.f32 %v2182_v47, %v2181_v46  ;;  %v2289_v47 = vsel %vm2100_vm0, %v2233_v43, 0.0  ;;  %v2291_v46 = vsel %vm2100_vm0, %v2234_v38, 0.0 }
 0x229   : > { %v2280_v59 = vadd.f32 %v2279_v19, %v2278_v31 }
 0x22a   : > { %v2185_v61 = vadd.f32 %v2184_v52, %v2183_v50  ;;  %v2237_v52 = vmul.f32 %v3716_v14, %v3716_v14  ;;  %v2295_v50 = vsel %vm2100_vm0, %v2236_v30, 0.0 }
 0x22b   : > { %v2282_v11 = vadd.f32 %v2281_v34, %v2280_v59 }
 0x22c   : > { %v2187_v4 = vadd.f32 %v2186_v41, %v2185_v61  ;;  %v2239_v41 = vmul.f32 %v3728_v40, %v3728_v40  ;;  %v2297_v1 = vsel %vm2100_vm0, %v2237_v52, 0.0  ;;  %v2299_v61 = vsel %vm2100_vm0, %v2238_v48, 0.0 }
 0x22d   : > { %v2284_v58 = vadd.f32 %v2283_v3, %v2282_v11 }
 0x22e   : > { %v2189_v10 = vadd.f32 %v2188_v63, %v2187_v4  ;;  %v2301_v51 = vsel %vm2100_vm0, %v2239_v41, 0.0 }
 0x22f   : > { %v2286_v26 = vadd.f32 %v2285_v35, %v2284_v58 }
 0x230   : > { %v2191_v16 = vadd.f32 %v2190_v15, %v2189_v10 }
 0x231   : > { %v2288_v18 = vadd.f32 %v2287_v6, %v2286_v26 }
 0x232   : > { %v2193_v42 = vadd.f32 %v2192_v54, %v2191_v16  ;;  %v2309_v54 = vld [vmem:[%s3910_s3] sm:$0x3] }
 0x233   : > { %v2290_v37 = vadd.f32 %v2289_v47, %v2288_v18 }
 0x234   : > { %v2195_v7 = vadd.f32 %v2194_v24, %v2193_v42 }
 0x235   : > { %v2292_v5 = vadd.f32 %v2291_v46, %v2290_v37 }
 0x236   : > { %v2197_v28 = vadd.f32 %v2196_v32, %v2195_v7 }
 0x237   : > { %v2294_v49 = vadd.f32 %v2293_v45, %v2292_v5 }
 0x238   : > { %v2199_v20 = vadd.f32 %v2198_v17, %v2197_v28 }
 0x239   : > { %v2296_v29 = vadd.f32 %v2295_v50, %v2294_v49 }
 0x23a   : > { %v2201_v36 = vadd.f32 %v2200_v55, %v2199_v20 }
 0x23b   : > { %v2298_v14 = vadd.f32 %v2297_v1, %v2296_v29 }
 0x23c   : > { %v2202_v8 = vrot.slane %v2201_v36, 4 }
 0x23d   : > { %v2300_v23 = vadd.f32 %v2299_v61, %v2298_v14 }
 0x23e   : > { %v2203_v2 = vadd.f32 %v2202_v8, %v2201_v36 }
 0x23f   : > { %v2302_v62 = vadd.f32 %v2301_v51, %v2300_v23 }
 0x240   : > { %v2204_v63 = vrot.slane %v2203_v2, 2 }
 0x241   : > { %v2303_v22 = vrot.slane %v2302_v62, 4 }
 0x242   : > { %v2205_v4 = vadd.f32 %v2204_v63, %v2203_v2 }
 0x243   : > { %v2304_v44 = vadd.f32 %v2303_v22, %v2302_v62 }
 0x244   : > { %v2206_v15 = vrot.slane %v2205_v4, 1 }
 0x245   : > { %v2305_v33 = vrot.slane %v2304_v44, 2 }
 0x246   : > { %v2207_v10 = vadd.f32 %v2206_v15, %v2205_v4 }
 0x247   : > { %v2306_v25 = vadd.f32 %v2305_v33, %v2304_v44 }
 0x249   : > { %v2307_v40 = vrot.slane %v2306_v25, 1 }
 0x24b   : > { %v2308_v13 = vadd.f32 %v2307_v40, %v2306_v25 }
 0x24d   : > { %v2311_v39 = vsel %vm2310_vm2, %v2207_v10, %v2308_v13 }
 0x24e   : > { %v2312_v9 = vadd.f32 %v2311_v39, %v2309_v54 }
 0x250   : > { %2314 = vst.msk [vmem:[%s3910_s3] sm:$0x3] %vm2313_vm3, %v2312_v9 }
 0x251 PF: > { %s14_s12 = sadd.s32 1, %s3110_s12  }
 0x252   : > { %p11_p5 = scmp.ge.s32.totalorder %s14_s12, 4  }
 0x254   :  { %13 = sbr.rel (!%p11_p5) target bundleno = 1 (0x1), region = 70 }

// kernel: squeeze.0
= control target key start
LH: loop header
LB: loop body
LE: loop exit
PB: predicated region body
PF: predicated region fallthrough
CT: control target
= control target key end

     0   :  { %s236_s6 = smov 3  ;;  %s239_s7 = smov 3  ;;  %vm241_vm0 = vcmask 850944   ;;  %vm280_vm1 = vcmask 916480   ;;  %vm261_vm2 = vcmask 883712   ;;  %vm298_vm3 = vcmask 949248   ;;  %s1052_s0 = inlined_call_operand.vmem [shape: f32[1568], index: 0, kind: input, shape index: {}]   ;;  %s1053_s1 = inlined_call_operand.hbm [shape: f32[2,1,28,28], index: 1, kind: output, shape index: {}]  }
   0x1   :  { %v769_v0 = vld [vmem:[%s1052_s0 + $0x4] ss:$7 sm:%s236_s6]   ;;  %v770_v1 = vld [vmem:[%s1052_s0 + $0x5] ss:$7 sm:%s239_s7]   ;;  %s275_s12 = smov 3  ;;  %s278_s15 = smov 3 }
   0x2   :  { %v242_v2 = vsel %vm241_vm0, %v770_v1, %v769_v0  ;;  %v276_v3 = vld [vmem:[%s1052_s0] ss:$7 sm:%s275_s12]   ;;  %v774_v4 = vld [vmem:[%s1052_s0 + $0x5] sm:$0x1]   ;;  %s836_s18 = smov 24   ;;  %s256_s21 = smov 3 }
   0x3   :  { %243 = vrot.lane.b32.xlu0 %v242_v2, %s836_s18  ;;  %v773_v5 = vld [vmem:[%s1052_s0 + $0x1] ss:$7 sm:%s278_s15]   ;;  %s259_s22 = smov 3  ;;  %v775_v6 = vld [vmem:[%s1052_s0 + $0x6] sm:$0x1]   ;;  %s837_s29 = smov 16  }
   0x4   :  { %v281_v7 = vsel %vm280_vm1, %v773_v5, %v276_v3  ;;  %v771_v8 = vld [vmem:[%s1052_s0 + $0x2] ss:$7 sm:%s256_s21]   ;;  %v772_v9 = vld [vmem:[%s1052_s0 + $0x3] ss:$7 sm:%s259_s22]   ;;  %s309_s30 = smov 3  ;;  %s312_s2 = smov 3  ;;  %v299_v11 = vsel %vm298_vm3, %v775_v6, %v774_v4 }
   0x5   :  { %282 = vrot.lane.b32.xlu1 %v281_v7, %s837_s29  ;;  %v262_v10 = vsel %vm261_vm2, %v772_v9, %v771_v8  ;;  %vm314_vm4 = vcmask 982016   ;;  %v776_v12 = vld [vmem:[%s1052_s0 + $0x3] ss:$7 sm:%s309_s30]   ;;  %s329_s7 = smov 3  ;;  %s838_s8 = smov 20   ;;  %vm334_vm5 = vcmask 1014784  }
   0x6   :  { %v777_v13 = vld [vmem:[%s1052_s0 + $0x4] ss:$7 sm:%s312_s2]   ;;  %s332_s11 = smov 3  ;;  %s839_s14 = smov 12   ;;  %v750_v21 = vld [vmem:[%s1052_s0 + $0x6] sm:$0x1]  }
   0x7   :  { %263 = vrot.lane.b32.xlu0 %v262_v10, %s838_s8  ;;  %v778_v14 = vld [vmem:[%s1052_s0 + $0x1] ss:$7 sm:%s329_s7]   ;;  %v315_v15 = vsel %vm314_vm4, %v777_v13, %v776_v12  ;;  %s10_s15 = smov 3  ;;  %s840_s16 = smov 8  }
   0x8   :  { %v779_v16 = vld [vmem:[%s1052_s0 + $0x2] ss:$7 sm:%s332_s11]   ;;  %s20_s17 = smov 3  ;;  %s841_s20 = smov 4  }
   0x9   :  { %300 = vrot.lane.b32.xlu1 %v299_v11, %s839_s14  ;;  %v335_v17 = vsel %vm334_vm5, %v779_v16, %v778_v14  ;;  %v747_v18 = vld [vmem:[%s1052_s0 + $0x5] ss:$7 sm:%s10_s15]   ;;  %s30_s21 = smov 3  ;;  %s842_s24 = smov 124  }
   0xa   :  { %v748_v19 = vld [vmem:[%s1052_s0 + $0x3] ss:$7 sm:%s20_s17]   ;;  %v749_v20 = vld [vmem:[%s1052_s0 + $0x1] ss:$7 sm:%s30_s21]   ;;  %s843_s27 = smov 120   ;;  %s47_s28 = smov 3 }
   0xb   :  { %316 = vrot.lane.b32.xlu0 %v315_v15, %s840_s16  ;;  %s844_s2 = smov 116   ;;  %s57_s3 = smov 3 }
   0xd   :  { %336 = vrot.lane.b32.xlu1 %v335_v17, %s841_s20 }
   0xf   :  { %12 = vrot.lane.b32.xlu0 %v747_v18, %s842_s24 }
  0x11   :  { %22 = vrot.lane.b32.xlu1 %v748_v19, %s843_s27 }
  0x13   :  { %32 = vrot.lane.b32.xlu0 %v749_v20, %s844_s2 }
  0x14   :  { %2 = vsyncpa [#allocation1], 0  ;;  %v751_v22 = vld [vmem:[%s1052_s0 + $0x4] ss:$7 sm:%s47_s28]   ;;  %s845_s6 = smov 112   ;;  %s66_s7 = smov 3 }
  0x15   :  { %41 = vrot.lane.b32.xlu1 %v750_v21, %s845_s6  ;;  %v752_v23 = vld [vmem:[%s1052_s0 + $0x2] ss:$7 sm:%s57_s3]   ;;  %s846_s10 = smov 108   ;;  %s847_s13 = smov 104   ;;  %v756_v28 = vld [vmem:[%s1052_s0 + $0x6] sm:$0x1]  }
  0x16   :  { %v67_v24 = vld [vmem:[%s1052_s0] ss:$7 sm:%s66_s7]   ;;  %s83_s14 = smov 3  ;;  %v753_v25 = vld [vmem:[%s1052_s0 + $0x5] sm:$0x1]   ;;  %s848_s17 = smov 100  }
  0x17   :  { %49 = vrot.lane.b32.xlu0 %v751_v22, %s846_s10  ;;  %s93_s18 = smov 3  ;;  %v754_v26 = vld [vmem:[%s1052_s0 + $0x3] ss:$7 sm:%s83_s14]   ;;  %s849_s21 = smov 96   ;;  %v759_v32 = vld [vmem:[%s1052_s0 + $0x5] sm:$0x1]  }
  0x18   :  { %v755_v27 = vld [vmem:[%s1052_s0 + $0x1] ss:$7 sm:%s93_s18]   ;;  %s850_s24 = smov 92   ;;  %s110_s25 = smov 3  ;;  %v762_v35 = vld [vmem:[%s1052_s0 + $0x6] sm:$0x1]  }
  0x19   :  { %59 = vrot.lane.b32.xlu1 %v752_v23, %s847_s13  ;;  %s851_s28 = smov 88   ;;  %s120_s29 = smov 3  ;;  %v757_v29 = vld [vmem:[%s1052_s0 + $0x4] ss:$7 sm:%s110_s25]   ;;  %vm5_vm6 = vcmask 228352   ;;  %vm245_vm7 = vcmask 195584  }
  0x1a   :  { %s852_s3 = smov 84   ;;  %s129_s4 = smov 3  ;;  %v758_v30 = vld [vmem:[%s1052_s0 + $0x2] ss:$7 sm:%s120_s29]   ;;  %v768_v45 = vld [vmem:[%s1052_s0 + $0x6] sm:$0x1]  }
  0x1b   :  { %68 = vrot.lane.b32.xlu0 %v67_v24, %s848_s17  ;;  %s853_s7 = smov 80   ;;  %v130_v31 = vld [vmem:[%s1052_s0] ss:$7 sm:%s129_s4]   ;;  %s854_s10 = smov 76   ;;  %v765_v40 = vld [vmem:[%s1052_s0 + $0x5] sm:$0x1]  }
  0x1c   :  { %s146_s11 = smov 3  ;;  %s855_s14 = smov 72   ;;  %vm250_vm8 = vcmask 228544   ;;  %vm284_vm9 = vcmask 130048   ;;  %vm289_vm10 = vcmask 228480   ;;  %vm265_vm11 = vcmask 162816  }
  0x1d   :  { %77 = vrot.lane.b32.xlu1 %v753_v25, %s849_s21  ;;  %s156_s15 = smov 3  ;;  %v760_v33 = vld [vmem:[%s1052_s0 + $0x3] ss:$7 sm:%s146_s11]   ;;  %s856_s18 = smov 68   ;;  %vm270_vm12 = vcmask 228512   ;;  %vm302_vm13 = vcmask 97280  }
  0x1e   :  { %v761_v34 = vld [vmem:[%s1052_s0 + $0x1] ss:$7 sm:%s156_s15]   ;;  %s857_s21 = smov 64   ;;  %s173_s22 = smov 3  ;;  %vm305_vm14 = vcmask 228448   ;;  %vm318_vm15 = vcmask 64512  }
  0x1f   :  { %85 = vrot.lane.b32.xlu0 %v754_v26, %s850_s24  ;;  %s858_s25 = smov 60   ;;  %s183_s26 = smov 3  ;;  %v763_v36 = vld [vmem:[%s1052_s0 + $0x4] ss:$7 sm:%s173_s22]   ;;  %vm323_vm0 = vcmask 228416   ;;  %vm338_vm1 = vcmask 31744  }
  0x20   :  { %s3_s29 = smov 3  ;;  %s859_s30 = smov 56   ;;  %v764_v38 = vld [vmem:[%s1052_s0 + $0x2] ss:$7 sm:%s183_s26]   ;;  %vm343_vm2 = vcmask 228384  }
  0x21   :  { %95 = vrot.lane.b32.xlu1 %v755_v27, %s851_s28  ;;  %s192_s2 = smov 3  ;;  %v4_v37 = vld [vmem:[%s1052_s0] ss:$7 sm:%s3_s29]   ;;  %s209_s11 = smov 3 }
  0x22   :  { %6 = vst.msk [vmem:[#allocation2] sm:$0x1] %vm5_vm6, %v4_v37   ;;  %8 = vst.msk [vmem:[#allocation2 + $0xff] sm:$0x2] %vm5_vm6, %v4_v37   ;;  %v193_v39 = vld [vmem:[%s1052_s0] ss:$7 sm:%s192_s2]  }
  0x23   :  { %104 = vrot.lane.b32.xlu0 %v756_v28, %s852_s3  ;;  %s219_s15 = smov 3  ;;  %v766_v41 = vld [vmem:[%s1052_s0 + $0x3] ss:$7 sm:%s209_s11]   ;;  %s866_s24 = smov 28  }
  0x24   :  { %v767_v44 = vld [vmem:[%s1052_s0 + $0x1] ss:$7 sm:%s219_s15]   ;;  %s865_s0 = smov 32  }
  0x25   :  { %112 = vrot.lane.b32.xlu1 %v757_v29, %s853_s7  ;;  %s860_s7 = smov 52  }
  0x27   :  { %122 = vrot.lane.b32.xlu0 %v758_v30, %s854_s10  ;;  %s861_s10 = smov 48  }
  0x29   :  { %131 = vrot.lane.b32.xlu1 %v130_v31, %s855_s14  ;;  %s862_s14 = smov 44   ;;  %v351_v42 = vld [vmem:[#allocation2] sm:$0x1] }
  0x2a   :  { %v540_v43 = vld [vmem:[#allocation2 + $0x100] sm:$0x1]  ;;  %353 = vst [vmem:[#allocation0] sm:$0x1] %v351_v42 }
  0x2b   :  { %140 = vrot.lane.b32.xlu0 %v759_v32, %s856_s18  ;;  %s863_s18 = smov 40   ;;  %544 = vst [vmem:[#allocation0 + $0x20] sm:$0x1] %v540_v43 }
  0x2d   :  { %148 = vrot.lane.b32.xlu1 %v760_v33, %s857_s21  ;;  %s864_s21 = smov 36  }
  0x2f   :  { %158 = vrot.lane.b32.xlu0 %v761_v34, %s858_s25  ;;  %s867_s25 = smov [#allocation0]  }
  0x30   :  { %s687_s26 = sshll.u32 %s867_s25, 4  ;;  %s688_s26 = int_to_ptr.vmem [resolvable:$true] %s687_s26 }
  0x31   :  { %167 = vrot.lane.b32.xlu1 %v762_v35, %s859_s30  ;;  %s812_s27 = scalar_lea.vmem %s688_s26, 896  ;;  %p817_p1 = scmp.lt.s32.totalorder %s688_s26, %s688_s26 }
  0x32   :  { %p813_p0 = scmp.ne.s32.totalorder %s688_s26, %s812_s27  ;;  %p818_p2 = scmp.lt.s32.totalorder %s812_s27, %s812_s27 }
  0x33   :  { %175 = vrot.lane.b32.xlu0 %v763_v36, %s860_s7 }
  0x34   :  { %p819_p3 = por %p818_p2, %p817_p1 }
  0x35   :  { %185 = vrot.lane.b32.xlu1 %v764_v38, %s861_s10 }
  0x36   :  { %p820_p4 = pnand %p819_p3, %p813_p0 }
  0x37   :  { %194 = vrot.lane.b32.xlu0 %v193_v39, %s862_s14 }
  0x39   :  { %203 = vrot.lane.b32.xlu1 %v765_v40, %s863_s18 }
  0x3b   :  { %211 = vrot.lane.b32.xlu0 %v766_v41, %s864_s21 }
  0x3d   :  { %221 = vrot.lane.b32.xlu1 %v767_v44, %s865_s0 }
  0x3f   :  { %230 = vrot.lane.b32.xlu0 %v768_v45, %s866_s24 }
  0x75   :  { %v244_v46 = vpop.permute.xlu0 %243  }
  0x76   :  { %247 = vst.msk [vmem:[#allocation2 + $0xb0] sm:$0x1] %vm245_vm7, %v244_v46   ;;  %249 = vst.msk [vmem:[#allocation2 + $0x1af] sm:$0x2] %vm245_vm7, %v244_v46  }
  0x77   :  { %252 = vst.msk [vmem:[#allocation2 + $0xb0] sm:$0x1] %vm250_vm8, %v244_v46   ;;  %254 = vst.msk [vmem:[#allocation2 + $0x1af] sm:$0x2] %vm250_vm8, %v244_v46   ;;  %v283_v47 = vpop.permute.xlu1 %282  }
  0x78   :  { %286 = vst.msk [vmem:[#allocation2 + $0x20] sm:$0x1] %vm284_vm9, %v283_v47   ;;  %288 = vst.msk [vmem:[#allocation2 + $0x11f] sm:$0x2] %vm284_vm9, %v283_v47  }
  0x79   :  { %291 = vst.msk [vmem:[#allocation2 + $0x20] sm:$0x1] %vm289_vm10, %v283_v47   ;;  %293 = vst.msk [vmem:[#allocation2 + $0x11f] sm:$0x2] %vm289_vm10, %v283_v47   ;;  %v264_v48 = vpop.permute.xlu0 %263  }
  0x7a   :  { %267 = vst.msk [vmem:[#allocation2 + $0x68] sm:$0x1] %vm265_vm11, %v264_v48   ;;  %269 = vst.msk [vmem:[#allocation2 + $0x167] sm:$0x2] %vm265_vm11, %v264_v48  }
  0x7b   :  { %272 = vst.msk [vmem:[#allocation2 + $0x68] sm:$0x1] %vm270_vm12, %v264_v48   ;;  %274 = vst.msk [vmem:[#allocation2 + $0x167] sm:$0x2] %vm270_vm12, %v264_v48   ;;  %v301_v49 = vpop.permute.xlu1 %300  }
  0x7c   :  { %304 = vst.msk [vmem:[#allocation2 + $0xd8] sm:$0x1] %vm302_vm13, %v301_v49  }
  0x7d   :  { %307 = vst.msk [vmem:[#allocation2 + $0xd8] sm:$0x1] %vm305_vm14, %v301_v49   ;;  %v317_v50 = vpop.permute.xlu0 %316  }
  0x7e   :  { %v480_v51 = vld [vmem:[#allocation2 + $0xb0] sm:$0x1]  ;;  %320 = vst.msk [vmem:[#allocation2 + $0x90] sm:$0x1] %vm318_vm15, %v317_v50   ;;  %322 = vst.msk [vmem:[#allocation2 + $0x18f] sm:$0x2] %vm318_vm15, %v317_v50  }
  0x7f   :  { %v672_v52 = vld [vmem:[#allocation2 + $0x1b0] sm:$0x1]  ;;  %484 = vst [vmem:[#allocation0 + $0x16] sm:$0x1] %v480_v51  ;;  %325 = vst.msk [vmem:[#allocation2 + $0x90] sm:$0x1] %vm323_vm0, %v317_v50   ;;  %v337_v53 = vpop.permute.xlu1 %336  }
  0x80   :  { %676 = vst [vmem:[#allocation0 + $0x36] sm:$0x1] %v672_v52  ;;  %327 = vst.msk [vmem:[#allocation2 + $0x18f] sm:$0x2] %vm323_vm0, %v317_v50   ;;  %v372_v54 = vld [vmem:[#allocation2 + $0x20] sm:$0x1] }
  0x81   :  { %v564_v55 = vld [vmem:[#allocation2 + $0x120] sm:$0x1]  ;;  %340 = vst.msk [vmem:[#allocation2 + $0x48] sm:$0x1] %vm338_vm1, %v337_v53   ;;  %342 = vst.msk [vmem:[#allocation2 + $0x147] sm:$0x2] %vm338_vm1, %v337_v53   ;;  %v13_v56 = vpop.permute.xlu0 %12  }
  0x82   :  { %376 = vst [vmem:[#allocation0 + $0x4] sm:$0x1] %v372_v54  ;;  %568 = vst [vmem:[#allocation0 + $0x24] sm:$0x1] %v564_v55  ;;  %v426_v57 = vld [vmem:[#allocation2 + $0x68] sm:$0x1] }
  0x83   :  { %345 = vst.msk [vmem:[#allocation2 + $0x48] sm:$0x1] %vm343_vm2, %v337_v53   ;;  %347 = vst.msk [vmem:[#allocation2 + $0x147] sm:$0x2] %vm343_vm2, %v337_v53   ;;  %v618_v58 = vld [vmem:[#allocation2 + $0x168] sm:$0x1]  ;;  %v23_v59 = vpop.permute.xlu1 %22  }
  0x84   :  { %16 = vst.msk [vmem:[#allocation2 + $0xb8] sm:$0x1] %vm5_vm6, %v13_v56   ;;  %18 = vst.msk [vmem:[#allocation2 + $0x1b7] sm:$0x2] %vm5_vm6, %v13_v56   ;;  %v510_v60 = vld [vmem:[#allocation2 + $0xd8] sm:$0x1] }
  0x85   :  { %430 = vst [vmem:[#allocation0 + $0xd] sm:$0x1] %v426_v57  ;;  %622 = vst [vmem:[#allocation0 + $0x2d] sm:$0x1] %v618_v58  ;;  %v33_v61 = vpop.permute.xlu0 %32  }
  0x86   :  { %26 = vst.msk [vmem:[#allocation2 + $0x70] sm:$0x1] %vm5_vm6, %v23_v59   ;;  %28 = vst.msk [vmem:[#allocation2 + $0x16f] sm:$0x2] %vm5_vm6, %v23_v59   ;;  %v456_v62 = vld [vmem:[#allocation2 + $0x90] sm:$0x1] }
  0x87   :  { %514 = vst [vmem:[#allocation0 + $0x1b] sm:$0x1] %v510_v60  ;;  %v648_v63 = vld [vmem:[#allocation2 + $0x190] sm:$0x1]  ;;  %36 = vst.msk [vmem:[#allocation2 + $0x28] sm:$0x1] %vm5_vm6, %v33_v61   ;;  %v42_v0 = vpop.permute.xlu1 %41  }
  0x88   :  { %38 = vst.msk [vmem:[#allocation2 + $0x127] sm:$0x2] %vm5_vm6, %v33_v61   ;;  %460 = vst [vmem:[#allocation0 + $0x12] sm:$0x1] %v456_v62 }
  0x89   :  { %652 = vst [vmem:[#allocation0 + $0x32] sm:$0x1] %v648_v63  ;;  %45 = vst.msk [vmem:[#allocation2 + $0xe0] sm:$0x1] %vm5_vm6, %v42_v0   ;;  %v50_v5 = vpop.permute.xlu0 %49  }
  0x8a   :  { %v402_v1 = vld [vmem:[#allocation2 + $0x48] sm:$0x1]  ;;  %53 = vst.msk [vmem:[#allocation2 + $0x98] sm:$0x1] %vm5_vm6, %v50_v5   ;;  %55 = vst.msk [vmem:[#allocation2 + $0x197] sm:$0x2] %vm5_vm6, %v50_v5  }
  0x8b   :  { %v594_v2 = vld [vmem:[#allocation2 + $0x148] sm:$0x1]  ;;  %406 = vst [vmem:[#allocation0 + $0x9] sm:$0x1] %v402_v1  ;;  %v486_v3 = vld [vmem:[#allocation2 + $0xb8] sm:$0x1]  ;;  %v60_v8 = vpop.permute.xlu1 %59  }
  0x8c   :  { %598 = vst [vmem:[#allocation0 + $0x29] sm:$0x1] %v594_v2  ;;  %v678_v4 = vld [vmem:[#allocation2 + $0x1b8] sm:$0x1]  ;;  %490 = vst [vmem:[#allocation0 + $0x17] sm:$0x1] %v486_v3 }
  0x8d   :  { %682 = vst [vmem:[#allocation0 + $0x37] sm:$0x1] %v678_v4  ;;  %v432_v6 = vld [vmem:[#allocation2 + $0x70] sm:$0x1]  ;;  %63 = vst.msk [vmem:[#allocation2 + $0x50] sm:$0x1] %vm5_vm6, %v60_v8   ;;  %v69_v11 = vpop.permute.xlu0 %68  }
  0x8e   :  { %v624_v7 = vld [vmem:[#allocation2 + $0x170] sm:$0x1]  ;;  %436 = vst [vmem:[#allocation0 + $0xe] sm:$0x1] %v432_v6  ;;  %65 = vst.msk [vmem:[#allocation2 + $0x14f] sm:$0x2] %vm5_vm6, %v60_v8  }
  0x8f   :  { %628 = vst [vmem:[#allocation0 + $0x2e] sm:$0x1] %v624_v7  ;;  %v378_v9 = vld [vmem:[#allocation2 + $0x28] sm:$0x1]  ;;  %72 = vst.msk [vmem:[#allocation2 + $0x8] sm:$0x1] %vm5_vm6, %v69_v11   ;;  %v78_v13 = vpop.permute.xlu1 %77  }
  0x90   :  { %v570_v10 = vld [vmem:[#allocation2 + $0x128] sm:$0x1]  ;;  %382 = vst [vmem:[#allocation0 + $0x5] sm:$0x1] %v378_v9  ;;  %74 = vst.msk [vmem:[#allocation2 + $0x107] sm:$0x2] %vm5_vm6, %v69_v11  }
  0x91   :  { %574 = vst [vmem:[#allocation0 + $0x25] sm:$0x1] %v570_v10  ;;  %v516_v12 = vld [vmem:[#allocation2 + $0xe0] sm:$0x1]  ;;  %81 = vst.msk [vmem:[#allocation2 + $0xc0] sm:$0x1] %vm5_vm6, %v78_v13   ;;  %v86_v16 = vpop.permute.xlu0 %85  }
  0x92   :  { %520 = vst [vmem:[#allocation0 + $0x1c] sm:$0x1] %v516_v12  ;;  %v462_v14 = vld [vmem:[#allocation2 + $0x98] sm:$0x1]  ;;  %89 = vst.msk [vmem:[#allocation2 + $0x78] sm:$0x1] %vm5_vm6, %v86_v16  }
  0x93   :  { %v654_v15 = vld [vmem:[#allocation2 + $0x198] sm:$0x1]  ;;  %466 = vst [vmem:[#allocation0 + $0x13] sm:$0x1] %v462_v14  ;;  %91 = vst.msk [vmem:[#allocation2 + $0x177] sm:$0x2] %vm5_vm6, %v86_v16   ;;  %v96_v19 = vpop.permute.xlu1 %95  }
  0x94   :  { %658 = vst [vmem:[#allocation0 + $0x33] sm:$0x1] %v654_v15  ;;  %v408_v17 = vld [vmem:[#allocation2 + $0x50] sm:$0x1]  ;;  %99 = vst.msk [vmem:[#allocation2 + $0x30] sm:$0x1] %vm5_vm6, %v96_v19  }
  0x95   :  { %v600_v18 = vld [vmem:[#allocation2 + $0x150] sm:$0x1]  ;;  %412 = vst [vmem:[#allocation0 + $0xa] sm:$0x1] %v408_v17  ;;  %101 = vst.msk [vmem:[#allocation2 + $0x12f] sm:$0x2] %vm5_vm6, %v96_v19   ;;  %v105_v22 = vpop.permute.xlu0 %104  }
  0x96   :  { %604 = vst [vmem:[#allocation0 + $0x2a] sm:$0x1] %v600_v18  ;;  %v355_v20 = vld [vmem:[#allocation2 + $0x8] sm:$0x1]  ;;  %108 = vst.msk [vmem:[#allocation2 + $0xe8] sm:$0x1] %vm5_vm6, %v105_v22  }
  0x97   :  { %v546_v21 = vld [vmem:[#allocation2 + $0x108] sm:$0x1]  ;;  %358 = vst [vmem:[#allocation0 + $0x1] sm:$0x1] %v355_v20  ;;  %v113_v24 = vpop.permute.xlu1 %112  }
  0x98   :  { %550 = vst [vmem:[#allocation0 + $0x21] sm:$0x1] %v546_v21  ;;  %v492_v23 = vld [vmem:[#allocation2 + $0xc0] sm:$0x1]  ;;  %116 = vst.msk [vmem:[#allocation2 + $0xa0] sm:$0x1] %vm5_vm6, %v113_v24  }
  0x99   :  { %496 = vst [vmem:[#allocation0 + $0x18] sm:$0x1] %v492_v23  ;;  %118 = vst.msk [vmem:[#allocation2 + $0x19f] sm:$0x2] %vm5_vm6, %v113_v24   ;;  %v438_v25 = vld [vmem:[#allocation2 + $0x78] sm:$0x1]  ;;  %v123_v27 = vpop.permute.xlu0 %122  }
  0x9a   :  { %v630_v26 = vld [vmem:[#allocation2 + $0x178] sm:$0x1]  ;;  %442 = vst [vmem:[#allocation0 + $0xf] sm:$0x1] %v438_v25  ;;  %126 = vst.msk [vmem:[#allocation2 + $0x58] sm:$0x1] %vm5_vm6, %v123_v27  }
  0x9b   :  { %634 = vst [vmem:[#allocation0 + $0x2f] sm:$0x1] %v630_v26  ;;  %128 = vst.msk [vmem:[#allocation2 + $0x157] sm:$0x2] %vm5_vm6, %v123_v27   ;;  %v384_v28 = vld [vmem:[#allocation2 + $0x30] sm:$0x1]  ;;  %v132_v30 = vpop.permute.xlu1 %131  }
  0x9c   :  { %v576_v29 = vld [vmem:[#allocation2 + $0x130] sm:$0x1]  ;;  %388 = vst [vmem:[#allocation0 + $0x6] sm:$0x1] %v384_v28  ;;  %135 = vst.msk [vmem:[#allocation2 + $0x10] sm:$0x1] %vm5_vm6, %v132_v30  }
  0x9d   :  { %580 = vst [vmem:[#allocation0 + $0x26] sm:$0x1] %v576_v29  ;;  %137 = vst.msk [vmem:[#allocation2 + $0x10f] sm:$0x2] %vm5_vm6, %v132_v30   ;;  %v522_v31 = vld [vmem:[#allocation2 + $0xe8] sm:$0x1]  ;;  %v141_v32 = vpop.permute.xlu0 %140  }
  0x9e   :  { %526 = vst [vmem:[#allocation0 + $0x1d] sm:$0x1] %v522_v31  ;;  %144 = vst.msk [vmem:[#allocation2 + $0xc8] sm:$0x1] %vm5_vm6, %v141_v32  }
  0x9f   :  { %v468_v33 = vld [vmem:[#allocation2 + $0xa0] sm:$0x1]  ;;  %v149_v35 = vpop.permute.xlu1 %148  }
  0xa0   :  { %v660_v34 = vld [vmem:[#allocation2 + $0x1a0] sm:$0x1]  ;;  %472 = vst [vmem:[#allocation0 + $0x14] sm:$0x1] %v468_v33  ;;  %152 = vst.msk [vmem:[#allocation2 + $0x80] sm:$0x1] %vm5_vm6, %v149_v35  }
  0xa1   :  { %664 = vst [vmem:[#allocation0 + $0x34] sm:$0x1] %v660_v34  ;;  %154 = vst.msk [vmem:[#allocation2 + $0x17f] sm:$0x2] %vm5_vm6, %v149_v35   ;;  %v414_v36 = vld [vmem:[#allocation2 + $0x58] sm:$0x1]  ;;  %v159_v38 = vpop.permute.xlu0 %158  }
  0xa2   :  { %v606_v37 = vld [vmem:[#allocation2 + $0x158] sm:$0x1]  ;;  %418 = vst [vmem:[#allocation0 + $0xb] sm:$0x1] %v414_v36  ;;  %162 = vst.msk [vmem:[#allocation2 + $0x38] sm:$0x1] %vm5_vm6, %v159_v38  }
  0xa3   :  { %610 = vst [vmem:[#allocation0 + $0x2b] sm:$0x1] %v606_v37  ;;  %164 = vst.msk [vmem:[#allocation2 + $0x137] sm:$0x2] %vm5_vm6, %v159_v38   ;;  %v360_v39 = vld [vmem:[#allocation2 + $0x10] sm:$0x1]  ;;  %v168_v41 = vpop.permute.xlu1 %167  }
  0xa4   :  { %v552_v40 = vld [vmem:[#allocation2 + $0x110] sm:$0x1]  ;;  %364 = vst [vmem:[#allocation0 + $0x2] sm:$0x1] %v360_v39  ;;  %171 = vst.msk [vmem:[#allocation2 + $0xf0] sm:$0x1] %vm5_vm6, %v168_v41  }
  0xa5   :  { %556 = vst [vmem:[#allocation0 + $0x22] sm:$0x1] %v552_v40  ;;  %v498_v42 = vld [vmem:[#allocation2 + $0xc8] sm:$0x1]  ;;  %v176_v43 = vpop.permute.xlu0 %175  }
  0xa6   :  { %502 = vst [vmem:[#allocation0 + $0x19] sm:$0x1] %v498_v42  ;;  %179 = vst.msk [vmem:[#allocation2 + $0xa8] sm:$0x1] %vm5_vm6, %v176_v43  }
  0xa7   :  { %181 = vst.msk [vmem:[#allocation2 + $0x1a7] sm:$0x2] %vm5_vm6, %v176_v43   ;;  %v444_v44 = vld [vmem:[#allocation2 + $0x80] sm:$0x1]  ;;  %v186_v46 = vpop.permute.xlu1 %185  }
  0xa8   :  { %v636_v45 = vld [vmem:[#allocation2 + $0x180] sm:$0x1]  ;;  %448 = vst [vmem:[#allocation0 + $0x10] sm:$0x1] %v444_v44  ;;  %189 = vst.msk [vmem:[#allocation2 + $0x60] sm:$0x1] %vm5_vm6, %v186_v46  }
  0xa9   :  { %640 = vst [vmem:[#allocation0 + $0x30] sm:$0x1] %v636_v45  ;;  %191 = vst.msk [vmem:[#allocation2 + $0x15f] sm:$0x2] %vm5_vm6, %v186_v46   ;;  %v390_v47 = vld [vmem:[#allocation2 + $0x38] sm:$0x1]  ;;  %v195_v49 = vpop.permute.xlu0 %194  }
  0xaa   :  { %v582_v48 = vld [vmem:[#allocation2 + $0x138] sm:$0x1]  ;;  %394 = vst [vmem:[#allocation0 + $0x7] sm:$0x1] %v390_v47  ;;  %198 = vst.msk [vmem:[#allocation2 + $0x18] sm:$0x1] %vm5_vm6, %v195_v49  }
  0xab   :  { %586 = vst [vmem:[#allocation0 + $0x27] sm:$0x1] %v582_v48  ;;  %200 = vst.msk [vmem:[#allocation2 + $0x117] sm:$0x2] %vm5_vm6, %v195_v49   ;;  %v528_v50 = vld [vmem:[#allocation2 + $0xf0] sm:$0x1]  ;;  %v204_v51 = vpop.permute.xlu1 %203  }
  0xac   :  { %532 = vst [vmem:[#allocation0 + $0x1e] sm:$0x1] %v528_v50  ;;  %207 = vst.msk [vmem:[#allocation2 + $0xd0] sm:$0x1] %vm5_vm6, %v204_v51  }
  0xad   :  { %v474_v52 = vld [vmem:[#allocation2 + $0xa8] sm:$0x1]  ;;  %v212_v54 = vpop.permute.xlu0 %211  }
  0xae   :  { %v666_v53 = vld [vmem:[#allocation2 + $0x1a8] sm:$0x1]  ;;  %478 = vst [vmem:[#allocation0 + $0x15] sm:$0x1] %v474_v52  ;;  %215 = vst.msk [vmem:[#allocation2 + $0x88] sm:$0x1] %vm5_vm6, %v212_v54  }
  0xaf   :  { %670 = vst [vmem:[#allocation0 + $0x35] sm:$0x1] %v666_v53  ;;  %217 = vst.msk [vmem:[#allocation2 + $0x187] sm:$0x2] %vm5_vm6, %v212_v54   ;;  %v420_v55 = vld [vmem:[#allocation2 + $0x60] sm:$0x1]  ;;  %v222_v57 = vpop.permute.xlu1 %221  }
  0xb0   :  { %v612_v56 = vld [vmem:[#allocation2 + $0x160] sm:$0x1]  ;;  %424 = vst [vmem:[#allocation0 + $0xc] sm:$0x1] %v420_v55  ;;  %225 = vst.msk [vmem:[#allocation2 + $0x40] sm:$0x1] %vm5_vm6, %v222_v57  }
  0xb1   :  { %616 = vst [vmem:[#allocation0 + $0x2c] sm:$0x1] %v612_v56  ;;  %227 = vst.msk [vmem:[#allocation2 + $0x13f] sm:$0x2] %vm5_vm6, %v222_v57   ;;  %v366_v58 = vld [vmem:[#allocation2 + $0x18] sm:$0x1]  ;;  %v231_v60 = vpop.permute.xlu0 %230  }
  0xb2   :  { %v558_v59 = vld [vmem:[#allocation2 + $0x118] sm:$0x1]  ;;  %370 = vst [vmem:[#allocation0 + $0x3] sm:$0x1] %v366_v58  ;;  %234 = vst.msk [vmem:[#allocation2 + $0xf8] sm:$0x1] %vm5_vm6, %v231_v60  }
  0xb3   :  { %562 = vst [vmem:[#allocation0 + $0x23] sm:$0x1] %v558_v59  ;;  %v504_v61 = vld [vmem:[#allocation2 + $0xd0] sm:$0x1] }
  0xb4   :  { %508 = vst [vmem:[#allocation0 + $0x1a] sm:$0x1] %v504_v61 }
  0xb5   :  { %v450_v62 = vld [vmem:[#allocation2 + $0x88] sm:$0x1] }
  0xb6   :  { %v642_v63 = vld [vmem:[#allocation2 + $0x188] sm:$0x1]  ;;  %454 = vst [vmem:[#allocation0 + $0x11] sm:$0x1] %v450_v62 }
  0xb7   :  { %646 = vst [vmem:[#allocation0 + $0x31] sm:$0x1] %v642_v63  ;;  %v396_v0 = vld [vmem:[#allocation2 + $0x40] sm:$0x1] }
  0xb8   :  { %v588_v1 = vld [vmem:[#allocation2 + $0x140] sm:$0x1]  ;;  %400 = vst [vmem:[#allocation0 + $0x8] sm:$0x1] %v396_v0 }
  0xb9   :  { %592 = vst [vmem:[#allocation0 + $0x28] sm:$0x1] %v588_v1  ;;  %v534_v2 = vld [vmem:[#allocation2 + $0xf8] sm:$0x1] }
  0xba   :  { %538 = vst [vmem:[#allocation0 + $0x1f] sm:$0x1] %v534_v2 }
  0xbb   :  { %823 = shalt.err (!%p820_p4)
}
  0xbc   :  { %s824_s30 = scalar_lea.hbm %s1053_s1, 896 }
  0xbd   :  { %p825_p5 = scmp.ne.s32.totalorder %s1053_s1, %s824_s30  ;;  %p828_p6 = scmp.lt.u32.totalorder %s824_s30, %s1053_s1 }
  0xbf   :  { %p830_p7 = pnand %p828_p6, %p825_p5 }
  0xc1   :  { %833 = shalt.err (!%p830_p7)
}
  0xc2   :  { %690 = dma.vmem_to_hbm [thread:$0]  %s688_s26, 896, %s1053_s1, [#allocation1]  }
  0xc3   :  { %834 = dma.done.wait [#allocation1], 896  }
  0xc4   :  { %835 = vsyncadd [#allocation1], 4294966400 }
  0xc5   :  { %692 = vsyncpa [#allocation1], 1 }

// kernel: generator_forward.13
= control target key start
LH: loop header
LB: loop body
LE: loop exit
PB: predicated region body
PF: predicated region fallthrough
CT: control target
= control target key end

     0   :  { %s1280_s9 = smov 0   ;;  %s1282_s10 = smov 0   ;;  %s1554_s0 = inlined_call_operand.vmem [shape: bf16[16,512], index: 0, kind: input, shape index: {}]   ;;  %s1555_s1 = inlined_call_operand.vmem [shape: bf16[512,1792], index: 1, kind: input, shape index: {}]   ;;  %s1556_s2 = inlined_call_operand.vmem [shape: f32[16,1792], index: 2, kind: output, shape index: {}]  }
   0x1   :  { %s1284_s11 = smov 0  }
   0x2 LB: > { %s1018_s12 = sadd.s32 4294967295, %s1263_s11   ;;  %s1297_s13 = sadd.s32 1, %s1263_s11   ;;  %s1263_s11 = sphi %s1284_s11, %s1560_s11   ;;  %s1259_s10 = sphi %s1282_s10, %s1559_s10   ;;  %s1255_s9 = sphi %s1280_s9, %s1558_s9  }
   0x3   : > { %s37_s14 = ssub.s32 %s1263_s11, %s1297_s13  ;;  %s40_s15 = sadd.s32 1, %s1259_s10 }
   0x4   : > { %p38_p0 = scmp.eq.s32.totalorder %s37_s14, 0  ;;  %p47_p1 = scmp.ne.s32.totalorder %s1259_s10, %s1255_s9 }
   0x5   : > { %p48_p2 = scmp.eq.s32.totalorder %s1263_s11, 0  ;;  %p77_p3 = scmp.eq.s32.totalorder %s1018_s12, 6 }
   0x6   : > { %s1308_s16 = scalar_select %p38_p0, %s1259_s10, %s40_s15  }
   0x7   : > { %p49_p4 = por %p48_p2, %p47_p1  ;;  %p1310_p5 = por %p77_p3, %p47_p1 }
   0x8   : > { %p1021_p6 = scmp.ge.s32.totalorder %s1263_s11, 7 }
   0xa   : > { %102 = sbr.rel (%p1021_p6) target bundleno = 53 (0x35), region = 20 }
  0x11   : > { %105 = sbr.rel (!%p49_p4) target bundleno = 53 (0x35), region = 24  ;;  %s107_s18 = sand.u32 (%p49_p4), 1, %s1259_s10  }
  0x12   : > { %s1101_s19 = sshll.u32 (%p49_p4), %s1263_s11, 3  ;;  %s1022_s20 = sshll.u32 (%p49_p4), %s107_s18, 9 }
  0x13   : > { %s1320_s23 = scalar_lea.vmem (%p49_p4), %s1555_s1, %s1101_s19  ;;  %s1325_s24 = scalar_lea.vmem (%p49_p4), [#allocation2], %s1022_s20 }
  0x14   : > { %v266_v0 = vld [vmem:[%s1320_s23] sm:$0xff] (%p49_p4)  ;;  %v268_v1 = vld [vmem:[%s1320_s23 + $0x38] sm:$0xff] (%p49_p4)  ;;  %v270_v2 = vld [vmem:[%s1320_s23 + $0x70] sm:$0xff] (%p49_p4) }
  0x15   : > { %267 = vst [vmem:[%s1325_s24] sm:$0xff] (%p49_p4), %v266_v0  ;;  %269 = vst [vmem:[%s1325_s24 + $0x8] sm:$0xff] (%p49_p4), %v268_v1  ;;  %v272_v3 = vld [vmem:[%s1320_s23 + $0xa8] sm:$0xff] (%p49_p4)  ;;  %v274_v4 = vld [vmem:[%s1320_s23 + $0xe0] sm:$0xff] (%p49_p4) }
  0x16   : > { %271 = vst [vmem:[%s1325_s24 + $0x10] sm:$0xff] (%p49_p4), %v270_v2  ;;  %v276_v5 = vld [vmem:[%s1320_s23 + $0x118] sm:$0xff] (%p49_p4)  ;;  %273 = vst [vmem:[%s1325_s24 + $0x18] sm:$0xff] (%p49_p4), %v272_v3  ;;  %v278_v6 = vld [vmem:[%s1320_s23 + $0x150] sm:$0xff] (%p49_p4) }
  0x17   : > { %275 = vst [vmem:[%s1325_s24 + $0x20] sm:$0xff] (%p49_p4), %v274_v4  ;;  %277 = vst [vmem:[%s1325_s24 + $0x28] sm:$0xff] (%p49_p4), %v276_v5  ;;  %v280_v7 = vld [vmem:[%s1320_s23 + $0x188] sm:$0xff] (%p49_p4)  ;;  %v282_v8 = vld [vmem:[%s1320_s23 + $0x1c0] sm:$0xff] (%p49_p4) }
  0x18   : > { %279 = vst [vmem:[%s1325_s24 + $0x30] sm:$0xff] %v278_v6  ;;  %281 = vst [vmem:[%s1325_s24 + $0x38] sm:$0xff] %v280_v7  ;;  %v284_v9 = vld [vmem:[%s1320_s23 + $0x1f8] sm:$0xff]  ;;  %v286_v10 = vld [vmem:[%s1320_s23 + $0x230] sm:$0xff] }
  0x19   : > { %283 = vst [vmem:[%s1325_s24 + $0x40] sm:$0xff] %v282_v8  ;;  %v288_v11 = vld [vmem:[%s1320_s23 + $0x268] sm:$0xff]  ;;  %285 = vst [vmem:[%s1325_s24 + $0x48] sm:$0xff] %v284_v9  ;;  %v290_v12 = vld [vmem:[%s1320_s23 + $0x2a0] sm:$0xff] }
  0x1a   : > { %287 = vst [vmem:[%s1325_s24 + $0x50] sm:$0xff] %v286_v10  ;;  %289 = vst [vmem:[%s1325_s24 + $0x58] sm:$0xff] %v288_v11  ;;  %v292_v13 = vld [vmem:[%s1320_s23 + $0x2d8] sm:$0xff]  ;;  %v294_v14 = vld [vmem:[%s1320_s23 + $0x310] sm:$0xff] }
  0x1b   : > { %291 = vst [vmem:[%s1325_s24 + $0x60] sm:$0xff] %v290_v12  ;;  %293 = vst [vmem:[%s1325_s24 + $0x68] sm:$0xff] %v292_v13  ;;  %v296_v15 = vld [vmem:[%s1320_s23 + $0x348] sm:$0xff]  ;;  %v298_v16 = vld [vmem:[%s1320_s23 + $0x380] sm:$0xff] }
  0x1c   : > { %295 = vst [vmem:[%s1325_s24 + $0x70] sm:$0xff] %v294_v14  ;;  %v300_v17 = vld [vmem:[%s1320_s23 + $0x3b8] sm:$0xff]  ;;  %297 = vst [vmem:[%s1325_s24 + $0x78] sm:$0xff] %v296_v15  ;;  %v302_v18 = vld [vmem:[%s1320_s23 + $0x3f0] sm:$0xff] }
  0x1d   : > { %299 = vst [vmem:[%s1325_s24 + $0x80] sm:$0xff] %v298_v16  ;;  %301 = vst [vmem:[%s1325_s24 + $0x88] sm:$0xff] %v300_v17  ;;  %v304_v19 = vld [vmem:[%s1320_s23 + $0x428] sm:$0xff]  ;;  %v306_v20 = vld [vmem:[%s1320_s23 + $0x460] sm:$0xff] }
  0x1e   : > { %303 = vst [vmem:[%s1325_s24 + $0x90] sm:$0xff] %v302_v18  ;;  %305 = vst [vmem:[%s1325_s24 + $0x98] sm:$0xff] %v304_v19  ;;  %v308_v21 = vld [vmem:[%s1320_s23 + $0x498] sm:$0xff]  ;;  %v310_v22 = vld [vmem:[%s1320_s23 + $0x4d0] sm:$0xff] }
  0x1f   : > { %307 = vst [vmem:[%s1325_s24 + $0xa0] sm:$0xff] %v306_v20  ;;  %v312_v23 = vld [vmem:[%s1320_s23 + $0x508] sm:$0xff]  ;;  %309 = vst [vmem:[%s1325_s24 + $0xa8] sm:$0xff] %v308_v21  ;;  %v314_v24 = vld [vmem:[%s1320_s23 + $0x540] sm:$0xff] }
  0x20   : > { %311 = vst [vmem:[%s1325_s24 + $0xb0] sm:$0xff] %v310_v22  ;;  %313 = vst [vmem:[%s1325_s24 + $0xb8] sm:$0xff] %v312_v23  ;;  %v316_v25 = vld [vmem:[%s1320_s23 + $0x578] sm:$0xff]  ;;  %v318_v26 = vld [vmem:[%s1320_s23 + $0x5b0] sm:$0xff] }
  0x21   : > { %315 = vst [vmem:[%s1325_s24 + $0xc0] sm:$0xff] %v314_v24  ;;  %317 = vst [vmem:[%s1325_s24 + $0xc8] sm:$0xff] %v316_v25  ;;  %v320_v27 = vld [vmem:[%s1320_s23 + $0x5e8] sm:$0xff]  ;;  %v322_v28 = vld [vmem:[%s1320_s23 + $0x620] sm:$0xff] }
  0x22   : > { %319 = vst [vmem:[%s1325_s24 + $0xd0] sm:$0xff] %v318_v26  ;;  %v324_v29 = vld [vmem:[%s1320_s23 + $0x658] sm:$0xff]  ;;  %321 = vst [vmem:[%s1325_s24 + $0xd8] sm:$0xff] %v320_v27  ;;  %v326_v30 = vld [vmem:[%s1320_s23 + $0x690] sm:$0xff] }
  0x23   : > { %323 = vst [vmem:[%s1325_s24 + $0xe0] sm:$0xff] %v322_v28  ;;  %325 = vst [vmem:[%s1325_s24 + $0xe8] sm:$0xff] %v324_v29  ;;  %v328_v31 = vld [vmem:[%s1320_s23 + $0x6c8] sm:$0xff]  ;;  %v330_v32 = vld [vmem:[%s1320_s23 + $0x700] sm:$0xff] }
  0x24   : > { %327 = vst [vmem:[%s1325_s24 + $0xf0] sm:$0xff] %v326_v30  ;;  %329 = vst [vmem:[%s1325_s24 + $0xf8] sm:$0xff] %v328_v31  ;;  %v332_v33 = vld [vmem:[%s1320_s23 + $0x738] sm:$0xff]  ;;  %v334_v34 = vld [vmem:[%s1320_s23 + $0x770] sm:$0xff] }
  0x25   : > { %331 = vst [vmem:[%s1325_s24 + $0x100] sm:$0xff] %v330_v32  ;;  %v336_v35 = vld [vmem:[%s1320_s23 + $0x7a8] sm:$0xff]  ;;  %333 = vst [vmem:[%s1325_s24 + $0x108] sm:$0xff] %v332_v33  ;;  %v338_v36 = vld [vmem:[%s1320_s23 + $0x7e0] sm:$0xff] }
  0x26   : > { %335 = vst [vmem:[%s1325_s24 + $0x110] sm:$0xff] %v334_v34  ;;  %337 = vst [vmem:[%s1325_s24 + $0x118] sm:$0xff] %v336_v35  ;;  %v340_v37 = vld [vmem:[%s1320_s23 + $0x818] sm:$0xff]  ;;  %v342_v38 = vld [vmem:[%s1320_s23 + $0x850] sm:$0xff] }
  0x27   : > { %339 = vst [vmem:[%s1325_s24 + $0x120] sm:$0xff] %v338_v36  ;;  %341 = vst [vmem:[%s1325_s24 + $0x128] sm:$0xff] %v340_v37  ;;  %v344_v39 = vld [vmem:[%s1320_s23 + $0x888] sm:$0xff]  ;;  %v346_v40 = vld [vmem:[%s1320_s23 + $0x8c0] sm:$0xff] }
  0x28   : > { %343 = vst [vmem:[%s1325_s24 + $0x130] sm:$0xff] %v342_v38  ;;  %v348_v41 = vld [vmem:[%s1320_s23 + $0x8f8] sm:$0xff]  ;;  %345 = vst [vmem:[%s1325_s24 + $0x138] sm:$0xff] %v344_v39  ;;  %v350_v42 = vld [vmem:[%s1320_s23 + $0x930] sm:$0xff] }
  0x29   : > { %347 = vst [vmem:[%s1325_s24 + $0x140] sm:$0xff] %v346_v40  ;;  %349 = vst [vmem:[%s1325_s24 + $0x148] sm:$0xff] %v348_v41  ;;  %v352_v43 = vld [vmem:[%s1320_s23 + $0x968] sm:$0xff]  ;;  %v354_v44 = vld [vmem:[%s1320_s23 + $0x9a0] sm:$0xff] }
  0x2a   : > { %351 = vst [vmem:[%s1325_s24 + $0x150] sm:$0xff] %v350_v42  ;;  %353 = vst [vmem:[%s1325_s24 + $0x158] sm:$0xff] %v352_v43  ;;  %v356_v45 = vld [vmem:[%s1320_s23 + $0x9d8] sm:$0xff]  ;;  %v358_v46 = vld [vmem:[%s1320_s23 + $0xa10] sm:$0xff] }
  0x2b   : > { %355 = vst [vmem:[%s1325_s24 + $0x160] sm:$0xff] %v354_v44  ;;  %v360_v47 = vld [vmem:[%s1320_s23 + $0xa48] sm:$0xff]  ;;  %357 = vst [vmem:[%s1325_s24 + $0x168] sm:$0xff] %v356_v45  ;;  %v362_v48 = vld [vmem:[%s1320_s23 + $0xa80] sm:$0xff] }
  0x2c   : > { %359 = vst [vmem:[%s1325_s24 + $0x170] sm:$0xff] %v358_v46  ;;  %361 = vst [vmem:[%s1325_s24 + $0x178] sm:$0xff] %v360_v47  ;;  %v364_v49 = vld [vmem:[%s1320_s23 + $0xab8] sm:$0xff]  ;;  %v366_v50 = vld [vmem:[%s1320_s23 + $0xaf0] sm:$0xff] }
  0x2d   : > { %363 = vst [vmem:[%s1325_s24 + $0x180] sm:$0xff] %v362_v48  ;;  %365 = vst [vmem:[%s1325_s24 + $0x188] sm:$0xff] %v364_v49  ;;  %v368_v51 = vld [vmem:[%s1320_s23 + $0xb28] sm:$0xff]  ;;  %v370_v52 = vld [vmem:[%s1320_s23 + $0xb60] sm:$0xff] }
  0x2e   : > { %367 = vst [vmem:[%s1325_s24 + $0x190] sm:$0xff] %v366_v50  ;;  %v372_v53 = vld [vmem:[%s1320_s23 + $0xb98] sm:$0xff]  ;;  %369 = vst [vmem:[%s1325_s24 + $0x198] sm:$0xff] %v368_v51  ;;  %v374_v54 = vld [vmem:[%s1320_s23 + $0xbd0] sm:$0xff] }
  0x2f   : > { %371 = vst [vmem:[%s1325_s24 + $0x1a0] sm:$0xff] %v370_v52  ;;  %373 = vst [vmem:[%s1325_s24 + $0x1a8] sm:$0xff] %v372_v53  ;;  %v376_v55 = vld [vmem:[%s1320_s23 + $0xc08] sm:$0xff]  ;;  %v378_v56 = vld [vmem:[%s1320_s23 + $0xc40] sm:$0xff] }
  0x30   : > { %375 = vst [vmem:[%s1325_s24 + $0x1b0] sm:$0xff] %v374_v54  ;;  %377 = vst [vmem:[%s1325_s24 + $0x1b8] sm:$0xff] %v376_v55  ;;  %v380_v57 = vld [vmem:[%s1320_s23 + $0xc78] sm:$0xff]  ;;  %v382_v58 = vld [vmem:[%s1320_s23 + $0xcb0] sm:$0xff] }
  0x31   : > { %379 = vst [vmem:[%s1325_s24 + $0x1c0] sm:$0xff] %v378_v56  ;;  %v384_v59 = vld [vmem:[%s1320_s23 + $0xce8] sm:$0xff]  ;;  %381 = vst [vmem:[%s1325_s24 + $0x1c8] sm:$0xff] %v380_v57  ;;  %v386_v60 = vld [vmem:[%s1320_s23 + $0xd20] sm:$0xff] }
  0x32   : > { %383 = vst [vmem:[%s1325_s24 + $0x1d0] sm:$0xff] %v382_v58  ;;  %385 = vst [vmem:[%s1325_s24 + $0x1d8] sm:$0xff] %v384_v59  ;;  %v388_v61 = vld [vmem:[%s1320_s23 + $0xd58] sm:$0xff]  ;;  %v390_v62 = vld [vmem:[%s1320_s23 + $0xd90] sm:$0xff] }
  0x33   : > { %387 = vst [vmem:[%s1325_s24 + $0x1e0] sm:$0xff] %v386_v60  ;;  %389 = vst [vmem:[%s1325_s24 + $0x1e8] sm:$0xff] %v388_v61  ;;  %v392_v63 = vld [vmem:[%s1320_s23 + $0xdc8] sm:$0xff] }
  0x34   : > { %391 = vst [vmem:[%s1325_s24 + $0x1f0] sm:$0xff] %v390_v62  ;;  %393 = vst [vmem:[%s1325_s24 + $0x1f8] sm:$0xff] %v392_v63 }
  0x35 PF: > { %p1025_p7 = scmp.ge.s32.totalorder %s1263_s11, 1  ;;  %p398_p8 = scmp.lt.s32.totalorder %s1263_s11, 8 }
  0x37   : > { %p399_p9 = pnand %p1025_p7, %p398_p8 }
  0x38   : > { %s405_s25 = sand.u32 (!%p399_p9), 1, %s1255_s9   ;;  %v1229_v0 = vld [vmem:[%s1554_s0 + $0x4] ss:$16 sps:$4 sm:$0xff] (!%p399_p9)   ;;  %v1232_v1 = vld [vmem:[%s1554_s0 + $0xc] ss:$16 sps:$4 sm:$0xff] (!%p399_p9)  }
  0x39   : > { %402 = sbr.rel (%p399_p9) target bundleno = 362 (0x16a), region = 62  ;;  %s1026_s26 = sshll.u32 (!%p399_p9), %s405_s25, 9  ;;  %867 = vmatprep.mubr.bf16.mxu1 (!%p399_p9), %v1229_v0  ;;  %910 = vmatprep.mubr.bf16.mxu0 (!%p399_p9), %v1232_v1 }
  0x3a   : > { %s1463_s3 = scalar_lea.vmem (!%p399_p9), [#allocation2], %s1026_s26  ;;  %s1027_s8 = sshll.u32 (!%p399_p9), %s405_s25, 5 }
  0x3b   : > { %v1131_v2 = vld [vmem:[%s1463_s3 + $0x4] ss:$8 sps:$4 sm:$0xff] (!%p399_p9)   ;;  %v1135_v4 = vld [vmem:[%s1463_s3] ss:$8 sps:$4 sm:$0xff] (!%p399_p9)   ;;  %v1137_v6 = vld [vmem:[%s1463_s3 + $0x14] ss:$8 sps:$4 sm:$0xff] (!%p399_p9)  }
  0x3c   : > { %v1133_v3 = vld [vmem:[%s1463_s3 + $0x104] ss:$8 sps:$4 sm:$0xff] (!%p399_p9)   ;;  %835 = vmatprep.subr.bf16.mxu1 (!%p399_p9), %v1131_v2  ;;  %v1136_v5 = vld [vmem:[%s1463_s3 + $0x100] ss:$8 sps:$4 sm:$0xff] (!%p399_p9)   ;;  %v1139_v7 = vld [vmem:[%s1463_s3 + $0x114] ss:$8 sps:$4 sm:$0xff] (!%p399_p9)  }
  0x3d   : > { %878 = vmatprep.subr.bf16.mxu0 (!%p399_p9), %v1133_v3  ;;  %836 = vmatpush1.bf16.msra.mxu1 (!%p399_p9), %v1135_v4  ;;  %v1141_v8 = vld [vmem:[%s1463_s3 + $0x10] ss:$8 sps:$4 sm:$0xff] (!%p399_p9)   ;;  %v1143_v10 = vld [vmem:[%s1463_s3 + $0x24] ss:$8 sps:$4 sm:$0xff] (!%p399_p9)   ;;  %v1147_v12 = vld [vmem:[%s1463_s3 + $0x20] ss:$8 sps:$4 sm:$0xff] (!%p399_p9)  }
  0x3e   : > { %879 = vmatpush1.bf16.msra.mxu0 (!%p399_p9), %v1136_v5  ;;  %837 = vmatprep.subr.bf16.mxu1 (!%p399_p9), %v1137_v6  ;;  %v1142_v9 = vld [vmem:[%s1463_s3 + $0x110] ss:$8 sps:$4 sm:$0xff] (!%p399_p9)   ;;  %v1145_v11 = vld [vmem:[%s1463_s3 + $0x124] ss:$8 sps:$4 sm:$0xff] (!%p399_p9)   ;;  %v1148_v13 = vld [vmem:[%s1463_s3 + $0x120] ss:$8 sps:$4 sm:$0xff] (!%p399_p9)  }
  0x3f   : > { %880 = vmatprep.subr.bf16.mxu0 (!%p399_p9), %v1139_v7  ;;  %v1149_v14 = vld [vmem:[%s1463_s3 + $0x34] ss:$8 sps:$4 sm:$0xff] (!%p399_p9)   ;;  %v1153_v16 = vld [vmem:[%s1463_s3 + $0x30] ss:$8 sps:$4 sm:$0xff] (!%p399_p9)   ;;  %v1155_v18 = vld [vmem:[%s1463_s3 + $0x44] ss:$8 sps:$4 sm:$0xff] (!%p399_p9)  }
  0x40   : > { %v1151_v15 = vld [vmem:[%s1463_s3 + $0x134] ss:$8 sps:$4 sm:$0xff]   ;;  %v1154_v17 = vld [vmem:[%s1463_s3 + $0x130] ss:$8 sps:$4 sm:$0xff]   ;;  %v1157_v19 = vld [vmem:[%s1463_s3 + $0x144] ss:$8 sps:$4 sm:$0xff]  }
  0x41   : > { %838 = vmatpush1.bf16.msra.mxu1 %v1141_v8  ;;  %v1159_v20 = vld [vmem:[%s1463_s3 + $0x40] ss:$8 sps:$4 sm:$0xff]   ;;  %v1161_v22 = vld [vmem:[%s1463_s3 + $0x54] ss:$8 sps:$4 sm:$0xff]   ;;  %v1165_v24 = vld [vmem:[%s1463_s3 + $0x50] ss:$8 sps:$4 sm:$0xff]  }
  0x42   : > { %881 = vmatpush1.bf16.msra.mxu0 %v1142_v9  ;;  %839 = vmatprep.subr.bf16.mxu1 %v1143_v10  ;;  %v1160_v21 = vld [vmem:[%s1463_s3 + $0x140] ss:$8 sps:$4 sm:$0xff]   ;;  %v1163_v23 = vld [vmem:[%s1463_s3 + $0x154] ss:$8 sps:$4 sm:$0xff]   ;;  %v1166_v25 = vld [vmem:[%s1463_s3 + $0x150] ss:$8 sps:$4 sm:$0xff]  }
  0x43   : > { %882 = vmatprep.subr.bf16.mxu0 %v1145_v11  ;;  %v1167_v26 = vld [vmem:[%s1463_s3 + $0x64] ss:$8 sps:$4 sm:$0xff]   ;;  %v1171_v28 = vld [vmem:[%s1463_s3 + $0x60] ss:$8 sps:$4 sm:$0xff]   ;;  %v1173_v30 = vld [vmem:[%s1463_s3 + $0x74] ss:$8 sps:$4 sm:$0xff]  }
  0x44   : > { %v1169_v27 = vld [vmem:[%s1463_s3 + $0x164] ss:$8 sps:$4 sm:$0xff]   ;;  %v1172_v29 = vld [vmem:[%s1463_s3 + $0x160] ss:$8 sps:$4 sm:$0xff]   ;;  %v1175_v31 = vld [vmem:[%s1463_s3 + $0x174] ss:$8 sps:$4 sm:$0xff]  }
  0x45   : > { %840 = vmatpush1.bf16.msra.mxu1 %v1147_v12  ;;  %v1177_v32 = vld [vmem:[%s1463_s3 + $0x70] ss:$8 sps:$4 sm:$0xff]   ;;  %v1179_v34 = vld [vmem:[%s1463_s3 + $0x84] ss:$8 sps:$4 sm:$0xff]   ;;  %v1183_v36 = vld [vmem:[%s1463_s3 + $0x80] ss:$8 sps:$4 sm:$0xff]  }
  0x46   : > { %883 = vmatpush1.bf16.msra.mxu0 %v1148_v13  ;;  %841 = vmatprep.subr.bf16.mxu1 %v1149_v14  ;;  %v1178_v33 = vld [vmem:[%s1463_s3 + $0x170] ss:$8 sps:$4 sm:$0xff]   ;;  %v1181_v35 = vld [vmem:[%s1463_s3 + $0x184] ss:$8 sps:$4 sm:$0xff]   ;;  %v1184_v37 = vld [vmem:[%s1463_s3 + $0x180] ss:$8 sps:$4 sm:$0xff]  }
  0x47   : > { %884 = vmatprep.subr.bf16.mxu0 %v1151_v15  ;;  %v1185_v38 = vld [vmem:[%s1463_s3 + $0x94] ss:$8 sps:$4 sm:$0xff]   ;;  %v1189_v40 = vld [vmem:[%s1463_s3 + $0x90] ss:$8 sps:$4 sm:$0xff]   ;;  %v1191_v42 = vld [vmem:[%s1463_s3 + $0xa4] ss:$8 sps:$4 sm:$0xff]  }
  0x48   : > { %v1187_v39 = vld [vmem:[%s1463_s3 + $0x194] ss:$8 sps:$4 sm:$0xff]   ;;  %v1190_v41 = vld [vmem:[%s1463_s3 + $0x190] ss:$8 sps:$4 sm:$0xff]   ;;  %v1193_v43 = vld [vmem:[%s1463_s3 + $0x1a4] ss:$8 sps:$4 sm:$0xff]  }
  0x49   : > { %842 = vmatpush1.bf16.msra.mxu1 %v1153_v16  ;;  %v1195_v44 = vld [vmem:[%s1463_s3 + $0xa0] ss:$8 sps:$4 sm:$0xff]   ;;  %v1197_v46 = vld [vmem:[%s1463_s3 + $0xb4] ss:$8 sps:$4 sm:$0xff]   ;;  %v1201_v48 = vld [vmem:[%s1463_s3 + $0xb0] ss:$8 sps:$4 sm:$0xff]  }
  0x4a   : > { %885 = vmatpush1.bf16.msra.mxu0 %v1154_v17  ;;  %843 = vmatprep.subr.bf16.mxu1 %v1155_v18  ;;  %v1196_v45 = vld [vmem:[%s1463_s3 + $0x1a0] ss:$8 sps:$4 sm:$0xff]   ;;  %v1199_v47 = vld [vmem:[%s1463_s3 + $0x1b4] ss:$8 sps:$4 sm:$0xff]   ;;  %v1202_v49 = vld [vmem:[%s1463_s3 + $0x1b0] ss:$8 sps:$4 sm:$0xff]  }
  0x4b   : > { %886 = vmatprep.subr.bf16.mxu0 %v1157_v19  ;;  %v1203_v50 = vld [vmem:[%s1463_s3 + $0xc4] ss:$8 sps:$4 sm:$0xff]   ;;  %v1207_v52 = vld [vmem:[%s1463_s3 + $0xc0] ss:$8 sps:$4 sm:$0xff]   ;;  %v1209_v54 = vld [vmem:[%s1463_s3 + $0xd4] ss:$8 sps:$4 sm:$0xff]  }
  0x4c   : > { %v1205_v51 = vld [vmem:[%s1463_s3 + $0x1c4] ss:$8 sps:$4 sm:$0xff]   ;;  %v1208_v53 = vld [vmem:[%s1463_s3 + $0x1c0] ss:$8 sps:$4 sm:$0xff]   ;;  %v1211_v55 = vld [vmem:[%s1463_s3 + $0x1d4] ss:$8 sps:$4 sm:$0xff]  }
  0x4d   : > { %844 = vmatpush1.bf16.msra.mxu1 %v1159_v20  ;;  %v1213_v56 = vld [vmem:[%s1463_s3 + $0xd0] ss:$8 sps:$4 sm:$0xff]   ;;  %v1215_v58 = vld [vmem:[%s1463_s3 + $0xe4] ss:$8 sps:$4 sm:$0xff]   ;;  %v1219_v60 = vld [vmem:[%s1463_s3 + $0xe0] ss:$8 sps:$4 sm:$0xff]  }
  0x4e   : > { %887 = vmatpush1.bf16.msra.mxu0 %v1160_v21  ;;  %845 = vmatprep.subr.bf16.mxu1 %v1161_v22  ;;  %v1214_v57 = vld [vmem:[%s1463_s3 + $0x1d0] ss:$8 sps:$4 sm:$0xff]   ;;  %v1217_v59 = vld [vmem:[%s1463_s3 + $0x1e4] ss:$8 sps:$4 sm:$0xff]   ;;  %v1220_v61 = vld [vmem:[%s1463_s3 + $0x1e0] ss:$8 sps:$4 sm:$0xff]  }
  0x4f   : > { %888 = vmatprep.subr.bf16.mxu0 %v1163_v23  ;;  %v1221_v62 = vld [vmem:[%s1463_s3 + $0xf4] ss:$8 sps:$4 sm:$0xff]   ;;  %v1225_v0 = vld [vmem:[%s1463_s3 + $0xf0] ss:$8 sps:$4 sm:$0xff]   ;;  %s424_s14 = scalar_lea.vmem [#allocation3], %s1027_s8  ;;  %s1102_s15 = sshll.u32 (%p1310_p5), %s1018_s12, 4 }
  0x50   : > { %v1223_v63 = vld [vmem:[%s1463_s3 + $0x1f4] ss:$8 sps:$4 sm:$0xff]   ;;  %v1226_v1 = vld [vmem:[%s1463_s3 + $0x1f0] ss:$8 sps:$4 sm:$0xff]   ;;  %s938_s19 = scalar_lea.vmem (%p1310_p5), %s1556_s2, %s1102_s15 }
  0x51   : > { %846 = vmatpush1.bf16.msra.mxu1 %v1165_v24  ;;  %v1227_v2 = vld [vmem:[%s1554_s0] ss:$16 sps:$4 sm:$0xff]   ;;  %v1230_v3 = vld [vmem:[%s1554_s0 + $0x8] ss:$16 sps:$4 sm:$0xff]  }
  0x52   : > { %889 = vmatpush1.bf16.msra.mxu0 %v1166_v25  ;;  %847 = vmatprep.subr.bf16.mxu1 %v1167_v26 }
  0x53   : > { %890 = vmatprep.subr.bf16.mxu0 %v1169_v27 }
  0x55   : > { %848 = vmatpush1.bf16.msra.mxu1 %v1171_v28 }
  0x56   : > { %891 = vmatpush1.bf16.msra.mxu0 %v1172_v29  ;;  %849 = vmatprep.subr.bf16.mxu1 %v1173_v30 }
  0x57   : > { %892 = vmatprep.subr.bf16.mxu0 %v1175_v31 }
  0x59   : > { %850 = vmatpush1.bf16.msra.mxu1 %v1177_v32 }
  0x5a   : > { %893 = vmatpush1.bf16.msra.mxu0 %v1178_v33  ;;  %851 = vmatprep.subr.bf16.mxu1 %v1179_v34 }
  0x5b   : > { %894 = vmatprep.subr.bf16.mxu0 %v1181_v35 }
  0x5d   : > { %852 = vmatpush1.bf16.msra.mxu1 %v1183_v36 }
  0x5e   : > { %895 = vmatpush1.bf16.msra.mxu0 %v1184_v37  ;;  %853 = vmatprep.subr.bf16.mxu1 %v1185_v38 }
  0x5f   : > { %896 = vmatprep.subr.bf16.mxu0 %v1187_v39 }
  0x61   : > { %854 = vmatpush1.bf16.msra.mxu1 %v1189_v40 }
  0x62   : > { %897 = vmatpush1.bf16.msra.mxu0 %v1190_v41  ;;  %855 = vmatprep.subr.bf16.mxu1 %v1191_v42 }
  0x63   : > { %898 = vmatprep.subr.bf16.mxu0 %v1193_v43 }
  0x65   : > { %856 = vmatpush1.bf16.msra.mxu1 %v1195_v44 }
  0x66   : > { %899 = vmatpush1.bf16.msra.mxu0 %v1196_v45  ;;  %857 = vmatprep.subr.bf16.mxu1 %v1197_v46 }
  0x67   : > { %900 = vmatprep.subr.bf16.mxu0 %v1199_v47 }
  0x69   : > { %858 = vmatpush1.bf16.msra.mxu1 %v1201_v48 }
  0x6a   : > { %901 = vmatpush1.bf16.msra.mxu0 %v1202_v49  ;;  %859 = vmatprep.subr.bf16.mxu1 %v1203_v50 }
  0x6b   : > { %902 = vmatprep.subr.bf16.mxu0 %v1205_v51 }
  0x6d   : > { %860 = vmatpush1.bf16.msra.mxu1 %v1207_v52 }
  0x6e   : > { %903 = vmatpush1.bf16.msra.mxu0 %v1208_v53  ;;  %861 = vmatprep.subr.bf16.mxu1 %v1209_v54 }
  0x6f   : > { %904 = vmatprep.subr.bf16.mxu0 %v1211_v55 }
  0x71   : > { %862 = vmatpush1.bf16.msra.mxu1 %v1213_v56 }
  0x72   : > { %905 = vmatpush1.bf16.msra.mxu0 %v1214_v57  ;;  %863 = vmatprep.subr.bf16.mxu1 %v1215_v58 }
  0x73   : > { %906 = vmatprep.subr.bf16.mxu0 %v1217_v59 }
  0x75   : > { %864 = vmatpush1.bf16.msra.mxu1 %v1219_v60 }
  0x76   : > { %907 = vmatpush1.bf16.msra.mxu0 %v1220_v61  ;;  %865 = vmatprep.subr.bf16.mxu1 %v1221_v62 }
  0x77   : > { %908 = vmatprep.subr.bf16.mxu0 %v1223_v63 }
  0x79   : > { %866 = vmatpush1.bf16.msra.mxu1 %v1225_v0 }
  0x7a   : > { %909 = vmatpush1.bf16.msra.mxu0 %v1226_v1 }
  0x7c   : > { %868 = vmatmul.mubr.bf16.vlgmr.msra.gmra.mrb[0].mxu1 %v1227_v2 }
  0x7d   : > { %911 = vmatmul.mubr.bf16.vlgmr.msra.gmra.mrb[0].mxu0 %v1230_v3 }
 0x14f   : > { %v869_v4 = vpop.f32.mrb[0].mxu1 }
 0x150   : > { %v912_v5 = vpop.f32.mrb[0].mxu0  ;;  %v871_v7 = vpop.f32.mrb[1].mxu1 }
 0x151   : > { %v913_v6 = vadd.f32 %v912_v5, %v869_v4  ;;  %v914_v8 = vpop.f32.mrb[1].mxu0  ;;  %v873_v10 = vpop.f32.mrb[2].mxu1 }
 0x152   : > { %v915_v9 = vadd.f32 %v914_v8, %v871_v7  ;;  %v916_v11 = vpop.f32.mrb[2].mxu0  ;;  %v875_v13 = vpop.f32.mrb[3].mxu1 }
 0x153   : > { %1233 = vtanh.f32 %v913_v6  ;;  %v917_v12 = vadd.f32 %v916_v11, %v873_v10  ;;  %v918_v14 = vpop.f32.mrb[3].mxu0 }
 0x154   : > { %1235 = vtanh.f32 %v915_v9  ;;  %v919_v15 = vadd.f32 %v918_v14, %v875_v13 }
 0x155   : > { %1237 = vtanh.f32 %v917_v12 }
 0x156   : > { %1239 = vtanh.f32 %v919_v15 }
 0x15b   : > { %935 = sbr.rel (!%p1310_p5) target bundleno = 362 (0x16a), region = 70 }
 0x15d   : > { %v1234_v16 = vpop.eup %1233 }
 0x15e   : > { %v1236_v17 = vpop.eup %1235  ;;  %925 = vst [vmem:[%s424_s14] sm:$0xff] %v1234_v16 }
 0x15f   : > { %v1238_v18 = vpop.eup %1237  ;;  %926 = vst [vmem:[%s424_s14 + $0x8] sm:$0xff] %v1236_v17 }
 0x160   : > { %v1240_v19 = vpop.eup %1239  ;;  %927 = vst [vmem:[%s424_s14 + $0x10] sm:$0xff] %v1238_v18 }
 0x161   : > { %928 = vst [vmem:[%s424_s14 + $0x18] sm:$0xff] %v1240_v19 }
 0x165   : > { %v951_v20 = vld [vmem:[%s424_s14] sm:$0xff] }
 0x166   : > { %v953_v21 = vld [vmem:[%s424_s14 + $0x8] sm:$0xff]  ;;  %952 = vst [vmem:[%s938_s19] sm:$0xff] %v951_v20 }
 0x167   : > { %v955_v22 = vld [vmem:[%s424_s14 + $0x10] sm:$0xff]  ;;  %954 = vst [vmem:[%s938_s19 + $0x8] sm:$0xff] %v953_v21 }
 0x168   : > { %v957_v23 = vld [vmem:[%s424_s14 + $0x18] sm:$0xff]  ;;  %956 = vst [vmem:[%s938_s19 + $0x70] sm:$0xff] %v955_v22 }
 0x169   : > { %958 = vst [vmem:[%s938_s19 + $0x78] sm:$0xff] %v957_v23 }
 0x16a PF: > { %p9_p10 = scmp.ge.s32.totalorder %s1297_s13, 9   ;;  %s1558_s9 = smov %s1259_s10 }
 0x16b   : > { %s1559_s10 = smov %s1308_s16  ;;  %s1560_s11 = smov %s1297_s13 }
 0x16c   :  { %11 = sbr.rel (!%p9_p10) target bundleno = 2 (0x2), region = 124 }

</bundles_post_ra>
